<compile_context>
chip_gen: v7x
topology: tpu7x:2x2x1
jax: 0.10.0
libtpu: 0.0.40
codegen_flags: <defaults>
</compile_context>

<pallas_src>
import functools
import math

import jax
import jax.numpy as jnp
from jax import lax
from jax.experimental import pallas as pl

VOCAB_SIZE = 96          # synthetic stand-in for len(sorted(set(text)))
VOCAB_PAD = 128          # lm_head lane-padded output width
N_EMBD = 64
N_HEAD = 4
HEAD_SIZE = N_EMBD // N_HEAD
N_LAYER = 4
BLOCK_SIZE = 32          # max_len of the positional encoding
EPS = 1e-5               # nn.LayerNorm default


# ----------------------------- kernel ----------------------------------------

def _layer_norm(x, gamma, beta):
    mu = jnp.mean(x, axis=-1, keepdims=True)
    var = jnp.mean((x - mu) ** 2, axis=-1, keepdims=True)
    return (x - mu) * lax.rsqrt(var + EPS) * gamma + beta


def decoder_kernel(x_ref,
                   g1_ref, bt1_ref, wqkv_ref, wp_ref, bp_ref,
                   g2_ref, bt2_ref, w1_ref, b1_ref, w2_ref, b2_ref,
                   lng_ref, lnb_ref, wh_ref, bh_ref,
                   o_ref, *, batch, seq):
    """Entire Decoder forward on a (B*T, C) activation slab, all in VMEM."""
    C = N_EMBD
    HS = HEAD_SIZE

    x = x_ref[...]                                           # (B*T, C) f32

    # Hoisted once: causal mask + attention scale (reused by every layer/head).
    row = lax.broadcasted_iota(jnp.int32, (seq, seq), 0)
    col = lax.broadcasted_iota(jnp.int32, (seq, seq), 1)
    causal = col <= row
    scale = 1.0 / math.sqrt(HS)

    for l in range(N_LAYER):                                 # static unroll
        # ---- x = x + MultiHead(LN1(x)) ----
        xn = _layer_norm(x, g1_ref[l], bt1_ref[l])
        qkv = jnp.dot(xn, wqkv_ref[l],                        # fused QKV matmul
                      preferred_element_type=jnp.float32)     # (B*T, 3C)
        q = qkv[:, 0 * C:1 * C]
        k = qkv[:, 1 * C:2 * C]
        v = qkv[:, 2 * C:3 * C]
        wp_l = wp_ref[l]                                      # (C, C)

        rows = []
        for b in range(batch):                                # static unroll
            r0 = b * seq
            acc = jnp.zeros((seq, C), jnp.float32)
            for h in range(N_HEAD):                           # static unroll
                c0 = h * HS
                qh = q[r0:r0 + seq, c0:c0 + HS]
                kh = k[r0:r0 + seq, c0:c0 + HS]
                vh = v[r0:r0 + seq, c0:c0 + HS]
                s = jnp.dot(qh, kh.T,
                            preferred_element_type=jnp.float32) * scale
                s = jnp.where(causal, s, -1e30)               # masked_fill(-inf)
                m = jnp.max(s, axis=-1, keepdims=True)
                e = jnp.exp(s - m)
                p = e * pl.reciprocal(jnp.sum(e, axis=-1, keepdims=True),
                                      approx=True)            # softmax (EUP rcp)
                # dropout: eval-mode identity
                oh = jnp.dot(p, vh, preferred_element_type=jnp.float32)
                # Fold the head-concat into the output projection: accumulate
                # through the 16-row (sublane-aligned) slice of wp.
                acc = acc + jnp.dot(oh, wp_l[c0:c0 + HS, :],
                                    preferred_element_type=jnp.float32)
            rows.append(acc)
        attn = jnp.concatenate(rows, axis=0) + bp_ref[l]       # (B*T, C)
        x = x + attn                                           # residual

        # ---- x = x + MLP(LN2(x)) ----
        yn = _layer_norm(x, g2_ref[l], bt2_ref[l])
        h1 = jnp.maximum(
            jnp.dot(yn, w1_ref[l], preferred_element_type=jnp.float32)
            + b1_ref[l], 0.0)
        x = x + jnp.dot(h1, w2_ref[l],
                        preferred_element_type=jnp.float32) + b2_ref[l]

    # ---- final LayerNorm + lm_head (lane-padded to 128 for dense stores) ----
    xn = _layer_norm(x, lng_ref[...], lnb_ref[...])
    o_ref[...] = jnp.dot(xn, wh_ref[...],
                         preferred_element_type=jnp.float32) + bh_ref[...]


# --------------------------- pallas wrapper -----------------------------------

def decoder_apply(x_flat, params, *, batch, seq):
    """Run the fused kernel on a (B*T, C) slab; returns (B*T, VOCAB_PAD)."""
    s = params['stacked']
    kernel = functools.partial(decoder_kernel, batch=batch, seq=seq)
    # No grid: single invocation, every operand is a full-array VMEM ref
    # (total resident bytes ~0.9 MB, far below every generation's VMEM).
    return pl.pallas_call(
        kernel,
        out_shape=jax.ShapeDtypeStruct((batch * seq, VOCAB_PAD), jnp.float32),
    )(x_flat,
      s['g1'], s['bt1'], s['wqkv'], s['wp'], s['bp'],
      s['g2'], s['bt2'], s['w1'], s['b1'], s['w2'], s['b2'],
      params['ln_g'], params['ln_b'],
      params['w_head_pad'], params['b_head_pad'])


# --------------------------- params / glue ------------------------------------

def positional_encoding(max_len, n_embd):
    position = jnp.arange(max_len, dtype=jnp.float32)[:, None]
    div_term = jnp.exp(jnp.arange(0, n_embd, 2, dtype=jnp.float32)
                       * (-math.log(10000.0) / n_embd))
    pe = jnp.zeros((max_len, 1, n_embd), jnp.float32)
    pe = pe.at[:, 0, 0::2].set(jnp.sin(position * div_term))
    pe = pe.at[:, 0, 1::2].set(jnp.cos(position * div_term))
    return pe


def init_params(key):
    keys = iter(jax.random.split(key, 256))

    def linear(fan_in, fan_out, bias=True):
        bound = 1.0 / math.sqrt(fan_in)
        w = jax.random.uniform(next(keys), (fan_in, fan_out), jnp.float32,
                               -bound, bound)
        if not bias:
            return w
        b = jax.random.uniform(next(keys), (1, fan_out), jnp.float32,
                               -bound, bound)
        return w, b

    params = {
        'emb': jax.random.normal(next(keys), (VOCAB_SIZE, N_EMBD), jnp.float32),
        'pe': positional_encoding(BLOCK_SIZE, N_EMBD),
    }

    blocks = []
    for _ in range(N_LAYER):
        p = {'g1': jnp.ones((1, N_EMBD), jnp.float32),
             'bt1': jnp.zeros((1, N_EMBD), jnp.float32),
             'g2': jnp.ones((1, N_EMBD), jnp.float32),
             'bt2': jnp.zeros((1, N_EMBD), jnp.float32)}
        # per-head q/k/v (bias=False), concatenated along output columns
        p['wq'] = jnp.concatenate(
            [linear(N_EMBD, HEAD_SIZE, bias=False) for _ in range(N_HEAD)], 1)
        p['wk'] = jnp.concatenate(
            [linear(N_EMBD, HEAD_SIZE, bias=False) for _ in range(N_HEAD)], 1)
        p['wv'] = jnp.concatenate(
            [linear(N_EMBD, HEAD_SIZE, bias=False) for _ in range(N_HEAD)], 1)
        p['wp'], p['bp'] = linear(N_EMBD, N_EMBD)
        p['w1'], p['b1'] = linear(N_EMBD, 4 * N_EMBD)
        p['w2'], p['b2'] = linear(4 * N_EMBD, N_EMBD)
        blocks.append(p)

    # Stack per-layer weights with a leading (N_LAYER, ...) axis; fuse Q/K/V
    # into one (C, 3C) projection per layer.
    params['stacked'] = {
        'g1':  jnp.stack([p['g1'] for p in blocks]),
        'bt1': jnp.stack([p['bt1'] for p in blocks]),
        'wqkv': jnp.stack(
            [jnp.concatenate([p['wq'], p['wk'], p['wv']], axis=1)
             for p in blocks]),
        'wp':  jnp.stack([p['wp'] for p in blocks]),
        'bp':  jnp.stack([p['bp'] for p in blocks]),
        'g2':  jnp.stack([p['g2'] for p in blocks]),
        'bt2': jnp.stack([p['bt2'] for p in blocks]),
        'w1':  jnp.stack([p['w1'] for p in blocks]),
        'b1':  jnp.stack([p['b1'] for p in blocks]),
        'w2':  jnp.stack([p['w2'] for p in blocks]),
        'b2':  jnp.stack([p['b2'] for p in blocks]),
    }

    params['ln_g'] = jnp.ones((1, N_EMBD), jnp.float32)
    params['ln_b'] = jnp.zeros((1, N_EMBD), jnp.float32)
    w_head, b_head = linear(N_EMBD, VOCAB_SIZE)
    # Lane-pad the lm_head to 128 output columns (dense, unmasked stores).
    params['w_head_pad'] = jnp.pad(
        w_head, ((0, 0), (0, VOCAB_PAD - VOCAB_SIZE)))
    params['b_head_pad'] = jnp.pad(
        b_head, ((0, 0), (0, VOCAB_PAD - VOCAB_SIZE)))
    return params


def decoder_forward(tokens, params):
    """Equivalent of Decoder.forward(x, targets=None) -> (logits, None)."""
    B, T = tokens.shape
    input_emb = jnp.take(params['emb'], tokens, axis=0)      # (B, T, C)
    # NOTE: PositionalEncoding.forward returns pe[:x.size(0)] where x is the
    # embedding, i.e. indexed by BATCH (the module's quirk) -> (B, 1, C),
    # broadcast over T.  Reproduced exactly.
    pos_emb = params['pe'][:B]                               # (B, 1, C)
    x = (input_emb + pos_emb).reshape(B * T, N_EMBD)         # fold batch -> rows

    logits_pad = decoder_apply(x, params, batch=B, seq=T)    # (B*T, 128)
    logits = logits_pad.reshape(B, T, VOCAB_PAD)[:, :, :VOCAB_SIZE]
    return logits, None


# ------------------------------- main -----------------------------------------

if __name__ == "__main__":
    key = jax.random.PRNGKey(0)
    k_params, k_tok = jax.random.split(key)
    params = init_params(k_params)

    B, T = 2, 8                                              # T <= block_size
    tokens = jax.random.randint(k_tok, (B, T), 0, VOCAB_SIZE, dtype=jnp.int32)

    logits, loss = decoder_forward(tokens, params)
    logits = jax.block_until_ready(logits)

    assert logits.shape == (B, T, VOCAB_SIZE)
    assert loss is None
    assert bool(jnp.all(jnp.isfinite(logits)))
    print("KERNEL_OK")
</pallas_src>

<mosaic_0001>
module attributes {stable_mosaic.version = 11 : i64} {
  func.func @decoder_kernel(%arg0: memref<16x64xf32, #tpu.memory_space<vmem>>, %arg1: memref<4x1x64xf32, #tpu.memory_space<vmem>>, %arg2: memref<4x1x64xf32, #tpu.memory_space<vmem>>, %arg3: memref<4x64x192xf32, #tpu.memory_space<vmem>>, %arg4: memref<4x64x64xf32, #tpu.memory_space<vmem>>, %arg5: memref<4x1x64xf32, #tpu.memory_space<vmem>>, %arg6: memref<4x1x64xf32, #tpu.memory_space<vmem>>, %arg7: memref<4x1x64xf32, #tpu.memory_space<vmem>>, %arg8: memref<4x64x256xf32, #tpu.memory_space<vmem>>, %arg9: memref<4x1x256xf32, #tpu.memory_space<vmem>>, %arg10: memref<4x256x64xf32, #tpu.memory_space<vmem>>, %arg11: memref<4x1x64xf32, #tpu.memory_space<vmem>>, %arg12: memref<1x64xf32, #tpu.memory_space<vmem>>, %arg13: memref<1x64xf32, #tpu.memory_space<vmem>>, %arg14: memref<64x128xf32, #tpu.memory_space<vmem>>, %arg15: memref<1x128xf32, #tpu.memory_space<vmem>>, %arg16: memref<16x128xf32, #tpu.memory_space<vmem>>) attributes {dimension_semantics = [], scalar_prefetch = 0 : i64, scratch_operands = 0 : i64, tpu.core_type = #tpu.core_type<tc>} {
    %c0 = arith.constant 0 : index
    %c0_0 = arith.constant 0 : index
    %0 = vector.load %arg0[%c0, %c0_0] : memref<16x64xf32, #tpu.memory_space<vmem>>, vector<16x64xf32>
    %1 = tpu.iota {dimensions = array<i32: 0>} : vector<8x8xi32>
    %2 = tpu.iota {dimensions = array<i32: 1>} : vector<8x8xi32>
    %3 = arith.cmpi sle, %2, %1 : vector<8x8xi32>
    %c0_1 = arith.constant 0 : index
    %c0_2 = arith.constant 0 : index
    %c0_3 = arith.constant 0 : index
    %4 = vector.load %arg1[%c0_1, %c0_2, %c0_3] : memref<4x1x64xf32, #tpu.memory_space<vmem>>, vector<1x1x64xf32>
    %5 = vector.shape_cast %4 : vector<1x1x64xf32> to vector<1x64xf32>
    %c0_4 = arith.constant 0 : index
    %c0_5 = arith.constant 0 : index
    %c0_6 = arith.constant 0 : index
    %6 = vector.load %arg2[%c0_4, %c0_5, %c0_6] : memref<4x1x64xf32, #tpu.memory_space<vmem>>, vector<1x1x64xf32>
    %7 = vector.shape_cast %6 : vector<1x1x64xf32> to vector<1x64xf32>
    %cst = arith.constant dense<0.000000e+00> : vector<16xf32>
    %8 = vector.multi_reduction <add>, %0, %cst [1] : vector<16x64xf32> to vector<16xf32>
    %9 = vector.shape_cast %8 : vector<16xf32> to vector<16x1xf32>
    %cst_7 = arith.constant 6.400000e+01 : f32
    %10 = vector.broadcast %cst_7 : f32 to vector<16x1xf32>
    %11 = arith.divf %9, %10 : vector<16x1xf32>
    %12 = vector.broadcast %11 : vector<16x1xf32> to vector<16x64xf32>
    %13 = arith.subf %0, %12 : vector<16x64xf32>
    %14 = arith.mulf %13, %13 : vector<16x64xf32>
    %cst_8 = arith.constant dense<0.000000e+00> : vector<16xf32>
    %15 = vector.multi_reduction <add>, %14, %cst_8 [1] : vector<16x64xf32> to vector<16xf32>
    %16 = vector.shape_cast %15 : vector<16xf32> to vector<16x1xf32>
    %cst_9 = arith.constant 6.400000e+01 : f32
    %17 = vector.broadcast %cst_9 : f32 to vector<16x1xf32>
    %18 = arith.divf %16, %17 : vector<16x1xf32>
    %19 = vector.broadcast %11 : vector<16x1xf32> to vector<16x64xf32>
    %20 = arith.subf %0, %19 : vector<16x64xf32>
    %cst_10 = arith.constant 9.99999974E-6 : f32
    %21 = vector.broadcast %cst_10 : f32 to vector<16x1xf32>
    %22 = arith.addf %18, %21 : vector<16x1xf32>
    %23 = math.rsqrt %22 : vector<16x1xf32>
    %24 = vector.broadcast %23 : vector<16x1xf32> to vector<16x64xf32>
    %25 = arith.mulf %20, %24 : vector<16x64xf32>
    %26 = vector.broadcast %5 : vector<1x64xf32> to vector<16x64xf32>
    %27 = arith.mulf %25, %26 : vector<16x64xf32>
    %28 = vector.broadcast %7 : vector<1x64xf32> to vector<16x64xf32>
    %29 = arith.addf %27, %28 : vector<16x64xf32>
    %c0_11 = arith.constant 0 : index
    %c0_12 = arith.constant 0 : index
    %c0_13 = arith.constant 0 : index
    %30 = vector.load %arg3[%c0_11, %c0_12, %c0_13] : memref<4x64x192xf32, #tpu.memory_space<vmem>>, vector<1x64x192xf32>
    %31 = vector.shape_cast %30 : vector<1x64x192xf32> to vector<64x192xf32>
    %cst_14 = arith.constant dense<0.000000e+00> : vector<16x192xf32>
    %32 = tpu.matmul %29, %31, %cst_14 {dimension_numbers = #tpu.dot_dimension_numbers<[1], [0], [0], [1], [0, 0, 1, 1], [], []>} : vector<16x64xf32>, vector<64x192xf32>, vector<16x192xf32> -> vector<16x192xf32>
    %33 = vector.extract_strided_slice %32 {offsets = [0, 0], sizes = [16, 64], strides = [1, 1]} : vector<16x192xf32> to vector<16x64xf32>
    %34 = vector.extract_strided_slice %32 {offsets = [0, 64], sizes = [16, 64], strides = [1, 1]} : vector<16x192xf32> to vector<16x64xf32>
    %35 = vector.extract_strided_slice %32 {offsets = [0, 128], sizes = [16, 64], strides = [1, 1]} : vector<16x192xf32> to vector<16x64xf32>
    %c0_15 = arith.constant 0 : index
    %c0_16 = arith.constant 0 : index
    %c0_17 = arith.constant 0 : index
    %36 = vector.load %arg4[%c0_15, %c0_16, %c0_17] : memref<4x64x64xf32, #tpu.memory_space<vmem>>, vector<1x64x64xf32>
    %37 = vector.shape_cast %36 : vector<1x64x64xf32> to vector<64x64xf32>
    %cst_18 = arith.constant 0.000000e+00 : f32
    %38 = vector.broadcast %cst_18 : f32 to vector<8x64xf32>
    %39 = vector.extract_strided_slice %33 {offsets = [0, 0], sizes = [8, 16], strides = [1, 1]} : vector<16x64xf32> to vector<8x16xf32>
    %40 = vector.extract_strided_slice %34 {offsets = [0, 0], sizes = [8, 16], strides = [1, 1]} : vector<16x64xf32> to vector<8x16xf32>
    %41 = vector.extract_strided_slice %35 {offsets = [0, 0], sizes = [8, 16], strides = [1, 1]} : vector<16x64xf32> to vector<8x16xf32>
    %42 = tpu.transpose %40, [1, 0] : vector<8x16xf32> -> vector<16x8xf32>
    %cst_19 = arith.constant dense<0.000000e+00> : vector<8x8xf32>
    %43 = tpu.matmul %39, %42, %cst_19 {dimension_numbers = #tpu.dot_dimension_numbers<[1], [0], [0], [1], [0, 0, 1, 1], [], []>} : vector<8x16xf32>, vector<16x8xf32>, vector<8x8xf32> -> vector<8x8xf32>
    %cst_20 = arith.constant 2.500000e-01 : f32
    %44 = vector.broadcast %cst_20 : f32 to vector<8x8xf32>
    %45 = arith.mulf %43, %44 : vector<8x8xf32>
    %cst_21 = arith.constant -1.000000e+30 : f32
    %46 = vector.broadcast %cst_21 : f32 to vector<8x8xf32>
    %47 = arith.select %3, %45, %46 : vector<8x8xi1>, vector<8x8xf32>
    %cst_22 = arith.constant dense<0xFF800000> : vector<8xf32>
    %48 = vector.multi_reduction <maximumf>, %47, %cst_22 [1] : vector<8x8xf32> to vector<8xf32>
    %49 = vector.shape_cast %48 : vector<8xf32> to vector<8x1xf32>
    %50 = vector.broadcast %49 : vector<8x1xf32> to vector<8x8xf32>
    %51 = arith.subf %47, %50 : vector<8x8xf32>
    %52 = math.exp %51 : vector<8x8xf32>
    %cst_23 = arith.constant dense<0.000000e+00> : vector<8xf32>
    %53 = vector.multi_reduction <add>, %52, %cst_23 [1] : vector<8x8xf32> to vector<8xf32>
    %54 = vector.shape_cast %53 : vector<8xf32> to vector<8x1xf32>
    %55 = tpu.reciprocal %54 {approx = true} : vector<8x1xf32> -> vector<8x1xf32>
    %56 = vector.broadcast %55 : vector<8x1xf32> to vector<8x8xf32>
    %57 = arith.mulf %52, %56 : vector<8x8xf32>
    %cst_24 = arith.constant dense<0.000000e+00> : vector<8x16xf32>
    %58 = tpu.matmul %57, %41, %cst_24 {dimension_numbers = #tpu.dot_dimension_numbers<[1], [0], [0], [1], [0, 0, 1, 1], [], []>} : vector<8x8xf32>, vector<8x16xf32>, vector<8x16xf32> -> vector<8x16xf32>
    %59 = vector.extract_strided_slice %37 {offsets = [0, 0], sizes = [16, 64], strides = [1, 1]} : vector<64x64xf32> to vector<16x64xf32>
    %cst_25 = arith.constant dense<0.000000e+00> : vector<8x64xf32>
    %60 = tpu.matmul %58, %59, %cst_25 {dimension_numbers = #tpu.dot_dimension_numbers<[1], [0], [0], [1], [0, 0, 1, 1], [], []>} : vector<8x16xf32>, vector<16x64xf32>, vector<8x64xf32> -> vector<8x64xf32>
    %61 = arith.addf %38, %60 : vector<8x64xf32>
    %62 = vector.extract_strided_slice %33 {offsets = [0, 16], sizes = [8, 16], strides = [1, 1]} : vector<16x64xf32> to vector<8x16xf32>
    %63 = vector.extract_strided_slice %34 {offsets = [0, 16], sizes = [8, 16], strides = [1, 1]} : vector<16x64xf32> to vector<8x16xf32>
    %64 = vector.extract_strided_slice %35 {offsets = [0, 16], sizes = [8, 16], strides = [1, 1]} : vector<16x64xf32> to vector<8x16xf32>
    %65 = tpu.transpose %63, [1, 0] : vector<8x16xf32> -> vector<16x8xf32>
    %cst_26 = arith.constant dense<0.000000e+00> : vector<8x8xf32>
    %66 = tpu.matmul %62, %65, %cst_26 {dimension_numbers = #tpu.dot_dimension_numbers<[1], [0], [0], [1], [0, 0, 1, 1], [], []>} : vector<8x16xf32>, vector<16x8xf32>, vector<8x8xf32> -> vector<8x8xf32>
    %cst_27 = arith.constant 2.500000e-01 : f32
    %67 = vector.broadcast %cst_27 : f32 to vector<8x8xf32>
    %68 = arith.mulf %66, %67 : vector<8x8xf32>
    %cst_28 = arith.constant -1.000000e+30 : f32
    %69 = vector.broadcast %cst_28 : f32 to vector<8x8xf32>
    %70 = arith.select %3, %68, %69 : vector<8x8xi1>, vector<8x8xf32>
    %cst_29 = arith.constant dense<0xFF800000> : vector<8xf32>
    %71 = vector.multi_reduction <maximumf>, %70, %cst_29 [1] : vector<8x8xf32> to vector<8xf32>
    %72 = vector.shape_cast %71 : vector<8xf32> to vector<8x1xf32>
    %73 = vector.broadcast %72 : vector<8x1xf32> to vector<8x8xf32>
    %74 = arith.subf %70, %73 : vector<8x8xf32>
    %75 = math.exp %74 : vector<8x8xf32>
    %cst_30 = arith.constant dense<0.000000e+00> : vector<8xf32>
    %76 = vector.multi_reduction <add>, %75, %cst_30 [1] : vector<8x8xf32> to vector<8xf32>
    %77 = vector.shape_cast %76 : vector<8xf32> to vector<8x1xf32>
    %78 = tpu.reciprocal %77 {approx = true} : vector<8x1xf32> -> vector<8x1xf32>
    %79 = vector.broadcast %78 : vector<8x1xf32> to vector<8x8xf32>
    %80 = arith.mulf %75, %79 : vector<8x8xf32>
    %cst_31 = arith.constant dense<0.000000e+00> : vector<8x16xf32>
    %81 = tpu.matmul %80, %64, %cst_31 {dimension_numbers = #tpu.dot_dimension_numbers<[1], [0], [0], [1], [0, 0, 1, 1], [], []>} : vector<8x8xf32>, vector<8x16xf32>, vector<8x16xf32> -> vector<8x16xf32>
    %82 = vector.extract_strided_slice %37 {offsets = [16, 0], sizes = [16, 64], strides = [1, 1]} : vector<64x64xf32> to vector<16x64xf32>
    %cst_32 = arith.constant dense<0.000000e+00> : vector<8x64xf32>
    %83 = tpu.matmul %81, %82, %cst_32 {dimension_numbers = #tpu.dot_dimension_numbers<[1], [0], [0], [1], [0, 0, 1, 1], [], []>} : vector<8x16xf32>, vector<16x64xf32>, vector<8x64xf32> -> vector<8x64xf32>
    %84 = arith.addf %61, %83 : vector<8x64xf32>
    %85 = vector.extract_strided_slice %33 {offsets = [0, 32], sizes = [8, 16], strides = [1, 1]} : vector<16x64xf32> to vector<8x16xf32>
    %86 = vector.extract_strided_slice %34 {offsets = [0, 32], sizes = [8, 16], strides = [1, 1]} : vector<16x64xf32> to vector<8x16xf32>
    %87 = vector.extract_strided_slice %35 {offsets = [0, 32], sizes = [8, 16], strides = [1, 1]} : vector<16x64xf32> to vector<8x16xf32>
    %88 = tpu.transpose %86, [1, 0] : vector<8x16xf32> -> vector<16x8xf32>
    %cst_33 = arith.constant dense<0.000000e+00> : vector<8x8xf32>
    %89 = tpu.matmul %85, %88, %cst_33 {dimension_numbers = #tpu.dot_dimension_numbers<[1], [0], [0], [1], [0, 0, 1, 1], [], []>} : vector<8x16xf32>, vector<16x8xf32>, vector<8x8xf32> -> vector<8x8xf32>
    %cst_34 = arith.constant 2.500000e-01 : f32
    %90 = vector.broadcast %cst_34 : f32 to vector<8x8xf32>
    %91 = arith.mulf %89, %90 : vector<8x8xf32>
    %cst_35 = arith.constant -1.000000e+30 : f32
    %92 = vector.broadcast %cst_35 : f32 to vector<8x8xf32>
    %93 = arith.select %3, %91, %92 : vector<8x8xi1>, vector<8x8xf32>
    %cst_36 = arith.constant dense<0xFF800000> : vector<8xf32>
    %94 = vector.multi_reduction <maximumf>, %93, %cst_36 [1] : vector<8x8xf32> to vector<8xf32>
    %95 = vector.shape_cast %94 : vector<8xf32> to vector<8x1xf32>
    %96 = vector.broadcast %95 : vector<8x1xf32> to vector<8x8xf32>
    %97 = arith.subf %93, %96 : vector<8x8xf32>
    %98 = math.exp %97 : vector<8x8xf32>
    %cst_37 = arith.constant dense<0.000000e+00> : vector<8xf32>
    %99 = vector.multi_reduction <add>, %98, %cst_37 [1] : vector<8x8xf32> to vector<8xf32>
    %100 = vector.shape_cast %99 : vector<8xf32> to vector<8x1xf32>
    %101 = tpu.reciprocal %100 {approx = true} : vector<8x1xf32> -> vector<8x1xf32>
    %102 = vector.broadcast %101 : vector<8x1xf32> to vector<8x8xf32>
    %103 = arith.mulf %98, %102 : vector<8x8xf32>
    %cst_38 = arith.constant dense<0.000000e+00> : vector<8x16xf32>
    %104 = tpu.matmul %103, %87, %cst_38 {dimension_numbers = #tpu.dot_dimension_numbers<[1], [0], [0], [1], [0, 0, 1, 1], [], []>} : vector<8x8xf32>, vector<8x16xf32>, vector<8x16xf32> -> vector<8x16xf32>
    %105 = vector.extract_strided_slice %37 {offsets = [32, 0], sizes = [16, 64], strides = [1, 1]} : vector<64x64xf32> to vector<16x64xf32>
    %cst_39 = arith.constant dense<0.000000e+00> : vector<8x64xf32>
    %106 = tpu.matmul %104, %105, %cst_39 {dimension_numbers = #tpu.dot_dimension_numbers<[1], [0], [0], [1], [0, 0, 1, 1], [], []>} : vector<8x16xf32>, vector<16x64xf32>, vector<8x64xf32> -> vector<8x64xf32>
    %107 = arith.addf %84, %106 : vector<8x64xf32>
    %108 = vector.extract_strided_slice %33 {offsets = [0, 48], sizes = [8, 16], strides = [1, 1]} : vector<16x64xf32> to vector<8x16xf32>
    %109 = vector.extract_strided_slice %34 {offsets = [0, 48], sizes = [8, 16], strides = [1, 1]} : vector<16x64xf32> to vector<8x16xf32>
    %110 = vector.extract_strided_slice %35 {offsets = [0, 48], sizes = [8, 16], strides = [1, 1]} : vector<16x64xf32> to vector<8x16xf32>
    %111 = tpu.transpose %109, [1, 0] : vector<8x16xf32> -> vector<16x8xf32>
    %cst_40 = arith.constant dense<0.000000e+00> : vector<8x8xf32>
    %112 = tpu.matmul %108, %111, %cst_40 {dimension_numbers = #tpu.dot_dimension_numbers<[1], [0], [0], [1], [0, 0, 1, 1], [], []>} : vector<8x16xf32>, vector<16x8xf32>, vector<8x8xf32> -> vector<8x8xf32>
    %cst_41 = arith.constant 2.500000e-01 : f32
    %113 = vector.broadcast %cst_41 : f32 to vector<8x8xf32>
    %114 = arith.mulf %112, %113 : vector<8x8xf32>
    %cst_42 = arith.constant -1.000000e+30 : f32
    %115 = vector.broadcast %cst_42 : f32 to vector<8x8xf32>
    %116 = arith.select %3, %114, %115 : vector<8x8xi1>, vector<8x8xf32>
    %cst_43 = arith.constant dense<0xFF800000> : vector<8xf32>
    %117 = vector.multi_reduction <maximumf>, %116, %cst_43 [1] : vector<8x8xf32> to vector<8xf32>
    %118 = vector.shape_cast %117 : vector<8xf32> to vector<8x1xf32>
    %119 = vector.broadcast %118 : vector<8x1xf32> to vector<8x8xf32>
    %120 = arith.subf %116, %119 : vector<8x8xf32>
    %121 = math.exp %120 : vector<8x8xf32>
    %cst_44 = arith.constant dense<0.000000e+00> : vector<8xf32>
    %122 = vector.multi_reduction <add>, %121, %cst_44 [1] : vector<8x8xf32> to vector<8xf32>
    %123 = vector.shape_cast %122 : vector<8xf32> to vector<8x1xf32>
    %124 = tpu.reciprocal %123 {approx = true} : vector<8x1xf32> -> vector<8x1xf32>
    %125 = vector.broadcast %124 : vector<8x1xf32> to vector<8x8xf32>
    %126 = arith.mulf %121, %125 : vector<8x8xf32>
    %cst_45 = arith.constant dense<0.000000e+00> : vector<8x16xf32>
    %127 = tpu.matmul %126, %110, %cst_45 {dimension_numbers = #tpu.dot_dimension_numbers<[1], [0], [0], [1], [0, 0, 1, 1], [], []>} : vector<8x8xf32>, vector<8x16xf32>, vector<8x16xf32> -> vector<8x16xf32>
    %128 = vector.extract_strided_slice %37 {offsets = [48, 0], sizes = [16, 64], strides = [1, 1]} : vector<64x64xf32> to vector<16x64xf32>
    %cst_46 = arith.constant dense<0.000000e+00> : vector<8x64xf32>
    %129 = tpu.matmul %127, %128, %cst_46 {dimension_numbers = #tpu.dot_dimension_numbers<[1], [0], [0], [1], [0, 0, 1, 1], [], []>} : vector<8x16xf32>, vector<16x64xf32>, vector<8x64xf32> -> vector<8x64xf32>
    %130 = arith.addf %107, %129 : vector<8x64xf32>
    %cst_47 = arith.constant 0.000000e+00 : f32
    %131 = vector.broadcast %cst_47 : f32 to vector<8x64xf32>
    %132 = vector.extract_strided_slice %33 {offsets = [8, 0], sizes = [8, 16], strides = [1, 1]} : vector<16x64xf32> to vector<8x16xf32>
    %133 = vector.extract_strided_slice %34 {offsets = [8, 0], sizes = [8, 16], strides = [1, 1]} : vector<16x64xf32> to vector<8x16xf32>
    %134 = vector.extract_strided_slice %35 {offsets = [8, 0], sizes = [8, 16], strides = [1, 1]} : vector<16x64xf32> to vector<8x16xf32>
    %135 = tpu.transpose %133, [1, 0] : vector<8x16xf32> -> vector<16x8xf32>
    %cst_48 = arith.constant dense<0.000000e+00> : vector<8x8xf32>
    %136 = tpu.matmul %132, %135, %cst_48 {dimension_numbers = #tpu.dot_dimension_numbers<[1], [0], [0], [1], [0, 0, 1, 1], [], []>} : vector<8x16xf32>, vector<16x8xf32>, vector<8x8xf32> -> vector<8x8xf32>
    %cst_49 = arith.constant 2.500000e-01 : f32
    %137 = vector.broadcast %cst_49 : f32 to vector<8x8xf32>
    %138 = arith.mulf %136, %137 : vector<8x8xf32>
    %cst_50 = arith.constant -1.000000e+30 : f32
    %139 = vector.broadcast %cst_50 : f32 to vector<8x8xf32>
    %140 = arith.select %3, %138, %139 : vector<8x8xi1>, vector<8x8xf32>
    %cst_51 = arith.constant dense<0xFF800000> : vector<8xf32>
    %141 = vector.multi_reduction <maximumf>, %140, %cst_51 [1] : vector<8x8xf32> to vector<8xf32>
    %142 = vector.shape_cast %141 : vector<8xf32> to vector<8x1xf32>
    %143 = vector.broadcast %142 : vector<8x1xf32> to vector<8x8xf32>
    %144 = arith.subf %140, %143 : vector<8x8xf32>
    %145 = math.exp %144 : vector<8x8xf32>
    %cst_52 = arith.constant dense<0.000000e+00> : vector<8xf32>
    %146 = vector.multi_reduction <add>, %145, %cst_52 [1] : vector<8x8xf32> to vector<8xf32>
    %147 = vector.shape_cast %146 : vector<8xf32> to vector<8x1xf32>
    %148 = tpu.reciprocal %147 {approx = true} : vector<8x1xf32> -> vector<8x1xf32>
    %149 = vector.broadcast %148 : vector<8x1xf32> to vector<8x8xf32>
    %150 = arith.mulf %145, %149 : vector<8x8xf32>
    %cst_53 = arith.constant dense<0.000000e+00> : vector<8x16xf32>
    %151 = tpu.matmul %150, %134, %cst_53 {dimension_numbers = #tpu.dot_dimension_numbers<[1], [0], [0], [1], [0, 0, 1, 1], [], []>} : vector<8x8xf32>, vector<8x16xf32>, vector<8x16xf32> -> vector<8x16xf32>
    %152 = vector.extract_strided_slice %37 {offsets = [0, 0], sizes = [16, 64], strides = [1, 1]} : vector<64x64xf32> to vector<16x64xf32>
    %cst_54 = arith.constant dense<0.000000e+00> : vector<8x64xf32>
    %153 = tpu.matmul %151, %152, %cst_54 {dimension_numbers = #tpu.dot_dimension_numbers<[1], [0], [0], [1], [0, 0, 1, 1], [], []>} : vector<8x16xf32>, vector<16x64xf32>, vector<8x64xf32> -> vector<8x64xf32>
    %154 = arith.addf %131, %153 : vector<8x64xf32>
    %155 = vector.extract_strided_slice %33 {offsets = [8, 16], sizes = [8, 16], strides = [1, 1]} : vector<16x64xf32> to vector<8x16xf32>
    %156 = vector.extract_strided_slice %34 {offsets = [8, 16], sizes = [8, 16], strides = [1, 1]} : vector<16x64xf32> to vector<8x16xf32>
    %157 = vector.extract_strided_slice %35 {offsets = [8, 16], sizes = [8, 16], strides = [1, 1]} : vector<16x64xf32> to vector<8x16xf32>
    %158 = tpu.transpose %156, [1, 0] : vector<8x16xf32> -> vector<16x8xf32>
    %cst_55 = arith.constant dense<0.000000e+00> : vector<8x8xf32>
    %159 = tpu.matmul %155, %158, %cst_55 {dimension_numbers = #tpu.dot_dimension_numbers<[1], [0], [0], [1], [0, 0, 1, 1], [], []>} : vector<8x16xf32>, vector<16x8xf32>, vector<8x8xf32> -> vector<8x8xf32>
    %cst_56 = arith.constant 2.500000e-01 : f32
    %160 = vector.broadcast %cst_56 : f32 to vector<8x8xf32>
    %161 = arith.mulf %159, %160 : vector<8x8xf32>
    %cst_57 = arith.constant -1.000000e+30 : f32
    %162 = vector.broadcast %cst_57 : f32 to vector<8x8xf32>
    %163 = arith.select %3, %161, %162 : vector<8x8xi1>, vector<8x8xf32>
    %cst_58 = arith.constant dense<0xFF800000> : vector<8xf32>
    %164 = vector.multi_reduction <maximumf>, %163, %cst_58 [1] : vector<8x8xf32> to vector<8xf32>
    %165 = vector.shape_cast %164 : vector<8xf32> to vector<8x1xf32>
    %166 = vector.broadcast %165 : vector<8x1xf32> to vector<8x8xf32>
    %167 = arith.subf %163, %166 : vector<8x8xf32>
    %168 = math.exp %167 : vector<8x8xf32>
    %cst_59 = arith.constant dense<0.000000e+00> : vector<8xf32>
    %169 = vector.multi_reduction <add>, %168, %cst_59 [1] : vector<8x8xf32> to vector<8xf32>
    %170 = vector.shape_cast %169 : vector<8xf32> to vector<8x1xf32>
    %171 = tpu.reciprocal %170 {approx = true} : vector<8x1xf32> -> vector<8x1xf32>
    %172 = vector.broadcast %171 : vector<8x1xf32> to vector<8x8xf32>
    %173 = arith.mulf %168, %172 : vector<8x8xf32>
    %cst_60 = arith.constant dense<0.000000e+00> : vector<8x16xf32>
    %174 = tpu.matmul %173, %157, %cst_60 {dimension_numbers = #tpu.dot_dimension_numbers<[1], [0], [0], [1], [0, 0, 1, 1], [], []>} : vector<8x8xf32>, vector<8x16xf32>, vector<8x16xf32> -> vector<8x16xf32>
    %175 = vector.extract_strided_slice %37 {offsets = [16, 0], sizes = [16, 64], strides = [1, 1]} : vector<64x64xf32> to vector<16x64xf32>
    %cst_61 = arith.constant dense<0.000000e+00> : vector<8x64xf32>
    %176 = tpu.matmul %174, %175, %cst_61 {dimension_numbers = #tpu.dot_dimension_numbers<[1], [0], [0], [1], [0, 0, 1, 1], [], []>} : vector<8x16xf32>, vector<16x64xf32>, vector<8x64xf32> -> vector<8x64xf32>
    %177 = arith.addf %154, %176 : vector<8x64xf32>
    %178 = vector.extract_strided_slice %33 {offsets = [8, 32], sizes = [8, 16], strides = [1, 1]} : vector<16x64xf32> to vector<8x16xf32>
    %179 = vector.extract_strided_slice %34 {offsets = [8, 32], sizes = [8, 16], strides = [1, 1]} : vector<16x64xf32> to vector<8x16xf32>
    %180 = vector.extract_strided_slice %35 {offsets = [8, 32], sizes = [8, 16], strides = [1, 1]} : vector<16x64xf32> to vector<8x16xf32>
    %181 = tpu.transpose %179, [1, 0] : vector<8x16xf32> -> vector<16x8xf32>
    %cst_62 = arith.constant dense<0.000000e+00> : vector<8x8xf32>
    %182 = tpu.matmul %178, %181, %cst_62 {dimension_numbers = #tpu.dot_dimension_numbers<[1], [0], [0], [1], [0, 0, 1, 1], [], []>} : vector<8x16xf32>, vector<16x8xf32>, vector<8x8xf32> -> vector<8x8xf32>
    %cst_63 = arith.constant 2.500000e-01 : f32
    %183 = vector.broadcast %cst_63 : f32 to vector<8x8xf32>
    %184 = arith.mulf %182, %183 : vector<8x8xf32>
    %cst_64 = arith.constant -1.000000e+30 : f32
    %185 = vector.broadcast %cst_64 : f32 to vector<8x8xf32>
    %186 = arith.select %3, %184, %185 : vector<8x8xi1>, vector<8x8xf32>
    %cst_65 = arith.constant dense<0xFF800000> : vector<8xf32>
    %187 = vector.multi_reduction <maximumf>, %186, %cst_65 [1] : vector<8x8xf32> to vector<8xf32>
    %188 = vector.shape_cast %187 : vector<8xf32> to vector<8x1xf32>
    %189 = vector.broadcast %188 : vector<8x1xf32> to vector<8x8xf32>
    %190 = arith.subf %186, %189 : vector<8x8xf32>
    %191 = math.exp %190 : vector<8x8xf32>
    %cst_66 = arith.constant dense<0.000000e+00> : vector<8xf32>
    %192 = vector.multi_reduction <add>, %191, %cst_66 [1] : vector<8x8xf32> to vector<8xf32>
    %193 = vector.shape_cast %192 : vector<8xf32> to vector<8x1xf32>
    %194 = tpu.reciprocal %193 {approx = true} : vector<8x1xf32> -> vector<8x1xf32>
    %195 = vector.broadcast %194 : vector<8x1xf32> to vector<8x8xf32>
    %196 = arith.mulf %191, %195 : vector<8x8xf32>
    %cst_67 = arith.constant dense<0.000000e+00> : vector<8x16xf32>
    %197 = tpu.matmul %196, %180, %cst_67 {dimension_numbers = #tpu.dot_dimension_numbers<[1], [0], [0], [1], [0, 0, 1, 1], [], []>} : vector<8x8xf32>, vector<8x16xf32>, vector<8x16xf32> -> vector<8x16xf32>
    %198 = vector.extract_strided_slice %37 {offsets = [32, 0], sizes = [16, 64], strides = [1, 1]} : vector<64x64xf32> to vector<16x64xf32>
    %cst_68 = arith.constant dense<0.000000e+00> : vector<8x64xf32>
    %199 = tpu.matmul %197, %198, %cst_68 {dimension_numbers = #tpu.dot_dimension_numbers<[1], [0], [0], [1], [0, 0, 1, 1], [], []>} : vector<8x16xf32>, vector<16x64xf32>, vector<8x64xf32> -> vector<8x64xf32>
    %200 = arith.addf %177, %199 : vector<8x64xf32>
    %201 = vector.extract_strided_slice %33 {offsets = [8, 48], sizes = [8, 16], strides = [1, 1]} : vector<16x64xf32> to vector<8x16xf32>
    %202 = vector.extract_strided_slice %34 {offsets = [8, 48], sizes = [8, 16], strides = [1, 1]} : vector<16x64xf32> to vector<8x16xf32>
    %203 = vector.extract_strided_slice %35 {offsets = [8, 48], sizes = [8, 16], strides = [1, 1]} : vector<16x64xf32> to vector<8x16xf32>
    %204 = tpu.transpose %202, [1, 0] : vector<8x16xf32> -> vector<16x8xf32>
    %cst_69 = arith.constant dense<0.000000e+00> : vector<8x8xf32>
    %205 = tpu.matmul %201, %204, %cst_69 {dimension_numbers = #tpu.dot_dimension_numbers<[1], [0], [0], [1], [0, 0, 1, 1], [], []>} : vector<8x16xf32>, vector<16x8xf32>, vector<8x8xf32> -> vector<8x8xf32>
    %cst_70 = arith.constant 2.500000e-01 : f32
    %206 = vector.broadcast %cst_70 : f32 to vector<8x8xf32>
    %207 = arith.mulf %205, %206 : vector<8x8xf32>
    %cst_71 = arith.constant -1.000000e+30 : f32
    %208 = vector.broadcast %cst_71 : f32 to vector<8x8xf32>
    %209 = arith.select %3, %207, %208 : vector<8x8xi1>, vector<8x8xf32>
    %cst_72 = arith.constant dense<0xFF800000> : vector<8xf32>
    %210 = vector.multi_reduction <maximumf>, %209, %cst_72 [1] : vector<8x8xf32> to vector<8xf32>
    %211 = vector.shape_cast %210 : vector<8xf32> to vector<8x1xf32>
    %212 = vector.broadcast %211 : vector<8x1xf32> to vector<8x8xf32>
    %213 = arith.subf %209, %212 : vector<8x8xf32>
    %214 = math.exp %213 : vector<8x8xf32>
    %cst_73 = arith.constant dense<0.000000e+00> : vector<8xf32>
    %215 = vector.multi_reduction <add>, %214, %cst_73 [1] : vector<8x8xf32> to vector<8xf32>
    %216 = vector.shape_cast %215 : vector<8xf32> to vector<8x1xf32>
    %217 = tpu.reciprocal %216 {approx = true} : vector<8x1xf32> -> vector<8x1xf32>
    %218 = vector.broadcast %217 : vector<8x1xf32> to vector<8x8xf32>
    %219 = arith.mulf %214, %218 : vector<8x8xf32>
    %cst_74 = arith.constant dense<0.000000e+00> : vector<8x16xf32>
    %220 = tpu.matmul %219, %203, %cst_74 {dimension_numbers = #tpu.dot_dimension_numbers<[1], [0], [0], [1], [0, 0, 1, 1], [], []>} : vector<8x8xf32>, vector<8x16xf32>, vector<8x16xf32> -> vector<8x16xf32>
    %221 = vector.extract_strided_slice %37 {offsets = [48, 0], sizes = [16, 64], strides = [1, 1]} : vector<64x64xf32> to vector<16x64xf32>
    %cst_75 = arith.constant dense<0.000000e+00> : vector<8x64xf32>
    %222 = tpu.matmul %220, %221, %cst_75 {dimension_numbers = #tpu.dot_dimension_numbers<[1], [0], [0], [1], [0, 0, 1, 1], [], []>} : vector<8x16xf32>, vector<16x64xf32>, vector<8x64xf32> -> vector<8x64xf32>
    %223 = arith.addf %200, %222 : vector<8x64xf32>
    %224 = tpu.concatenate %130, %223 in 0 : vector<8x64xf32>, vector<8x64xf32> -> vector<16x64xf32>
    %c0_76 = arith.constant 0 : index
    %c0_77 = arith.constant 0 : index
    %c0_78 = arith.constant 0 : index
    %225 = vector.load %arg5[%c0_76, %c0_77, %c0_78] : memref<4x1x64xf32, #tpu.memory_space<vmem>>, vector<1x1x64xf32>
    %226 = vector.shape_cast %225 : vector<1x1x64xf32> to vector<1x64xf32>
    %227 = vector.broadcast %226 : vector<1x64xf32> to vector<16x64xf32>
    %228 = arith.addf %224, %227 : vector<16x64xf32>
    %229 = arith.addf %0, %228 : vector<16x64xf32>
    %c0_79 = arith.constant 0 : index
    %c0_80 = arith.constant 0 : index
    %c0_81 = arith.constant 0 : index
    %230 = vector.load %arg6[%c0_79, %c0_80, %c0_81] : memref<4x1x64xf32, #tpu.memory_space<vmem>>, vector<1x1x64xf32>
    %231 = vector.shape_cast %230 : vector<1x1x64xf32> to vector<1x64xf32>
    %c0_82 = arith.constant 0 : index
    %c0_83 = arith.constant 0 : index
    %c0_84 = arith.constant 0 : index
    %232 = vector.load %arg7[%c0_82, %c0_83, %c0_84] : memref<4x1x64xf32, #tpu.memory_space<vmem>>, vector<1x1x64xf32>
    %233 = vector.shape_cast %232 : vector<1x1x64xf32> to vector<1x64xf32>
    %cst_85 = arith.constant dense<0.000000e+00> : vector<16xf32>
    %234 = vector.multi_reduction <add>, %229, %cst_85 [1] : vector<16x64xf32> to vector<16xf32>
    %235 = vector.shape_cast %234 : vector<16xf32> to vector<16x1xf32>
    %cst_86 = arith.constant 6.400000e+01 : f32
    %236 = vector.broadcast %cst_86 : f32 to vector<16x1xf32>
    %237 = arith.divf %235, %236 : vector<16x1xf32>
    %238 = vector.broadcast %237 : vector<16x1xf32> to vector<16x64xf32>
    %239 = arith.subf %229, %238 : vector<16x64xf32>
    %240 = arith.mulf %239, %239 : vector<16x64xf32>
    %cst_87 = arith.constant dense<0.000000e+00> : vector<16xf32>
    %241 = vector.multi_reduction <add>, %240, %cst_87 [1] : vector<16x64xf32> to vector<16xf32>
    %242 = vector.shape_cast %241 : vector<16xf32> to vector<16x1xf32>
    %cst_88 = arith.constant 6.400000e+01 : f32
    %243 = vector.broadcast %cst_88 : f32 to vector<16x1xf32>
    %244 = arith.divf %242, %243 : vector<16x1xf32>
    %245 = vector.broadcast %237 : vector<16x1xf32> to vector<16x64xf32>
    %246 = arith.subf %229, %245 : vector<16x64xf32>
    %cst_89 = arith.constant 9.99999974E-6 : f32
    %247 = vector.broadcast %cst_89 : f32 to vector<16x1xf32>
    %248 = arith.addf %244, %247 : vector<16x1xf32>
    %249 = math.rsqrt %248 : vector<16x1xf32>
    %250 = vector.broadcast %249 : vector<16x1xf32> to vector<16x64xf32>
    %251 = arith.mulf %246, %250 : vector<16x64xf32>
    %252 = vector.broadcast %231 : vector<1x64xf32> to vector<16x64xf32>
    %253 = arith.mulf %251, %252 : vector<16x64xf32>
    %254 = vector.broadcast %233 : vector<1x64xf32> to vector<16x64xf32>
    %255 = arith.addf %253, %254 : vector<16x64xf32>
    %c0_90 = arith.constant 0 : index
    %c0_91 = arith.constant 0 : index
    %c0_92 = arith.constant 0 : index
    %256 = vector.load %arg8[%c0_90, %c0_91, %c0_92] : memref<4x64x256xf32, #tpu.memory_space<vmem>>, vector<1x64x256xf32>
    %257 = vector.shape_cast %256 : vector<1x64x256xf32> to vector<64x256xf32>
    %cst_93 = arith.constant dense<0.000000e+00> : vector<16x256xf32>
    %258 = tpu.matmul %255, %257, %cst_93 {dimension_numbers = #tpu.dot_dimension_numbers<[1], [0], [0], [1], [0, 0, 1, 1], [], []>} : vector<16x64xf32>, vector<64x256xf32>, vector<16x256xf32> -> vector<16x256xf32>
    %c0_94 = arith.constant 0 : index
    %c0_95 = arith.constant 0 : index
    %c0_96 = arith.constant 0 : index
    %259 = vector.load %arg9[%c0_94, %c0_95, %c0_96] : memref<4x1x256xf32, #tpu.memory_space<vmem>>, vector<1x1x256xf32>
    %260 = vector.shape_cast %259 : vector<1x1x256xf32> to vector<1x256xf32>
    %261 = vector.broadcast %260 : vector<1x256xf32> to vector<16x256xf32>
    %262 = arith.addf %258, %261 : vector<16x256xf32>
    %cst_97 = arith.constant 0.000000e+00 : f32
    %263 = vector.broadcast %cst_97 : f32 to vector<16x256xf32>
    %264 = arith.maximumf %262, %263 : vector<16x256xf32>
    %c0_98 = arith.constant 0 : index
    %c0_99 = arith.constant 0 : index
    %c0_100 = arith.constant 0 : index
    %265 = vector.load %arg10[%c0_98, %c0_99, %c0_100] : memref<4x256x64xf32, #tpu.memory_space<vmem>>, vector<1x256x64xf32>
    %266 = vector.shape_cast %265 : vector<1x256x64xf32> to vector<256x64xf32>
    %cst_101 = arith.constant dense<0.000000e+00> : vector<16x64xf32>
    %267 = tpu.matmul %264, %266, %cst_101 {dimension_numbers = #tpu.dot_dimension_numbers<[1], [0], [0], [1], [0, 0, 1, 1], [], []>} : vector<16x256xf32>, vector<256x64xf32>, vector<16x64xf32> -> vector<16x64xf32>
    %268 = arith.addf %229, %267 : vector<16x64xf32>
    %c0_102 = arith.constant 0 : index
    %c0_103 = arith.constant 0 : index
    %c0_104 = arith.constant 0 : index
    %269 = vector.load %arg11[%c0_102, %c0_103, %c0_104] : memref<4x1x64xf32, #tpu.memory_space<vmem>>, vector<1x1x64xf32>
    %270 = vector.shape_cast %269 : vector<1x1x64xf32> to vector<1x64xf32>
    %271 = vector.broadcast %270 : vector<1x64xf32> to vector<16x64xf32>
    %272 = arith.addf %268, %271 : vector<16x64xf32>
    %c1 = arith.constant 1 : index
    %c0_105 = arith.constant 0 : index
    %c0_106 = arith.constant 0 : index
    %273 = vector.load %arg1[%c1, %c0_105, %c0_106] : memref<4x1x64xf32, #tpu.memory_space<vmem>>, vector<1x1x64xf32>
    %274 = vector.shape_cast %273 : vector<1x1x64xf32> to vector<1x64xf32>
    %c1_107 = arith.constant 1 : index
    %c0_108 = arith.constant 0 : index
    %c0_109 = arith.constant 0 : index
    %275 = vector.load %arg2[%c1_107, %c0_108, %c0_109] : memref<4x1x64xf32, #tpu.memory_space<vmem>>, vector<1x1x64xf32>
    %276 = vector.shape_cast %275 : vector<1x1x64xf32> to vector<1x64xf32>
    %cst_110 = arith.constant dense<0.000000e+00> : vector<16xf32>
    %277 = vector.multi_reduction <add>, %272, %cst_110 [1] : vector<16x64xf32> to vector<16xf32>
    %278 = vector.shape_cast %277 : vector<16xf32> to vector<16x1xf32>
    %cst_111 = arith.constant 6.400000e+01 : f32
    %279 = vector.broadcast %cst_111 : f32 to vector<16x1xf32>
    %280 = arith.divf %278, %279 : vector<16x1xf32>
    %281 = vector.broadcast %280 : vector<16x1xf32> to vector<16x64xf32>
    %282 = arith.subf %272, %281 : vector<16x64xf32>
    %283 = arith.mulf %282, %282 : vector<16x64xf32>
    %cst_112 = arith.constant dense<0.000000e+00> : vector<16xf32>
    %284 = vector.multi_reduction <add>, %283, %cst_112 [1] : vector<16x64xf32> to vector<16xf32>
    %285 = vector.shape_cast %284 : vector<16xf32> to vector<16x1xf32>
    %cst_113 = arith.constant 6.400000e+01 : f32
    %286 = vector.broadcast %cst_113 : f32 to vector<16x1xf32>
    %287 = arith.divf %285, %286 : vector<16x1xf32>
    %288 = vector.broadcast %280 : vector<16x1xf32> to vector<16x64xf32>
    %289 = arith.subf %272, %288 : vector<16x64xf32>
    %cst_114 = arith.constant 9.99999974E-6 : f32
    %290 = vector.broadcast %cst_114 : f32 to vector<16x1xf32>
    %291 = arith.addf %287, %290 : vector<16x1xf32>
    %292 = math.rsqrt %291 : vector<16x1xf32>
    %293 = vector.broadcast %292 : vector<16x1xf32> to vector<16x64xf32>
    %294 = arith.mulf %289, %293 : vector<16x64xf32>
    %295 = vector.broadcast %274 : vector<1x64xf32> to vector<16x64xf32>
    %296 = arith.mulf %294, %295 : vector<16x64xf32>
    %297 = vector.broadcast %276 : vector<1x64xf32> to vector<16x64xf32>
    %298 = arith.addf %296, %297 : vector<16x64xf32>
    %c1_115 = arith.constant 1 : index
    %c0_116 = arith.constant 0 : index
    %c0_117 = arith.constant 0 : index
    %299 = vector.load %arg3[%c1_115, %c0_116, %c0_117] : memref<4x64x192xf32, #tpu.memory_space<vmem>>, vector<1x64x192xf32>
    %300 = vector.shape_cast %299 : vector<1x64x192xf32> to vector<64x192xf32>
    %cst_118 = arith.constant dense<0.000000e+00> : vector<16x192xf32>
    %301 = tpu.matmul %298, %300, %cst_118 {dimension_numbers = #tpu.dot_dimension_numbers<[1], [0], [0], [1], [0, 0, 1, 1], [], []>} : vector<16x64xf32>, vector<64x192xf32>, vector<16x192xf32> -> vector<16x192xf32>
    %302 = vector.extract_strided_slice %301 {offsets = [0, 0], sizes = [16, 64], strides = [1, 1]} : vector<16x192xf32> to vector<16x64xf32>
    %303 = vector.extract_strided_slice %301 {offsets = [0, 64], sizes = [16, 64], strides = [1, 1]} : vector<16x192xf32> to vector<16x64xf32>
    %304 = vector.extract_strided_slice %301 {offsets = [0, 128], sizes = [16, 64], strides = [1, 1]} : vector<16x192xf32> to vector<16x64xf32>
    %c1_119 = arith.constant 1 : index
    %c0_120 = arith.constant 0 : index
    %c0_121 = arith.constant 0 : index
    %305 = vector.load %arg4[%c1_119, %c0_120, %c0_121] : memref<4x64x64xf32, #tpu.memory_space<vmem>>, vector<1x64x64xf32>
    %306 = vector.shape_cast %305 : vector<1x64x64xf32> to vector<64x64xf32>
    %cst_122 = arith.constant 0.000000e+00 : f32
    %307 = vector.broadcast %cst_122 : f32 to vector<8x64xf32>
    %308 = vector.extract_strided_slice %302 {offsets = [0, 0], sizes = [8, 16], strides = [1, 1]} : vector<16x64xf32> to vector<8x16xf32>
    %309 = vector.extract_strided_slice %303 {offsets = [0, 0], sizes = [8, 16], strides = [1, 1]} : vector<16x64xf32> to vector<8x16xf32>
    %310 = vector.extract_strided_slice %304 {offsets = [0, 0], sizes = [8, 16], strides = [1, 1]} : vector<16x64xf32> to vector<8x16xf32>
    %311 = tpu.transpose %309, [1, 0] : vector<8x16xf32> -> vector<16x8xf32>
    %cst_123 = arith.constant dense<0.000000e+00> : vector<8x8xf32>
    %312 = tpu.matmul %308, %311, %cst_123 {dimension_numbers = #tpu.dot_dimension_numbers<[1], [0], [0], [1], [0, 0, 1, 1], [], []>} : vector<8x16xf32>, vector<16x8xf32>, vector<8x8xf32> -> vector<8x8xf32>
    %cst_124 = arith.constant 2.500000e-01 : f32
    %313 = vector.broadcast %cst_124 : f32 to vector<8x8xf32>
    %314 = arith.mulf %312, %313 : vector<8x8xf32>
    %cst_125 = arith.constant -1.000000e+30 : f32
    %315 = vector.broadcast %cst_125 : f32 to vector<8x8xf32>
    %316 = arith.select %3, %314, %315 : vector<8x8xi1>, vector<8x8xf32>
    %cst_126 = arith.constant dense<0xFF800000> : vector<8xf32>
    %317 = vector.multi_reduction <maximumf>, %316, %cst_126 [1] : vector<8x8xf32> to vector<8xf32>
    %318 = vector.shape_cast %317 : vector<8xf32> to vector<8x1xf32>
    %319 = vector.broadcast %318 : vector<8x1xf32> to vector<8x8xf32>
    %320 = arith.subf %316, %319 : vector<8x8xf32>
    %321 = math.exp %320 : vector<8x8xf32>
    %cst_127 = arith.constant dense<0.000000e+00> : vector<8xf32>
    %322 = vector.multi_reduction <add>, %321, %cst_127 [1] : vector<8x8xf32> to vector<8xf32>
    %323 = vector.shape_cast %322 : vector<8xf32> to vector<8x1xf32>
    %324 = tpu.reciprocal %323 {approx = true} : vector<8x1xf32> -> vector<8x1xf32>
    %325 = vector.broadcast %324 : vector<8x1xf32> to vector<8x8xf32>
    %326 = arith.mulf %321, %325 : vector<8x8xf32>
    %cst_128 = arith.constant dense<0.000000e+00> : vector<8x16xf32>
    %327 = tpu.matmul %326, %310, %cst_128 {dimension_numbers = #tpu.dot_dimension_numbers<[1], [0], [0], [1], [0, 0, 1, 1], [], []>} : vector<8x8xf32>, vector<8x16xf32>, vector<8x16xf32> -> vector<8x16xf32>
    %328 = vector.extract_strided_slice %306 {offsets = [0, 0], sizes = [16, 64], strides = [1, 1]} : vector<64x64xf32> to vector<16x64xf32>
    %cst_129 = arith.constant dense<0.000000e+00> : vector<8x64xf32>
    %329 = tpu.matmul %327, %328, %cst_129 {dimension_numbers = #tpu.dot_dimension_numbers<[1], [0], [0], [1], [0, 0, 1, 1], [], []>} : vector<8x16xf32>, vector<16x64xf32>, vector<8x64xf32> -> vector<8x64xf32>
    %330 = arith.addf %307, %329 : vector<8x64xf32>
    %331 = vector.extract_strided_slice %302 {offsets = [0, 16], sizes = [8, 16], strides = [1, 1]} : vector<16x64xf32> to vector<8x16xf32>
    %332 = vector.extract_strided_slice %303 {offsets = [0, 16], sizes = [8, 16], strides = [1, 1]} : vector<16x64xf32> to vector<8x16xf32>
    %333 = vector.extract_strided_slice %304 {offsets = [0, 16], sizes = [8, 16], strides = [1, 1]} : vector<16x64xf32> to vector<8x16xf32>
    %334 = tpu.transpose %332, [1, 0] : vector<8x16xf32> -> vector<16x8xf32>
    %cst_130 = arith.constant dense<0.000000e+00> : vector<8x8xf32>
    %335 = tpu.matmul %331, %334, %cst_130 {dimension_numbers = #tpu.dot_dimension_numbers<[1], [0], [0], [1], [0, 0, 1, 1], [], []>} : vector<8x16xf32>, vector<16x8xf32>, vector<8x8xf32> -> vector<8x8xf32>
    %cst_131 = arith.constant 2.500000e-01 : f32
    %336 = vector.broadcast %cst_131 : f32 to vector<8x8xf32>
    %337 = arith.mulf %335, %336 : vector<8x8xf32>
    %cst_132 = arith.constant -1.000000e+30 : f32
    %338 = vector.broadcast %cst_132 : f32 to vector<8x8xf32>
    %339 = arith.select %3, %337, %338 : vector<8x8xi1>, vector<8x8xf32>
    %cst_133 = arith.constant dense<0xFF800000> : vector<8xf32>
    %340 = vector.multi_reduction <maximumf>, %339, %cst_133 [1] : vector<8x8xf32> to vector<8xf32>
    %341 = vector.shape_cast %340 : vector<8xf32> to vector<8x1xf32>
    %342 = vector.broadcast %341 : vector<8x1xf32> to vector<8x8xf32>
    %343 = arith.subf %339, %342 : vector<8x8xf32>
    %344 = math.exp %343 : vector<8x8xf32>
    %cst_134 = arith.constant dense<0.000000e+00> : vector<8xf32>
    %345 = vector.multi_reduction <add>, %344, %cst_134 [1] : vector<8x8xf32> to vector<8xf32>
    %346 = vector.shape_cast %345 : vector<8xf32> to vector<8x1xf32>
    %347 = tpu.reciprocal %346 {approx = true} : vector<8x1xf32> -> vector<8x1xf32>
    %348 = vector.broadcast %347 : vector<8x1xf32> to vector<8x8xf32>
    %349 = arith.mulf %344, %348 : vector<8x8xf32>
    %cst_135 = arith.constant dense<0.000000e+00> : vector<8x16xf32>
    %350 = tpu.matmul %349, %333, %cst_135 {dimension_numbers = #tpu.dot_dimension_numbers<[1], [0], [0], [1], [0, 0, 1, 1], [], []>} : vector<8x8xf32>, vector<8x16xf32>, vector<8x16xf32> -> vector<8x16xf32>
    %351 = vector.extract_strided_slice %306 {offsets = [16, 0], sizes = [16, 64], strides = [1, 1]} : vector<64x64xf32> to vector<16x64xf32>
    %cst_136 = arith.constant dense<0.000000e+00> : vector<8x64xf32>
    %352 = tpu.matmul %350, %351, %cst_136 {dimension_numbers = #tpu.dot_dimension_numbers<[1], [0], [0], [1], [0, 0, 1, 1], [], []>} : vector<8x16xf32>, vector<16x64xf32>, vector<8x64xf32> -> vector<8x64xf32>
    %353 = arith.addf %330, %352 : vector<8x64xf32>
    %354 = vector.extract_strided_slice %302 {offsets = [0, 32], sizes = [8, 16], strides = [1, 1]} : vector<16x64xf32> to vector<8x16xf32>
    %355 = vector.extract_strided_slice %303 {offsets = [0, 32], sizes = [8, 16], strides = [1, 1]} : vector<16x64xf32> to vector<8x16xf32>
    %356 = vector.extract_strided_slice %304 {offsets = [0, 32], sizes = [8, 16], strides = [1, 1]} : vector<16x64xf32> to vector<8x16xf32>
    %357 = tpu.transpose %355, [1, 0] : vector<8x16xf32> -> vector<16x8xf32>
    %cst_137 = arith.constant dense<0.000000e+00> : vector<8x8xf32>
    %358 = tpu.matmul %354, %357, %cst_137 {dimension_numbers = #tpu.dot_dimension_numbers<[1], [0], [0], [1], [0, 0, 1, 1], [], []>} : vector<8x16xf32>, vector<16x8xf32>, vector<8x8xf32> -> vector<8x8xf32>
    %cst_138 = arith.constant 2.500000e-01 : f32
    %359 = vector.broadcast %cst_138 : f32 to vector<8x8xf32>
    %360 = arith.mulf %358, %359 : vector<8x8xf32>
    %cst_139 = arith.constant -1.000000e+30 : f32
    %361 = vector.broadcast %cst_139 : f32 to vector<8x8xf32>
    %362 = arith.select %3, %360, %361 : vector<8x8xi1>, vector<8x8xf32>
    %cst_140 = arith.constant dense<0xFF800000> : vector<8xf32>
    %363 = vector.multi_reduction <maximumf>, %362, %cst_140 [1] : vector<8x8xf32> to vector<8xf32>
    %364 = vector.shape_cast %363 : vector<8xf32> to vector<8x1xf32>
    %365 = vector.broadcast %364 : vector<8x1xf32> to vector<8x8xf32>
    %366 = arith.subf %362, %365 : vector<8x8xf32>
    %367 = math.exp %366 : vector<8x8xf32>
    %cst_141 = arith.constant dense<0.000000e+00> : vector<8xf32>
    %368 = vector.multi_reduction <add>, %367, %cst_141 [1] : vector<8x8xf32> to vector<8xf32>
    %369 = vector.shape_cast %368 : vector<8xf32> to vector<8x1xf32>
    %370 = tpu.reciprocal %369 {approx = true} : vector<8x1xf32> -> vector<8x1xf32>
    %371 = vector.broadcast %370 : vector<8x1xf32> to vector<8x8xf32>
    %372 = arith.mulf %367, %371 : vector<8x8xf32>
    %cst_142 = arith.constant dense<0.000000e+00> : vector<8x16xf32>
    %373 = tpu.matmul %372, %356, %cst_142 {dimension_numbers = #tpu.dot_dimension_numbers<[1], [0], [0], [1], [0, 0, 1, 1], [], []>} : vector<8x8xf32>, vector<8x16xf32>, vector<8x16xf32> -> vector<8x16xf32>
    %374 = vector.extract_strided_slice %306 {offsets = [32, 0], sizes = [16, 64], strides = [1, 1]} : vector<64x64xf32> to vector<16x64xf32>
    %cst_143 = arith.constant dense<0.000000e+00> : vector<8x64xf32>
    %375 = tpu.matmul %373, %374, %cst_143 {dimension_numbers = #tpu.dot_dimension_numbers<[1], [0], [0], [1], [0, 0, 1, 1], [], []>} : vector<8x16xf32>, vector<16x64xf32>, vector<8x64xf32> -> vector<8x64xf32>
    %376 = arith.addf %353, %375 : vector<8x64xf32>
    %377 = vector.extract_strided_slice %302 {offsets = [0, 48], sizes = [8, 16], strides = [1, 1]} : vector<16x64xf32> to vector<8x16xf32>
    %378 = vector.extract_strided_slice %303 {offsets = [0, 48], sizes = [8, 16], strides = [1, 1]} : vector<16x64xf32> to vector<8x16xf32>
    %379 = vector.extract_strided_slice %304 {offsets = [0, 48], sizes = [8, 16], strides = [1, 1]} : vector<16x64xf32> to vector<8x16xf32>
    %380 = tpu.transpose %378, [1, 0] : vector<8x16xf32> -> vector<16x8xf32>
    %cst_144 = arith.constant dense<0.000000e+00> : vector<8x8xf32>
    %381 = tpu.matmul %377, %380, %cst_144 {dimension_numbers = #tpu.dot_dimension_numbers<[1], [0], [0], [1], [0, 0, 1, 1], [], []>} : vector<8x16xf32>, vector<16x8xf32>, vector<8x8xf32> -> vector<8x8xf32>
    %cst_145 = arith.constant 2.500000e-01 : f32
    %382 = vector.broadcast %cst_145 : f32 to vector<8x8xf32>
    %383 = arith.mulf %381, %382 : vector<8x8xf32>
    %cst_146 = arith.constant -1.000000e+30 : f32
    %384 = vector.broadcast %cst_146 : f32 to vector<8x8xf32>
    %385 = arith.select %3, %383, %384 : vector<8x8xi1>, vector<8x8xf32>
    %cst_147 = arith.constant dense<0xFF800000> : vector<8xf32>
    %386 = vector.multi_reduction <maximumf>, %385, %cst_147 [1] : vector<8x8xf32> to vector<8xf32>
    %387 = vector.shape_cast %386 : vector<8xf32> to vector<8x1xf32>
    %388 = vector.broadcast %387 : vector<8x1xf32> to vector<8x8xf32>
    %389 = arith.subf %385, %388 : vector<8x8xf32>
    %390 = math.exp %389 : vector<8x8xf32>
    %cst_148 = arith.constant dense<0.000000e+00> : vector<8xf32>
    %391 = vector.multi_reduction <add>, %390, %cst_148 [1] : vector<8x8xf32> to vector<8xf32>
    %392 = vector.shape_cast %391 : vector<8xf32> to vector<8x1xf32>
    %393 = tpu.reciprocal %392 {approx = true} : vector<8x1xf32> -> vector<8x1xf32>
    %394 = vector.broadcast %393 : vector<8x1xf32> to vector<8x8xf32>
    %395 = arith.mulf %390, %394 : vector<8x8xf32>
    %cst_149 = arith.constant dense<0.000000e+00> : vector<8x16xf32>
    %396 = tpu.matmul %395, %379, %cst_149 {dimension_numbers = #tpu.dot_dimension_numbers<[1], [0], [0], [1], [0, 0, 1, 1], [], []>} : vector<8x8xf32>, vector<8x16xf32>, vector<8x16xf32> -> vector<8x16xf32>
    %397 = vector.extract_strided_slice %306 {offsets = [48, 0], sizes = [16, 64], strides = [1, 1]} : vector<64x64xf32> to vector<16x64xf32>
    %cst_150 = arith.constant dense<0.000000e+00> : vector<8x64xf32>
    %398 = tpu.matmul %396, %397, %cst_150 {dimension_numbers = #tpu.dot_dimension_numbers<[1], [0], [0], [1], [0, 0, 1, 1], [], []>} : vector<8x16xf32>, vector<16x64xf32>, vector<8x64xf32> -> vector<8x64xf32>
    %399 = arith.addf %376, %398 : vector<8x64xf32>
    %cst_151 = arith.constant 0.000000e+00 : f32
    %400 = vector.broadcast %cst_151 : f32 to vector<8x64xf32>
    %401 = vector.extract_strided_slice %302 {offsets = [8, 0], sizes = [8, 16], strides = [1, 1]} : vector<16x64xf32> to vector<8x16xf32>
    %402 = vector.extract_strided_slice %303 {offsets = [8, 0], sizes = [8, 16], strides = [1, 1]} : vector<16x64xf32> to vector<8x16xf32>
    %403 = vector.extract_strided_slice %304 {offsets = [8, 0], sizes = [8, 16], strides = [1, 1]} : vector<16x64xf32> to vector<8x16xf32>
    %404 = tpu.transpose %402, [1, 0] : vector<8x16xf32> -> vector<16x8xf32>
    %cst_152 = arith.constant dense<0.000000e+00> : vector<8x8xf32>
    %405 = tpu.matmul %401, %404, %cst_152 {dimension_numbers = #tpu.dot_dimension_numbers<[1], [0], [0], [1], [0, 0, 1, 1], [], []>} : vector<8x16xf32>, vector<16x8xf32>, vector<8x8xf32> -> vector<8x8xf32>
    %cst_153 = arith.constant 2.500000e-01 : f32
    %406 = vector.broadcast %cst_153 : f32 to vector<8x8xf32>
    %407 = arith.mulf %405, %406 : vector<8x8xf32>
    %cst_154 = arith.constant -1.000000e+30 : f32
    %408 = vector.broadcast %cst_154 : f32 to vector<8x8xf32>
    %409 = arith.select %3, %407, %408 : vector<8x8xi1>, vector<8x8xf32>
    %cst_155 = arith.constant dense<0xFF800000> : vector<8xf32>
    %410 = vector.multi_reduction <maximumf>, %409, %cst_155 [1] : vector<8x8xf32> to vector<8xf32>
    %411 = vector.shape_cast %410 : vector<8xf32> to vector<8x1xf32>
    %412 = vector.broadcast %411 : vector<8x1xf32> to vector<8x8xf32>
    %413 = arith.subf %409, %412 : vector<8x8xf32>
    %414 = math.exp %413 : vector<8x8xf32>
    %cst_156 = arith.constant dense<0.000000e+00> : vector<8xf32>
    %415 = vector.multi_reduction <add>, %414, %cst_156 [1] : vector<8x8xf32> to vector<8xf32>
    %416 = vector.shape_cast %415 : vector<8xf32> to vector<8x1xf32>
    %417 = tpu.reciprocal %416 {approx = true} : vector<8x1xf32> -> vector<8x1xf32>
    %418 = vector.broadcast %417 : vector<8x1xf32> to vector<8x8xf32>
    %419 = arith.mulf %414, %418 : vector<8x8xf32>
    %cst_157 = arith.constant dense<0.000000e+00> : vector<8x16xf32>
    %420 = tpu.matmul %419, %403, %cst_157 {dimension_numbers = #tpu.dot_dimension_numbers<[1], [0], [0], [1], [0, 0, 1, 1], [], []>} : vector<8x8xf32>, vector<8x16xf32>, vector<8x16xf32> -> vector<8x16xf32>
    %421 = vector.extract_strided_slice %306 {offsets = [0, 0], sizes = [16, 64], strides = [1, 1]} : vector<64x64xf32> to vector<16x64xf32>
    %cst_158 = arith.constant dense<0.000000e+00> : vector<8x64xf32>
    %422 = tpu.matmul %420, %421, %cst_158 {dimension_numbers = #tpu.dot_dimension_numbers<[1], [0], [0], [1], [0, 0, 1, 1], [], []>} : vector<8x16xf32>, vector<16x64xf32>, vector<8x64xf32> -> vector<8x64xf32>
    %423 = arith.addf %400, %422 : vector<8x64xf32>
    %424 = vector.extract_strided_slice %302 {offsets = [8, 16], sizes = [8, 16], strides = [1, 1]} : vector<16x64xf32> to vector<8x16xf32>
    %425 = vector.extract_strided_slice %303 {offsets = [8, 16], sizes = [8, 16], strides = [1, 1]} : vector<16x64xf32> to vector<8x16xf32>
    %426 = vector.extract_strided_slice %304 {offsets = [8, 16], sizes = [8, 16], strides = [1, 1]} : vector<16x64xf32> to vector<8x16xf32>
    %427 = tpu.transpose %425, [1, 0] : vector<8x16xf32> -> vector<16x8xf32>
    %cst_159 = arith.constant dense<0.000000e+00> : vector<8x8xf32>
    %428 = tpu.matmul %424, %427, %cst_159 {dimension_numbers = #tpu.dot_dimension_numbers<[1], [0], [0], [1], [0, 0, 1, 1], [], []>} : vector<8x16xf32>, vector<16x8xf32>, vector<8x8xf32> -> vector<8x8xf32>
    %cst_160 = arith.constant 2.500000e-01 : f32
    %429 = vector.broadcast %cst_160 : f32 to vector<8x8xf32>
    %430 = arith.mulf %428, %429 : vector<8x8xf32>
    %cst_161 = arith.constant -1.000000e+30 : f32
    %431 = vector.broadcast %cst_161 : f32 to vector<8x8xf32>
    %432 = arith.select %3, %430, %431 : vector<8x8xi1>, vector<8x8xf32>
    %cst_162 = arith.constant dense<0xFF800000> : vector<8xf32>
    %433 = vector.multi_reduction <maximumf>, %432, %cst_162 [1] : vector<8x8xf32> to vector<8xf32>
    %434 = vector.shape_cast %433 : vector<8xf32> to vector<8x1xf32>
    %435 = vector.broadcast %434 : vector<8x1xf32> to vector<8x8xf32>
    %436 = arith.subf %432, %435 : vector<8x8xf32>
    %437 = math.exp %436 : vector<8x8xf32>
    %cst_163 = arith.constant dense<0.000000e+00> : vector<8xf32>
    %438 = vector.multi_reduction <add>, %437, %cst_163 [1] : vector<8x8xf32> to vector<8xf32>
    %439 = vector.shape_cast %438 : vector<8xf32> to vector<8x1xf32>
    %440 = tpu.reciprocal %439 {approx = true} : vector<8x1xf32> -> vector<8x1xf32>
    %441 = vector.broadcast %440 : vector<8x1xf32> to vector<8x8xf32>
    %442 = arith.mulf %437, %441 : vector<8x8xf32>
    %cst_164 = arith.constant dense<0.000000e+00> : vector<8x16xf32>
    %443 = tpu.matmul %442, %426, %cst_164 {dimension_numbers = #tpu.dot_dimension_numbers<[1], [0], [0], [1], [0, 0, 1, 1], [], []>} : vector<8x8xf32>, vector<8x16xf32>, vector<8x16xf32> -> vector<8x16xf32>
    %444 = vector.extract_strided_slice %306 {offsets = [16, 0], sizes = [16, 64], strides = [1, 1]} : vector<64x64xf32> to vector<16x64xf32>
    %cst_165 = arith.constant dense<0.000000e+00> : vector<8x64xf32>
    %445 = tpu.matmul %443, %444, %cst_165 {dimension_numbers = #tpu.dot_dimension_numbers<[1], [0], [0], [1], [0, 0, 1, 1], [], []>} : vector<8x16xf32>, vector<16x64xf32>, vector<8x64xf32> -> vector<8x64xf32>
    %446 = arith.addf %423, %445 : vector<8x64xf32>
    %447 = vector.extract_strided_slice %302 {offsets = [8, 32], sizes = [8, 16], strides = [1, 1]} : vector<16x64xf32> to vector<8x16xf32>
    %448 = vector.extract_strided_slice %303 {offsets = [8, 32], sizes = [8, 16], strides = [1, 1]} : vector<16x64xf32> to vector<8x16xf32>
    %449 = vector.extract_strided_slice %304 {offsets = [8, 32], sizes = [8, 16], strides = [1, 1]} : vector<16x64xf32> to vector<8x16xf32>
    %450 = tpu.transpose %448, [1, 0] : vector<8x16xf32> -> vector<16x8xf32>
    %cst_166 = arith.constant dense<0.000000e+00> : vector<8x8xf32>
    %451 = tpu.matmul %447, %450, %cst_166 {dimension_numbers = #tpu.dot_dimension_numbers<[1], [0], [0], [1], [0, 0, 1, 1], [], []>} : vector<8x16xf32>, vector<16x8xf32>, vector<8x8xf32> -> vector<8x8xf32>
    %cst_167 = arith.constant 2.500000e-01 : f32
    %452 = vector.broadcast %cst_167 : f32 to vector<8x8xf32>
    %453 = arith.mulf %451, %452 : vector<8x8xf32>
    %cst_168 = arith.constant -1.000000e+30 : f32
    %454 = vector.broadcast %cst_168 : f32 to vector<8x8xf32>
    %455 = arith.select %3, %453, %454 : vector<8x8xi1>, vector<8x8xf32>
    %cst_169 = arith.constant dense<0xFF800000> : vector<8xf32>
    %456 = vector.multi_reduction <maximumf>, %455, %cst_169 [1] : vector<8x8xf32> to vector<8xf32>
    %457 = vector.shape_cast %456 : vector<8xf32> to vector<8x1xf32>
    %458 = vector.broadcast %457 : vector<8x1xf32> to vector<8x8xf32>
    %459 = arith.subf %455, %458 : vector<8x8xf32>
    %460 = math.exp %459 : vector<8x8xf32>
    %cst_170 = arith.constant dense<0.000000e+00> : vector<8xf32>
    %461 = vector.multi_reduction <add>, %460, %cst_170 [1] : vector<8x8xf32> to vector<8xf32>
    %462 = vector.shape_cast %461 : vector<8xf32> to vector<8x1xf32>
    %463 = tpu.reciprocal %462 {approx = true} : vector<8x1xf32> -> vector<8x1xf32>
    %464 = vector.broadcast %463 : vector<8x1xf32> to vector<8x8xf32>
    %465 = arith.mulf %460, %464 : vector<8x8xf32>
    %cst_171 = arith.constant dense<0.000000e+00> : vector<8x16xf32>
    %466 = tpu.matmul %465, %449, %cst_171 {dimension_numbers = #tpu.dot_dimension_numbers<[1], [0], [0], [1], [0, 0, 1, 1], [], []>} : vector<8x8xf32>, vector<8x16xf32>, vector<8x16xf32> -> vector<8x16xf32>
    %467 = vector.extract_strided_slice %306 {offsets = [32, 0], sizes = [16, 64], strides = [1, 1]} : vector<64x64xf32> to vector<16x64xf32>
    %cst_172 = arith.constant dense<0.000000e+00> : vector<8x64xf32>
    %468 = tpu.matmul %466, %467, %cst_172 {dimension_numbers = #tpu.dot_dimension_numbers<[1], [0], [0], [1], [0, 0, 1, 1], [], []>} : vector<8x16xf32>, vector<16x64xf32>, vector<8x64xf32> -> vector<8x64xf32>
    %469 = arith.addf %446, %468 : vector<8x64xf32>
    %470 = vector.extract_strided_slice %302 {offsets = [8, 48], sizes = [8, 16], strides = [1, 1]} : vector<16x64xf32> to vector<8x16xf32>
    %471 = vector.extract_strided_slice %303 {offsets = [8, 48], sizes = [8, 16], strides = [1, 1]} : vector<16x64xf32> to vector<8x16xf32>
    %472 = vector.extract_strided_slice %304 {offsets = [8, 48], sizes = [8, 16], strides = [1, 1]} : vector<16x64xf32> to vector<8x16xf32>
    %473 = tpu.transpose %471, [1, 0] : vector<8x16xf32> -> vector<16x8xf32>
    %cst_173 = arith.constant dense<0.000000e+00> : vector<8x8xf32>
    %474 = tpu.matmul %470, %473, %cst_173 {dimension_numbers = #tpu.dot_dimension_numbers<[1], [0], [0], [1], [0, 0, 1, 1], [], []>} : vector<8x16xf32>, vector<16x8xf32>, vector<8x8xf32> -> vector<8x8xf32>
    %cst_174 = arith.constant 2.500000e-01 : f32
    %475 = vector.broadcast %cst_174 : f32 to vector<8x8xf32>
    %476 = arith.mulf %474, %475 : vector<8x8xf32>
    %cst_175 = arith.constant -1.000000e+30 : f32
    %477 = vector.broadcast %cst_175 : f32 to vector<8x8xf32>
    %478 = arith.select %3, %476, %477 : vector<8x8xi1>, vector<8x8xf32>
    %cst_176 = arith.constant dense<0xFF800000> : vector<8xf32>
    %479 = vector.multi_reduction <maximumf>, %478, %cst_176 [1] : vector<8x8xf32> to vector<8xf32>
    %480 = vector.shape_cast %479 : vector<8xf32> to vector<8x1xf32>
    %481 = vector.broadcast %480 : vector<8x1xf32> to vector<8x8xf32>
    %482 = arith.subf %478, %481 : vector<8x8xf32>
    %483 = math.exp %482 : vector<8x8xf32>
    %cst_177 = arith.constant dense<0.000000e+00> : vector<8xf32>
    %484 = vector.multi_reduction <add>, %483, %cst_177 [1] : vector<8x8xf32> to vector<8xf32>
    %485 = vector.shape_cast %484 : vector<8xf32> to vector<8x1xf32>
    %486 = tpu.reciprocal %485 {approx = true} : vector<8x1xf32> -> vector<8x1xf32>
    %487 = vector.broadcast %486 : vector<8x1xf32> to vector<8x8xf32>
    %488 = arith.mulf %483, %487 : vector<8x8xf32>
    %cst_178 = arith.constant dense<0.000000e+00> : vector<8x16xf32>
    %489 = tpu.matmul %488, %472, %cst_178 {dimension_numbers = #tpu.dot_dimension_numbers<[1], [0], [0], [1], [0, 0, 1, 1], [], []>} : vector<8x8xf32>, vector<8x16xf32>, vector<8x16xf32> -> vector<8x16xf32>
    %490 = vector.extract_strided_slice %306 {offsets = [48, 0], sizes = [16, 64], strides = [1, 1]} : vector<64x64xf32> to vector<16x64xf32>
    %cst_179 = arith.constant dense<0.000000e+00> : vector<8x64xf32>
    %491 = tpu.matmul %489, %490, %cst_179 {dimension_numbers = #tpu.dot_dimension_numbers<[1], [0], [0], [1], [0, 0, 1, 1], [], []>} : vector<8x16xf32>, vector<16x64xf32>, vector<8x64xf32> -> vector<8x64xf32>
    %492 = arith.addf %469, %491 : vector<8x64xf32>
    %493 = tpu.concatenate %399, %492 in 0 : vector<8x64xf32>, vector<8x64xf32> -> vector<16x64xf32>
    %c1_180 = arith.constant 1 : index
    %c0_181 = arith.constant 0 : index
    %c0_182 = arith.constant 0 : index
    %494 = vector.load %arg5[%c1_180, %c0_181, %c0_182] : memref<4x1x64xf32, #tpu.memory_space<vmem>>, vector<1x1x64xf32>
    %495 = vector.shape_cast %494 : vector<1x1x64xf32> to vector<1x64xf32>
    %496 = vector.broadcast %495 : vector<1x64xf32> to vector<16x64xf32>
    %497 = arith.addf %493, %496 : vector<16x64xf32>
    %498 = arith.addf %272, %497 : vector<16x64xf32>
    %c1_183 = arith.constant 1 : index
    %c0_184 = arith.constant 0 : index
    %c0_185 = arith.constant 0 : index
    %499 = vector.load %arg6[%c1_183, %c0_184, %c0_185] : memref<4x1x64xf32, #tpu.memory_space<vmem>>, vector<1x1x64xf32>
    %500 = vector.shape_cast %499 : vector<1x1x64xf32> to vector<1x64xf32>
    %c1_186 = arith.constant 1 : index
    %c0_187 = arith.constant 0 : index
    %c0_188 = arith.constant 0 : index
    %501 = vector.load %arg7[%c1_186, %c0_187, %c0_188] : memref<4x1x64xf32, #tpu.memory_space<vmem>>, vector<1x1x64xf32>
    %502 = vector.shape_cast %501 : vector<1x1x64xf32> to vector<1x64xf32>
    %cst_189 = arith.constant dense<0.000000e+00> : vector<16xf32>
    %503 = vector.multi_reduction <add>, %498, %cst_189 [1] : vector<16x64xf32> to vector<16xf32>
    %504 = vector.shape_cast %503 : vector<16xf32> to vector<16x1xf32>
    %cst_190 = arith.constant 6.400000e+01 : f32
    %505 = vector.broadcast %cst_190 : f32 to vector<16x1xf32>
    %506 = arith.divf %504, %505 : vector<16x1xf32>
    %507 = vector.broadcast %506 : vector<16x1xf32> to vector<16x64xf32>
    %508 = arith.subf %498, %507 : vector<16x64xf32>
    %509 = arith.mulf %508, %508 : vector<16x64xf32>
    %cst_191 = arith.constant dense<0.000000e+00> : vector<16xf32>
    %510 = vector.multi_reduction <add>, %509, %cst_191 [1] : vector<16x64xf32> to vector<16xf32>
    %511 = vector.shape_cast %510 : vector<16xf32> to vector<16x1xf32>
    %cst_192 = arith.constant 6.400000e+01 : f32
    %512 = vector.broadcast %cst_192 : f32 to vector<16x1xf32>
    %513 = arith.divf %511, %512 : vector<16x1xf32>
    %514 = vector.broadcast %506 : vector<16x1xf32> to vector<16x64xf32>
    %515 = arith.subf %498, %514 : vector<16x64xf32>
    %cst_193 = arith.constant 9.99999974E-6 : f32
    %516 = vector.broadcast %cst_193 : f32 to vector<16x1xf32>
    %517 = arith.addf %513, %516 : vector<16x1xf32>
    %518 = math.rsqrt %517 : vector<16x1xf32>
    %519 = vector.broadcast %518 : vector<16x1xf32> to vector<16x64xf32>
    %520 = arith.mulf %515, %519 : vector<16x64xf32>
    %521 = vector.broadcast %500 : vector<1x64xf32> to vector<16x64xf32>
    %522 = arith.mulf %520, %521 : vector<16x64xf32>
    %523 = vector.broadcast %502 : vector<1x64xf32> to vector<16x64xf32>
    %524 = arith.addf %522, %523 : vector<16x64xf32>
    %c1_194 = arith.constant 1 : index
    %c0_195 = arith.constant 0 : index
    %c0_196 = arith.constant 0 : index
    %525 = vector.load %arg8[%c1_194, %c0_195, %c0_196] : memref<4x64x256xf32, #tpu.memory_space<vmem>>, vector<1x64x256xf32>
    %526 = vector.shape_cast %525 : vector<1x64x256xf32> to vector<64x256xf32>
    %cst_197 = arith.constant dense<0.000000e+00> : vector<16x256xf32>
    %527 = tpu.matmul %524, %526, %cst_197 {dimension_numbers = #tpu.dot_dimension_numbers<[1], [0], [0], [1], [0, 0, 1, 1], [], []>} : vector<16x64xf32>, vector<64x256xf32>, vector<16x256xf32> -> vector<16x256xf32>
    %c1_198 = arith.constant 1 : index
    %c0_199 = arith.constant 0 : index
    %c0_200 = arith.constant 0 : index
    %528 = vector.load %arg9[%c1_198, %c0_199, %c0_200] : memref<4x1x256xf32, #tpu.memory_space<vmem>>, vector<1x1x256xf32>
    %529 = vector.shape_cast %528 : vector<1x1x256xf32> to vector<1x256xf32>
    %530 = vector.broadcast %529 : vector<1x256xf32> to vector<16x256xf32>
    %531 = arith.addf %527, %530 : vector<16x256xf32>
    %cst_201 = arith.constant 0.000000e+00 : f32
    %532 = vector.broadcast %cst_201 : f32 to vector<16x256xf32>
    %533 = arith.maximumf %531, %532 : vector<16x256xf32>
    %c1_202 = arith.constant 1 : index
    %c0_203 = arith.constant 0 : index
    %c0_204 = arith.constant 0 : index
    %534 = vector.load %arg10[%c1_202, %c0_203, %c0_204] : memref<4x256x64xf32, #tpu.memory_space<vmem>>, vector<1x256x64xf32>
    %535 = vector.shape_cast %534 : vector<1x256x64xf32> to vector<256x64xf32>
    %cst_205 = arith.constant dense<0.000000e+00> : vector<16x64xf32>
    %536 = tpu.matmul %533, %535, %cst_205 {dimension_numbers = #tpu.dot_dimension_numbers<[1], [0], [0], [1], [0, 0, 1, 1], [], []>} : vector<16x256xf32>, vector<256x64xf32>, vector<16x64xf32> -> vector<16x64xf32>
    %537 = arith.addf %498, %536 : vector<16x64xf32>
    %c1_206 = arith.constant 1 : index
    %c0_207 = arith.constant 0 : index
    %c0_208 = arith.constant 0 : index
    %538 = vector.load %arg11[%c1_206, %c0_207, %c0_208] : memref<4x1x64xf32, #tpu.memory_space<vmem>>, vector<1x1x64xf32>
    %539 = vector.shape_cast %538 : vector<1x1x64xf32> to vector<1x64xf32>
    %540 = vector.broadcast %539 : vector<1x64xf32> to vector<16x64xf32>
    %541 = arith.addf %537, %540 : vector<16x64xf32>
    %c2 = arith.constant 2 : index
    %c0_209 = arith.constant 0 : index
    %c0_210 = arith.constant 0 : index
    %542 = vector.load %arg1[%c2, %c0_209, %c0_210] : memref<4x1x64xf32, #tpu.memory_space<vmem>>, vector<1x1x64xf32>
    %543 = vector.shape_cast %542 : vector<1x1x64xf32> to vector<1x64xf32>
    %c2_211 = arith.constant 2 : index
    %c0_212 = arith.constant 0 : index
    %c0_213 = arith.constant 0 : index
    %544 = vector.load %arg2[%c2_211, %c0_212, %c0_213] : memref<4x1x64xf32, #tpu.memory_space<vmem>>, vector<1x1x64xf32>
    %545 = vector.shape_cast %544 : vector<1x1x64xf32> to vector<1x64xf32>
    %cst_214 = arith.constant dense<0.000000e+00> : vector<16xf32>
    %546 = vector.multi_reduction <add>, %541, %cst_214 [1] : vector<16x64xf32> to vector<16xf32>
    %547 = vector.shape_cast %546 : vector<16xf32> to vector<16x1xf32>
    %cst_215 = arith.constant 6.400000e+01 : f32
    %548 = vector.broadcast %cst_215 : f32 to vector<16x1xf32>
    %549 = arith.divf %547, %548 : vector<16x1xf32>
    %550 = vector.broadcast %549 : vector<16x1xf32> to vector<16x64xf32>
    %551 = arith.subf %541, %550 : vector<16x64xf32>
    %552 = arith.mulf %551, %551 : vector<16x64xf32>
    %cst_216 = arith.constant dense<0.000000e+00> : vector<16xf32>
    %553 = vector.multi_reduction <add>, %552, %cst_216 [1] : vector<16x64xf32> to vector<16xf32>
    %554 = vector.shape_cast %553 : vector<16xf32> to vector<16x1xf32>
    %cst_217 = arith.constant 6.400000e+01 : f32
    %555 = vector.broadcast %cst_217 : f32 to vector<16x1xf32>
    %556 = arith.divf %554, %555 : vector<16x1xf32>
    %557 = vector.broadcast %549 : vector<16x1xf32> to vector<16x64xf32>
    %558 = arith.subf %541, %557 : vector<16x64xf32>
    %cst_218 = arith.constant 9.99999974E-6 : f32
    %559 = vector.broadcast %cst_218 : f32 to vector<16x1xf32>
    %560 = arith.addf %556, %559 : vector<16x1xf32>
    %561 = math.rsqrt %560 : vector<16x1xf32>
    %562 = vector.broadcast %561 : vector<16x1xf32> to vector<16x64xf32>
    %563 = arith.mulf %558, %562 : vector<16x64xf32>
    %564 = vector.broadcast %543 : vector<1x64xf32> to vector<16x64xf32>
    %565 = arith.mulf %563, %564 : vector<16x64xf32>
    %566 = vector.broadcast %545 : vector<1x64xf32> to vector<16x64xf32>
    %567 = arith.addf %565, %566 : vector<16x64xf32>
    %c2_219 = arith.constant 2 : index
    %c0_220 = arith.constant 0 : index
    %c0_221 = arith.constant 0 : index
    %568 = vector.load %arg3[%c2_219, %c0_220, %c0_221] : memref<4x64x192xf32, #tpu.memory_space<vmem>>, vector<1x64x192xf32>
    %569 = vector.shape_cast %568 : vector<1x64x192xf32> to vector<64x192xf32>
    %cst_222 = arith.constant dense<0.000000e+00> : vector<16x192xf32>
    %570 = tpu.matmul %567, %569, %cst_222 {dimension_numbers = #tpu.dot_dimension_numbers<[1], [0], [0], [1], [0, 0, 1, 1], [], []>} : vector<16x64xf32>, vector<64x192xf32>, vector<16x192xf32> -> vector<16x192xf32>
    %571 = vector.extract_strided_slice %570 {offsets = [0, 0], sizes = [16, 64], strides = [1, 1]} : vector<16x192xf32> to vector<16x64xf32>
    %572 = vector.extract_strided_slice %570 {offsets = [0, 64], sizes = [16, 64], strides = [1, 1]} : vector<16x192xf32> to vector<16x64xf32>
    %573 = vector.extract_strided_slice %570 {offsets = [0, 128], sizes = [16, 64], strides = [1, 1]} : vector<16x192xf32> to vector<16x64xf32>
    %c2_223 = arith.constant 2 : index
    %c0_224 = arith.constant 0 : index
    %c0_225 = arith.constant 0 : index
    %574 = vector.load %arg4[%c2_223, %c0_224, %c0_225] : memref<4x64x64xf32, #tpu.memory_space<vmem>>, vector<1x64x64xf32>
    %575 = vector.shape_cast %574 : vector<1x64x64xf32> to vector<64x64xf32>
    %cst_226 = arith.constant 0.000000e+00 : f32
    %576 = vector.broadcast %cst_226 : f32 to vector<8x64xf32>
    %577 = vector.extract_strided_slice %571 {offsets = [0, 0], sizes = [8, 16], strides = [1, 1]} : vector<16x64xf32> to vector<8x16xf32>
    %578 = vector.extract_strided_slice %572 {offsets = [0, 0], sizes = [8, 16], strides = [1, 1]} : vector<16x64xf32> to vector<8x16xf32>
    %579 = vector.extract_strided_slice %573 {offsets = [0, 0], sizes = [8, 16], strides = [1, 1]} : vector<16x64xf32> to vector<8x16xf32>
    %580 = tpu.transpose %578, [1, 0] : vector<8x16xf32> -> vector<16x8xf32>
    %cst_227 = arith.constant dense<0.000000e+00> : vector<8x8xf32>
    %581 = tpu.matmul %577, %580, %cst_227 {dimension_numbers = #tpu.dot_dimension_numbers<[1], [0], [0], [1], [0, 0, 1, 1], [], []>} : vector<8x16xf32>, vector<16x8xf32>, vector<8x8xf32> -> vector<8x8xf32>
    %cst_228 = arith.constant 2.500000e-01 : f32
    %582 = vector.broadcast %cst_228 : f32 to vector<8x8xf32>
    %583 = arith.mulf %581, %582 : vector<8x8xf32>
    %cst_229 = arith.constant -1.000000e+30 : f32
    %584 = vector.broadcast %cst_229 : f32 to vector<8x8xf32>
    %585 = arith.select %3, %583, %584 : vector<8x8xi1>, vector<8x8xf32>
    %cst_230 = arith.constant dense<0xFF800000> : vector<8xf32>
    %586 = vector.multi_reduction <maximumf>, %585, %cst_230 [1] : vector<8x8xf32> to vector<8xf32>
    %587 = vector.shape_cast %586 : vector<8xf32> to vector<8x1xf32>
    %588 = vector.broadcast %587 : vector<8x1xf32> to vector<8x8xf32>
    %589 = arith.subf %585, %588 : vector<8x8xf32>
    %590 = math.exp %589 : vector<8x8xf32>
    %cst_231 = arith.constant dense<0.000000e+00> : vector<8xf32>
    %591 = vector.multi_reduction <add>, %590, %cst_231 [1] : vector<8x8xf32> to vector<8xf32>
    %592 = vector.shape_cast %591 : vector<8xf32> to vector<8x1xf32>
    %593 = tpu.reciprocal %592 {approx = true} : vector<8x1xf32> -> vector<8x1xf32>
    %594 = vector.broadcast %593 : vector<8x1xf32> to vector<8x8xf32>
    %595 = arith.mulf %590, %594 : vector<8x8xf32>
    %cst_232 = arith.constant dense<0.000000e+00> : vector<8x16xf32>
    %596 = tpu.matmul %595, %579, %cst_232 {dimension_numbers = #tpu.dot_dimension_numbers<[1], [0], [0], [1], [0, 0, 1, 1], [], []>} : vector<8x8xf32>, vector<8x16xf32>, vector<8x16xf32> -> vector<8x16xf32>
    %597 = vector.extract_strided_slice %575 {offsets = [0, 0], sizes = [16, 64], strides = [1, 1]} : vector<64x64xf32> to vector<16x64xf32>
    %cst_233 = arith.constant dense<0.000000e+00> : vector<8x64xf32>
    %598 = tpu.matmul %596, %597, %cst_233 {dimension_numbers = #tpu.dot_dimension_numbers<[1], [0], [0], [1], [0, 0, 1, 1], [], []>} : vector<8x16xf32>, vector<16x64xf32>, vector<8x64xf32> -> vector<8x64xf32>
    %599 = arith.addf %576, %598 : vector<8x64xf32>
    %600 = vector.extract_strided_slice %571 {offsets = [0, 16], sizes = [8, 16], strides = [1, 1]} : vector<16x64xf32> to vector<8x16xf32>
    %601 = vector.extract_strided_slice %572 {offsets = [0, 16], sizes = [8, 16], strides = [1, 1]} : vector<16x64xf32> to vector<8x16xf32>
    %602 = vector.extract_strided_slice %573 {offsets = [0, 16], sizes = [8, 16], strides = [1, 1]} : vector<16x64xf32> to vector<8x16xf32>
    %603 = tpu.transpose %601, [1, 0] : vector<8x16xf32> -> vector<16x8xf32>
    %cst_234 = arith.constant dense<0.000000e+00> : vector<8x8xf32>
    %604 = tpu.matmul %600, %603, %cst_234 {dimension_numbers = #tpu.dot_dimension_numbers<[1], [0], [0], [1], [0, 0, 1, 1], [], []>} : vector<8x16xf32>, vector<16x8xf32>, vector<8x8xf32> -> vector<8x8xf32>
    %cst_235 = arith.constant 2.500000e-01 : f32
    %605 = vector.broadcast %cst_235 : f32 to vector<8x8xf32>
    %606 = arith.mulf %604, %605 : vector<8x8xf32>
    %cst_236 = arith.constant -1.000000e+30 : f32
    %607 = vector.broadcast %cst_236 : f32 to vector<8x8xf32>
    %608 = arith.select %3, %606, %607 : vector<8x8xi1>, vector<8x8xf32>
    %cst_237 = arith.constant dense<0xFF800000> : vector<8xf32>
    %609 = vector.multi_reduction <maximumf>, %608, %cst_237 [1] : vector<8x8xf32> to vector<8xf32>
    %610 = vector.shape_cast %609 : vector<8xf32> to vector<8x1xf32>
    %611 = vector.broadcast %610 : vector<8x1xf32> to vector<8x8xf32>
    %612 = arith.subf %608, %611 : vector<8x8xf32>
    %613 = math.exp %612 : vector<8x8xf32>
    %cst_238 = arith.constant dense<0.000000e+00> : vector<8xf32>
    %614 = vector.multi_reduction <add>, %613, %cst_238 [1] : vector<8x8xf32> to vector<8xf32>
    %615 = vector.shape_cast %614 : vector<8xf32> to vector<8x1xf32>
    %616 = tpu.reciprocal %615 {approx = true} : vector<8x1xf32> -> vector<8x1xf32>
    %617 = vector.broadcast %616 : vector<8x1xf32> to vector<8x8xf32>
    %618 = arith.mulf %613, %617 : vector<8x8xf32>
    %cst_239 = arith.constant dense<0.000000e+00> : vector<8x16xf32>
    %619 = tpu.matmul %618, %602, %cst_239 {dimension_numbers = #tpu.dot_dimension_numbers<[1], [0], [0], [1], [0, 0, 1, 1], [], []>} : vector<8x8xf32>, vector<8x16xf32>, vector<8x16xf32> -> vector<8x16xf32>
    %620 = vector.extract_strided_slice %575 {offsets = [16, 0], sizes = [16, 64], strides = [1, 1]} : vector<64x64xf32> to vector<16x64xf32>
    %cst_240 = arith.constant dense<0.000000e+00> : vector<8x64xf32>
    %621 = tpu.matmul %619, %620, %cst_240 {dimension_numbers = #tpu.dot_dimension_numbers<[1], [0], [0], [1], [0, 0, 1, 1], [], []>} : vector<8x16xf32>, vector<16x64xf32>, vector<8x64xf32> -> vector<8x64xf32>
    %622 = arith.addf %599, %621 : vector<8x64xf32>
    %623 = vector.extract_strided_slice %571 {offsets = [0, 32], sizes = [8, 16], strides = [1, 1]} : vector<16x64xf32> to vector<8x16xf32>
    %624 = vector.extract_strided_slice %572 {offsets = [0, 32], sizes = [8, 16], strides = [1, 1]} : vector<16x64xf32> to vector<8x16xf32>
    %625 = vector.extract_strided_slice %573 {offsets = [0, 32], sizes = [8, 16], strides = [1, 1]} : vector<16x64xf32> to vector<8x16xf32>
    %626 = tpu.transpose %624, [1, 0] : vector<8x16xf32> -> vector<16x8xf32>
    %cst_241 = arith.constant dense<0.000000e+00> : vector<8x8xf32>
    %627 = tpu.matmul %623, %626, %cst_241 {dimension_numbers = #tpu.dot_dimension_numbers<[1], [0], [0], [1], [0, 0, 1, 1], [], []>} : vector<8x16xf32>, vector<16x8xf32>, vector<8x8xf32> -> vector<8x8xf32>
    %cst_242 = arith.constant 2.500000e-01 : f32
    %628 = vector.broadcast %cst_242 : f32 to vector<8x8xf32>
    %629 = arith.mulf %627, %628 : vector<8x8xf32>
    %cst_243 = arith.constant -1.000000e+30 : f32
    %630 = vector.broadcast %cst_243 : f32 to vector<8x8xf32>
    %631 = arith.select %3, %629, %630 : vector<8x8xi1>, vector<8x8xf32>
    %cst_244 = arith.constant dense<0xFF800000> : vector<8xf32>
    %632 = vector.multi_reduction <maximumf>, %631, %cst_244 [1] : vector<8x8xf32> to vector<8xf32>
    %633 = vector.shape_cast %632 : vector<8xf32> to vector<8x1xf32>
    %634 = vector.broadcast %633 : vector<8x1xf32> to vector<8x8xf32>
    %635 = arith.subf %631, %634 : vector<8x8xf32>
    %636 = math.exp %635 : vector<8x8xf32>
    %cst_245 = arith.constant dense<0.000000e+00> : vector<8xf32>
    %637 = vector.multi_reduction <add>, %636, %cst_245 [1] : vector<8x8xf32> to vector<8xf32>
    %638 = vector.shape_cast %637 : vector<8xf32> to vector<8x1xf32>
    %639 = tpu.reciprocal %638 {approx = true} : vector<8x1xf32> -> vector<8x1xf32>
    %640 = vector.broadcast %639 : vector<8x1xf32> to vector<8x8xf32>
    %641 = arith.mulf %636, %640 : vector<8x8xf32>
    %cst_246 = arith.constant dense<0.000000e+00> : vector<8x16xf32>
    %642 = tpu.matmul %641, %625, %cst_246 {dimension_numbers = #tpu.dot_dimension_numbers<[1], [0], [0], [1], [0, 0, 1, 1], [], []>} : vector<8x8xf32>, vector<8x16xf32>, vector<8x16xf32> -> vector<8x16xf32>
    %643 = vector.extract_strided_slice %575 {offsets = [32, 0], sizes = [16, 64], strides = [1, 1]} : vector<64x64xf32> to vector<16x64xf32>
    %cst_247 = arith.constant dense<0.000000e+00> : vector<8x64xf32>
    %644 = tpu.matmul %642, %643, %cst_247 {dimension_numbers = #tpu.dot_dimension_numbers<[1], [0], [0], [1], [0, 0, 1, 1], [], []>} : vector<8x16xf32>, vector<16x64xf32>, vector<8x64xf32> -> vector<8x64xf32>
    %645 = arith.addf %622, %644 : vector<8x64xf32>
    %646 = vector.extract_strided_slice %571 {offsets = [0, 48], sizes = [8, 16], strides = [1, 1]} : vector<16x64xf32> to vector<8x16xf32>
    %647 = vector.extract_strided_slice %572 {offsets = [0, 48], sizes = [8, 16], strides = [1, 1]} : vector<16x64xf32> to vector<8x16xf32>
    %648 = vector.extract_strided_slice %573 {offsets = [0, 48], sizes = [8, 16], strides = [1, 1]} : vector<16x64xf32> to vector<8x16xf32>
    %649 = tpu.transpose %647, [1, 0] : vector<8x16xf32> -> vector<16x8xf32>
    %cst_248 = arith.constant dense<0.000000e+00> : vector<8x8xf32>
    %650 = tpu.matmul %646, %649, %cst_248 {dimension_numbers = #tpu.dot_dimension_numbers<[1], [0], [0], [1], [0, 0, 1, 1], [], []>} : vector<8x16xf32>, vector<16x8xf32>, vector<8x8xf32> -> vector<8x8xf32>
    %cst_249 = arith.constant 2.500000e-01 : f32
    %651 = vector.broadcast %cst_249 : f32 to vector<8x8xf32>
    %652 = arith.mulf %650, %651 : vector<8x8xf32>
    %cst_250 = arith.constant -1.000000e+30 : f32
    %653 = vector.broadcast %cst_250 : f32 to vector<8x8xf32>
    %654 = arith.select %3, %652, %653 : vector<8x8xi1>, vector<8x8xf32>
    %cst_251 = arith.constant dense<0xFF800000> : vector<8xf32>
    %655 = vector.multi_reduction <maximumf>, %654, %cst_251 [1] : vector<8x8xf32> to vector<8xf32>
    %656 = vector.shape_cast %655 : vector<8xf32> to vector<8x1xf32>
    %657 = vector.broadcast %656 : vector<8x1xf32> to vector<8x8xf32>
    %658 = arith.subf %654, %657 : vector<8x8xf32>
    %659 = math.exp %658 : vector<8x8xf32>
    %cst_252 = arith.constant dense<0.000000e+00> : vector<8xf32>
    %660 = vector.multi_reduction <add>, %659, %cst_252 [1] : vector<8x8xf32> to vector<8xf32>
    %661 = vector.shape_cast %660 : vector<8xf32> to vector<8x1xf32>
    %662 = tpu.reciprocal %661 {approx = true} : vector<8x1xf32> -> vector<8x1xf32>
    %663 = vector.broadcast %662 : vector<8x1xf32> to vector<8x8xf32>
    %664 = arith.mulf %659, %663 : vector<8x8xf32>
    %cst_253 = arith.constant dense<0.000000e+00> : vector<8x16xf32>
    %665 = tpu.matmul %664, %648, %cst_253 {dimension_numbers = #tpu.dot_dimension_numbers<[1], [0], [0], [1], [0, 0, 1, 1], [], []>} : vector<8x8xf32>, vector<8x16xf32>, vector<8x16xf32> -> vector<8x16xf32>
    %666 = vector.extract_strided_slice %575 {offsets = [48, 0], sizes = [16, 64], strides = [1, 1]} : vector<64x64xf32> to vector<16x64xf32>
    %cst_254 = arith.constant dense<0.000000e+00> : vector<8x64xf32>
    %667 = tpu.matmul %665, %666, %cst_254 {dimension_numbers = #tpu.dot_dimension_numbers<[1], [0], [0], [1], [0, 0, 1, 1], [], []>} : vector<8x16xf32>, vector<16x64xf32>, vector<8x64xf32> -> vector<8x64xf32>
    %668 = arith.addf %645, %667 : vector<8x64xf32>
    %cst_255 = arith.constant 0.000000e+00 : f32
    %669 = vector.broadcast %cst_255 : f32 to vector<8x64xf32>
    %670 = vector.extract_strided_slice %571 {offsets = [8, 0], sizes = [8, 16], strides = [1, 1]} : vector<16x64xf32> to vector<8x16xf32>
    %671 = vector.extract_strided_slice %572 {offsets = [8, 0], sizes = [8, 16], strides = [1, 1]} : vector<16x64xf32> to vector<8x16xf32>
    %672 = vector.extract_strided_slice %573 {offsets = [8, 0], sizes = [8, 16], strides = [1, 1]} : vector<16x64xf32> to vector<8x16xf32>
    %673 = tpu.transpose %671, [1, 0] : vector<8x16xf32> -> vector<16x8xf32>
    %cst_256 = arith.constant dense<0.000000e+00> : vector<8x8xf32>
    %674 = tpu.matmul %670, %673, %cst_256 {dimension_numbers = #tpu.dot_dimension_numbers<[1], [0], [0], [1], [0, 0, 1, 1], [], []>} : vector<8x16xf32>, vector<16x8xf32>, vector<8x8xf32> -> vector<8x8xf32>
    %cst_257 = arith.constant 2.500000e-01 : f32
    %675 = vector.broadcast %cst_257 : f32 to vector<8x8xf32>
    %676 = arith.mulf %674, %675 : vector<8x8xf32>
    %cst_258 = arith.constant -1.000000e+30 : f32
    %677 = vector.broadcast %cst_258 : f32 to vector<8x8xf32>
    %678 = arith.select %3, %676, %677 : vector<8x8xi1>, vector<8x8xf32>
    %cst_259 = arith.constant dense<0xFF800000> : vector<8xf32>
    %679 = vector.multi_reduction <maximumf>, %678, %cst_259 [1] : vector<8x8xf32> to vector<8xf32>
    %680 = vector.shape_cast %679 : vector<8xf32> to vector<8x1xf32>
    %681 = vector.broadcast %680 : vector<8x1xf32> to vector<8x8xf32>
    %682 = arith.subf %678, %681 : vector<8x8xf32>
    %683 = math.exp %682 : vector<8x8xf32>
    %cst_260 = arith.constant dense<0.000000e+00> : vector<8xf32>
    %684 = vector.multi_reduction <add>, %683, %cst_260 [1] : vector<8x8xf32> to vector<8xf32>
    %685 = vector.shape_cast %684 : vector<8xf32> to vector<8x1xf32>
    %686 = tpu.reciprocal %685 {approx = true} : vector<8x1xf32> -> vector<8x1xf32>
    %687 = vector.broadcast %686 : vector<8x1xf32> to vector<8x8xf32>
    %688 = arith.mulf %683, %687 : vector<8x8xf32>
    %cst_261 = arith.constant dense<0.000000e+00> : vector<8x16xf32>
    %689 = tpu.matmul %688, %672, %cst_261 {dimension_numbers = #tpu.dot_dimension_numbers<[1], [0], [0], [1], [0, 0, 1, 1], [], []>} : vector<8x8xf32>, vector<8x16xf32>, vector<8x16xf32> -> vector<8x16xf32>
    %690 = vector.extract_strided_slice %575 {offsets = [0, 0], sizes = [16, 64], strides = [1, 1]} : vector<64x64xf32> to vector<16x64xf32>
    %cst_262 = arith.constant dense<0.000000e+00> : vector<8x64xf32>
    %691 = tpu.matmul %689, %690, %cst_262 {dimension_numbers = #tpu.dot_dimension_numbers<[1], [0], [0], [1], [0, 0, 1, 1], [], []>} : vector<8x16xf32>, vector<16x64xf32>, vector<8x64xf32> -> vector<8x64xf32>
    %692 = arith.addf %669, %691 : vector<8x64xf32>
    %693 = vector.extract_strided_slice %571 {offsets = [8, 16], sizes = [8, 16], strides = [1, 1]} : vector<16x64xf32> to vector<8x16xf32>
    %694 = vector.extract_strided_slice %572 {offsets = [8, 16], sizes = [8, 16], strides = [1, 1]} : vector<16x64xf32> to vector<8x16xf32>
    %695 = vector.extract_strided_slice %573 {offsets = [8, 16], sizes = [8, 16], strides = [1, 1]} : vector<16x64xf32> to vector<8x16xf32>
    %696 = tpu.transpose %694, [1, 0] : vector<8x16xf32> -> vector<16x8xf32>
    %cst_263 = arith.constant dense<0.000000e+00> : vector<8x8xf32>
    %697 = tpu.matmul %693, %696, %cst_263 {dimension_numbers = #tpu.dot_dimension_numbers<[1], [0], [0], [1], [0, 0, 1, 1], [], []>} : vector<8x16xf32>, vector<16x8xf32>, vector<8x8xf32> -> vector<8x8xf32>
    %cst_264 = arith.constant 2.500000e-01 : f32
    %698 = vector.broadcast %cst_264 : f32 to vector<8x8xf32>
    %699 = arith.mulf %697, %698 : vector<8x8xf32>
    %cst_265 = arith.constant -1.000000e+30 : f32
    %700 = vector.broadcast %cst_265 : f32 to vector<8x8xf32>
    %701 = arith.select %3, %699, %700 : vector<8x8xi1>, vector<8x8xf32>
    %cst_266 = arith.constant dense<0xFF800000> : vector<8xf32>
    %702 = vector.multi_reduction <maximumf>, %701, %cst_266 [1] : vector<8x8xf32> to vector<8xf32>
    %703 = vector.shape_cast %702 : vector<8xf32> to vector<8x1xf32>
    %704 = vector.broadcast %703 : vector<8x1xf32> to vector<8x8xf32>
    %705 = arith.subf %701, %704 : vector<8x8xf32>
    %706 = math.exp %705 : vector<8x8xf32>
    %cst_267 = arith.constant dense<0.000000e+00> : vector<8xf32>
    %707 = vector.multi_reduction <add>, %706, %cst_267 [1] : vector<8x8xf32> to vector<8xf32>
    %708 = vector.shape_cast %707 : vector<8xf32> to vector<8x1xf32>
    %709 = tpu.reciprocal %708 {approx = true} : vector<8x1xf32> -> vector<8x1xf32>
    %710 = vector.broadcast %709 : vector<8x1xf32> to vector<8x8xf32>
    %711 = arith.mulf %706, %710 : vector<8x8xf32>
    %cst_268 = arith.constant dense<0.000000e+00> : vector<8x16xf32>
    %712 = tpu.matmul %711, %695, %cst_268 {dimension_numbers = #tpu.dot_dimension_numbers<[1], [0], [0], [1], [0, 0, 1, 1], [], []>} : vector<8x8xf32>, vector<8x16xf32>, vector<8x16xf32> -> vector<8x16xf32>
    %713 = vector.extract_strided_slice %575 {offsets = [16, 0], sizes = [16, 64], strides = [1, 1]} : vector<64x64xf32> to vector<16x64xf32>
    %cst_269 = arith.constant dense<0.000000e+00> : vector<8x64xf32>
    %714 = tpu.matmul %712, %713, %cst_269 {dimension_numbers = #tpu.dot_dimension_numbers<[1], [0], [0], [1], [0, 0, 1, 1], [], []>} : vector<8x16xf32>, vector<16x64xf32>, vector<8x64xf32> -> vector<8x64xf32>
    %715 = arith.addf %692, %714 : vector<8x64xf32>
    %716 = vector.extract_strided_slice %571 {offsets = [8, 32], sizes = [8, 16], strides = [1, 1]} : vector<16x64xf32> to vector<8x16xf32>
    %717 = vector.extract_strided_slice %572 {offsets = [8, 32], sizes = [8, 16], strides = [1, 1]} : vector<16x64xf32> to vector<8x16xf32>
    %718 = vector.extract_strided_slice %573 {offsets = [8, 32], sizes = [8, 16], strides = [1, 1]} : vector<16x64xf32> to vector<8x16xf32>
    %719 = tpu.transpose %717, [1, 0] : vector<8x16xf32> -> vector<16x8xf32>
    %cst_270 = arith.constant dense<0.000000e+00> : vector<8x8xf32>
    %720 = tpu.matmul %716, %719, %cst_270 {dimension_numbers = #tpu.dot_dimension_numbers<[1], [0], [0], [1], [0, 0, 1, 1], [], []>} : vector<8x16xf32>, vector<16x8xf32>, vector<8x8xf32> -> vector<8x8xf32>
    %cst_271 = arith.constant 2.500000e-01 : f32
    %721 = vector.broadcast %cst_271 : f32 to vector<8x8xf32>
    %722 = arith.mulf %720, %721 : vector<8x8xf32>
    %cst_272 = arith.constant -1.000000e+30 : f32
    %723 = vector.broadcast %cst_272 : f32 to vector<8x8xf32>
    %724 = arith.select %3, %722, %723 : vector<8x8xi1>, vector<8x8xf32>
    %cst_273 = arith.constant dense<0xFF800000> : vector<8xf32>
    %725 = vector.multi_reduction <maximumf>, %724, %cst_273 [1] : vector<8x8xf32> to vector<8xf32>
    %726 = vector.shape_cast %725 : vector<8xf32> to vector<8x1xf32>
    %727 = vector.broadcast %726 : vector<8x1xf32> to vector<8x8xf32>
    %728 = arith.subf %724, %727 : vector<8x8xf32>
    %729 = math.exp %728 : vector<8x8xf32>
    %cst_274 = arith.constant dense<0.000000e+00> : vector<8xf32>
    %730 = vector.multi_reduction <add>, %729, %cst_274 [1] : vector<8x8xf32> to vector<8xf32>
    %731 = vector.shape_cast %730 : vector<8xf32> to vector<8x1xf32>
    %732 = tpu.reciprocal %731 {approx = true} : vector<8x1xf32> -> vector<8x1xf32>
    %733 = vector.broadcast %732 : vector<8x1xf32> to vector<8x8xf32>
    %734 = arith.mulf %729, %733 : vector<8x8xf32>
    %cst_275 = arith.constant dense<0.000000e+00> : vector<8x16xf32>
    %735 = tpu.matmul %734, %718, %cst_275 {dimension_numbers = #tpu.dot_dimension_numbers<[1], [0], [0], [1], [0, 0, 1, 1], [], []>} : vector<8x8xf32>, vector<8x16xf32>, vector<8x16xf32> -> vector<8x16xf32>
    %736 = vector.extract_strided_slice %575 {offsets = [32, 0], sizes = [16, 64], strides = [1, 1]} : vector<64x64xf32> to vector<16x64xf32>
    %cst_276 = arith.constant dense<0.000000e+00> : vector<8x64xf32>
    %737 = tpu.matmul %735, %736, %cst_276 {dimension_numbers = #tpu.dot_dimension_numbers<[1], [0], [0], [1], [0, 0, 1, 1], [], []>} : vector<8x16xf32>, vector<16x64xf32>, vector<8x64xf32> -> vector<8x64xf32>
    %738 = arith.addf %715, %737 : vector<8x64xf32>
    %739 = vector.extract_strided_slice %571 {offsets = [8, 48], sizes = [8, 16], strides = [1, 1]} : vector<16x64xf32> to vector<8x16xf32>
    %740 = vector.extract_strided_slice %572 {offsets = [8, 48], sizes = [8, 16], strides = [1, 1]} : vector<16x64xf32> to vector<8x16xf32>
    %741 = vector.extract_strided_slice %573 {offsets = [8, 48], sizes = [8, 16], strides = [1, 1]} : vector<16x64xf32> to vector<8x16xf32>
    %742 = tpu.transpose %740, [1, 0] : vector<8x16xf32> -> vector<16x8xf32>
    %cst_277 = arith.constant dense<0.000000e+00> : vector<8x8xf32>
    %743 = tpu.matmul %739, %742, %cst_277 {dimension_numbers = #tpu.dot_dimension_numbers<[1], [0], [0], [1], [0, 0, 1, 1], [], []>} : vector<8x16xf32>, vector<16x8xf32>, vector<8x8xf32> -> vector<8x8xf32>
    %cst_278 = arith.constant 2.500000e-01 : f32
    %744 = vector.broadcast %cst_278 : f32 to vector<8x8xf32>
    %745 = arith.mulf %743, %744 : vector<8x8xf32>
    %cst_279 = arith.constant -1.000000e+30 : f32
    %746 = vector.broadcast %cst_279 : f32 to vector<8x8xf32>
    %747 = arith.select %3, %745, %746 : vector<8x8xi1>, vector<8x8xf32>
    %cst_280 = arith.constant dense<0xFF800000> : vector<8xf32>
    %748 = vector.multi_reduction <maximumf>, %747, %cst_280 [1] : vector<8x8xf32> to vector<8xf32>
    %749 = vector.shape_cast %748 : vector<8xf32> to vector<8x1xf32>
    %750 = vector.broadcast %749 : vector<8x1xf32> to vector<8x8xf32>
    %751 = arith.subf %747, %750 : vector<8x8xf32>
    %752 = math.exp %751 : vector<8x8xf32>
    %cst_281 = arith.constant dense<0.000000e+00> : vector<8xf32>
    %753 = vector.multi_reduction <add>, %752, %cst_281 [1] : vector<8x8xf32> to vector<8xf32>
    %754 = vector.shape_cast %753 : vector<8xf32> to vector<8x1xf32>
    %755 = tpu.reciprocal %754 {approx = true} : vector<8x1xf32> -> vector<8x1xf32>
    %756 = vector.broadcast %755 : vector<8x1xf32> to vector<8x8xf32>
    %757 = arith.mulf %752, %756 : vector<8x8xf32>
    %cst_282 = arith.constant dense<0.000000e+00> : vector<8x16xf32>
    %758 = tpu.matmul %757, %741, %cst_282 {dimension_numbers = #tpu.dot_dimension_numbers<[1], [0], [0], [1], [0, 0, 1, 1], [], []>} : vector<8x8xf32>, vector<8x16xf32>, vector<8x16xf32> -> vector<8x16xf32>
    %759 = vector.extract_strided_slice %575 {offsets = [48, 0], sizes = [16, 64], strides = [1, 1]} : vector<64x64xf32> to vector<16x64xf32>
    %cst_283 = arith.constant dense<0.000000e+00> : vector<8x64xf32>
    %760 = tpu.matmul %758, %759, %cst_283 {dimension_numbers = #tpu.dot_dimension_numbers<[1], [0], [0], [1], [0, 0, 1, 1], [], []>} : vector<8x16xf32>, vector<16x64xf32>, vector<8x64xf32> -> vector<8x64xf32>
    %761 = arith.addf %738, %760 : vector<8x64xf32>
    %762 = tpu.concatenate %668, %761 in 0 : vector<8x64xf32>, vector<8x64xf32> -> vector<16x64xf32>
    %c2_284 = arith.constant 2 : index
    %c0_285 = arith.constant 0 : index
    %c0_286 = arith.constant 0 : index
    %763 = vector.load %arg5[%c2_284, %c0_285, %c0_286] : memref<4x1x64xf32, #tpu.memory_space<vmem>>, vector<1x1x64xf32>
    %764 = vector.shape_cast %763 : vector<1x1x64xf32> to vector<1x64xf32>
    %765 = vector.broadcast %764 : vector<1x64xf32> to vector<16x64xf32>
    %766 = arith.addf %762, %765 : vector<16x64xf32>
    %767 = arith.addf %541, %766 : vector<16x64xf32>
    %c2_287 = arith.constant 2 : index
    %c0_288 = arith.constant 0 : index
    %c0_289 = arith.constant 0 : index
    %768 = vector.load %arg6[%c2_287, %c0_288, %c0_289] : memref<4x1x64xf32, #tpu.memory_space<vmem>>, vector<1x1x64xf32>
    %769 = vector.shape_cast %768 : vector<1x1x64xf32> to vector<1x64xf32>
    %c2_290 = arith.constant 2 : index
    %c0_291 = arith.constant 0 : index
    %c0_292 = arith.constant 0 : index
    %770 = vector.load %arg7[%c2_290, %c0_291, %c0_292] : memref<4x1x64xf32, #tpu.memory_space<vmem>>, vector<1x1x64xf32>
    %771 = vector.shape_cast %770 : vector<1x1x64xf32> to vector<1x64xf32>
    %cst_293 = arith.constant dense<0.000000e+00> : vector<16xf32>
    %772 = vector.multi_reduction <add>, %767, %cst_293 [1] : vector<16x64xf32> to vector<16xf32>
    %773 = vector.shape_cast %772 : vector<16xf32> to vector<16x1xf32>
    %cst_294 = arith.constant 6.400000e+01 : f32
    %774 = vector.broadcast %cst_294 : f32 to vector<16x1xf32>
    %775 = arith.divf %773, %774 : vector<16x1xf32>
    %776 = vector.broadcast %775 : vector<16x1xf32> to vector<16x64xf32>
    %777 = arith.subf %767, %776 : vector<16x64xf32>
    %778 = arith.mulf %777, %777 : vector<16x64xf32>
    %cst_295 = arith.constant dense<0.000000e+00> : vector<16xf32>
    %779 = vector.multi_reduction <add>, %778, %cst_295 [1] : vector<16x64xf32> to vector<16xf32>
    %780 = vector.shape_cast %779 : vector<16xf32> to vector<16x1xf32>
    %cst_296 = arith.constant 6.400000e+01 : f32
    %781 = vector.broadcast %cst_296 : f32 to vector<16x1xf32>
    %782 = arith.divf %780, %781 : vector<16x1xf32>
    %783 = vector.broadcast %775 : vector<16x1xf32> to vector<16x64xf32>
    %784 = arith.subf %767, %783 : vector<16x64xf32>
    %cst_297 = arith.constant 9.99999974E-6 : f32
    %785 = vector.broadcast %cst_297 : f32 to vector<16x1xf32>
    %786 = arith.addf %782, %785 : vector<16x1xf32>
    %787 = math.rsqrt %786 : vector<16x1xf32>
    %788 = vector.broadcast %787 : vector<16x1xf32> to vector<16x64xf32>
    %789 = arith.mulf %784, %788 : vector<16x64xf32>
    %790 = vector.broadcast %769 : vector<1x64xf32> to vector<16x64xf32>
    %791 = arith.mulf %789, %790 : vector<16x64xf32>
    %792 = vector.broadcast %771 : vector<1x64xf32> to vector<16x64xf32>
    %793 = arith.addf %791, %792 : vector<16x64xf32>
    %c2_298 = arith.constant 2 : index
    %c0_299 = arith.constant 0 : index
    %c0_300 = arith.constant 0 : index
    %794 = vector.load %arg8[%c2_298, %c0_299, %c0_300] : memref<4x64x256xf32, #tpu.memory_space<vmem>>, vector<1x64x256xf32>
    %795 = vector.shape_cast %794 : vector<1x64x256xf32> to vector<64x256xf32>
    %cst_301 = arith.constant dense<0.000000e+00> : vector<16x256xf32>
    %796 = tpu.matmul %793, %795, %cst_301 {dimension_numbers = #tpu.dot_dimension_numbers<[1], [0], [0], [1], [0, 0, 1, 1], [], []>} : vector<16x64xf32>, vector<64x256xf32>, vector<16x256xf32> -> vector<16x256xf32>
    %c2_302 = arith.constant 2 : index
    %c0_303 = arith.constant 0 : index
    %c0_304 = arith.constant 0 : index
    %797 = vector.load %arg9[%c2_302, %c0_303, %c0_304] : memref<4x1x256xf32, #tpu.memory_space<vmem>>, vector<1x1x256xf32>
    %798 = vector.shape_cast %797 : vector<1x1x256xf32> to vector<1x256xf32>
    %799 = vector.broadcast %798 : vector<1x256xf32> to vector<16x256xf32>
    %800 = arith.addf %796, %799 : vector<16x256xf32>
    %cst_305 = arith.constant 0.000000e+00 : f32
    %801 = vector.broadcast %cst_305 : f32 to vector<16x256xf32>
    %802 = arith.maximumf %800, %801 : vector<16x256xf32>
    %c2_306 = arith.constant 2 : index
    %c0_307 = arith.constant 0 : index
    %c0_308 = arith.constant 0 : index
    %803 = vector.load %arg10[%c2_306, %c0_307, %c0_308] : memref<4x256x64xf32, #tpu.memory_space<vmem>>, vector<1x256x64xf32>
    %804 = vector.shape_cast %803 : vector<1x256x64xf32> to vector<256x64xf32>
    %cst_309 = arith.constant dense<0.000000e+00> : vector<16x64xf32>
    %805 = tpu.matmul %802, %804, %cst_309 {dimension_numbers = #tpu.dot_dimension_numbers<[1], [0], [0], [1], [0, 0, 1, 1], [], []>} : vector<16x256xf32>, vector<256x64xf32>, vector<16x64xf32> -> vector<16x64xf32>
    %806 = arith.addf %767, %805 : vector<16x64xf32>
    %c2_310 = arith.constant 2 : index
    %c0_311 = arith.constant 0 : index
    %c0_312 = arith.constant 0 : index
    %807 = vector.load %arg11[%c2_310, %c0_311, %c0_312] : memref<4x1x64xf32, #tpu.memory_space<vmem>>, vector<1x1x64xf32>
    %808 = vector.shape_cast %807 : vector<1x1x64xf32> to vector<1x64xf32>
    %809 = vector.broadcast %808 : vector<1x64xf32> to vector<16x64xf32>
    %810 = arith.addf %806, %809 : vector<16x64xf32>
    %c3 = arith.constant 3 : index
    %c0_313 = arith.constant 0 : index
    %c0_314 = arith.constant 0 : index
    %811 = vector.load %arg1[%c3, %c0_313, %c0_314] : memref<4x1x64xf32, #tpu.memory_space<vmem>>, vector<1x1x64xf32>
    %812 = vector.shape_cast %811 : vector<1x1x64xf32> to vector<1x64xf32>
    %c3_315 = arith.constant 3 : index
    %c0_316 = arith.constant 0 : index
    %c0_317 = arith.constant 0 : index
    %813 = vector.load %arg2[%c3_315, %c0_316, %c0_317] : memref<4x1x64xf32, #tpu.memory_space<vmem>>, vector<1x1x64xf32>
    %814 = vector.shape_cast %813 : vector<1x1x64xf32> to vector<1x64xf32>
    %cst_318 = arith.constant dense<0.000000e+00> : vector<16xf32>
    %815 = vector.multi_reduction <add>, %810, %cst_318 [1] : vector<16x64xf32> to vector<16xf32>
    %816 = vector.shape_cast %815 : vector<16xf32> to vector<16x1xf32>
    %cst_319 = arith.constant 6.400000e+01 : f32
    %817 = vector.broadcast %cst_319 : f32 to vector<16x1xf32>
    %818 = arith.divf %816, %817 : vector<16x1xf32>
    %819 = vector.broadcast %818 : vector<16x1xf32> to vector<16x64xf32>
    %820 = arith.subf %810, %819 : vector<16x64xf32>
    %821 = arith.mulf %820, %820 : vector<16x64xf32>
    %cst_320 = arith.constant dense<0.000000e+00> : vector<16xf32>
    %822 = vector.multi_reduction <add>, %821, %cst_320 [1] : vector<16x64xf32> to vector<16xf32>
    %823 = vector.shape_cast %822 : vector<16xf32> to vector<16x1xf32>
    %cst_321 = arith.constant 6.400000e+01 : f32
    %824 = vector.broadcast %cst_321 : f32 to vector<16x1xf32>
    %825 = arith.divf %823, %824 : vector<16x1xf32>
    %826 = vector.broadcast %818 : vector<16x1xf32> to vector<16x64xf32>
    %827 = arith.subf %810, %826 : vector<16x64xf32>
    %cst_322 = arith.constant 9.99999974E-6 : f32
    %828 = vector.broadcast %cst_322 : f32 to vector<16x1xf32>
    %829 = arith.addf %825, %828 : vector<16x1xf32>
    %830 = math.rsqrt %829 : vector<16x1xf32>
    %831 = vector.broadcast %830 : vector<16x1xf32> to vector<16x64xf32>
    %832 = arith.mulf %827, %831 : vector<16x64xf32>
    %833 = vector.broadcast %812 : vector<1x64xf32> to vector<16x64xf32>
    %834 = arith.mulf %832, %833 : vector<16x64xf32>
    %835 = vector.broadcast %814 : vector<1x64xf32> to vector<16x64xf32>
    %836 = arith.addf %834, %835 : vector<16x64xf32>
    %c3_323 = arith.constant 3 : index
    %c0_324 = arith.constant 0 : index
    %c0_325 = arith.constant 0 : index
    %837 = vector.load %arg3[%c3_323, %c0_324, %c0_325] : memref<4x64x192xf32, #tpu.memory_space<vmem>>, vector<1x64x192xf32>
    %838 = vector.shape_cast %837 : vector<1x64x192xf32> to vector<64x192xf32>
    %cst_326 = arith.constant dense<0.000000e+00> : vector<16x192xf32>
    %839 = tpu.matmul %836, %838, %cst_326 {dimension_numbers = #tpu.dot_dimension_numbers<[1], [0], [0], [1], [0, 0, 1, 1], [], []>} : vector<16x64xf32>, vector<64x192xf32>, vector<16x192xf32> -> vector<16x192xf32>
    %840 = vector.extract_strided_slice %839 {offsets = [0, 0], sizes = [16, 64], strides = [1, 1]} : vector<16x192xf32> to vector<16x64xf32>
    %841 = vector.extract_strided_slice %839 {offsets = [0, 64], sizes = [16, 64], strides = [1, 1]} : vector<16x192xf32> to vector<16x64xf32>
    %842 = vector.extract_strided_slice %839 {offsets = [0, 128], sizes = [16, 64], strides = [1, 1]} : vector<16x192xf32> to vector<16x64xf32>
    %c3_327 = arith.constant 3 : index
    %c0_328 = arith.constant 0 : index
    %c0_329 = arith.constant 0 : index
    %843 = vector.load %arg4[%c3_327, %c0_328, %c0_329] : memref<4x64x64xf32, #tpu.memory_space<vmem>>, vector<1x64x64xf32>
    %844 = vector.shape_cast %843 : vector<1x64x64xf32> to vector<64x64xf32>
    %cst_330 = arith.constant 0.000000e+00 : f32
    %845 = vector.broadcast %cst_330 : f32 to vector<8x64xf32>
    %846 = vector.extract_strided_slice %840 {offsets = [0, 0], sizes = [8, 16], strides = [1, 1]} : vector<16x64xf32> to vector<8x16xf32>
    %847 = vector.extract_strided_slice %841 {offsets = [0, 0], sizes = [8, 16], strides = [1, 1]} : vector<16x64xf32> to vector<8x16xf32>
    %848 = vector.extract_strided_slice %842 {offsets = [0, 0], sizes = [8, 16], strides = [1, 1]} : vector<16x64xf32> to vector<8x16xf32>
    %849 = tpu.transpose %847, [1, 0] : vector<8x16xf32> -> vector<16x8xf32>
    %cst_331 = arith.constant dense<0.000000e+00> : vector<8x8xf32>
    %850 = tpu.matmul %846, %849, %cst_331 {dimension_numbers = #tpu.dot_dimension_numbers<[1], [0], [0], [1], [0, 0, 1, 1], [], []>} : vector<8x16xf32>, vector<16x8xf32>, vector<8x8xf32> -> vector<8x8xf32>
    %cst_332 = arith.constant 2.500000e-01 : f32
    %851 = vector.broadcast %cst_332 : f32 to vector<8x8xf32>
    %852 = arith.mulf %850, %851 : vector<8x8xf32>
    %cst_333 = arith.constant -1.000000e+30 : f32
    %853 = vector.broadcast %cst_333 : f32 to vector<8x8xf32>
    %854 = arith.select %3, %852, %853 : vector<8x8xi1>, vector<8x8xf32>
    %cst_334 = arith.constant dense<0xFF800000> : vector<8xf32>
    %855 = vector.multi_reduction <maximumf>, %854, %cst_334 [1] : vector<8x8xf32> to vector<8xf32>
    %856 = vector.shape_cast %855 : vector<8xf32> to vector<8x1xf32>
    %857 = vector.broadcast %856 : vector<8x1xf32> to vector<8x8xf32>
    %858 = arith.subf %854, %857 : vector<8x8xf32>
    %859 = math.exp %858 : vector<8x8xf32>
    %cst_335 = arith.constant dense<0.000000e+00> : vector<8xf32>
    %860 = vector.multi_reduction <add>, %859, %cst_335 [1] : vector<8x8xf32> to vector<8xf32>
    %861 = vector.shape_cast %860 : vector<8xf32> to vector<8x1xf32>
    %862 = tpu.reciprocal %861 {approx = true} : vector<8x1xf32> -> vector<8x1xf32>
    %863 = vector.broadcast %862 : vector<8x1xf32> to vector<8x8xf32>
    %864 = arith.mulf %859, %863 : vector<8x8xf32>
    %cst_336 = arith.constant dense<0.000000e+00> : vector<8x16xf32>
    %865 = tpu.matmul %864, %848, %cst_336 {dimension_numbers = #tpu.dot_dimension_numbers<[1], [0], [0], [1], [0, 0, 1, 1], [], []>} : vector<8x8xf32>, vector<8x16xf32>, vector<8x16xf32> -> vector<8x16xf32>
    %866 = vector.extract_strided_slice %844 {offsets = [0, 0], sizes = [16, 64], strides = [1, 1]} : vector<64x64xf32> to vector<16x64xf32>
    %cst_337 = arith.constant dense<0.000000e+00> : vector<8x64xf32>
    %867 = tpu.matmul %865, %866, %cst_337 {dimension_numbers = #tpu.dot_dimension_numbers<[1], [0], [0], [1], [0, 0, 1, 1], [], []>} : vector<8x16xf32>, vector<16x64xf32>, vector<8x64xf32> -> vector<8x64xf32>
    %868 = arith.addf %845, %867 : vector<8x64xf32>
    %869 = vector.extract_strided_slice %840 {offsets = [0, 16], sizes = [8, 16], strides = [1, 1]} : vector<16x64xf32> to vector<8x16xf32>
    %870 = vector.extract_strided_slice %841 {offsets = [0, 16], sizes = [8, 16], strides = [1, 1]} : vector<16x64xf32> to vector<8x16xf32>
    %871 = vector.extract_strided_slice %842 {offsets = [0, 16], sizes = [8, 16], strides = [1, 1]} : vector<16x64xf32> to vector<8x16xf32>
    %872 = tpu.transpose %870, [1, 0] : vector<8x16xf32> -> vector<16x8xf32>
    %cst_338 = arith.constant dense<0.000000e+00> : vector<8x8xf32>
    %873 = tpu.matmul %869, %872, %cst_338 {dimension_numbers = #tpu.dot_dimension_numbers<[1], [0], [0], [1], [0, 0, 1, 1], [], []>} : vector<8x16xf32>, vector<16x8xf32>, vector<8x8xf32> -> vector<8x8xf32>
    %cst_339 = arith.constant 2.500000e-01 : f32
    %874 = vector.broadcast %cst_339 : f32 to vector<8x8xf32>
    %875 = arith.mulf %873, %874 : vector<8x8xf32>
    %cst_340 = arith.constant -1.000000e+30 : f32
    %876 = vector.broadcast %cst_340 : f32 to vector<8x8xf32>
    %877 = arith.select %3, %875, %876 : vector<8x8xi1>, vector<8x8xf32>
    %cst_341 = arith.constant dense<0xFF800000> : vector<8xf32>
    %878 = vector.multi_reduction <maximumf>, %877, %cst_341 [1] : vector<8x8xf32> to vector<8xf32>
    %879 = vector.shape_cast %878 : vector<8xf32> to vector<8x1xf32>
    %880 = vector.broadcast %879 : vector<8x1xf32> to vector<8x8xf32>
    %881 = arith.subf %877, %880 : vector<8x8xf32>
    %882 = math.exp %881 : vector<8x8xf32>
    %cst_342 = arith.constant dense<0.000000e+00> : vector<8xf32>
    %883 = vector.multi_reduction <add>, %882, %cst_342 [1] : vector<8x8xf32> to vector<8xf32>
    %884 = vector.shape_cast %883 : vector<8xf32> to vector<8x1xf32>
    %885 = tpu.reciprocal %884 {approx = true} : vector<8x1xf32> -> vector<8x1xf32>
    %886 = vector.broadcast %885 : vector<8x1xf32> to vector<8x8xf32>
    %887 = arith.mulf %882, %886 : vector<8x8xf32>
    %cst_343 = arith.constant dense<0.000000e+00> : vector<8x16xf32>
    %888 = tpu.matmul %887, %871, %cst_343 {dimension_numbers = #tpu.dot_dimension_numbers<[1], [0], [0], [1], [0, 0, 1, 1], [], []>} : vector<8x8xf32>, vector<8x16xf32>, vector<8x16xf32> -> vector<8x16xf32>
    %889 = vector.extract_strided_slice %844 {offsets = [16, 0], sizes = [16, 64], strides = [1, 1]} : vector<64x64xf32> to vector<16x64xf32>
    %cst_344 = arith.constant dense<0.000000e+00> : vector<8x64xf32>
    %890 = tpu.matmul %888, %889, %cst_344 {dimension_numbers = #tpu.dot_dimension_numbers<[1], [0], [0], [1], [0, 0, 1, 1], [], []>} : vector<8x16xf32>, vector<16x64xf32>, vector<8x64xf32> -> vector<8x64xf32>
    %891 = arith.addf %868, %890 : vector<8x64xf32>
    %892 = vector.extract_strided_slice %840 {offsets = [0, 32], sizes = [8, 16], strides = [1, 1]} : vector<16x64xf32> to vector<8x16xf32>
    %893 = vector.extract_strided_slice %841 {offsets = [0, 32], sizes = [8, 16], strides = [1, 1]} : vector<16x64xf32> to vector<8x16xf32>
    %894 = vector.extract_strided_slice %842 {offsets = [0, 32], sizes = [8, 16], strides = [1, 1]} : vector<16x64xf32> to vector<8x16xf32>
    %895 = tpu.transpose %893, [1, 0] : vector<8x16xf32> -> vector<16x8xf32>
    %cst_345 = arith.constant dense<0.000000e+00> : vector<8x8xf32>
    %896 = tpu.matmul %892, %895, %cst_345 {dimension_numbers = #tpu.dot_dimension_numbers<[1], [0], [0], [1], [0, 0, 1, 1], [], []>} : vector<8x16xf32>, vector<16x8xf32>, vector<8x8xf32> -> vector<8x8xf32>
    %cst_346 = arith.constant 2.500000e-01 : f32
    %897 = vector.broadcast %cst_346 : f32 to vector<8x8xf32>
    %898 = arith.mulf %896, %897 : vector<8x8xf32>
    %cst_347 = arith.constant -1.000000e+30 : f32
    %899 = vector.broadcast %cst_347 : f32 to vector<8x8xf32>
    %900 = arith.select %3, %898, %899 : vector<8x8xi1>, vector<8x8xf32>
    %cst_348 = arith.constant dense<0xFF800000> : vector<8xf32>
    %901 = vector.multi_reduction <maximumf>, %900, %cst_348 [1] : vector<8x8xf32> to vector<8xf32>
    %902 = vector.shape_cast %901 : vector<8xf32> to vector<8x1xf32>
    %903 = vector.broadcast %902 : vector<8x1xf32> to vector<8x8xf32>
    %904 = arith.subf %900, %903 : vector<8x8xf32>
    %905 = math.exp %904 : vector<8x8xf32>
    %cst_349 = arith.constant dense<0.000000e+00> : vector<8xf32>
    %906 = vector.multi_reduction <add>, %905, %cst_349 [1] : vector<8x8xf32> to vector<8xf32>
    %907 = vector.shape_cast %906 : vector<8xf32> to vector<8x1xf32>
    %908 = tpu.reciprocal %907 {approx = true} : vector<8x1xf32> -> vector<8x1xf32>
    %909 = vector.broadcast %908 : vector<8x1xf32> to vector<8x8xf32>
    %910 = arith.mulf %905, %909 : vector<8x8xf32>
    %cst_350 = arith.constant dense<0.000000e+00> : vector<8x16xf32>
    %911 = tpu.matmul %910, %894, %cst_350 {dimension_numbers = #tpu.dot_dimension_numbers<[1], [0], [0], [1], [0, 0, 1, 1], [], []>} : vector<8x8xf32>, vector<8x16xf32>, vector<8x16xf32> -> vector<8x16xf32>
    %912 = vector.extract_strided_slice %844 {offsets = [32, 0], sizes = [16, 64], strides = [1, 1]} : vector<64x64xf32> to vector<16x64xf32>
    %cst_351 = arith.constant dense<0.000000e+00> : vector<8x64xf32>
    %913 = tpu.matmul %911, %912, %cst_351 {dimension_numbers = #tpu.dot_dimension_numbers<[1], [0], [0], [1], [0, 0, 1, 1], [], []>} : vector<8x16xf32>, vector<16x64xf32>, vector<8x64xf32> -> vector<8x64xf32>
    %914 = arith.addf %891, %913 : vector<8x64xf32>
    %915 = vector.extract_strided_slice %840 {offsets = [0, 48], sizes = [8, 16], strides = [1, 1]} : vector<16x64xf32> to vector<8x16xf32>
    %916 = vector.extract_strided_slice %841 {offsets = [0, 48], sizes = [8, 16], strides = [1, 1]} : vector<16x64xf32> to vector<8x16xf32>
    %917 = vector.extract_strided_slice %842 {offsets = [0, 48], sizes = [8, 16], strides = [1, 1]} : vector<16x64xf32> to vector<8x16xf32>
    %918 = tpu.transpose %916, [1, 0] : vector<8x16xf32> -> vector<16x8xf32>
    %cst_352 = arith.constant dense<0.000000e+00> : vector<8x8xf32>
    %919 = tpu.matmul %915, %918, %cst_352 {dimension_numbers = #tpu.dot_dimension_numbers<[1], [0], [0], [1], [0, 0, 1, 1], [], []>} : vector<8x16xf32>, vector<16x8xf32>, vector<8x8xf32> -> vector<8x8xf32>
    %cst_353 = arith.constant 2.500000e-01 : f32
    %920 = vector.broadcast %cst_353 : f32 to vector<8x8xf32>
    %921 = arith.mulf %919, %920 : vector<8x8xf32>
    %cst_354 = arith.constant -1.000000e+30 : f32
    %922 = vector.broadcast %cst_354 : f32 to vector<8x8xf32>
    %923 = arith.select %3, %921, %922 : vector<8x8xi1>, vector<8x8xf32>
    %cst_355 = arith.constant dense<0xFF800000> : vector<8xf32>
    %924 = vector.multi_reduction <maximumf>, %923, %cst_355 [1] : vector<8x8xf32> to vector<8xf32>
    %925 = vector.shape_cast %924 : vector<8xf32> to vector<8x1xf32>
    %926 = vector.broadcast %925 : vector<8x1xf32> to vector<8x8xf32>
    %927 = arith.subf %923, %926 : vector<8x8xf32>
    %928 = math.exp %927 : vector<8x8xf32>
    %cst_356 = arith.constant dense<0.000000e+00> : vector<8xf32>
    %929 = vector.multi_reduction <add>, %928, %cst_356 [1] : vector<8x8xf32> to vector<8xf32>
    %930 = vector.shape_cast %929 : vector<8xf32> to vector<8x1xf32>
    %931 = tpu.reciprocal %930 {approx = true} : vector<8x1xf32> -> vector<8x1xf32>
    %932 = vector.broadcast %931 : vector<8x1xf32> to vector<8x8xf32>
    %933 = arith.mulf %928, %932 : vector<8x8xf32>
    %cst_357 = arith.constant dense<0.000000e+00> : vector<8x16xf32>
    %934 = tpu.matmul %933, %917, %cst_357 {dimension_numbers = #tpu.dot_dimension_numbers<[1], [0], [0], [1], [0, 0, 1, 1], [], []>} : vector<8x8xf32>, vector<8x16xf32>, vector<8x16xf32> -> vector<8x16xf32>
    %935 = vector.extract_strided_slice %844 {offsets = [48, 0], sizes = [16, 64], strides = [1, 1]} : vector<64x64xf32> to vector<16x64xf32>
    %cst_358 = arith.constant dense<0.000000e+00> : vector<8x64xf32>
    %936 = tpu.matmul %934, %935, %cst_358 {dimension_numbers = #tpu.dot_dimension_numbers<[1], [0], [0], [1], [0, 0, 1, 1], [], []>} : vector<8x16xf32>, vector<16x64xf32>, vector<8x64xf32> -> vector<8x64xf32>
    %937 = arith.addf %914, %936 : vector<8x64xf32>
    %cst_359 = arith.constant 0.000000e+00 : f32
    %938 = vector.broadcast %cst_359 : f32 to vector<8x64xf32>
    %939 = vector.extract_strided_slice %840 {offsets = [8, 0], sizes = [8, 16], strides = [1, 1]} : vector<16x64xf32> to vector<8x16xf32>
    %940 = vector.extract_strided_slice %841 {offsets = [8, 0], sizes = [8, 16], strides = [1, 1]} : vector<16x64xf32> to vector<8x16xf32>
    %941 = vector.extract_strided_slice %842 {offsets = [8, 0], sizes = [8, 16], strides = [1, 1]} : vector<16x64xf32> to vector<8x16xf32>
    %942 = tpu.transpose %940, [1, 0] : vector<8x16xf32> -> vector<16x8xf32>
    %cst_360 = arith.constant dense<0.000000e+00> : vector<8x8xf32>
    %943 = tpu.matmul %939, %942, %cst_360 {dimension_numbers = #tpu.dot_dimension_numbers<[1], [0], [0], [1], [0, 0, 1, 1], [], []>} : vector<8x16xf32>, vector<16x8xf32>, vector<8x8xf32> -> vector<8x8xf32>
    %cst_361 = arith.constant 2.500000e-01 : f32
    %944 = vector.broadcast %cst_361 : f32 to vector<8x8xf32>
    %945 = arith.mulf %943, %944 : vector<8x8xf32>
    %cst_362 = arith.constant -1.000000e+30 : f32
    %946 = vector.broadcast %cst_362 : f32 to vector<8x8xf32>
    %947 = arith.select %3, %945, %946 : vector<8x8xi1>, vector<8x8xf32>
    %cst_363 = arith.constant dense<0xFF800000> : vector<8xf32>
    %948 = vector.multi_reduction <maximumf>, %947, %cst_363 [1] : vector<8x8xf32> to vector<8xf32>
    %949 = vector.shape_cast %948 : vector<8xf32> to vector<8x1xf32>
    %950 = vector.broadcast %949 : vector<8x1xf32> to vector<8x8xf32>
    %951 = arith.subf %947, %950 : vector<8x8xf32>
    %952 = math.exp %951 : vector<8x8xf32>
    %cst_364 = arith.constant dense<0.000000e+00> : vector<8xf32>
    %953 = vector.multi_reduction <add>, %952, %cst_364 [1] : vector<8x8xf32> to vector<8xf32>
    %954 = vector.shape_cast %953 : vector<8xf32> to vector<8x1xf32>
    %955 = tpu.reciprocal %954 {approx = true} : vector<8x1xf32> -> vector<8x1xf32>
    %956 = vector.broadcast %955 : vector<8x1xf32> to vector<8x8xf32>
    %957 = arith.mulf %952, %956 : vector<8x8xf32>
    %cst_365 = arith.constant dense<0.000000e+00> : vector<8x16xf32>
    %958 = tpu.matmul %957, %941, %cst_365 {dimension_numbers = #tpu.dot_dimension_numbers<[1], [0], [0], [1], [0, 0, 1, 1], [], []>} : vector<8x8xf32>, vector<8x16xf32>, vector<8x16xf32> -> vector<8x16xf32>
    %959 = vector.extract_strided_slice %844 {offsets = [0, 0], sizes = [16, 64], strides = [1, 1]} : vector<64x64xf32> to vector<16x64xf32>
    %cst_366 = arith.constant dense<0.000000e+00> : vector<8x64xf32>
    %960 = tpu.matmul %958, %959, %cst_366 {dimension_numbers = #tpu.dot_dimension_numbers<[1], [0], [0], [1], [0, 0, 1, 1], [], []>} : vector<8x16xf32>, vector<16x64xf32>, vector<8x64xf32> -> vector<8x64xf32>
    %961 = arith.addf %938, %960 : vector<8x64xf32>
    %962 = vector.extract_strided_slice %840 {offsets = [8, 16], sizes = [8, 16], strides = [1, 1]} : vector<16x64xf32> to vector<8x16xf32>
    %963 = vector.extract_strided_slice %841 {offsets = [8, 16], sizes = [8, 16], strides = [1, 1]} : vector<16x64xf32> to vector<8x16xf32>
    %964 = vector.extract_strided_slice %842 {offsets = [8, 16], sizes = [8, 16], strides = [1, 1]} : vector<16x64xf32> to vector<8x16xf32>
    %965 = tpu.transpose %963, [1, 0] : vector<8x16xf32> -> vector<16x8xf32>
    %cst_367 = arith.constant dense<0.000000e+00> : vector<8x8xf32>
    %966 = tpu.matmul %962, %965, %cst_367 {dimension_numbers = #tpu.dot_dimension_numbers<[1], [0], [0], [1], [0, 0, 1, 1], [], []>} : vector<8x16xf32>, vector<16x8xf32>, vector<8x8xf32> -> vector<8x8xf32>
    %cst_368 = arith.constant 2.500000e-01 : f32
    %967 = vector.broadcast %cst_368 : f32 to vector<8x8xf32>
    %968 = arith.mulf %966, %967 : vector<8x8xf32>
    %cst_369 = arith.constant -1.000000e+30 : f32
    %969 = vector.broadcast %cst_369 : f32 to vector<8x8xf32>
    %970 = arith.select %3, %968, %969 : vector<8x8xi1>, vector<8x8xf32>
    %cst_370 = arith.constant dense<0xFF800000> : vector<8xf32>
    %971 = vector.multi_reduction <maximumf>, %970, %cst_370 [1] : vector<8x8xf32> to vector<8xf32>
    %972 = vector.shape_cast %971 : vector<8xf32> to vector<8x1xf32>
    %973 = vector.broadcast %972 : vector<8x1xf32> to vector<8x8xf32>
    %974 = arith.subf %970, %973 : vector<8x8xf32>
    %975 = math.exp %974 : vector<8x8xf32>
    %cst_371 = arith.constant dense<0.000000e+00> : vector<8xf32>
    %976 = vector.multi_reduction <add>, %975, %cst_371 [1] : vector<8x8xf32> to vector<8xf32>
    %977 = vector.shape_cast %976 : vector<8xf32> to vector<8x1xf32>
    %978 = tpu.reciprocal %977 {approx = true} : vector<8x1xf32> -> vector<8x1xf32>
    %979 = vector.broadcast %978 : vector<8x1xf32> to vector<8x8xf32>
    %980 = arith.mulf %975, %979 : vector<8x8xf32>
    %cst_372 = arith.constant dense<0.000000e+00> : vector<8x16xf32>
    %981 = tpu.matmul %980, %964, %cst_372 {dimension_numbers = #tpu.dot_dimension_numbers<[1], [0], [0], [1], [0, 0, 1, 1], [], []>} : vector<8x8xf32>, vector<8x16xf32>, vector<8x16xf32> -> vector<8x16xf32>
    %982 = vector.extract_strided_slice %844 {offsets = [16, 0], sizes = [16, 64], strides = [1, 1]} : vector<64x64xf32> to vector<16x64xf32>
    %cst_373 = arith.constant dense<0.000000e+00> : vector<8x64xf32>
    %983 = tpu.matmul %981, %982, %cst_373 {dimension_numbers = #tpu.dot_dimension_numbers<[1], [0], [0], [1], [0, 0, 1, 1], [], []>} : vector<8x16xf32>, vector<16x64xf32>, vector<8x64xf32> -> vector<8x64xf32>
    %984 = arith.addf %961, %983 : vector<8x64xf32>
    %985 = vector.extract_strided_slice %840 {offsets = [8, 32], sizes = [8, 16], strides = [1, 1]} : vector<16x64xf32> to vector<8x16xf32>
    %986 = vector.extract_strided_slice %841 {offsets = [8, 32], sizes = [8, 16], strides = [1, 1]} : vector<16x64xf32> to vector<8x16xf32>
    %987 = vector.extract_strided_slice %842 {offsets = [8, 32], sizes = [8, 16], strides = [1, 1]} : vector<16x64xf32> to vector<8x16xf32>
    %988 = tpu.transpose %986, [1, 0] : vector<8x16xf32> -> vector<16x8xf32>
    %cst_374 = arith.constant dense<0.000000e+00> : vector<8x8xf32>
    %989 = tpu.matmul %985, %988, %cst_374 {dimension_numbers = #tpu.dot_dimension_numbers<[1], [0], [0], [1], [0, 0, 1, 1], [], []>} : vector<8x16xf32>, vector<16x8xf32>, vector<8x8xf32> -> vector<8x8xf32>
    %cst_375 = arith.constant 2.500000e-01 : f32
    %990 = vector.broadcast %cst_375 : f32 to vector<8x8xf32>
    %991 = arith.mulf %989, %990 : vector<8x8xf32>
    %cst_376 = arith.constant -1.000000e+30 : f32
    %992 = vector.broadcast %cst_376 : f32 to vector<8x8xf32>
    %993 = arith.select %3, %991, %992 : vector<8x8xi1>, vector<8x8xf32>
    %cst_377 = arith.constant dense<0xFF800000> : vector<8xf32>
    %994 = vector.multi_reduction <maximumf>, %993, %cst_377 [1] : vector<8x8xf32> to vector<8xf32>
    %995 = vector.shape_cast %994 : vector<8xf32> to vector<8x1xf32>
    %996 = vector.broadcast %995 : vector<8x1xf32> to vector<8x8xf32>
    %997 = arith.subf %993, %996 : vector<8x8xf32>
    %998 = math.exp %997 : vector<8x8xf32>
    %cst_378 = arith.constant dense<0.000000e+00> : vector<8xf32>
    %999 = vector.multi_reduction <add>, %998, %cst_378 [1] : vector<8x8xf32> to vector<8xf32>
    %1000 = vector.shape_cast %999 : vector<8xf32> to vector<8x1xf32>
    %1001 = tpu.reciprocal %1000 {approx = true} : vector<8x1xf32> -> vector<8x1xf32>
    %1002 = vector.broadcast %1001 : vector<8x1xf32> to vector<8x8xf32>
    %1003 = arith.mulf %998, %1002 : vector<8x8xf32>
    %cst_379 = arith.constant dense<0.000000e+00> : vector<8x16xf32>
    %1004 = tpu.matmul %1003, %987, %cst_379 {dimension_numbers = #tpu.dot_dimension_numbers<[1], [0], [0], [1], [0, 0, 1, 1], [], []>} : vector<8x8xf32>, vector<8x16xf32>, vector<8x16xf32> -> vector<8x16xf32>
    %1005 = vector.extract_strided_slice %844 {offsets = [32, 0], sizes = [16, 64], strides = [1, 1]} : vector<64x64xf32> to vector<16x64xf32>
    %cst_380 = arith.constant dense<0.000000e+00> : vector<8x64xf32>
    %1006 = tpu.matmul %1004, %1005, %cst_380 {dimension_numbers = #tpu.dot_dimension_numbers<[1], [0], [0], [1], [0, 0, 1, 1], [], []>} : vector<8x16xf32>, vector<16x64xf32>, vector<8x64xf32> -> vector<8x64xf32>
    %1007 = arith.addf %984, %1006 : vector<8x64xf32>
    %1008 = vector.extract_strided_slice %840 {offsets = [8, 48], sizes = [8, 16], strides = [1, 1]} : vector<16x64xf32> to vector<8x16xf32>
    %1009 = vector.extract_strided_slice %841 {offsets = [8, 48], sizes = [8, 16], strides = [1, 1]} : vector<16x64xf32> to vector<8x16xf32>
    %1010 = vector.extract_strided_slice %842 {offsets = [8, 48], sizes = [8, 16], strides = [1, 1]} : vector<16x64xf32> to vector<8x16xf32>
    %1011 = tpu.transpose %1009, [1, 0] : vector<8x16xf32> -> vector<16x8xf32>
    %cst_381 = arith.constant dense<0.000000e+00> : vector<8x8xf32>
    %1012 = tpu.matmul %1008, %1011, %cst_381 {dimension_numbers = #tpu.dot_dimension_numbers<[1], [0], [0], [1], [0, 0, 1, 1], [], []>} : vector<8x16xf32>, vector<16x8xf32>, vector<8x8xf32> -> vector<8x8xf32>
    %cst_382 = arith.constant 2.500000e-01 : f32
    %1013 = vector.broadcast %cst_382 : f32 to vector<8x8xf32>
    %1014 = arith.mulf %1012, %1013 : vector<8x8xf32>
    %cst_383 = arith.constant -1.000000e+30 : f32
    %1015 = vector.broadcast %cst_383 : f32 to vector<8x8xf32>
    %1016 = arith.select %3, %1014, %1015 : vector<8x8xi1>, vector<8x8xf32>
    %cst_384 = arith.constant dense<0xFF800000> : vector<8xf32>
    %1017 = vector.multi_reduction <maximumf>, %1016, %cst_384 [1] : vector<8x8xf32> to vector<8xf32>
    %1018 = vector.shape_cast %1017 : vector<8xf32> to vector<8x1xf32>
    %1019 = vector.broadcast %1018 : vector<8x1xf32> to vector<8x8xf32>
    %1020 = arith.subf %1016, %1019 : vector<8x8xf32>
    %1021 = math.exp %1020 : vector<8x8xf32>
    %cst_385 = arith.constant dense<0.000000e+00> : vector<8xf32>
    %1022 = vector.multi_reduction <add>, %1021, %cst_385 [1] : vector<8x8xf32> to vector<8xf32>
    %1023 = vector.shape_cast %1022 : vector<8xf32> to vector<8x1xf32>
    %1024 = tpu.reciprocal %1023 {approx = true} : vector<8x1xf32> -> vector<8x1xf32>
    %1025 = vector.broadcast %1024 : vector<8x1xf32> to vector<8x8xf32>
    %1026 = arith.mulf %1021, %1025 : vector<8x8xf32>
    %cst_386 = arith.constant dense<0.000000e+00> : vector<8x16xf32>
    %1027 = tpu.matmul %1026, %1010, %cst_386 {dimension_numbers = #tpu.dot_dimension_numbers<[1], [0], [0], [1], [0, 0, 1, 1], [], []>} : vector<8x8xf32>, vector<8x16xf32>, vector<8x16xf32> -> vector<8x16xf32>
    %1028 = vector.extract_strided_slice %844 {offsets = [48, 0], sizes = [16, 64], strides = [1, 1]} : vector<64x64xf32> to vector<16x64xf32>
    %cst_387 = arith.constant dense<0.000000e+00> : vector<8x64xf32>
    %1029 = tpu.matmul %1027, %1028, %cst_387 {dimension_numbers = #tpu.dot_dimension_numbers<[1], [0], [0], [1], [0, 0, 1, 1], [], []>} : vector<8x16xf32>, vector<16x64xf32>, vector<8x64xf32> -> vector<8x64xf32>
    %1030 = arith.addf %1007, %1029 : vector<8x64xf32>
    %1031 = tpu.concatenate %937, %1030 in 0 : vector<8x64xf32>, vector<8x64xf32> -> vector<16x64xf32>
    %c3_388 = arith.constant 3 : index
    %c0_389 = arith.constant 0 : index
    %c0_390 = arith.constant 0 : index
    %1032 = vector.load %arg5[%c3_388, %c0_389, %c0_390] : memref<4x1x64xf32, #tpu.memory_space<vmem>>, vector<1x1x64xf32>
    %1033 = vector.shape_cast %1032 : vector<1x1x64xf32> to vector<1x64xf32>
    %1034 = vector.broadcast %1033 : vector<1x64xf32> to vector<16x64xf32>
    %1035 = arith.addf %1031, %1034 : vector<16x64xf32>
    %1036 = arith.addf %810, %1035 : vector<16x64xf32>
    %c3_391 = arith.constant 3 : index
    %c0_392 = arith.constant 0 : index
    %c0_393 = arith.constant 0 : index
    %1037 = vector.load %arg6[%c3_391, %c0_392, %c0_393] : memref<4x1x64xf32, #tpu.memory_space<vmem>>, vector<1x1x64xf32>
    %1038 = vector.shape_cast %1037 : vector<1x1x64xf32> to vector<1x64xf32>
    %c3_394 = arith.constant 3 : index
    %c0_395 = arith.constant 0 : index
    %c0_396 = arith.constant 0 : index
    %1039 = vector.load %arg7[%c3_394, %c0_395, %c0_396] : memref<4x1x64xf32, #tpu.memory_space<vmem>>, vector<1x1x64xf32>
    %1040 = vector.shape_cast %1039 : vector<1x1x64xf32> to vector<1x64xf32>
    %cst_397 = arith.constant dense<0.000000e+00> : vector<16xf32>
    %1041 = vector.multi_reduction <add>, %1036, %cst_397 [1] : vector<16x64xf32> to vector<16xf32>
    %1042 = vector.shape_cast %1041 : vector<16xf32> to vector<16x1xf32>
    %cst_398 = arith.constant 6.400000e+01 : f32
    %1043 = vector.broadcast %cst_398 : f32 to vector<16x1xf32>
    %1044 = arith.divf %1042, %1043 : vector<16x1xf32>
    %1045 = vector.broadcast %1044 : vector<16x1xf32> to vector<16x64xf32>
    %1046 = arith.subf %1036, %1045 : vector<16x64xf32>
    %1047 = arith.mulf %1046, %1046 : vector<16x64xf32>
    %cst_399 = arith.constant dense<0.000000e+00> : vector<16xf32>
    %1048 = vector.multi_reduction <add>, %1047, %cst_399 [1] : vector<16x64xf32> to vector<16xf32>
    %1049 = vector.shape_cast %1048 : vector<16xf32> to vector<16x1xf32>
    %cst_400 = arith.constant 6.400000e+01 : f32
    %1050 = vector.broadcast %cst_400 : f32 to vector<16x1xf32>
    %1051 = arith.divf %1049, %1050 : vector<16x1xf32>
    %1052 = vector.broadcast %1044 : vector<16x1xf32> to vector<16x64xf32>
    %1053 = arith.subf %1036, %1052 : vector<16x64xf32>
    %cst_401 = arith.constant 9.99999974E-6 : f32
    %1054 = vector.broadcast %cst_401 : f32 to vector<16x1xf32>
    %1055 = arith.addf %1051, %1054 : vector<16x1xf32>
    %1056 = math.rsqrt %1055 : vector<16x1xf32>
    %1057 = vector.broadcast %1056 : vector<16x1xf32> to vector<16x64xf32>
    %1058 = arith.mulf %1053, %1057 : vector<16x64xf32>
    %1059 = vector.broadcast %1038 : vector<1x64xf32> to vector<16x64xf32>
    %1060 = arith.mulf %1058, %1059 : vector<16x64xf32>
    %1061 = vector.broadcast %1040 : vector<1x64xf32> to vector<16x64xf32>
    %1062 = arith.addf %1060, %1061 : vector<16x64xf32>
    %c3_402 = arith.constant 3 : index
    %c0_403 = arith.constant 0 : index
    %c0_404 = arith.constant 0 : index
    %1063 = vector.load %arg8[%c3_402, %c0_403, %c0_404] : memref<4x64x256xf32, #tpu.memory_space<vmem>>, vector<1x64x256xf32>
    %1064 = vector.shape_cast %1063 : vector<1x64x256xf32> to vector<64x256xf32>
    %cst_405 = arith.constant dense<0.000000e+00> : vector<16x256xf32>
    %1065 = tpu.matmul %1062, %1064, %cst_405 {dimension_numbers = #tpu.dot_dimension_numbers<[1], [0], [0], [1], [0, 0, 1, 1], [], []>} : vector<16x64xf32>, vector<64x256xf32>, vector<16x256xf32> -> vector<16x256xf32>
    %c3_406 = arith.constant 3 : index
    %c0_407 = arith.constant 0 : index
    %c0_408 = arith.constant 0 : index
    %1066 = vector.load %arg9[%c3_406, %c0_407, %c0_408] : memref<4x1x256xf32, #tpu.memory_space<vmem>>, vector<1x1x256xf32>
    %1067 = vector.shape_cast %1066 : vector<1x1x256xf32> to vector<1x256xf32>
    %1068 = vector.broadcast %1067 : vector<1x256xf32> to vector<16x256xf32>
    %1069 = arith.addf %1065, %1068 : vector<16x256xf32>
    %cst_409 = arith.constant 0.000000e+00 : f32
    %1070 = vector.broadcast %cst_409 : f32 to vector<16x256xf32>
    %1071 = arith.maximumf %1069, %1070 : vector<16x256xf32>
    %c3_410 = arith.constant 3 : index
    %c0_411 = arith.constant 0 : index
    %c0_412 = arith.constant 0 : index
    %1072 = vector.load %arg10[%c3_410, %c0_411, %c0_412] : memref<4x256x64xf32, #tpu.memory_space<vmem>>, vector<1x256x64xf32>
    %1073 = vector.shape_cast %1072 : vector<1x256x64xf32> to vector<256x64xf32>
    %cst_413 = arith.constant dense<0.000000e+00> : vector<16x64xf32>
    %1074 = tpu.matmul %1071, %1073, %cst_413 {dimension_numbers = #tpu.dot_dimension_numbers<[1], [0], [0], [1], [0, 0, 1, 1], [], []>} : vector<16x256xf32>, vector<256x64xf32>, vector<16x64xf32> -> vector<16x64xf32>
    %1075 = arith.addf %1036, %1074 : vector<16x64xf32>
    %c3_414 = arith.constant 3 : index
    %c0_415 = arith.constant 0 : index
    %c0_416 = arith.constant 0 : index
    %1076 = vector.load %arg11[%c3_414, %c0_415, %c0_416] : memref<4x1x64xf32, #tpu.memory_space<vmem>>, vector<1x1x64xf32>
    %1077 = vector.shape_cast %1076 : vector<1x1x64xf32> to vector<1x64xf32>
    %1078 = vector.broadcast %1077 : vector<1x64xf32> to vector<16x64xf32>
    %1079 = arith.addf %1075, %1078 : vector<16x64xf32>
    %c0_417 = arith.constant 0 : index
    %c0_418 = arith.constant 0 : index
    %1080 = vector.load %arg12[%c0_417, %c0_418] : memref<1x64xf32, #tpu.memory_space<vmem>>, vector<1x64xf32>
    %c0_419 = arith.constant 0 : index
    %c0_420 = arith.constant 0 : index
    %1081 = vector.load %arg13[%c0_419, %c0_420] : memref<1x64xf32, #tpu.memory_space<vmem>>, vector<1x64xf32>
    %cst_421 = arith.constant dense<0.000000e+00> : vector<16xf32>
    %1082 = vector.multi_reduction <add>, %1079, %cst_421 [1] : vector<16x64xf32> to vector<16xf32>
    %1083 = vector.shape_cast %1082 : vector<16xf32> to vector<16x1xf32>
    %cst_422 = arith.constant 6.400000e+01 : f32
    %1084 = vector.broadcast %cst_422 : f32 to vector<16x1xf32>
    %1085 = arith.divf %1083, %1084 : vector<16x1xf32>
    %1086 = vector.broadcast %1085 : vector<16x1xf32> to vector<16x64xf32>
    %1087 = arith.subf %1079, %1086 : vector<16x64xf32>
    %1088 = arith.mulf %1087, %1087 : vector<16x64xf32>
    %cst_423 = arith.constant dense<0.000000e+00> : vector<16xf32>
    %1089 = vector.multi_reduction <add>, %1088, %cst_423 [1] : vector<16x64xf32> to vector<16xf32>
    %1090 = vector.shape_cast %1089 : vector<16xf32> to vector<16x1xf32>
    %cst_424 = arith.constant 6.400000e+01 : f32
    %1091 = vector.broadcast %cst_424 : f32 to vector<16x1xf32>
    %1092 = arith.divf %1090, %1091 : vector<16x1xf32>
    %1093 = vector.broadcast %1085 : vector<16x1xf32> to vector<16x64xf32>
    %1094 = arith.subf %1079, %1093 : vector<16x64xf32>
    %cst_425 = arith.constant 9.99999974E-6 : f32
    %1095 = vector.broadcast %cst_425 : f32 to vector<16x1xf32>
    %1096 = arith.addf %1092, %1095 : vector<16x1xf32>
    %1097 = math.rsqrt %1096 : vector<16x1xf32>
    %1098 = vector.broadcast %1097 : vector<16x1xf32> to vector<16x64xf32>
    %1099 = arith.mulf %1094, %1098 : vector<16x64xf32>
    %1100 = vector.broadcast %1080 : vector<1x64xf32> to vector<16x64xf32>
    %1101 = arith.mulf %1099, %1100 : vector<16x64xf32>
    %1102 = vector.broadcast %1081 : vector<1x64xf32> to vector<16x64xf32>
    %1103 = arith.addf %1101, %1102 : vector<16x64xf32>
    %c0_426 = arith.constant 0 : index
    %c0_427 = arith.constant 0 : index
    %1104 = vector.load %arg14[%c0_426, %c0_427] : memref<64x128xf32, #tpu.memory_space<vmem>>, vector<64x128xf32>
    %cst_428 = arith.constant dense<0.000000e+00> : vector<16x128xf32>
    %1105 = tpu.matmul %1103, %1104, %cst_428 {dimension_numbers = #tpu.dot_dimension_numbers<[1], [0], [0], [1], [0, 0, 1, 1], [], []>} : vector<16x64xf32>, vector<64x128xf32>, vector<16x128xf32> -> vector<16x128xf32>
    %c0_429 = arith.constant 0 : index
    %c0_430 = arith.constant 0 : index
    %1106 = vector.load %arg15[%c0_429, %c0_430] : memref<1x128xf32, #tpu.memory_space<vmem>>, vector<1x128xf32>
    %1107 = vector.broadcast %1106 : vector<1x128xf32> to vector<16x128xf32>
    %1108 = arith.addf %1105, %1107 : vector<16x128xf32>
    %c0_431 = arith.constant 0 : index
    %c0_432 = arith.constant 0 : index
    %1109 = vector.load %arg16[%c0_431, %c0_432] : memref<16x128xf32, #tpu.memory_space<vmem>>, vector<16x128xf32>
    tpu.vector_store %arg16[%c0_431, %c0_432], %1108 {strides = array<i32>} : memref<16x128xf32, #tpu.memory_space<vmem>>, vector<16x128xf32>,
    return
  }
}

</mosaic_0001>

<bundles_post_ra>
// kernel: tpu_custom_call.1
= control target key start
LH: loop header
LB: loop body
LE: loop exit
PB: predicated region body
PF: predicated region fallthrough
CT: control target
= control target key end

     0   :  { %s13828_s0 = inlined_call_operand.vmem [shape: f32[16,64], index: 0, kind: input, shape index: {}]   ;;  %s13829_s1 = inlined_call_operand.vmem [shape: f32[4,1,64], index: 1, kind: input, shape index: {}]   ;;  %s13830_s2 = inlined_call_operand.vmem [shape: f32[4,1,64], index: 2, kind: input, shape index: {}]   ;;  %s13831_s3 = inlined_call_operand.vmem [shape: f32[4,64,192], index: 3, kind: input, shape index: {}]   ;;  %s13832_s4 = inlined_call_operand.vmem [shape: f32[4,64,64], index: 4, kind: input, shape index: {}]   ;;  %s13833_s5 = inlined_call_operand.vmem [shape: f32[4,1,64], index: 5, kind: input, shape index: {}]   ;;  %s13834_s6 = inlined_call_operand.vmem [shape: f32[4,1,64], index: 6, kind: input, shape index: {}]   ;;  %s13835_s7 = inlined_call_operand.vmem [shape: f32[4,1,64], index: 7, kind: input, shape index: {}]   ;;  %s13836_s8 = inlined_call_operand.vmem [shape: f32[4,64,256], index: 8, kind: input, shape index: {}]   ;;  %s13837_s9 = inlined_call_operand.vmem [shape: f32[4,1,256], index: 9, kind: input, shape index: {}]   ;;  %s13838_s10 = inlined_call_operand.vmem [shape: f32[4,256,64], index: 10, kind: input, shape index: {}]   ;;  %s13839_s11 = inlined_call_operand.vmem [shape: f32[4,1,64], index: 11, kind: input, shape index: {}]   ;;  %s13840_s12 = inlined_call_operand.vmem [shape: f32[1,64], index: 12, kind: input, shape index: {}]   ;;  %s13841_s13 = inlined_call_operand.vmem [shape: f32[1,64], index: 13, kind: input, shape index: {}]   ;;  %s13842_s14 = inlined_call_operand.vmem [shape: f32[64,128], index: 14, kind: input, shape index: {}]   ;;  %s13843_s15 = inlined_call_operand.vmem [shape: f32[1,128], index: 15, kind: input, shape index: {}]   ;;  %s13844_s16 = inlined_call_operand.hbm [shape: f32[16,128], index: 16, kind: output, shape index: {}]  }
   0x1   :  { %13858 = sst [smem:[#allocation5_spill]] %s13828_s0 }
   0x2   :  { %s13859_s23 = sld [smem:[#allocation5_spill]]  ;;  %vm63_vm0 = vcmask 523264  }
   0x8   :  { %v11713_v0 = vld [vmem:[%s13859_s23] sm:$0xff] }
   0x9   :  { %21 = vsyncpa [#allocation3], 0  ;;  %v64_v1 = vsel %vm63_vm0, %v11713_v0, 0.0  ;;  %v108_v7 = vld [vmem:[%s13831_s3 + $0x8] sm:$0xff]  ;;  %v110_v8 = vld [vmem:[%s13831_s3 + $0x18] sm:$0xff]  ;;  %v11612_v20 = vmov 0.0   ;;  %v56_v44 = vlaneseq }
   0xa   :  { %65 = vadd.xlane.f32.xlu0 %v64_v1  ;;  %v11043_v9 = vpack.c.bf16 %v110_v8, %v108_v7  ;;  %v107_v10 = vld [vmem:[%s13831_s3] sm:$0xff]  ;;  %v109_v11 = vld [vmem:[%s13831_s3 + $0x10] sm:$0xff]  ;;  %v112_v13 = vld [vmem:[%s13831_s3 + $0x28] sm:$0xff]  ;;  %193 = vmatprep.mubr.f32.mxu0 %v11612_v20  ;;  %vm11613_vm1 = vmmov 0   ;;  %s13856_s17 = smov 48   ;;  %s11615_s18 = smov 64  }
   0xb   :  { %v11045_v12 = vpack.c.bf16 %v109_v11, %v107_v10  ;;  %v114_v14 = vld [vmem:[%s13831_s3 + $0x38] sm:$0xff]  ;;  %v111_v15 = vld [vmem:[%s13831_s3 + $0x20] sm:$0xff]  ;;  %v113_v17 = vld [vmem:[%s13831_s3 + $0x30] sm:$0xff]  ;;  %10480 = vmatprep.subr.mxu1 %v11612_v20  ;;  %10482 = vmatprep.mubr.msk.f32.mxu1 %vm11613_vm1, %v11612_v20  ;;  %vm217_vm2 = vcmask 130048   ;;  %v11802_v45 = vshrl.u32 %v56_v44, 7  ;;  %v59_v46 = vand.u32 127, %v56_v44 }
   0xc   :  { %11044 = vmatprep.subr.bf16.mxu0 %v11043_v9  ;;  %v11047_v16 = vpack.c.bf16 %v114_v14, %v112_v13  ;;  %v116_v18 = vld [vmem:[%s13831_s3 + $0x48] sm:$0xff]  ;;  %v118_v19 = vld [vmem:[%s13831_s3 + $0x58] sm:$0xff]  ;;  %v11049_v21 = vpack.c.bf16 %v113_v17, %v111_v15  ;;  %v115_v23 = vld [vmem:[%s13831_s3 + $0x40] sm:$0xff]  ;;  %vm294_vm4 = vcmask 64512   ;;  %s13854_s19 = smov 112   ;;  %s13852_s22 = smov 32  }
   0xd   :  { %11046 = vmatpush1.bf16.msra.mxu0 %v11045_v12  ;;  %v11051_v22 = vpack.c.bf16 %v118_v19, %v116_v18  ;;  %v117_v24 = vld [vmem:[%s13831_s3 + $0x50] sm:$0xff]  ;;  %v120_v25 = vld [vmem:[%s13831_s3 + $0x68] sm:$0xff]  ;;  %v122_v26 = vld [vmem:[%s13831_s3 + $0x78] sm:$0xff]  ;;  %vm11805_vm3 = vcmp.le.s32.totalorder %v59_v46, %v11802_v45  ;;  %s13848_s20 = smov 80   ;;  %s13846_s21 = smov 16  }
   0xe   :  { %11048 = vmatprep.subr.bf16.mxu0 %v11047_v16  ;;  %v11053_v27 = vpack.c.bf16 %v117_v24, %v115_v23  ;;  %v11055_v28 = vpack.c.bf16 %v122_v26, %v120_v25  ;;  %v119_v29 = vld [vmem:[%s13831_s3 + $0x60] sm:$0xff]  ;;  %v121_v30 = vld [vmem:[%s13831_s3 + $0x70] sm:$0xff]  ;;  %v11619_v24 = vmov 0.0|0.0   ;;  %v209_v26 = vld [vmem:[%s13832_s4 + $0x18] sm:$0xff]  ;;  %s13862_s26 = smov 80   ;;  %s13863_s27 = smov 16  }
   0xf   :  { %v11057_v31 = vpack.c.bf16 %v121_v30, %v119_v29  ;;  %v11773_v36 = vld [vmem:[%s13829_s1] ss:$0 sm:$0xff]  ;;  %v208_v25 = vld [vmem:[%s13832_s4 + $0x10] sm:$0xff]  ;;  %s13864_s28 = smov 32   ;;  %s13865_s29 = smov 96  }
  0x10   :  { %v11778_v38 = vld [vmem:[%s13830_s2] ss:$0 sm:$0xff]  ;;  %s11622_s30 = smov [#allocation2]  }
  0x11   :  { %11050 = vmatpush1.bf16.msra.mxu0 %v11049_v21  ;;  %v206_v30 = vld [vmem:[%s13832_s4] sm:$0xff]  ;;  %s9673_s0 = sshll.u32 %s11622_s30, 4  ;;  %s9674_s0 = int_to_ptr.vmem [resolvable:$true] %s9673_s0 }
  0x12   :  { %11052 = vmatprep.subr.bf16.mxu0 %v11051_v22  ;;  %p11593_p1 = scmp.lt.s32.totalorder %s9674_s0, %s9674_s0 }
  0x15   :  { %11054 = vmatpush1.bf16.msra.mxu0 %v11053_v27 }
  0x16   :  { %11056 = vmatprep.subr.bf16.mxu0 %v11055_v28  ;;  %v11852_v28 = vpack.c.bf16 %v209_v26, %v208_v25 }
  0x19   :  { %11058 = vmatpush1.bf16.msra.mxu0 %v11057_v31  ;;  %v207_v31 = vld [vmem:[%s13832_s4 + $0x8] sm:$0xff] }
  0x1a   :  { %10519 = vmatprep.subr.mxu0 %v11612_v20 }
  0x97   :  { %v66_v2 = vpop.xlane.xlu0 %65 }
  0x98   :  { %v71_v3 = vmul.f32 0.015625, %v66_v2 }
  0x9a   :  { %v73_v4 = vsub.f32 %v11713_v0, %v71_v3 }
  0x9c   :  { %v75_v5 = vmul.f32 %v73_v4, %v73_v4 }
  0x9e   :  { %v77_v6 = vsel %vm63_vm0, %v75_v5, 0.0 }
  0x9f   :  { %78 = vadd.xlane.f32.xlu0 %v77_v6  ;;  %v11828_v6 = vld [vmem:[%s13859_s23 + $0x8] sm:$0xff]  ;;  %s13850_s23 = smov 96  }
  0xa0   :  { %v67_v8 = vsel %vm63_vm0, %v11828_v6, 0.0 }
 0x12c   :  { %v79_v32 = vpop.xlane.xlu0 %78 }
 0x12d   :  { %v83_v33 = vmul.f32 0.015625, %v79_v32  ;;  %v11865_v32 = vpack.c.bf16 %v207_v31, %v206_v30 }
 0x12f   :  { %v85_v34 = vadd.f32 1e-05, %v83_v33 }
 0x131   :  { %11424 = vrsqrt.f32 %v85_v34 }
 0x13b   :  { %v11425_v35 = vpop.eup %11424 }
 0x13c   :  { %v89_v37 = vmul.f32 %v11425_v35, %v73_v4 }
 0x13e   :  { %v97_v39 = vmul.f32 %v11773_v36, %v89_v37 }
 0x140   :  { %v105_v40 = vadd.f32 %v11778_v38, %v97_v39 }
 0x142   :  { %9686 = vmatmul.mubr.msk.f32.vlgmr.msra.gmra.mrb[0].mxu0 %vm63_vm0, %v105_v40 }
 0x143   :  { %199 = vmatprep.mubr.f32.mxu0 %v11612_v20 }
 0x215   :  { %v11786_v41 = vpop.f32.mrb[0].mxu0 }
 0x216   :  { %381 = vrot.lane.b32.xlu0 %v11786_v41, %s13856_s17  ;;  %215 = vrot.lane.b32.xlu1 %v11786_v41, %s11615_s18  ;;  %v11792_v42 = vpop.f32.mrb[1].mxu0 }
 0x288   :  { %v216_v43 = vpop.permute.xlu1 %215  ;;  %v382_v58 = vpop.permute.xlu0 %381 }
 0x289   :  { %10481 = vmatpush3.xpose.msk.msra.mxu1 %vm217_vm2, %v216_v43 }
 0x28a   :  { %10485 = vmatprep.subr.mxu1 %v11612_v20 }
 0x28c   :  { %10483 = vmatmul.mubr.msk.f32.vlgmr.msra.gmra.mrb[0].mxu1 %vm217_vm2, %v11786_v41 }
 0x28d   :  { %10486 = vmatpush3.msra.mxu1 %v11792_v42  ;;  %10487 = vmatprep.mubr.msk.f32.mxu1 %vm11613_vm1, %v11612_v20 }
 0x28e   :  { %10490 = vmatprep.subr.mxu1 %v11612_v20 }
 0x35f   :  { %v288_v47 = vpop.f32.mrb[0].mxu1 }
 0x360   :  { %v292_v49 = vmul.f32 0.25, %v288_v47  ;;  %v10484_v50 = vpop.f32.mrb[1].mxu1 }
 0x362   :  { %v293_v51 = vsel %vm11805_vm3, %v292_v49, -1e+30 }
 0x363   :  { %v295_v52 = vsel %vm294_vm4, %v293_v51, -inf }
 0x364   :  { %296 = vmax.xlane.f32.xlu1 %v295_v52 }
 0x3f1   :  { %v297_v53 = vpop.xlane.xlu1 %296 }
 0x3f2   :  { %v298_v54 = vsub.f32 %v293_v51, %v297_v53 }
 0x3f4   :  { %v299_v55 = vmul.f32 1.442695, %v298_v54 }
 0x3f6   :  { %11426 = vpow2.f32 %v299_v55 }
 0x400   :  { %v11427_v56 = vpop.eup %11426 }
 0x401   :  { %v301_v57 = vsel %vm294_vm4, %v11427_v56, 0.0 }
 0x402   :  { %302 = vadd.xlane.f32.xlu0 %v301_v57 }
 0x418   :  { %379 = vrot.lane.b32.xlu0 %v11786_v41, %s13854_s19 }
 0x48f   :  { %v303_v59 = vpop.xlane.xlu0 %302 }
 0x490   :  { %11428 = vrcp.f32 %v303_v59 }
 0x493   :  { %v380_v62 = vpop.permute.xlu0 %379 }
 0x49a   :  { %v11429_v60 = vpop.eup %11428 }
 0x49b   :  { %v305_v61 = vmul.f32 %v11429_v60, %v11427_v56 }
 0x49d   :  { %10488 = vmatmul.mubr.msk.f32.vlgmr.msra.gmra.mrb[2].mxu1 %vm294_vm4, %v305_v61 }
 0x49e   :  { %10491 = vmatpush3.xpose.msk.msra.mxu1 %vm217_vm2, %v382_v58  ;;  %10492 = vmatprep.mubr.msk.f32.mxu1 %vm11613_vm1, %v11612_v20 }
 0x49f   :  { %10495 = vmatprep.subr.mxu1 %v11612_v20 }
 0x4a1   :  { %10493 = vmatmul.mubr.msk.f32.vlgmr.msra.gmra.mrb[4].mxu1 %vm217_vm2, %v380_v62 }
 0x4a2   :  { %10497 = vmatprep.mubr.msk.f32.mxu1 %vm11613_vm1, %v11612_v20 }
 0x570   :  { %v375_v63 = vpop.f32.mrb[2].mxu1 }
 0x571   :  { %v10489_v1 = vpop.f32.mrb[3].mxu1 }
 0x572   :  { %v211_v1 = vld [vmem:[%s13832_s4 + $0x28] sm:$0xff] }
 0x574   :  { %v453_v2 = vpop.f32.mrb[4].mxu1 }
 0x575   :  { %v457_v3 = vmul.f32 0.25, %v453_v2  ;;  %v10494_v4 = vpop.f32.mrb[5].mxu1 }
 0x577   :  { %v458_v5 = vsel %vm11805_vm3, %v457_v3, -1e+30 }
 0x578   :  { %v459_v7 = vsel %vm294_vm4, %v458_v5, -inf }
 0x579   :  { %460 = vmax.xlane.f32.xlu0 %v459_v7 }
 0x57d   :  { %68 = vadd.xlane.f32.xlu0 %v67_v8 }
 0x606   :  { %v461_v9 = vpop.xlane.xlu0 %460 }
 0x607   :  { %v462_v10 = vsub.f32 %v458_v5, %v461_v9 }
 0x609   :  { %v463_v11 = vmul.f32 1.442695, %v462_v10 }
 0x60a   :  { %v69_v12 = vpop.xlane.xlu0 %68 }
 0x60b   :  { %11430 = vpow2.f32 %v463_v11  ;;  %v72_v13 = vmul.f32 0.015625, %v69_v12 }
 0x60d   :  { %v74_v14 = vsub.f32 %v11828_v6, %v72_v13 }
 0x60f   :  { %v76_v15 = vmul.f32 %v74_v14, %v74_v14 }
 0x611   :  { %v80_v16 = vsel %vm63_vm0, %v76_v15, 0.0 }
 0x612   :  { %81 = vadd.xlane.f32.xlu0 %v80_v16 }
 0x615   :  { %v11431_v17 = vpop.eup %11430 }
 0x616   :  { %v465_v18 = vsel %vm294_vm4, %v11431_v17, 0.0 }
 0x617   :  { %466 = vadd.xlane.f32.xlu1 %v465_v18 }
 0x628   :  { %471 = vrot.lane.b32.xlu1 %v11792_v42, %s13854_s19  ;;  %784 = vrot.lane.b32.xlu0 %v11792_v42, %s13850_s23 }
 0x62c   :  { %695 = vrot.lane.b32.xlu1 %v11786_v41, %s13852_s22 }
 0x630   :  { %693 = vrot.lane.b32.xlu1 %v11786_v41, %s13850_s23 }
 0x69f   :  { %v82_v19 = vpop.xlane.xlu0 %81 }
 0x6a0   :  { %v84_v39 = vmul.f32 0.015625, %v82_v19 }
 0x6a2   :  { %v86_v40 = vadd.f32 1e-05, %v84_v39 }
 0x6a3   :  { %v785_v21 = vpop.permute.xlu0 %784 }
 0x6a4   :  { %v467_v22 = vpop.xlane.xlu1 %466  ;;  %10520 = vmatpush3.msra.mxu0 %v785_v21 }
 0x6a5   :  { %11432 = vrcp.f32 %v467_v22  ;;  %10531 = vmatprep.subr.mxu0 %v11612_v20 }
 0x6a6   :  { %11434 = vrsqrt.f32 %v86_v40 }
 0x6a8   :  { %v472_v23 = vpop.permute.xlu1 %471 }
 0x6a9   :  { %10496 = vmatpush3.msra.mxu1 %v472_v23  ;;  %v213_v23 = vld [vmem:[%s13832_s4 + $0x38] sm:$0xff] }
 0x6aa   :  { %11059 = vmatprep.subr.bf16.mxu1 %v11619_v24 }
 0x6ac   :  { %v696_v35 = vpop.permute.xlu1 %695 }
 0x6af   :  { %v11433_v27 = vpop.eup %11432 }
 0x6b0   :  { %v469_v29 = vmul.f32 %v11433_v27, %v11431_v17  ;;  %v694_v37 = vpop.permute.xlu1 %693  ;;  %v11435_v43 = vpop.eup %11434 }
 0x6b1   :  { %v90_v44 = vmul.f32 %v11435_v43, %v74_v14 }
 0x6b2   :  { %10498 = vmatmul.mubr.msk.f32.vlgmr.msra.gmra.mrb[6].mxu1 %vm294_vm4, %v469_v29 }
 0x6b3   :  { %11061 = vmatpush3.bf16.msra.mxu1 %v11852_v28  ;;  %10504 = vmatprep.mubr.msk.f32.mxu1 %vm11613_vm1, %v11612_v20  ;;  %v98_v46 = vmul.f32 %v11773_v36, %v90_v44 }
 0x6b4   :  { %11062 = vmatprep.subr.bf16.mxu1 %v11619_v24 }
 0x6b5   :  { %v106_v47 = vadd.f32 %v11778_v38, %v98_v46 }
 0x6b7   :  { %9687 = vmatmul.mubr.msk.f32.gmra.mrb[2].mxu0 %vm63_vm0, %v106_v47 }
 0x6b8   :  { %10521 = vmatprep.mubr.msk.f32.mxu0 %vm11613_vm1, %v11612_v20 }
 0x785   :  { %v543_v33 = vpop.f32.mrb[6].mxu1 }
 0x786   :  { %v10499_v34 = vpop.f32.mrb[7].mxu1  ;;  %10505 = vmatmul.mubr.msk.f32.vlgmr.msra.gmra.mrb[8].mxu1 %vm217_vm2, %v543_v33 }
 0x787   :  { %11064 = vmatpush3.bf16.msra.mxu1 %v11865_v32  ;;  %10511 = vmatprep.mubr.msk.f32.mxu1 %vm11613_vm1, %v11612_v20 }
 0x788   :  { %10514 = vmatprep.subr.mxu1 %v11612_v20 }
 0x78a   :  { %10512 = vmatmul.mubr.msk.f32.vlgmr.msra.gmra.mrb[10].mxu1 %vm217_vm2, %v375_v63  ;;  %v11895_v62 = vpop.f32.mrb[2].mxu0  ;;  %v210_v63 = vld [vmem:[%s13832_s4 + $0x20] sm:$0xff] }
 0x78b   :  { %10516 = vmatprep.mubr.msk.f32.mxu1 %vm11613_vm1, %v11612_v20  ;;  %v11903_v2 = vpop.f32.mrb[3].mxu0  ;;  %v11905_v3 = vpack.c.bf16 %v211_v1, %v210_v63 }
 0x790   :  { %10515 = vmatpush3.xpose.msk.msra.mxu1 %vm217_vm2, %v696_v35 }
 0x791   :  { %11065 = vmatprep.subr.bf16.mxu1 %v11619_v24 }
 0x793   :  { %10517 = vmatmul.mubr.msk.f32.vlgmr.msra.gmra.mrb[12].mxu1 %vm217_vm2, %v694_v37 }
 0x794   :  { %10528 = vmatprep.mubr.msk.f32.mxu1 %vm11613_vm1, %v11612_v20  ;;  %11067 = vmatpush3.bf16.msra.mxu1 %v11905_v3 }
 0x795   :  { %10536 = vmatprep.subr.mxu1 %v11612_v20 }
 0x859   :  { %v616_v49 = vpop.f32.mrb[8].mxu1 }
 0x85a   :  { %v10506_v50 = vpop.f32.mrb[9].mxu1 }
 0x85d   :  { %v689_v51 = vpop.f32.mrb[10].mxu1 }
 0x85e   :  { %v11885_v52 = vadd.f32 %v689_v51, %v616_v49  ;;  %v10513_v53 = vpop.f32.mrb[11].mxu1 }
 0x866   :  { %v767_v54 = vpop.f32.mrb[12].mxu1 }
 0x867   :  { %v771_v55 = vmul.f32 0.25, %v767_v54  ;;  %v10518_v56 = vpop.f32.mrb[13].mxu1 }
 0x869   :  { %v772_v57 = vsel %vm11805_vm3, %v771_v55, -1e+30 }
 0x86a   :  { %v773_v36 = vsel %vm294_vm4, %v772_v57, -inf }
 0x86b   :  { %774 = vmax.xlane.f32.xlu1 %v773_v36 }
 0x87c   :  { %934 = vrot.lane.b32.xlu1 %v11786_v41, %s13848_s20 }
 0x8f8   :  { %v775_v38 = vpop.xlane.xlu1 %774 }
 0x8f9   :  { %v776_v58 = vsub.f32 %v772_v57, %v775_v38 }
 0x8fb   :  { %v777_v59 = vmul.f32 1.442695, %v776_v58 }
 0x8fc   :  { %v935_v8 = vpop.permute.xlu1 %934 }
 0x8fd   :  { %11436 = vpow2.f32 %v777_v59 }
 0x907   :  { %v11437_v60 = vpop.eup %11436 }
 0x908   :  { %v779_v61 = vsel %vm294_vm4, %v11437_v60, 0.0 }
 0x909   :  { %780 = vadd.xlane.f32.xlu0 %v779_v61 }
 0x91f   :  { %936 = vrot.lane.b32.xlu0 %v11786_v41, %s13846_s21 }
 0x996   :  { %v781_v4 = vpop.xlane.xlu0 %780 }
 0x997   :  { %11438 = vrcp.f32 %v781_v4 }
 0x99a   :  { %v937_v7 = vpop.permute.xlu0 %936 }
 0x9a1   :  { %v11439_v41 = vpop.eup %11438 }
 0x9a2   :  { %v783_v5 = vmul.f32 %v11439_v41, %v11437_v60 }
 0x9a4   :  { %10522 = vmatmul.mubr.msk.f32.vlgmr.msra.gmra.mrb[4].mxu0 %vm294_vm4, %v783_v5 }
 0x9a5   :  { %10532 = vmatpush3.xpose.msk.msra.mxu0 %vm217_vm2, %v937_v7  ;;  %10533 = vmatprep.mubr.msk.f32.mxu0 %vm11613_vm1, %v11612_v20 }
 0x9a6   :  { %11068 = vmatprep.subr.bf16.mxu0 %v11619_v24 }
 0x9a8   :  { %10534 = vmatmul.mubr.msk.f32.vlgmr.msra.gmra.mrb[6].mxu0 %vm217_vm2, %v935_v8 }
 0x9a9   :  { %10545 = vmatprep.mubr.msk.f32.mxu0 %vm11613_vm1, %v11612_v20 }
 0xa77   :  { %v856_v9 = vpop.f32.mrb[4].mxu0 }
 0xa78   :  { %v10523_v10 = vpop.f32.mrb[5].mxu0  ;;  %10529 = vmatmul.mubr.msk.f32.vlgmr.msra.gmra.mrb[14].mxu1 %vm217_vm2, %v856_v9 }
 0xa79   :  { %10538 = vmatprep.mubr.msk.f32.mxu1 %vm11613_vm1, %v11612_v20 }
 0xa7b   :  { %v1008_v11 = vpop.f32.mrb[6].mxu0 }
 0xa7c   :  { %v1012_v12 = vmul.f32 0.25, %v1008_v11  ;;  %v10535_v13 = vpop.f32.mrb[7].mxu0 }
 0xa7e   :  { %v1013_v14 = vsel %vm11805_vm3, %v1012_v12, -1e+30 }
 0xa7f   :  { %v1014_v15 = vsel %vm294_vm4, %v1013_v14, -inf }
 0xa80   :  { %1015 = vmax.xlane.f32.xlu0 %v1014_v15 }
 0xa96   :  { %1025 = vrot.lane.b32.xlu0 %v11792_v42, %s13848_s20  ;;  %v212_v42 = vld [vmem:[%s13832_s4 + $0x30] sm:$0xff] }
 0xa97   :  { %v11939_v25 = vpack.c.bf16 %v213_v23, %v212_v42 }
 0xa99   :  { %11070 = vmatpush3.bf16.msra.mxu0 %v11939_v25 }
 0xa9a   :  { %1340 = vrot.lane.b32.xlu0 %v11895_v62, %s13856_s17  ;;  %10553 = vmatprep.subr.mxu0 %v11612_v20 }
 0xa9e   :  { %1338 = vrot.lane.b32.xlu0 %v11895_v62, %s13854_s19 }
 0xb0d   :  { %v1016_v16 = vpop.xlane.xlu0 %1015 }
 0xb0e   :  { %v1017_v17 = vsub.f32 %v1013_v14, %v1016_v16 }
 0xb10   :  { %v1018_v18 = vmul.f32 1.442695, %v1017_v17 }
 0xb11   :  { %v1026_v19 = vpop.permute.xlu0 %1025 }
 0xb12   :  { %11440 = vpow2.f32 %v1018_v18  ;;  %10537 = vmatpush3.msra.mxu1 %v1026_v19 }
 0xb13   :  { %10548 = vmatprep.subr.mxu1 %v11612_v20 }
 0xb15   :  { %v1341_v35 = vpop.permute.xlu0 %1340 }
 0xb19   :  { %v1339_v37 = vpop.permute.xlu0 %1338 }
 0xb1c   :  { %v11441_v21 = vpop.eup %11440 }
 0xb1d   :  { %v1020_v22 = vsel %vm294_vm4, %v11441_v21, 0.0 }
 0xb1e   :  { %1021 = vadd.xlane.f32.xlu1 %v1020_v22 }
 0xb2f   :  { %1176 = vrot.lane.b32.xlu1 %v11895_v62, %s11615_s18 }
 0xb4b   :  { %v929_v26 = vpop.f32.mrb[14].mxu1 }
 0xb4c   :  { %v933_v27 = vadd.f32 %v929_v26, %v11885_v52  ;;  %v10530_v29 = vpop.f32.mrb[15].mxu1 }
 0xbab   :  { %v1022_v30 = vpop.xlane.xlu1 %1021 }
 0xbac   :  { %11442 = vrcp.f32 %v1022_v30 }
 0xbaf   :  { %v1177_v34 = vpop.permute.xlu1 %1176 }
 0xbb6   :  { %v11443_v31 = vpop.eup %11442 }
 0xbb7   :  { %v1024_v33 = vmul.f32 %v11443_v31, %v11441_v21 }
 0xbb9   :  { %10539 = vmatmul.mubr.msk.f32.vlgmr.msra.gmra.mrb[16].mxu1 %vm294_vm4, %v1024_v33 }
 0xbba   :  { %10549 = vmatpush3.xpose.msk.msra.mxu1 %vm217_vm2, %v1177_v34  ;;  %10550 = vmatprep.mubr.msk.f32.mxu1 %vm11613_vm1, %v11612_v20 }
 0xbbb   :  { %10558 = vmatprep.subr.mxu1 %v11612_v20 }
 0xbbd   :  { %10551 = vmatmul.mubr.msk.f32.vlgmr.msra.gmra.mrb[18].mxu1 %vm217_vm2, %v11895_v62 }
 0xbbe   :  { %10559 = vmatpush3.xpose.msk.msra.mxu1 %vm217_vm2, %v1341_v35  ;;  %10560 = vmatprep.mubr.msk.f32.mxu1 %vm11613_vm1, %v11612_v20 }
 0xbbf   :  { %11071 = vmatprep.subr.bf16.mxu1 %v11619_v24 }
 0xbc1   :  { %10561 = vmatmul.mubr.msk.f32.vlgmr.msra.gmra.mrb[20].mxu1 %vm217_vm2, %v1339_v37 }
 0xbc2   :  { %11073 = vmatpush3.bf16.msra.mxu1 %v11852_v28  ;;  %10572 = vmatprep.mubr.msk.f32.mxu1 %vm11613_vm1, %v11612_v20 }
 0xbc3   :  { %10582 = vmatprep.subr.mxu1 %v11612_v20 }
 0xc8c   :  { %v1097_v39 = vpop.f32.mrb[16].mxu1 }
 0xc8d   :  { %v10540_v40 = vpop.f32.mrb[17].mxu1  ;;  %10546 = vmatmul.mubr.msk.f32.vlgmr.msra.gmra.mrb[8].mxu0 %vm217_vm2, %v1097_v39 }
 0xc8e   :  { %10554 = vmatpush3.msra.mxu0 %v11903_v2  ;;  %10555 = vmatprep.mubr.msk.f32.mxu0 %vm11613_vm1, %v11612_v20 }
 0xc8f   :  { %10563 = vmatprep.subr.mxu0 %v11612_v20 }
 0xc90   :  { %v1248_v43 = vpop.f32.mrb[18].mxu1 }
 0xc91   :  { %v1252_v44 = vmul.f32 0.25, %v1248_v43  ;;  %v10552_v46 = vpop.f32.mrb[19].mxu1 }
 0xc92   :  { %v12028_v46 = vld [vmem:[%s13833_s5] ss:$0 sm:$0xff] }
 0xc93   :  { %v1253_v28 = vsel %vm11805_vm3, %v1252_v44, -1e+30 }
 0xc94   :  { %v1412_v47 = vpop.f32.mrb[20].mxu1  ;;  %v1254_v49 = vsel %vm294_vm4, %v1253_v28, -inf }
 0xc95   :  { %v1416_v50 = vmul.f32 0.25, %v1412_v47  ;;  %1255 = vmax.xlane.f32.xlu0 %v1254_v49  ;;  %v10562_v51 = vpop.f32.mrb[21].mxu1 }
 0xc97   :  { %v1417_v52 = vsel %vm11805_vm3, %v1416_v50, -1e+30 }
 0xc98   :  { %v1418_v53 = vsel %vm294_vm4, %v1417_v52, -inf }
 0xc99   :  { %1419 = vmax.xlane.f32.xlu1 %v1418_v53 }
 0xcaa   :  { %1654 = vrot.lane.b32.xlu1 %v11895_v62, %s13852_s22 }
 0xcae   :  { %1652 = vrot.lane.b32.xlu1 %v11895_v62, %s13850_s23 }
 0xd22   :  { %v1256_v54 = vpop.xlane.xlu0 %1255 }
 0xd23   :  { %v1257_v55 = vsub.f32 %v1253_v28, %v1256_v54 }
 0xd25   :  { %v1258_v56 = vmul.f32 1.442695, %v1257_v55 }
 0xd26   :  { %v1420_v57 = vpop.xlane.xlu1 %1419 }
 0xd27   :  { %11444 = vpow2.f32 %v1258_v56  ;;  %v1421_v36 = vsub.f32 %v1417_v52, %v1420_v57 }
 0xd29   :  { %v1422_v38 = vmul.f32 1.442695, %v1421_v36 }
 0xd2a   :  { %v1655_v14 = vpop.permute.xlu1 %1654 }
 0xd2b   :  { %11446 = vpow2.f32 %v1422_v38 }
 0xd31   :  { %v11445_v58 = vpop.eup %11444 }
 0xd32   :  { %v1260_v59 = vsel %vm294_vm4, %v11445_v58, 0.0 }
 0xd33   :  { %1261 = vadd.xlane.f32.xlu0 %v1260_v59 }
 0xd35   :  { %v11447_v60 = vpop.eup %11446 }
 0xd36   :  { %v1424_v61 = vsel %vm294_vm4, %v11447_v60, 0.0 }
 0xd37   :  { %1425 = vadd.xlane.f32.xlu0 %v1424_v61 }
 0xd4d   :  { %1430 = vrot.lane.b32.xlu0 %v11903_v2, %s13854_s19 }
 0xd60   :  { %v1170_v63 = vpop.f32.mrb[8].mxu0 }
 0xd61   :  { %v11979_v1 = vadd.f32 %v1170_v63, %v933_v27  ;;  %v10547_v4 = vpop.f32.mrb[9].mxu0 }
 0xd63   :  { %v2141_v47 = vadd.f32 %v12028_v46, %v11979_v1 }
 0xd65   :  { %v12038_v52 = vadd.f32 %v2141_v47, %v11713_v0  ;;  %v2320_v47 = vld [vmem:[%s13838_s10 + $0x80] sm:$0xff] }
 0xd67   :  { %v2147_v54 = vsel %vm63_vm0, %v12038_v52, 0.0 }
 0xdc0   :  { %v1262_v41 = vpop.xlane.xlu0 %1261 }
 0xdc1   :  { %11448 = vrcp.f32 %v1262_v41 }
 0xdc4   :  { %v1426_v5 = vpop.xlane.xlu0 %1425 }
 0xdc5   :  { %11450 = vrcp.f32 %v1426_v5 }
 0xdc8   :  { %v1431_v9 = vpop.permute.xlu0 %1430 }
 0xdcb   :  { %v11449_v7 = vpop.eup %11448 }
 0xdcc   :  { %v1264_v8 = vmul.f32 %v11449_v7, %v11445_v58  ;;  %v2190_v7 = vld [vmem:[%s13836_s8 + $0x8] sm:$0xff] }
 0xdce   :  { %10556 = vmatmul.mubr.msk.f32.vlgmr.msra.gmra.mrb[10].mxu0 %vm294_vm4, %v1264_v8  ;;  %v2192_v8 = vld [vmem:[%s13836_s8 + $0x18] sm:$0xff] }
 0xdcf   :  { %v11451_v10 = vpop.eup %11450  ;;  %10564 = vmatpush3.msra.mxu0 %v1431_v9  ;;  %10565 = vmatprep.mubr.msk.f32.mxu0 %vm11613_vm1, %v11612_v20 }
 0xdd0   :  { %v1428_v11 = vmul.f32 %v11451_v10, %v11447_v60  ;;  %11074 = vmatprep.subr.bf16.mxu0 %v11619_v24  ;;  %v11083_v10 = vpack.c.bf16 %v2192_v8, %v2190_v7 }
 0xdd2   :  { %10566 = vmatmul.mubr.msk.f32.vlgmr.msra.gmra.mrb[12].mxu0 %vm294_vm4, %v1428_v11 }
 0xdd3   :  { %11076 = vmatpush3.bf16.msra.mxu0 %v11865_v32  ;;  %10579 = vmatprep.mubr.msk.f32.mxu0 %vm11613_vm1, %v11612_v20  ;;  %v1653_v32 = vpop.permute.xlu1 %1652 }
 0xdd4   :  { %10587 = vmatprep.subr.mxu0 %v11612_v20 }
 0xea1   :  { %v1334_v12 = vpop.f32.mrb[10].mxu0 }
 0xea2   :  { %v10557_v13 = vpop.f32.mrb[11].mxu0  ;;  %10580 = vmatmul.mubr.msk.f32.vlgmr.msra.gmra.mrb[14].mxu0 %vm217_vm2, %v1334_v12  ;;  %v2189_v12 = vld [vmem:[%s13836_s8] sm:$0xff] }
 0xea3   :  { %10589 = vmatprep.mubr.msk.f32.mxu0 %vm11613_vm1, %v11612_v20  ;;  %v2191_v13 = vld [vmem:[%s13836_s8 + $0x10] sm:$0xff] }
 0xea5   :  { %v1502_v15 = vpop.f32.mrb[12].mxu0 }
 0xea6   :  { %v10567_v16 = vpop.f32.mrb[13].mxu0  ;;  %10573 = vmatmul.mubr.msk.f32.vlgmr.msra.gmra.mrb[22].mxu1 %vm217_vm2, %v1502_v15  ;;  %v2196_v15 = vld [vmem:[%s13836_s8 + $0x38] sm:$0xff] }
 0xea7   :  { %10583 = vmatpush3.xpose.msk.msra.mxu1 %vm217_vm2, %v1655_v14  ;;  %10584 = vmatprep.mubr.msk.f32.mxu1 %vm11613_vm1, %v11612_v20  ;;  %v2194_v14 = vld [vmem:[%s13836_s8 + $0x28] sm:$0xff] }
 0xea8   :  { %11077 = vmatprep.subr.bf16.mxu1 %v11619_v24 }
 0xeaa   :  { %10585 = vmatmul.mubr.msk.f32.vlgmr.msra.gmra.mrb[24].mxu1 %vm217_vm2, %v1653_v32  ;;  %v11085_v32 = vpack.c.bf16 %v2191_v13, %v2189_v12  ;;  %v12171_v13 = vsub.s32 1, %v11802_v45 }
 0xeab   :  { %11079 = vmatpush3.bf16.msra.mxu1 %v11905_v3  ;;  %10596 = vmatprep.mubr.msk.f32.mxu1 %vm11613_vm1, %v11612_v20 }
 0xeac   :  { %10604 = vmatprep.subr.mxu1 %v11612_v20 }
 0xf75   :  { %v1648_v17 = vpop.f32.mrb[14].mxu0 }
 0xf76   :  { %v10581_v18 = vpop.f32.mrb[15].mxu0 }
 0xf77   :  { %v11087_v18 = vpack.c.bf16 %v2196_v15, %v2194_v14  ;;  %v2205_v14 = vld [vmem:[%s13837_s9] sm:$0x3] }
 0xf79   :  { %v1575_v19 = vpop.f32.mrb[22].mxu1 }
 0xf7a   :  { %v12003_v21 = vadd.f32 %v1648_v17, %v1575_v19  ;;  %v10574_v22 = vpop.f32.mrb[23].mxu1  ;;  %v2193_v19 = vld [vmem:[%s13836_s8 + $0x20] sm:$0xff] }
 0xf7b   :  { %v2198_v22 = vld [vmem:[%s13836_s8 + $0x48] sm:$0xff] }
 0xf7d   :  { %v1726_v42 = vpop.f32.mrb[24].mxu1 }
 0xf7e   :  { %v1730_v23 = vmul.f32 0.25, %v1726_v42  ;;  %v10586_v26 = vpop.f32.mrb[25].mxu1  ;;  %v2200_v42 = vld [vmem:[%s13836_s8 + $0x58] sm:$0xff] }
 0xf7f   :  { %v11091_v26 = vpack.c.bf16 %v2200_v42, %v2198_v22  ;;  %v2314_v42 = vld [vmem:[%s13838_s10 + $0x50] sm:$0xff] }
 0xf80   :  { %v1731_v27 = vsel %vm11805_vm3, %v1730_v23, -1e+30 }
 0xf81   :  { %v1732_v29 = vsel %vm294_vm4, %v1731_v27, -inf }
 0xf82   :  { %1733 = vmax.xlane.f32.xlu0 %v1732_v29  ;;  %v2199_v29 = vld [vmem:[%s13836_s8 + $0x50] sm:$0xff] }
 0xf98   :  { %1743 = vrot.lane.b32.xlu0 %v11903_v2, %s13850_s23 }
 0xf9c   :  { %1893 = vrot.lane.b32.xlu0 %v11895_v62, %s13848_s20 }
0x100f   :  { %v1734_v3 = vpop.xlane.xlu0 %1733 }
0x1010   :  { %v1735_v30 = vsub.f32 %v1731_v27, %v1734_v3  ;;  %v2197_v27 = vld [vmem:[%s13836_s8 + $0x40] sm:$0xff] }
0x1012   :  { %v1736_v31 = vmul.f32 1.442695, %v1735_v30  ;;  %v2202_v30 = vld [vmem:[%s13836_s8 + $0x68] sm:$0xff] }
0x1013   :  { %v1744_v33 = vpop.permute.xlu0 %1743 }
0x1014   :  { %11452 = vpow2.f32 %v1736_v31  ;;  %10588 = vmatpush3.msra.mxu0 %v1744_v33  ;;  %v2204_v31 = vld [vmem:[%s13836_s8 + $0x78] sm:$0xff]  ;;  %v11093_v33 = vpack.c.bf16 %v2199_v29, %v2197_v27  ;;  %v2332_v27 = vld [vmem:[%s13838_s10 + $0xe0] sm:$0xff]  ;;  %v2333_v29 = vld [vmem:[%s13838_s10 + $0xe8] sm:$0xff] }
0x1015   :  { %10599 = vmatprep.subr.mxu0 %v11612_v20 }
0x1017   :  { %v1894_v44 = vpop.permute.xlu0 %1893 }
0x101e   :  { %v11453_v34 = vpop.eup %11452 }
0x101f   :  { %v1738_v35 = vsel %vm294_vm4, %v11453_v34, 0.0 }
0x1020   :  { %1739 = vadd.xlane.f32.xlu1 %v1738_v35  ;;  %v11095_v35 = vpack.c.bf16 %v2204_v31, %v2202_v30 }
0x1031   :  { %1895 = vrot.lane.b32.xlu1 %v11895_v62, %s13846_s21 }
0x10ad   :  { %v1740_v37 = vpop.xlane.xlu1 %1739 }
0x10ae   :  { %11454 = vrcp.f32 %v1740_v37  ;;  %v2201_v37 = vld [vmem:[%s13836_s8 + $0x60] sm:$0xff] }
0x10b1   :  { %v1896_v43 = vpop.permute.xlu1 %1895 }
0x10b8   :  { %v11455_v39 = vpop.eup %11454 }
0x10b9   :  { %v1742_v40 = vmul.f32 %v11455_v39, %v11453_v34  ;;  %v2203_v39 = vld [vmem:[%s13836_s8 + $0x70] sm:$0xff] }
0x10bb   :  { %10590 = vmatmul.mubr.msk.f32.vlgmr.msra.gmra.mrb[16].mxu0 %vm294_vm4, %v1742_v40  ;;  %v12104_v40 = vld [vmem:[%s13834_s6] ss:$0 sm:$0xff] }
0x10bc   :  { %10600 = vmatpush3.xpose.msk.msra.mxu0 %vm217_vm2, %v1896_v43  ;;  %10601 = vmatprep.mubr.msk.f32.mxu0 %vm11613_vm1, %v11612_v20  ;;  %v11097_v43 = vpack.c.bf16 %v2203_v39, %v2201_v37  ;;  %v2317_v37 = vld [vmem:[%s13838_s10 + $0x68] sm:$0xff] }
0x10bd   :  { %11080 = vmatprep.subr.bf16.mxu0 %v11619_v24 }
0x10bf   :  { %10602 = vmatmul.mubr.msk.f32.vlgmr.msra.gmra.mrb[18].mxu0 %vm217_vm2, %v1894_v44 }
0x10c0   :  { %11082 = vmatpush3.bf16.msra.mxu0 %v11939_v25  ;;  %10613 = vmatprep.mubr.msk.f32.mxu0 %vm11613_vm1, %v11612_v20 }
0x118e   :  { %v1815_v62 = vpop.f32.mrb[16].mxu0 }
0x118f   :  { %v10591_v28 = vpop.f32.mrb[17].mxu0  ;;  %10597 = vmatmul.mubr.msk.f32.vlgmr.msra.gmra.mrb[26].mxu1 %vm217_vm2, %v1815_v62  ;;  %v12110_v62 = vld [vmem:[%s13835_s7] ss:$0 sm:$0xff] }
0x1190   :  { %10606 = vmatprep.mubr.msk.f32.mxu1 %vm11613_vm1, %v11612_v20 }
0x1192   :  { %v1967_v49 = vpop.f32.mrb[18].mxu0 }
0x1193   :  { %v1971_v25 = vmul.f32 0.25, %v1967_v49  ;;  %v10603_v50 = vpop.f32.mrb[19].mxu0  ;;  %v2321_v49 = vld [vmem:[%s13838_s10 + $0x88] sm:$0xff] }
0x1194   :  { %v2304_v50 = vld [vmem:[%s13838_s10] sm:$0xff] }
0x1195   :  { %v1972_v51 = vsel %vm11805_vm3, %v1971_v25, -1e+30  ;;  %v11099_v25 = vpack.c.bf16 %v2321_v49, %v2320_v47  ;;  %v2318_v49 = vld [vmem:[%s13838_s10 + $0x70] sm:$0xff] }
0x1196   :  { %v1973_v53 = vsel %vm294_vm4, %v1972_v51, -inf }
0x1197   :  { %1974 = vmax.xlane.f32.xlu1 %v1973_v53  ;;  %11100 = vmatprep.subr.bf16.mxu0 %v11099_v25  ;;  %v2322_v53 = vld [vmem:[%s13838_s10 + $0x90] sm:$0xff]  ;;  %v2319_v25 = vld [vmem:[%s13838_s10 + $0x78] sm:$0xff] }
0x119b   :  { %2148 = vadd.xlane.f32.xlu1 %v2147_v54  ;;  %v2323_v54 = vld [vmem:[%s13838_s10 + $0x98] sm:$0xff] }
0x1224   :  { %v1975_v55 = vpop.xlane.xlu1 %1974 }
0x1225   :  { %v1976_v56 = vsub.f32 %v1972_v51, %v1975_v55  ;;  %v2305_v51 = vld [vmem:[%s13838_s10 + $0x8] sm:$0xff] }
0x1226   :  { %v11101_v55 = vpack.c.bf16 %v2305_v51, %v2304_v50  ;;  %v11129_v50 = vpack.c.bf16 %v2319_v25, %v2318_v49  ;;  %v9744_v49 = vld [vmem:[%s13831_s3 + $0xf0] sm:$0xff] }
0x1227   :  { %v1977_v57 = vmul.f32 1.442695, %v1976_v56  ;;  %v11103_v56 = vpack.c.bf16 %v2323_v54, %v2322_v53 }
0x1228   :  { %v2149_v36 = vpop.xlane.xlu1 %2148 }
0x1229   :  { %11456 = vpow2.f32 %v1977_v57  ;;  %v2153_v38 = vmul.f32 0.015625, %v2149_v36  ;;  %v2306_v57 = vld [vmem:[%s13838_s10 + $0x10] sm:$0xff]  ;;  %v2307_v36 = vld [vmem:[%s13838_s10 + $0x18] sm:$0xff] }
0x122b   :  { %v2155_v58 = vsub.f32 %v12038_v52, %v2153_v38 }
0x122d   :  { %v2157_v59 = vmul.f32 %v2155_v58, %v2155_v58 }
0x122f   :  { %v2159_v60 = vsel %vm63_vm0, %v2157_v59, 0.0  ;;  %v2325_v59 = vld [vmem:[%s13838_s10 + $0xa8] sm:$0xff] }
0x1230   :  { %2160 = vadd.xlane.f32.xlu1 %v2159_v60 }
0x1233   :  { %v11457_v0 = vpop.eup %11456 }
0x1234   :  { %v1979_v61 = vsel %vm294_vm4, %v11457_v0, 0.0 }
0x1235   :  { %1980 = vadd.xlane.f32.xlu0 %v1979_v61 }
0x124b   :  { %1984 = vrot.lane.b32.xlu0 %v11903_v2, %s13848_s20 }
0x1262   :  { %v1888_v63 = vpop.f32.mrb[26].mxu1 }
0x1263   :  { %v12049_v1 = vadd.f32 %v1888_v63, %v12003_v21  ;;  %v10598_v4 = vpop.f32.mrb[27].mxu1  ;;  %v2195_v21 = vld [vmem:[%s13836_s8 + $0x30] sm:$0xff]  ;;  %v2308_v63 = vld [vmem:[%s13838_s10 + $0x20] sm:$0xff] }
0x1264   :  { %v11089_v23 = vpack.c.bf16 %v2195_v21, %v2193_v19  ;;  %v2309_v4 = vld [vmem:[%s13838_s10 + $0x28] sm:$0xff]  ;;  %v12189_v19 = vrot.slane %v2205_v14, %v12171_v13 }
0x1265   :  { %v11109_v7 = vpack.c.bf16 %v2309_v4, %v2308_v63 }
0x12bd   :  { %v2161_v41 = vpop.xlane.xlu1 %2160 }
0x12be   :  { %v2165_v5 = vmul.f32 0.015625, %v2161_v41  ;;  %v2326_v41 = vld [vmem:[%s13838_s10 + $0xb0] sm:$0xff] }
0x12c0   :  { %v2167_v11 = vadd.f32 1e-05, %v2165_v5  ;;  %v2327_v5 = vld [vmem:[%s13838_s10 + $0xb8] sm:$0xff] }
0x12c1   :  { %v11111_v8 = vpack.c.bf16 %v2327_v5, %v2326_v41 }
0x12c2   :  { %v1981_v9 = vpop.xlane.xlu0 %1980 }
0x12c3   :  { %11458 = vrcp.f32 %v1981_v9  ;;  %v2310_v9 = vld [vmem:[%s13838_s10 + $0x30] sm:$0xff] }
0x12c4   :  { %11460 = vrsqrt.f32 %v2167_v11  ;;  %v2328_v11 = vld [vmem:[%s13838_s10 + $0xc0] sm:$0xff] }
0x12c6   :  { %v1985_v2 = vpop.permute.xlu0 %1984 }
0x12c7   :  { %10605 = vmatpush3.msra.mxu1 %v1985_v2  ;;  %v2329_v2 = vld [vmem:[%s13838_s10 + $0xc8] sm:$0xff] }
0x12c8   :  { %11084 = vmatprep.subr.bf16.mxu1 %v11083_v10  ;;  %v2311_v10 = vld [vmem:[%s13838_s10 + $0x38] sm:$0xff]  ;;  %v11115_v15 = vpack.c.bf16 %v2329_v2, %v2328_v11 }
0x12c9   :  { %v11113_v12 = vpack.c.bf16 %v2311_v10, %v2310_v9 }
0x12cd   :  { %v11459_v16 = vpop.eup %11458 }
0x12ce   :  { %v1983_v17 = vmul.f32 %v11459_v16, %v11457_v0  ;;  %v11461_v3 = vpop.eup %11460  ;;  %v11105_v0 = vpack.c.bf16 %v2307_v36, %v2306_v57  ;;  %v2312_v16 = vld [vmem:[%s13838_s10 + $0x40] sm:$0xff] }
0x12cf   :  { %v2171_v34 = vmul.f32 %v11461_v3, %v2155_v58  ;;  %v2324_v58 = vld [vmem:[%s13838_s10 + $0xa0] sm:$0xff] }
0x12d0   :  { %10607 = vmatmul.mubr.msk.f32.vlgmr.msra.gmra.mrb[28].mxu1 %vm294_vm4, %v1983_v17  ;;  %v11107_v61 = vpack.c.bf16 %v2325_v59, %v2324_v58  ;;  %v2330_v17 = vld [vmem:[%s13838_s10 + $0xd0] sm:$0xff] }
0x12d1   :  { %11086 = vmatpush1.bf16.msra.mxu1 %v11085_v32  ;;  %2287 = vmatprep.mubr.f32.mxu1 %v11612_v20  ;;  %v2179_v44 = vmul.f32 %v12104_v40, %v2171_v34  ;;  %v2313_v32 = vld [vmem:[%s13838_s10 + $0x48] sm:$0xff]  ;;  %v11123_v34 = vpack.c.bf16 %v2333_v29, %v2332_v27  ;;  %v9734_v27 = vld [vmem:[%s13831_s3 + $0xa0] sm:$0xff]  ;;  %v9736_v29 = vld [vmem:[%s13831_s3 + $0xb0] sm:$0xff] }
0x12d2   :  { %11088 = vmatprep.subr.bf16.mxu1 %v11087_v18  ;;  %v2331_v18 = vld [vmem:[%s13838_s10 + $0xd8] sm:$0xff]  ;;  %v11117_v21 = vpack.c.bf16 %v2313_v32, %v2312_v16 }
0x12d3   :  { %v2187_v28 = vadd.f32 %v12110_v62, %v2179_v44  ;;  %v11119_v22 = vpack.c.bf16 %v2331_v18, %v2330_v17  ;;  %v9731_v17 = vld [vmem:[%s13831_s3 + $0x88] sm:$0xff]  ;;  %v9733_v18 = vld [vmem:[%s13831_s3 + $0x98] sm:$0xff] }
0x12d5   :  { %11090 = vmatpush1.bf16.msra.mxu1 %v11089_v23  ;;  %v2315_v23 = vld [vmem:[%s13838_s10 + $0x58] sm:$0xff] }
0x12d6   :  { %11092 = vmatprep.subr.bf16.mxu1 %v11091_v26  ;;  %v11121_v31 = vpack.c.bf16 %v2315_v23, %v2314_v42  ;;  %v9735_v42 = vld [vmem:[%s13831_s3 + $0xa8] sm:$0xff]  ;;  %v9737_v23 = vld [vmem:[%s13831_s3 + $0xb8] sm:$0xff] }
0x12d9   :  { %11094 = vmatpush1.bf16.msra.mxu1 %v11093_v33  ;;  %v12205_v33 = vsub.s32 0, %v11802_v45  ;;  %v2335_v45 = vld [vmem:[%s13838_s10 + $0xf8] sm:$0xff] }
0x12da   :  { %11096 = vmatprep.subr.bf16.mxu1 %v11095_v35  ;;  %v2316_v35 = vld [vmem:[%s13838_s10 + $0x60] sm:$0xff] }
0x12db   :  { %v11125_v44 = vpack.c.bf16 %v2317_v37, %v2316_v35  ;;  %v9738_v35 = vld [vmem:[%s13831_s3 + $0xc0] sm:$0xff]  ;;  %v9740_v37 = vld [vmem:[%s13831_s3 + $0xd0] sm:$0xff] }
0x12dd   :  { %11098 = vmatpush1.bf16.msra.mxu1 %v11097_v43  ;;  %v2334_v43 = vld [vmem:[%s13838_s10 + $0xf0] sm:$0xff] }
0x12de   :  { %v11127_v47 = vpack.c.bf16 %v2335_v45, %v2334_v43  ;;  %v9743_v43 = vld [vmem:[%s13831_s3 + $0xe8] sm:$0xff]  ;;  %v9745_v45 = vld [vmem:[%s13831_s3 + $0xf8] sm:$0xff] }
0x12e0   :  { %9723 = vmatmul.mubr.msk.f32.vlgmr.msra.gmra.mrb[30].mxu1 %vm63_vm0, %v2187_v28  ;;  %v12220_v28 = vrot.slane %v2205_v14, %v12205_v33 }
0x12e1   :  { %2293 = vmatprep.mubr.f32.mxu1 %v11612_v20 }
0x13a3   :  { %v2056_v38 = vpop.f32.mrb[28].mxu1 }
0x13a4   :  { %v10608_v60 = vpop.f32.mrb[29].mxu1  ;;  %10614 = vmatmul.mubr.msk.f32.vlgmr.msra.gmra.mrb[20].mxu0 %vm217_vm2, %v2056_v38 }
0x13a5   :  { %11102 = vmatpush3.bf16.msra.mxu0 %v11101_v55 }
0x13a6   :  { %11104 = vmatprep.subr.bf16.mxu0 %v11103_v56 }
0x13a9   :  { %11106 = vmatpush3.bf16.msra.mxu0 %v11105_v0 }
0x13aa   :  { %11108 = vmatprep.subr.bf16.mxu0 %v11107_v61 }
0x13ad   :  { %11110 = vmatpush3.bf16.msra.mxu0 %v11109_v7 }
0x13ae   :  { %11112 = vmatprep.subr.bf16.mxu0 %v11111_v8 }
0x13b1   :  { %11114 = vmatpush3.bf16.msra.mxu0 %v11113_v12 }
0x13b2   :  { %11116 = vmatprep.subr.bf16.mxu0 %v11115_v15 }
0x13b3   :  { %v2289_v26 = vpop.f32.mrb[30].mxu1 }
0x13b4   :  { %v2291_v3 = vpop.f32.mrb[31].mxu1  ;;  %v2290_v51 = vadd.f32 %v2289_v26, %v12220_v28  ;;  %v11135_v26 = vpack.c.bf16 %v9737_v23, %v9735_v42 }
0x13b5   :  { %v2292_v30 = vadd.f32 %v2291_v3, %v12189_v19  ;;  %11118 = vmatpush3.bf16.msra.mxu0 %v11117_v21  ;;  %v11131_v21 = vpack.c.bf16 %v9733_v18, %v9731_v17  ;;  %v11137_v3 = vpack.c.bf16 %v9736_v29, %v9734_v27 }
0x13b6   :  { %11120 = vmatprep.subr.bf16.mxu0 %v11119_v22  ;;  %v2300_v53 = vmax.f32 %v2290_v51, 0.0  ;;  %v9730_v22 = vld [vmem:[%s13831_s3 + $0x80] sm:$0xff] }
0x13b7   :  { %v2301_v39 = vmax.f32 %v2292_v30, 0.0  ;;  %11132 = vmatprep.subr.bf16.mxu1 %v11131_v21  ;;  %v9739_v30 = vld [vmem:[%s13831_s3 + $0xc8] sm:$0xff] }
0x13b9   :  { %11122 = vmatpush3.bf16.msra.mxu0 %v11121_v31  ;;  %2400 = vmatprep.mubr.f32.mxu0 %v2301_v39  ;;  %v9741_v31 = vld [vmem:[%s13831_s3 + $0xd8] sm:$0xff]  ;;  %v11141_v39 = vpack.c.bf16 %v9740_v37, %v9738_v35 }
0x13ba   :  { %11124 = vmatprep.subr.bf16.mxu0 %v11123_v34  ;;  %v11139_v34 = vpack.c.bf16 %v9741_v31, %v9739_v30 }
0x13bd   :  { %11126 = vmatpush3.bf16.msra.mxu0 %v11125_v44  ;;  %v11143_v44 = vpack.c.bf16 %v9745_v45, %v9743_v43 }
0x13be   :  { %11128 = vmatprep.subr.bf16.mxu0 %v11127_v47  ;;  %v9742_v47 = vld [vmem:[%s13831_s3 + $0xe0] sm:$0xff] }
0x13bf   :  { %v11145_v25 = vpack.c.bf16 %v9744_v49, %v9742_v47 }
0x13c1   :  { %11130 = vmatpush3.bf16.msra.mxu0 %v11129_v50 }
0x13c2   :  { %10621 = vmatprep.subr.mxu0 %v11612_v20 }
0x13c4   :  { %2401 = vmatmul.mubr.f32.vlgmr.msra.gmra.mrb[22].mxu0 %v2300_v53 }
0x1477   :  { %v2129_v54 = vpop.f32.mrb[20].mxu0 }
0x1478   :  { %v2133_v55 = vadd.f32 %v2129_v54, %v12049_v1  ;;  %v10615_v56 = vpop.f32.mrb[21].mxu0 }
0x147a   :  { %v2142_v57 = vadd.f32 %v12028_v46, %v2133_v55  ;;  %v12242_v46 = vld [vmem:[%s13839_s11] ss:$0 sm:$0xff]  ;;  %v9728_v55 = vld [vmem:[%s13829_s1 + $0x1] ss:$0 sm:$0xff] }
0x147c   :  { %v12233_v36 = vadd.f32 %v2142_v57, %v11828_v6  ;;  %v9729_v57 = vld [vmem:[%s13830_s2 + $0x1] ss:$0 sm:$0xff] }
0x147e   :  { %v2150_v38 = vsel %vm63_vm0, %v12233_v36, 0.0 }
0x147f   :  { %2151 = vadd.xlane.f32.xlu1 %v2150_v38 }
0x1497   :  { %v10182_v58 = vpop.f32.mrb[22].mxu0 }
0x1498   :  { %v10183_v59 = vpop.f32.mrb[23].mxu0 }
0x1499   :  { %v10184_v60 = vadd.f32 %v10183_v59, %v10182_v58 }
0x149b   :  { %v2411_v63 = vadd.f32 %v10184_v60, %v12038_v52 }
0x149d   :  { %v12245_v1 = vadd.f32 %v12242_v46, %v2411_v63 }
0x149f   :  { %v2426_v5 = vsel %vm63_vm0, %v12245_v1, 0.0 }
0x150c   :  { %v2152_v0 = vpop.xlane.xlu1 %2151 }
0x150d   :  { %v2154_v61 = vmul.f32 0.015625, %v2152_v0 }
0x150f   :  { %v2156_v4 = vsub.f32 %v12233_v36, %v2154_v61 }
0x1511   :  { %v2158_v6 = vmul.f32 %v2156_v4, %v2156_v4 }
0x1513   :  { %v2162_v41 = vsel %vm63_vm0, %v2158_v6, 0.0 }
0x1514   :  { %2163 = vadd.xlane.f32.xlu1 %v2162_v41 }
0x1518   :  { %2427 = vadd.xlane.f32.xlu1 %v2426_v5 }
0x15a1   :  { %v2164_v7 = vpop.xlane.xlu1 %2163 }
0x15a2   :  { %v2166_v52 = vmul.f32 0.015625, %v2164_v7 }
0x15a4   :  { %v2168_v8 = vadd.f32 1e-05, %v2166_v52 }
0x15a5   :  { %v2428_v9 = vpop.xlane.xlu1 %2427 }
0x15a6   :  { %11462 = vrsqrt.f32 %v2168_v8  ;;  %v2432_v10 = vmul.f32 0.015625, %v2428_v9 }
0x15a8   :  { %v2434_v11 = vsub.f32 %v12245_v1, %v2432_v10 }
0x15aa   :  { %v2436_v2 = vmul.f32 %v2434_v11, %v2434_v11 }
0x15ac   :  { %v2438_v12 = vsel %vm63_vm0, %v2436_v2, 0.0 }
0x15ad   :  { %2439 = vadd.xlane.f32.xlu0 %v2438_v12 }
0x15b0   :  { %v11463_v14 = vpop.eup %11462 }
0x15b1   :  { %v2172_v15 = vmul.f32 %v11463_v14, %v2156_v4 }
0x15b3   :  { %v2180_v16 = vmul.f32 %v12104_v40, %v2172_v15  ;;  %v9732_v40 = vld [vmem:[%s13831_s3 + $0x90] sm:$0xff] }
0x15b5   :  { %v2188_v32 = vadd.f32 %v12110_v62, %v2180_v16  ;;  %v11133_v62 = vpack.c.bf16 %v9732_v40, %v9730_v22 }
0x15b7   :  { %9724 = vmatmul.mubr.msk.f32.gmra.mrb[32].mxu1 %vm63_vm0, %v2188_v32 }
0x15b8   :  { %2555 = vmatprep.mubr.f32.mxu1 %v11612_v20  ;;  %11134 = vmatpush1.bf16.msra.mxu1 %v11133_v62 }
0x15b9   :  { %11136 = vmatprep.subr.bf16.mxu1 %v11135_v26 }
0x15bc   :  { %11138 = vmatpush1.bf16.msra.mxu1 %v11137_v3 }
0x15bd   :  { %11140 = vmatprep.subr.bf16.mxu1 %v11139_v34 }
0x15c0   :  { %11142 = vmatpush1.bf16.msra.mxu1 %v11141_v39 }
0x15c1   :  { %11144 = vmatprep.subr.bf16.mxu1 %v11143_v44 }
0x15c4   :  { %11146 = vmatpush1.bf16.msra.mxu1 %v11145_v25 }
0x15c5   :  { %10616 = vmatprep.subr.mxu1 %v11612_v20 }
0x163a   :  { %v2440_v50 = vpop.xlane.xlu0 %2439 }
0x163b   :  { %v2444_v51 = vmul.f32 0.015625, %v2440_v50 }
0x163d   :  { %v2446_v53 = vadd.f32 1e-05, %v2444_v51 }
0x163f   :  { %11464 = vrsqrt.f32 %v2446_v53  ;;  %v9750_v53 = vld [vmem:[%s13832_s4 + $0x50] sm:$0xff] }
0x1649   :  { %v11465_v54 = vpop.eup %11464 }
0x164a   :  { %v2450_v56 = vmul.f32 %v11465_v54, %v2434_v11  ;;  %v9751_v54 = vld [vmem:[%s13832_s4 + $0x58] sm:$0xff] }
0x164c   :  { %v2458_v38 = vmul.f32 %v9728_v55, %v2450_v56 }
0x164e   :  { %v2466_v58 = vadd.f32 %v9729_v57, %v2458_v38 }
0x1650   :  { %9746 = vmatmul.mubr.msk.f32.vlgmr.msra.gmra.mrb[34].mxu1 %vm63_vm0, %v2466_v58 }
0x1651   :  { %2561 = vmatprep.mubr.f32.mxu1 %v11612_v20 }
0x168a   :  { %v2295_v59 = vpop.f32.mrb[32].mxu1 }
0x168b   :  { %v2296_v60 = vadd.f32 %v2295_v59, %v12220_v28  ;;  %v2297_v0 = vpop.f32.mrb[33].mxu1  ;;  %v9748_v59 = vld [vmem:[%s13832_s4 + $0x40] sm:$0xff] }
0x168c   :  { %v2298_v61 = vadd.f32 %v2297_v0, %v12189_v19 }
0x168d   :  { %v2302_v4 = vmax.f32 %v2296_v60, 0.0  ;;  %v9749_v60 = vld [vmem:[%s13832_s4 + $0x48] sm:$0xff] }
0x168e   :  { %v2303_v63 = vmax.f32 %v2298_v61, 0.0 }
0x1690   :  { %2405 = vmatprep.mubr.f32.mxu0 %v2303_v63  ;;  %v12388_v63 = vpack.c.bf16 %v9749_v60, %v9748_v59 }
0x1691   :  { %2406 = vmatmul.mubr.f32.gmra.mrb[24].mxu0 %v2302_v4 }
0x1692   :  { %10623 = vmatprep.mubr.msk.f32.mxu0 %vm11613_vm1, %v11612_v20 }
0x1723   :  { %v12317_v6 = vpop.f32.mrb[34].mxu1 }
0x1724   :  { %2740 = vrot.lane.b32.xlu0 %v12317_v6, %s13854_s19  ;;  %v12321_v41 = vpop.f32.mrb[35].mxu1 }
0x1725   :  { %10622 = vmatpush3.msra.mxu0 %v12321_v41 }
0x1726   :  { %10631 = vmatprep.subr.mxu0 %v11612_v20 }
0x1764   :  { %v10185_v28 = vpop.f32.mrb[24].mxu0 }
0x1765   :  { %v10186_v19 = vpop.f32.mrb[25].mxu0 }
0x1766   :  { %v10187_v5 = vadd.f32 %v10186_v19, %v10185_v28 }
0x1768   :  { %v2412_v7 = vadd.f32 %v10187_v5, %v12233_v36 }
0x176a   :  { %v12327_v52 = vadd.f32 %v12242_v46, %v2412_v7 }
0x176c   :  { %v2429_v8 = vsel %vm63_vm0, %v12327_v52, 0.0 }
0x176d   :  { %2430 = vadd.xlane.f32.xlu1 %v2429_v8 }
0x1796   :  { %v2741_v22 = vpop.permute.xlu0 %2740 }
0x17fa   :  { %v2431_v9 = vpop.xlane.xlu1 %2430 }
0x17fb   :  { %v2433_v10 = vmul.f32 0.015625, %v2431_v9 }
0x17fd   :  { %v2435_v11 = vsub.f32 %v12327_v52, %v2433_v10 }
0x17ff   :  { %v2437_v2 = vmul.f32 %v2435_v11, %v2435_v11 }
0x1801   :  { %v2441_v12 = vsel %vm63_vm0, %v2437_v2, 0.0 }
0x1802   :  { %2442 = vadd.xlane.f32.xlu1 %v2441_v12 }
0x1813   :  { %2578 = vrot.lane.b32.xlu1 %v12317_v6, %s11615_s18 }
0x1817   :  { %2742 = vrot.lane.b32.xlu1 %v12317_v6, %s13856_s17 }
0x188f   :  { %v2443_v36 = vpop.xlane.xlu1 %2442 }
0x1890   :  { %v2445_v46 = vmul.f32 0.015625, %v2443_v36 }
0x1892   :  { %v2447_v14 = vadd.f32 1e-05, %v2445_v46 }
0x1893   :  { %v2579_v15 = vpop.permute.xlu1 %2578 }
0x1894   :  { %11466 = vrsqrt.f32 %v2447_v14  ;;  %10617 = vmatpush3.xpose.msk.msra.mxu1 %vm217_vm2, %v2579_v15 }
0x1895   :  { %10626 = vmatprep.subr.mxu1 %v11612_v20 }
0x1897   :  { %v2743_v21 = vpop.permute.xlu1 %2742 }
0x189e   :  { %v11467_v16 = vpop.eup %11466 }
0x189f   :  { %v2451_v32 = vmul.f32 %v11467_v16, %v2435_v11 }
0x18a1   :  { %v2459_v17 = vmul.f32 %v9728_v55, %v2451_v32  ;;  %v12375_v55 = vpack.c.bf16 %v9751_v54, %v9750_v53 }
0x18a3   :  { %v2467_v18 = vadd.f32 %v9729_v57, %v2459_v17 }
0x18a5   :  { %9747 = vmatmul.mubr.msk.f32.gmra.mrb[36].mxu1 %vm63_vm0, %v2467_v18 }
0x18a6   :  { %10618 = vmatprep.mubr.msk.f32.mxu1 %vm11613_vm1, %v11612_v20 }
0x18a9   :  { %10619 = vmatmul.mubr.msk.f32.vlgmr.msra.gmra.mrb[38].mxu1 %vm217_vm2, %v12317_v6 }
0x18aa   :  { %10627 = vmatpush3.xpose.msk.msra.mxu1 %vm217_vm2, %v2743_v21  ;;  %10628 = vmatprep.mubr.msk.f32.mxu1 %vm11613_vm1, %v11612_v20 }
0x18ab   :  { %11147 = vmatprep.subr.bf16.mxu1 %v11619_v24 }
0x18ad   :  { %10629 = vmatmul.mubr.msk.f32.vlgmr.msra.gmra.mrb[40].mxu1 %vm217_vm2, %v2741_v22 }
0x18ae   :  { %10640 = vmatprep.mubr.msk.f32.mxu1 %vm11613_vm1, %v11612_v20  ;;  %11149 = vmatpush3.bf16.msra.mxu1 %v12375_v55 }
0x18af   :  { %10650 = vmatprep.subr.mxu1 %v11612_v20 }
0x1978   :  { %v12351_v40 = vpop.f32.mrb[36].mxu1 }
0x1979   :  { %v12353_v62 = vpop.f32.mrb[37].mxu1 }
0x197c   :  { %v2650_v42 = vpop.f32.mrb[38].mxu1 }
0x197d   :  { %v2654_v23 = vmul.f32 0.25, %v2650_v42  ;;  %v10620_v26 = vpop.f32.mrb[39].mxu1 }
0x197e   :  { %v9752_v26 = vld [vmem:[%s13832_s4 + $0x60] sm:$0xff] }
0x197f   :  { %v2655_v27 = vsel %vm11805_vm3, %v2654_v23, -1e+30 }
0x1980   :  { %v2814_v29 = vpop.f32.mrb[40].mxu1  ;;  %v2656_v3 = vsel %vm294_vm4, %v2655_v27, -inf }
0x1981   :  { %v2818_v30 = vmul.f32 0.25, %v2814_v29  ;;  %2657 = vmax.xlane.f32.xlu1 %v2656_v3  ;;  %v10630_v31 = vpop.f32.mrb[41].mxu1 }
0x1983   :  { %v2819_v34 = vsel %vm11805_vm3, %v2818_v30, -1e+30 }
0x1984   :  { %v2820_v35 = vsel %vm294_vm4, %v2819_v34, -inf }
0x1985   :  { %2821 = vmax.xlane.f32.xlu0 %v2820_v35 }
0x199b   :  { %3056 = vrot.lane.b32.xlu0 %v12317_v6, %s13852_s22 }
0x1a0e   :  { %v2658_v37 = vpop.xlane.xlu1 %2657 }
0x1a0f   :  { %v2659_v39 = vsub.f32 %v2655_v27, %v2658_v37  ;;  %v9753_v27 = vld [vmem:[%s13832_s4 + $0x68] sm:$0xff] }
0x1a10   :  { %v12426_v29 = vpack.c.bf16 %v9753_v27, %v9752_v26 }
0x1a11   :  { %v2660_v43 = vmul.f32 1.442695, %v2659_v39 }
0x1a12   :  { %v2822_v45 = vpop.xlane.xlu0 %2821 }
0x1a13   :  { %11468 = vpow2.f32 %v2660_v43  ;;  %v2823_v44 = vsub.f32 %v2819_v34, %v2822_v45 }
0x1a15   :  { %v2824_v47 = vmul.f32 1.442695, %v2823_v44 }
0x1a16   :  { %v3057_v7 = vpop.permute.xlu0 %3056 }
0x1a17   :  { %11470 = vpow2.f32 %v2824_v47 }
0x1a1d   :  { %v11469_v49 = vpop.eup %11468 }
0x1a1e   :  { %v2662_v25 = vsel %vm294_vm4, %v11469_v49, 0.0 }
0x1a1f   :  { %2663 = vadd.xlane.f32.xlu1 %v2662_v25 }
0x1a21   :  { %v11471_v50 = vpop.eup %11470 }
0x1a22   :  { %v2826_v51 = vsel %vm294_vm4, %v11471_v50, 0.0 }
0x1a23   :  { %2827 = vadd.xlane.f32.xlu1 %v2826_v51 }
0x1a34   :  { %2832 = vrot.lane.b32.xlu1 %v12321_v41, %s13854_s19 }
0x1a38   :  { %3054 = vrot.lane.b32.xlu1 %v12317_v6, %s13850_s23 }
0x1aac   :  { %v2664_v56 = vpop.xlane.xlu1 %2663 }
0x1aad   :  { %11472 = vrcp.f32 %v2664_v56  ;;  %v9755_v56 = vld [vmem:[%s13832_s4 + $0x78] sm:$0xff] }
0x1ab0   :  { %v2828_v57 = vpop.xlane.xlu1 %2827 }
0x1ab1   :  { %11474 = vrcp.f32 %v2828_v57 }
0x1ab4   :  { %v2833_v0 = vpop.permute.xlu1 %2832 }
0x1ab7   :  { %v11473_v38 = vpop.eup %11472 }
0x1ab8   :  { %v2666_v58 = vmul.f32 %v11473_v38, %v11469_v49  ;;  %v3055_v9 = vpop.permute.xlu1 %3054 }
0x1aba   :  { %10624 = vmatmul.mubr.msk.f32.vlgmr.msra.gmra.mrb[26].mxu0 %vm294_vm4, %v2666_v58 }
0x1abb   :  { %v11475_v61 = vpop.eup %11474  ;;  %10632 = vmatpush3.msra.mxu0 %v2833_v0  ;;  %10633 = vmatprep.mubr.msk.f32.mxu0 %vm11613_vm1, %v11612_v20 }
0x1abc   :  { %v2830_v4 = vmul.f32 %v11475_v61, %v11471_v50  ;;  %11150 = vmatprep.subr.bf16.mxu0 %v11619_v24 }
0x1abe   :  { %10634 = vmatmul.mubr.msk.f32.vlgmr.msra.gmra.mrb[28].mxu0 %vm294_vm4, %v2830_v4 }
0x1abf   :  { %11152 = vmatpush3.bf16.msra.mxu0 %v12388_v63  ;;  %10647 = vmatprep.mubr.msk.f32.mxu0 %vm11613_vm1, %v11612_v20 }
0x1ac0   :  { %10655 = vmatprep.subr.mxu0 %v11612_v20 }
0x1b8d   :  { %v2736_v28 = vpop.f32.mrb[26].mxu0 }
0x1b8e   :  { %v10625_v19 = vpop.f32.mrb[27].mxu0  ;;  %10648 = vmatmul.mubr.msk.f32.vlgmr.msra.gmra.mrb[30].mxu0 %vm217_vm2, %v2736_v28 }
0x1b8f   :  { %10657 = vmatprep.mubr.msk.f32.mxu0 %vm11613_vm1, %v11612_v20 }
0x1b91   :  { %v2904_v5 = vpop.f32.mrb[28].mxu0 }
0x1b92   :  { %v10635_v8 = vpop.f32.mrb[29].mxu0  ;;  %10641 = vmatmul.mubr.msk.f32.vlgmr.msra.gmra.mrb[42].mxu1 %vm217_vm2, %v2904_v5 }
0x1b93   :  { %10651 = vmatpush3.xpose.msk.msra.mxu1 %vm217_vm2, %v3057_v7  ;;  %10652 = vmatprep.mubr.msk.f32.mxu1 %vm11613_vm1, %v11612_v20 }
0x1b94   :  { %11153 = vmatprep.subr.bf16.mxu1 %v11619_v24 }
0x1b96   :  { %10653 = vmatmul.mubr.msk.f32.vlgmr.msra.gmra.mrb[44].mxu1 %vm217_vm2, %v3055_v9 }
0x1b97   :  { %10664 = vmatprep.mubr.msk.f32.mxu1 %vm11613_vm1, %v11612_v20  ;;  %11155 = vmatpush3.bf16.msra.mxu1 %v12426_v29 }
0x1b98   :  { %10672 = vmatprep.subr.mxu1 %v11612_v20 }
0x1c61   :  { %v3050_v10 = vpop.f32.mrb[30].mxu0 }
0x1c62   :  { %v10649_v11 = vpop.f32.mrb[31].mxu0 }
0x1c65   :  { %v2977_v2 = vpop.f32.mrb[42].mxu1 }
0x1c66   :  { %v12407_v12 = vadd.f32 %v3050_v10, %v2977_v2  ;;  %v10642_v36 = vpop.f32.mrb[43].mxu1 }
0x1c69   :  { %v3128_v46 = vpop.f32.mrb[44].mxu1 }
0x1c6a   :  { %v3132_v14 = vmul.f32 0.25, %v3128_v46  ;;  %v10654_v15 = vpop.f32.mrb[45].mxu1 }
0x1c6c   :  { %v3133_v16 = vsel %vm11805_vm3, %v3132_v14, -1e+30 }
0x1c6d   :  { %v3134_v32 = vsel %vm294_vm4, %v3133_v16, -inf }
0x1c6e   :  { %3135 = vmax.xlane.f32.xlu1 %v3134_v32 }
0x1c7f   :  { %3145 = vrot.lane.b32.xlu1 %v12321_v41, %s13850_s23 }
0x1c83   :  { %3295 = vrot.lane.b32.xlu1 %v12317_v6, %s13862_s26 }
0x1cfb   :  { %v3136_v17 = vpop.xlane.xlu1 %3135 }
0x1cfc   :  { %v3137_v18 = vsub.f32 %v3133_v16, %v3136_v17 }
0x1cfe   :  { %v3138_v21 = vmul.f32 1.442695, %v3137_v18 }
0x1cff   :  { %v3146_v22 = vpop.permute.xlu1 %3145 }
0x1d00   :  { %11476 = vpow2.f32 %v3138_v21  ;;  %10656 = vmatpush3.msra.mxu0 %v3146_v22 }
0x1d01   :  { %10667 = vmatprep.subr.mxu0 %v11612_v20 }
0x1d0a   :  { %v11477_v42 = vpop.eup %11476 }
0x1d0b   :  { %v3140_v23 = vsel %vm294_vm4, %v11477_v42, 0.0 }
0x1d0c   :  { %3141 = vadd.xlane.f32.xlu0 %v3140_v23 }
0x1d22   :  { %3297 = vrot.lane.b32.xlu0 %v12317_v6, %s13863_s27  ;;  %v3296_v6 = vpop.permute.xlu1 %3295 }
0x1d99   :  { %v3142_v3 = vpop.xlane.xlu0 %3141 }
0x1d9a   :  { %11478 = vrcp.f32 %v3142_v3 }
0x1d9d   :  { %v3298_v34 = vpop.permute.xlu0 %3297 }
0x1da4   :  { %v11479_v30 = vpop.eup %11478 }
0x1da5   :  { %v3144_v31 = vmul.f32 %v11479_v30, %v11477_v42 }
0x1da7   :  { %10658 = vmatmul.mubr.msk.f32.vlgmr.msra.gmra.mrb[32].mxu0 %vm294_vm4, %v3144_v31 }
0x1da8   :  { %10668 = vmatpush3.xpose.msk.msra.mxu0 %vm217_vm2, %v3298_v34  ;;  %10669 = vmatprep.mubr.msk.f32.mxu0 %vm11613_vm1, %v11612_v20 }
0x1da9   :  { %11156 = vmatprep.subr.bf16.mxu0 %v11619_v24 }
0x1dab   :  { %10670 = vmatmul.mubr.msk.f32.vlgmr.msra.gmra.mrb[34].mxu0 %vm217_vm2, %v3296_v6 }
0x1dac   :  { %10681 = vmatprep.mubr.msk.f32.mxu0 %vm11613_vm1, %v11612_v20 }
0x1e7a   :  { %v3217_v35 = vpop.f32.mrb[32].mxu0 }
0x1e7b   :  { %v10659_v37 = vpop.f32.mrb[33].mxu0  ;;  %10665 = vmatmul.mubr.msk.f32.vlgmr.msra.gmra.mrb[46].mxu1 %vm217_vm2, %v3217_v35 }
0x1e7c   :  { %10674 = vmatprep.mubr.msk.f32.mxu1 %vm11613_vm1, %v11612_v20 }
0x1e7e   :  { %v3369_v39 = vpop.f32.mrb[34].mxu0 }
0x1e7f   :  { %v3373_v43 = vmul.f32 0.25, %v3369_v39  ;;  %v10671_v45 = vpop.f32.mrb[35].mxu0 }
0x1e81   :  { %v3374_v44 = vsel %vm11805_vm3, %v3373_v43, -1e+30 }
0x1e82   :  { %v3375_v47 = vsel %vm294_vm4, %v3374_v44, -inf }
0x1e83   :  { %3376 = vmax.xlane.f32.xlu1 %v3375_v47 }
0x1e94   :  { %3386 = vrot.lane.b32.xlu1 %v12321_v41, %s13862_s26  ;;  %v9754_v41 = vld [vmem:[%s13832_s4 + $0x70] sm:$0xff] }
0x1e95   :  { %v12460_v57 = vpack.c.bf16 %v9755_v56, %v9754_v41 }
0x1e97   :  { %11158 = vmatpush3.bf16.msra.mxu0 %v12460_v57 }
0x1e98   :  { %3701 = vrot.lane.b32.xlu1 %v12351_v40, %s13856_s17  ;;  %10689 = vmatprep.subr.mxu0 %v11612_v20 }
0x1e9c   :  { %3699 = vrot.lane.b32.xlu1 %v12351_v40, %s13854_s19 }
0x1f10   :  { %v3377_v49 = vpop.xlane.xlu1 %3376 }
0x1f11   :  { %v3378_v25 = vsub.f32 %v3374_v44, %v3377_v49 }
0x1f13   :  { %v3379_v50 = vmul.f32 1.442695, %v3378_v25 }
0x1f14   :  { %v3387_v51 = vpop.permute.xlu1 %3386 }
0x1f15   :  { %11480 = vpow2.f32 %v3379_v50  ;;  %10673 = vmatpush3.msra.mxu1 %v3387_v51 }
0x1f16   :  { %10684 = vmatprep.subr.mxu1 %v11612_v20 }
0x1f18   :  { %v3702_v28 = vpop.permute.xlu1 %3701 }
0x1f1c   :  { %v3700_v19 = vpop.permute.xlu1 %3699 }
0x1f1f   :  { %v11481_v53 = vpop.eup %11480 }
0x1f20   :  { %v3381_v54 = vsel %vm294_vm4, %v11481_v53, 0.0 }
0x1f21   :  { %3382 = vadd.xlane.f32.xlu0 %v3381_v54 }
0x1f37   :  { %3537 = vrot.lane.b32.xlu0 %v12351_v40, %s11615_s18 }
0x1f4e   :  { %v3290_v38 = vpop.f32.mrb[46].mxu1 }
0x1f4f   :  { %v3294_v58 = vadd.f32 %v3290_v38, %v12407_v12  ;;  %v10666_v59 = vpop.f32.mrb[47].mxu1 }
0x1fae   :  { %v3383_v60 = vpop.xlane.xlu0 %3382 }
0x1faf   :  { %11482 = vrcp.f32 %v3383_v60 }
0x1fb2   :  { %v3538_v4 = vpop.permute.xlu0 %3537 }
0x1fb9   :  { %v11483_v0 = vpop.eup %11482 }
0x1fba   :  { %v3385_v61 = vmul.f32 %v11483_v0, %v11481_v53 }
0x1fbc   :  { %10675 = vmatmul.mubr.msk.f32.vlgmr.msra.gmra.mrb[48].mxu1 %vm294_vm4, %v3385_v61 }
0x1fbd   :  { %10685 = vmatpush3.xpose.msk.msra.mxu1 %vm217_vm2, %v3538_v4  ;;  %10686 = vmatprep.mubr.msk.f32.mxu1 %vm11613_vm1, %v11612_v20 }
0x1fbe   :  { %10694 = vmatprep.subr.mxu1 %v11612_v20 }
0x1fc0   :  { %10687 = vmatmul.mubr.msk.f32.vlgmr.msra.gmra.mrb[50].mxu1 %vm217_vm2, %v12351_v40 }
0x1fc1   :  { %10695 = vmatpush3.xpose.msk.msra.mxu1 %vm217_vm2, %v3702_v28  ;;  %10696 = vmatprep.mubr.msk.f32.mxu1 %vm11613_vm1, %v11612_v20 }
0x1fc2   :  { %11159 = vmatprep.subr.bf16.mxu1 %v11619_v24 }
0x1fc4   :  { %10697 = vmatmul.mubr.msk.f32.vlgmr.msra.gmra.mrb[52].mxu1 %vm217_vm2, %v3700_v19 }
0x1fc5   :  { %11161 = vmatpush3.bf16.msra.mxu1 %v12375_v55  ;;  %10708 = vmatprep.mubr.msk.f32.mxu1 %vm11613_vm1, %v11612_v20 }
0x1fc6   :  { %10718 = vmatprep.subr.mxu1 %v11612_v20 }
0x208f   :  { %v3458_v5 = vpop.f32.mrb[48].mxu1 }
0x2090   :  { %v10676_v7 = vpop.f32.mrb[49].mxu1  ;;  %10682 = vmatmul.mubr.msk.f32.vlgmr.msra.gmra.mrb[36].mxu0 %vm217_vm2, %v3458_v5 }
0x2091   :  { %10690 = vmatpush3.msra.mxu0 %v12353_v62  ;;  %10691 = vmatprep.mubr.msk.f32.mxu0 %vm11613_vm1, %v11612_v20 }
0x2092   :  { %10699 = vmatprep.subr.mxu0 %v11612_v20 }
0x2093   :  { %v3609_v8 = vpop.f32.mrb[50].mxu1 }
0x2094   :  { %v3613_v9 = vmul.f32 0.25, %v3609_v8  ;;  %v10688_v10 = vpop.f32.mrb[51].mxu1 }
0x2096   :  { %v3614_v55 = vsel %vm11805_vm3, %v3613_v9, -1e+30 }
0x2097   :  { %v3773_v11 = vpop.f32.mrb[52].mxu1  ;;  %v3615_v2 = vsel %vm294_vm4, %v3614_v55, -inf }
0x2098   :  { %v3777_v12 = vmul.f32 0.25, %v3773_v11  ;;  %3616 = vmax.xlane.f32.xlu0 %v3615_v2  ;;  %v10698_v36 = vpop.f32.mrb[53].mxu1 }
0x209a   :  { %v3778_v46 = vsel %vm11805_vm3, %v3777_v12, -1e+30 }
0x209b   :  { %v3779_v14 = vsel %vm294_vm4, %v3778_v46, -inf }
0x209c   :  { %3780 = vmax.xlane.f32.xlu1 %v3779_v14 }
0x20ad   :  { %3791 = vrot.lane.b32.xlu1 %v12353_v62, %s13854_s19 }
0x20b1   :  { %4013 = vrot.lane.b32.xlu1 %v12351_v40, %s13850_s23 }
0x2125   :  { %v3617_v15 = vpop.xlane.xlu0 %3616 }
0x2126   :  { %v3618_v16 = vsub.f32 %v3614_v55, %v3617_v15 }
0x2128   :  { %v3619_v32 = vmul.f32 1.442695, %v3618_v16 }
0x2129   :  { %v3781_v17 = vpop.xlane.xlu1 %3780 }
0x212a   :  { %11484 = vpow2.f32 %v3619_v32  ;;  %v3782_v18 = vsub.f32 %v3778_v46, %v3781_v17  ;;  %v12555_v32 = vld [vmem:[%s13833_s5 + $0x1] ss:$0 sm:$0xff] }
0x212c   :  { %v3783_v21 = vmul.f32 1.442695, %v3782_v18 }
0x212d   :  { %v3792_v37 = vpop.permute.xlu1 %3791 }
0x212e   :  { %11486 = vpow2.f32 %v3783_v21 }
0x2134   :  { %v11485_v22 = vpop.eup %11484 }
0x2135   :  { %v3621_v42 = vsel %vm294_vm4, %v11485_v22, 0.0 }
0x2136   :  { %3622 = vadd.xlane.f32.xlu0 %v3621_v42 }
0x2138   :  { %v11487_v23 = vpop.eup %11486 }
0x2139   :  { %v3785_v26 = vsel %vm294_vm4, %v11487_v23, 0.0 }
0x213a   :  { %3786 = vadd.xlane.f32.xlu0 %v3785_v26 }
0x2150   :  { %4015 = vrot.lane.b32.xlu0 %v12351_v40, %s13852_s22 }
0x2163   :  { %v3531_v27 = vpop.f32.mrb[36].mxu0 }
0x2164   :  { %v12500_v3 = vadd.f32 %v3531_v27, %v3294_v58  ;;  %v10683_v30 = vpop.f32.mrb[37].mxu0 }
0x2166   :  { %v4503_v17 = vadd.f32 %v12555_v32, %v12500_v3 }
0x2168   :  { %v12560_v21 = vadd.f32 %v4503_v17, %v12245_v1 }
0x21c3   :  { %v3623_v31 = vpop.xlane.xlu0 %3622 }
0x21c4   :  { %11488 = vrcp.f32 %v3623_v31 }
0x21c7   :  { %v3787_v34 = vpop.xlane.xlu0 %3786 }
0x21c8   :  { %11490 = vrcp.f32 %v3787_v34 }
0x21cb   :  { %v4016_v49 = vpop.permute.xlu0 %4015 }
0x21ce   :  { %v11489_v6 = vpop.eup %11488 }
0x21cf   :  { %v3625_v35 = vmul.f32 %v11489_v6, %v11485_v22  ;;  %v4511_v22 = vsel %vm63_vm0, %v12560_v21, 0.0 }
0x21d1   :  { %10692 = vmatmul.mubr.msk.f32.vlgmr.msra.gmra.mrb[38].mxu0 %vm294_vm4, %v3625_v35 }
0x21d2   :  { %v11491_v39 = vpop.eup %11490  ;;  %10700 = vmatpush3.msra.mxu0 %v3792_v37  ;;  %10701 = vmatprep.mubr.msk.f32.mxu0 %vm11613_vm1, %v11612_v20  ;;  %v9795_v37 = vld [vmem:[%s13836_s8 + $0x88] sm:$0xff] }
0x21d3   :  { %v3789_v43 = vmul.f32 %v11491_v39, %v11487_v23  ;;  %11162 = vmatprep.subr.bf16.mxu0 %v11619_v24  ;;  %v9797_v39 = vld [vmem:[%s13836_s8 + $0x98] sm:$0xff] }
0x21d5   :  { %10702 = vmatmul.mubr.msk.f32.vlgmr.msra.gmra.mrb[40].mxu0 %vm294_vm4, %v3789_v43  ;;  %v11171_v43 = vpack.c.bf16 %v9797_v39, %v9795_v37  ;;  %v9819_v39 = vld [vmem:[%s13838_s10 + $0x130] sm:$0xff] }
0x21d6   :  { %11164 = vmatpush3.bf16.msra.mxu0 %v12388_v63  ;;  %10715 = vmatprep.mubr.msk.f32.mxu0 %vm11613_vm1, %v11612_v20  ;;  %v4014_v63 = vpop.permute.xlu1 %4013 }
0x21d7   :  { %10723 = vmatprep.subr.mxu0 %v11612_v20 }
0x22a4   :  { %v3695_v45 = vpop.f32.mrb[38].mxu0 }
0x22a5   :  { %v10693_v44 = vpop.f32.mrb[39].mxu0  ;;  %10716 = vmatmul.mubr.msk.f32.vlgmr.msra.gmra.mrb[42].mxu0 %vm217_vm2, %v3695_v45  ;;  %v9794_v45 = vld [vmem:[%s13836_s8 + $0x80] sm:$0xff] }
0x22a6   :  { %10725 = vmatprep.mubr.msk.f32.mxu0 %vm11613_vm1, %v11612_v20  ;;  %v9796_v44 = vld [vmem:[%s13836_s8 + $0x90] sm:$0xff] }
0x22a8   :  { %v3863_v47 = vpop.f32.mrb[40].mxu0 }
0x22a9   :  { %v10703_v25 = vpop.f32.mrb[41].mxu0  ;;  %10709 = vmatmul.mubr.msk.f32.vlgmr.msra.gmra.mrb[54].mxu1 %vm217_vm2, %v3863_v47  ;;  %v11173_v47 = vpack.c.bf16 %v9796_v44, %v9794_v45  ;;  %v9837_v45 = vld [vmem:[%s13838_s10 + $0x1c0] sm:$0xff]  ;;  %v9838_v44 = vld [vmem:[%s13838_s10 + $0x1c8] sm:$0xff] }
0x22aa   :  { %10719 = vmatpush3.xpose.msk.msra.mxu1 %vm217_vm2, %v4016_v49  ;;  %10720 = vmatprep.mubr.msk.f32.mxu1 %vm11613_vm1, %v11612_v20  ;;  %v9799_v49 = vld [vmem:[%s13836_s8 + $0xa8] sm:$0xff]  ;;  %v9801_v25 = vld [vmem:[%s13836_s8 + $0xb8] sm:$0xff] }
0x22ab   :  { %11165 = vmatprep.subr.bf16.mxu1 %v11619_v24 }
0x22ad   :  { %10721 = vmatmul.mubr.msk.f32.vlgmr.msra.gmra.mrb[56].mxu1 %vm217_vm2, %v4014_v63  ;;  %v11175_v63 = vpack.c.bf16 %v9801_v25, %v9799_v49  ;;  %v11203_v49 = vpack.c.bf16 %v9838_v44, %v9837_v45  ;;  %v9821_v25 = vld [vmem:[%s13838_s10 + $0x140] sm:$0xff] }
0x22ae   :  { %11167 = vmatpush3.bf16.msra.mxu1 %v12426_v29  ;;  %10732 = vmatprep.mubr.msk.f32.mxu1 %vm11613_vm1, %v11612_v20 }
0x22af   :  { %10740 = vmatprep.subr.mxu1 %v11612_v20 }
0x2378   :  { %v4009_v50 = vpop.f32.mrb[42].mxu0 }
0x2379   :  { %v10717_v51 = vpop.f32.mrb[43].mxu0 }
0x237a   :  { %v9800_v51 = vld [vmem:[%s13836_s8 + $0xb0] sm:$0xff] }
0x237c   :  { %v3936_v53 = vpop.f32.mrb[54].mxu1 }
0x237d   :  { %v4010_v54 = vadd.f32 %v4009_v50, %v3936_v53  ;;  %v10710_v41 = vpop.f32.mrb[55].mxu1  ;;  %v9798_v50 = vld [vmem:[%s13836_s8 + $0xa0] sm:$0xff] }
0x237e   :  { %v11177_v53 = vpack.c.bf16 %v9800_v51, %v9798_v50  ;;  %v9805_v41 = vld [vmem:[%s13836_s8 + $0xd8] sm:$0xff]  ;;  %v9839_v50 = vld [vmem:[%s13838_s10 + $0x1d0] sm:$0xff] }
0x237f   :  { %v9840_v51 = vld [vmem:[%s13838_s10 + $0x1d8] sm:$0xff] }
0x2380   :  { %v4087_v56 = vpop.f32.mrb[56].mxu1 }
0x2381   :  { %v4091_v38 = vmul.f32 0.25, %v4087_v56  ;;  %v10722_v58 = vpop.f32.mrb[57].mxu1 }
0x2382   :  { %v9804_v58 = vld [vmem:[%s13836_s8 + $0xd0] sm:$0xff] }
0x2383   :  { %v4092_v59 = vsel %vm11805_vm3, %v4091_v38, -1e+30  ;;  %v9802_v38 = vld [vmem:[%s13836_s8 + $0xc0] sm:$0xff] }
0x2384   :  { %v4093_v60 = vsel %vm294_vm4, %v4092_v59, -inf }
0x2385   :  { %4094 = vmax.xlane.f32.xlu1 %v4093_v60  ;;  %v9807_v60 = vld [vmem:[%s13836_s8 + $0xe8] sm:$0xff] }
0x2396   :  { %4256 = vrot.lane.b32.xlu1 %v12351_v40, %s13863_s27 }
0x239a   :  { %4254 = vrot.lane.b32.xlu1 %v12351_v40, %s13862_s26 }
0x2412   :  { %v4095_v29 = vpop.xlane.xlu1 %4094 }
0x2413   :  { %v4096_v0 = vsub.f32 %v4092_v59, %v4095_v29  ;;  %v11181_v59 = vpack.c.bf16 %v9804_v58, %v9802_v38  ;;  %v9809_v29 = vld [vmem:[%s13836_s8 + $0xf8] sm:$0xff]  ;;  %v9841_v38 = vld [vmem:[%s13838_s10 + $0x1e0] sm:$0xff]  ;;  %v9842_v58 = vld [vmem:[%s13838_s10 + $0x1e8] sm:$0xff] }
0x2415   :  { %v4097_v61 = vmul.f32 1.442695, %v4096_v0  ;;  %v9806_v0 = vld [vmem:[%s13836_s8 + $0xe0] sm:$0xff] }
0x2416   :  { %v4257_v8 = vpop.permute.xlu1 %4256 }
0x2417   :  { %11492 = vpow2.f32 %v4097_v61  ;;  %v11183_v61 = vpack.c.bf16 %v9809_v29, %v9807_v60  ;;  %v11211_v60 = vpack.c.bf16 %v9842_v58, %v9841_v38  ;;  %v9825_v29 = vld [vmem:[%s13838_s10 + $0x160] sm:$0xff]  ;;  %v9858_v38 = vld [vmem:[%s13831_s3 + $0x138] sm:$0xff] }
0x241a   :  { %v4255_v9 = vpop.permute.xlu1 %4254 }
0x2421   :  { %v11493_v4 = vpop.eup %11492 }
0x2422   :  { %v4099_v28 = vsel %vm294_vm4, %v11493_v4, 0.0 }
0x2423   :  { %4100 = vadd.xlane.f32.xlu0 %v4099_v28 }
0x2439   :  { %4104 = vrot.lane.b32.xlu0 %v12353_v62, %s13850_s23 }
0x24b0   :  { %v4101_v19 = vpop.xlane.xlu0 %4100 }
0x24b1   :  { %11494 = vrcp.f32 %v4101_v19  ;;  %v9829_v19 = vld [vmem:[%s13838_s10 + $0x180] sm:$0xff] }
0x24b4   :  { %v4105_v5 = vpop.permute.xlu0 %4104 }
0x24b5   :  { %10724 = vmatpush3.msra.mxu0 %v4105_v5  ;;  %v9830_v5 = vld [vmem:[%s13838_s10 + $0x188] sm:$0xff] }
0x24b6   :  { %10735 = vmatprep.subr.mxu0 %v11612_v20 }
0x24bb   :  { %v11495_v7 = vpop.eup %11494 }
0x24bc   :  { %v4103_v40 = vmul.f32 %v11495_v7, %v11493_v4  ;;  %v9808_v4 = vld [vmem:[%s13836_s8 + $0xf0] sm:$0xff]  ;;  %v11187_v7 = vpack.c.bf16 %v9830_v5, %v9829_v19 }
0x24bd   :  { %v11185_v28 = vpack.c.bf16 %v9808_v4, %v9806_v0  ;;  %v9826_v0 = vld [vmem:[%s13838_s10 + $0x168] sm:$0xff]  ;;  %v9843_v4 = vld [vmem:[%s13838_s10 + $0x1f0] sm:$0xff] }
0x24be   :  { %10726 = vmatmul.mubr.msk.f32.vlgmr.msra.gmra.mrb[44].mxu0 %vm294_vm4, %v4103_v40  ;;  %v9827_v5 = vld [vmem:[%s13838_s10 + $0x170] sm:$0xff] }
0x24bf   :  { %10736 = vmatpush3.xpose.msk.msra.mxu0 %vm217_vm2, %v4257_v8  ;;  %10737 = vmatprep.mubr.msk.f32.mxu0 %vm11613_vm1, %v11612_v20 }
0x24c0   :  { %11168 = vmatprep.subr.bf16.mxu0 %v11619_v24 }
0x24c2   :  { %10738 = vmatmul.mubr.msk.f32.vlgmr.msra.gmra.mrb[46].mxu0 %vm217_vm2, %v4255_v9 }
0x24c3   :  { %11170 = vmatpush3.bf16.msra.mxu0 %v12460_v57  ;;  %10749 = vmatprep.mubr.msk.f32.mxu0 %vm11613_vm1, %v11612_v20 }
0x24c4   :  { %11188 = vmatprep.subr.bf16.mxu0 %v11187_v7  ;;  %v9828_v7 = vld [vmem:[%s13838_s10 + $0x178] sm:$0xff] }
0x2591   :  { %v4176_v10 = vpop.f32.mrb[44].mxu0 }
0x2592   :  { %v10727_v55 = vpop.f32.mrb[45].mxu0  ;;  %10733 = vmatmul.mubr.msk.f32.vlgmr.msra.gmra.mrb[58].mxu1 %vm217_vm2, %v4176_v10 }
0x2593   :  { %10742 = vmatprep.mubr.msk.f32.mxu1 %vm11613_vm1, %v11612_v20  ;;  %v12628_v55 = vld [vmem:[%s13834_s6 + $0x1] ss:$0 sm:$0xff] }
0x2595   :  { %v4328_v11 = vpop.f32.mrb[46].mxu0 }
0x2596   :  { %v4332_v2 = vmul.f32 0.25, %v4328_v11  ;;  %v10739_v12 = vpop.f32.mrb[47].mxu0 }
0x2598   :  { %v4333_v36 = vsel %vm11805_vm3, %v4332_v2, -1e+30  ;;  %v12633_v2 = vld [vmem:[%s13835_s7 + $0x1] ss:$0 sm:$0xff] }
0x2599   :  { %v4334_v46 = vsel %vm294_vm4, %v4333_v36, -inf }
0x259a   :  { %4335 = vmax.xlane.f32.xlu0 %v4334_v46  ;;  %v9813_v46 = vld [vmem:[%s13838_s10 + $0x100] sm:$0xff] }
0x25b0   :  { %4345 = vrot.lane.b32.xlu0 %v12353_v62, %s13862_s26 }
0x2627   :  { %v4336_v57 = vpop.xlane.xlu0 %4335 }
0x2628   :  { %v4337_v14 = vsub.f32 %v4333_v36, %v4336_v57  ;;  %v9814_v57 = vld [vmem:[%s13838_s10 + $0x108] sm:$0xff] }
0x262a   :  { %v4338_v15 = vmul.f32 1.442695, %v4337_v14  ;;  %v9831_v14 = vld [vmem:[%s13838_s10 + $0x190] sm:$0xff] }
0x262b   :  { %v4346_v16 = vpop.permute.xlu0 %4345 }
0x262c   :  { %11496 = vpow2.f32 %v4338_v15  ;;  %10741 = vmatpush3.msra.mxu1 %v4346_v16  ;;  %v9832_v15 = vld [vmem:[%s13838_s10 + $0x198] sm:$0xff]  ;;  %v11189_v16 = vpack.c.bf16 %v9814_v57, %v9813_v46 }
0x262d   :  { %11172 = vmatprep.subr.bf16.mxu1 %v11171_v43  ;;  %v11191_v17 = vpack.c.bf16 %v9832_v15, %v9831_v14  ;;  %v9820_v43 = vld [vmem:[%s13838_s10 + $0x138] sm:$0xff] }
0x2636   :  { %v11497_v18 = vpop.eup %11496 }
0x2637   :  { %v4340_v62 = vsel %vm294_vm4, %v11497_v18, 0.0 }
0x2638   :  { %4341 = vadd.xlane.f32.xlu1 %v4340_v62  ;;  %v9816_v62 = vld [vmem:[%s13838_s10 + $0x118] sm:$0xff] }
0x263c   :  { %4512 = vadd.xlane.f32.xlu1 %v4511_v22 }
0x2665   :  { %v4249_v42 = vpop.f32.mrb[58].mxu1 }
0x2666   :  { %v12565_v23 = vadd.f32 %v4249_v42, %v4010_v54  ;;  %v10734_v26 = vpop.f32.mrb[59].mxu1  ;;  %v9803_v54 = vld [vmem:[%s13836_s8 + $0xc8] sm:$0xff]  ;;  %v9833_v42 = vld [vmem:[%s13838_s10 + $0x1a0] sm:$0xff] }
0x2667   :  { %v11179_v56 = vpack.c.bf16 %v9805_v41, %v9803_v54  ;;  %v9834_v26 = vld [vmem:[%s13838_s10 + $0x1a8] sm:$0xff]  ;;  %v11207_v54 = vpack.c.bf16 %v9840_v51, %v9839_v50  ;;  %v9823_v41 = vld [vmem:[%s13838_s10 + $0x150] sm:$0xff] }
0x2668   :  { %v9852_v51 = vld [vmem:[%s13831_s3 + $0x108] sm:$0xff] }
0x26c5   :  { %v4342_v27 = vpop.xlane.xlu1 %4341 }
0x26c6   :  { %11498 = vrcp.f32 %v4342_v27 }
0x26c9   :  { %v4513_v30 = vpop.xlane.xlu1 %4512 }
0x26ca   :  { %v4517_v31 = vmul.f32 0.015625, %v4513_v30 }
0x26cc   :  { %v4519_v3 = vsub.f32 %v12560_v21, %v4517_v31  ;;  %v11195_v31 = vpack.c.bf16 %v9834_v26, %v9833_v42 }
0x26ce   :  { %v4521_v34 = vmul.f32 %v4519_v3, %v4519_v3 }
0x26d0   :  { %v11499_v1 = vpop.eup %11498  ;;  %v4523_v6 = vsel %vm63_vm0, %v4521_v34, 0.0  ;;  %v9818_v34 = vld [vmem:[%s13838_s10 + $0x128] sm:$0xff] }
0x26d1   :  { %4524 = vadd.xlane.f32.xlu1 %v4523_v6  ;;  %v4344_v35 = vmul.f32 %v11499_v1, %v11497_v18  ;;  %v9815_v18 = vld [vmem:[%s13838_s10 + $0x110] sm:$0xff]  ;;  %v9836_v6 = vld [vmem:[%s13838_s10 + $0x1b8] sm:$0xff] }
0x26d2   :  { %v11193_v30 = vpack.c.bf16 %v9816_v62, %v9815_v18  ;;  %v9835_v1 = vld [vmem:[%s13838_s10 + $0x1b0] sm:$0xff] }
0x26d3   :  { %10743 = vmatmul.mubr.msk.f32.vlgmr.msra.gmra.mrb[60].mxu1 %vm294_vm4, %v4344_v35  ;;  %v11199_v37 = vpack.c.bf16 %v9836_v6, %v9835_v1 }
0x26d4   :  { %4653 = vmatprep.mubr.f32.mxu1 %v11612_v20  ;;  %11174 = vmatpush1.bf16.msra.mxu1 %v11173_v47  ;;  %v11201_v47 = vpack.c.bf16 %v9820_v43, %v9819_v39 }
0x26d5   :  { %11176 = vmatprep.subr.bf16.mxu1 %v11175_v63  ;;  %v9822_v63 = vld [vmem:[%s13838_s10 + $0x148] sm:$0xff] }
0x26d8   :  { %11178 = vmatpush1.bf16.msra.mxu1 %v11177_v53  ;;  %v11205_v53 = vpack.c.bf16 %v9822_v63, %v9821_v25 }
0x26d9   :  { %11180 = vmatprep.subr.bf16.mxu1 %v11179_v56  ;;  %v9824_v56 = vld [vmem:[%s13838_s10 + $0x158] sm:$0xff] }
0x26dc   :  { %11182 = vmatpush1.bf16.msra.mxu1 %v11181_v59  ;;  %v11209_v59 = vpack.c.bf16 %v9824_v56, %v9823_v41  ;;  %v9856_v56 = vld [vmem:[%s13831_s3 + $0x128] sm:$0xff] }
0x26dd   :  { %11184 = vmatprep.subr.bf16.mxu1 %v11183_v61  ;;  %v11213_v61 = vpack.c.bf16 %v9826_v0, %v9825_v29  ;;  %v11223_v58 = vpack.c.bf16 %v9858_v38, %v9856_v56  ;;  %v9860_v0 = vld [vmem:[%s13831_s3 + $0x148] sm:$0xff] }
0x26e0   :  { %11186 = vmatpush1.bf16.msra.mxu1 %v11185_v28  ;;  %v9844_v28 = vld [vmem:[%s13838_s10 + $0x1f8] sm:$0xff] }
0x26e1   :  { %v11215_v19 = vpack.c.bf16 %v9844_v28, %v9843_v4  ;;  %v9859_v28 = vld [vmem:[%s13831_s3 + $0x140] sm:$0xff] }
0x275e   :  { %v4525_v8 = vpop.xlane.xlu1 %4524 }
0x275f   :  { %v4529_v40 = vmul.f32 0.015625, %v4525_v8  ;;  %v11217_v8 = vpack.c.bf16 %v9828_v7, %v9827_v5  ;;  %v9864_v7 = vld [vmem:[%s13831_s3 + $0x168] sm:$0xff] }
0x2761   :  { %v4531_v9 = vadd.f32 1e-05, %v4529_v40  ;;  %v9810_v40 = vld [vmem:[%s13837_s9 + $0x2] sm:$0x3] }
0x2763   :  { %11500 = vrsqrt.f32 %v4531_v9  ;;  %v12735_v9 = vrot.slane %v9810_v40, %v12205_v33 }
0x276d   :  { %v11501_v10 = vpop.eup %11500 }
0x276e   :  { %v4535_v11 = vmul.f32 %v11501_v10, %v4519_v3  ;;  %v9817_v3 = vld [vmem:[%s13838_s10 + $0x120] sm:$0xff]  ;;  %v12738_v10 = vrot.slane %v9810_v40, %v12171_v13 }
0x276f   :  { %v11197_v35 = vpack.c.bf16 %v9818_v34, %v9817_v3 }
0x2770   :  { %v4543_v12 = vmul.f32 %v12628_v55, %v4535_v11 }
0x2772   :  { %v4551_v36 = vadd.f32 %v12633_v2, %v4543_v12 }
0x2774   :  { %9811 = vmatmul.mubr.msk.f32.vlgmr.msra.gmra.mrb[62].mxu1 %vm63_vm0, %v4551_v36 }
0x2775   :  { %4659 = vmatprep.mubr.f32.mxu1 %v11612_v20 }
0x27a6   :  { %v4417_v22 = vpop.f32.mrb[60].mxu1 }
0x27a7   :  { %v10744_v27 = vpop.f32.mrb[61].mxu1  ;;  %10750 = vmatmul.mubr.msk.f32.vlgmr.msra.gmra.mrb[48].mxu0 %vm217_vm2, %v4417_v22 }
0x27a8   :  { %11190 = vmatpush3.bf16.msra.mxu0 %v11189_v16 }
0x27a9   :  { %11192 = vmatprep.subr.bf16.mxu0 %v11191_v17 }
0x27ac   :  { %11194 = vmatpush3.bf16.msra.mxu0 %v11193_v30 }
0x27ad   :  { %11196 = vmatprep.subr.bf16.mxu0 %v11195_v31 }
0x27b0   :  { %11198 = vmatpush3.bf16.msra.mxu0 %v11197_v35 }
0x27b1   :  { %11200 = vmatprep.subr.bf16.mxu0 %v11199_v37 }
0x27b4   :  { %11202 = vmatpush3.bf16.msra.mxu0 %v11201_v47 }
0x27b5   :  { %11204 = vmatprep.subr.bf16.mxu0 %v11203_v49 }
0x27b8   :  { %11206 = vmatpush3.bf16.msra.mxu0 %v11205_v53 }
0x27b9   :  { %11208 = vmatprep.subr.bf16.mxu0 %v11207_v54  ;;  %v9853_v54 = vld [vmem:[%s13831_s3 + $0x110] sm:$0xff] }
0x27bc   :  { %11210 = vmatpush3.bf16.msra.mxu0 %v11209_v59  ;;  %v9855_v59 = vld [vmem:[%s13831_s3 + $0x120] sm:$0xff] }
0x27bd   :  { %11212 = vmatprep.subr.bf16.mxu0 %v11211_v60  ;;  %v9857_v60 = vld [vmem:[%s13831_s3 + $0x130] sm:$0xff] }
0x27be   :  { %v11225_v29 = vpack.c.bf16 %v9857_v60, %v9855_v59 }
0x27c0   :  { %11214 = vmatpush3.bf16.msra.mxu0 %v11213_v61  ;;  %v9862_v61 = vld [vmem:[%s13831_s3 + $0x158] sm:$0xff] }
0x27c1   :  { %11216 = vmatprep.subr.bf16.mxu0 %v11215_v19  ;;  %v11227_v4 = vpack.c.bf16 %v9862_v61, %v9860_v0  ;;  %v9861_v19 = vld [vmem:[%s13831_s3 + $0x150] sm:$0xff] }
0x27c2   :  { %v11229_v5 = vpack.c.bf16 %v9861_v19, %v9859_v28 }
0x27c4   :  { %11218 = vmatpush3.bf16.msra.mxu0 %v11217_v8  ;;  %v9866_v8 = vld [vmem:[%s13831_s3 + $0x178] sm:$0xff] }
0x27c5   :  { %10757 = vmatprep.subr.mxu0 %v11612_v20  ;;  %v11231_v40 = vpack.c.bf16 %v9866_v8, %v9864_v7 }
0x2847   :  { %v4655_v11 = vpop.f32.mrb[62].mxu1 }
0x2848   :  { %v4656_v12 = vadd.f32 %v4655_v11, %v12735_v9  ;;  %v4657_v36 = vpop.f32.mrb[63].mxu1  ;;  %v9863_v11 = vld [vmem:[%s13831_s3 + $0x160] sm:$0xff] }
0x2849   :  { %v4658_v46 = vadd.f32 %v4657_v36, %v12738_v10 }
0x284a   :  { %v4666_v14 = vmax.f32 %v4656_v12, 0.0  ;;  %v9865_v12 = vld [vmem:[%s13831_s3 + $0x170] sm:$0xff] }
0x284b   :  { %v4667_v57 = vmax.f32 %v4658_v46, 0.0  ;;  %v11233_v36 = vpack.c.bf16 %v9865_v12, %v9863_v11 }
0x284d   :  { %4767 = vmatprep.mubr.f32.mxu0 %v4667_v57 }
0x284e   :  { %4768 = vmatmul.mubr.f32.vlgmr.msra.gmra.mrb[50].mxu0 %v4666_v14 }
0x287a   :  { %v4490_v15 = vpop.f32.mrb[48].mxu0 }
0x287b   :  { %v4494_v16 = vadd.f32 %v4490_v15, %v12565_v23  ;;  %v10751_v17 = vpop.f32.mrb[49].mxu0 }
0x287d   :  { %v4504_v18 = vadd.f32 %v12555_v32, %v4494_v16  ;;  %v9849_v16 = vld [vmem:[%s13829_s1 + $0x2] ss:$0 sm:$0xff] }
0x287f   :  { %v12745_v62 = vadd.f32 %v4504_v18, %v12327_v52  ;;  %v12754_v52 = vld [vmem:[%s13839_s11 + $0x1] ss:$0 sm:$0xff]  ;;  %v9850_v18 = vld [vmem:[%s13830_s2 + $0x2] ss:$0 sm:$0xff] }
0x2881   :  { %v4514_v22 = vsel %vm63_vm0, %v12745_v62, 0.0 }
0x2882   :  { %4515 = vadd.xlane.f32.xlu1 %v4514_v22 }
0x290f   :  { %v4516_v42 = vpop.xlane.xlu1 %4515 }
0x2910   :  { %v4518_v26 = vmul.f32 0.015625, %v4516_v42 }
0x2912   :  { %v4520_v27 = vsub.f32 %v12745_v62, %v4518_v26 }
0x2914   :  { %v4522_v30 = vmul.f32 %v4520_v27, %v4520_v27 }
0x2916   :  { %v4526_v31 = vsel %vm63_vm0, %v4522_v30, 0.0 }
0x2917   :  { %4527 = vadd.xlane.f32.xlu1 %v4526_v31 }
0x2921   :  { %v10276_v3 = vpop.f32.mrb[50].mxu0 }
0x2922   :  { %v10277_v23 = vpop.f32.mrb[51].mxu0 }
0x2923   :  { %v10278_v34 = vadd.f32 %v10277_v23, %v10276_v3 }
0x2925   :  { %v4778_v32 = vadd.f32 %v10278_v34, %v12560_v21 }
0x2927   :  { %v12758_v1 = vadd.f32 %v12754_v52, %v4778_v32 }
0x2929   :  { %v4794_v6 = vsel %vm63_vm0, %v12758_v1, 0.0 }
0x292a   :  { %4795 = vadd.xlane.f32.xlu0 %v4794_v6 }
0x29a4   :  { %v4528_v35 = vpop.xlane.xlu1 %4527 }
0x29a5   :  { %v4530_v37 = vmul.f32 0.015625, %v4528_v35 }
0x29a7   :  { %v4532_v39 = vadd.f32 1e-05, %v4530_v37 }
0x29a9   :  { %11502 = vrsqrt.f32 %v4532_v39 }
0x29b3   :  { %v11503_v43 = vpop.eup %11502 }
0x29b4   :  { %v4536_v45 = vmul.f32 %v11503_v43, %v4520_v27 }
0x29b6   :  { %v4544_v44 = vmul.f32 %v12628_v55, %v4536_v45  ;;  %v9854_v55 = vld [vmem:[%s13831_s3 + $0x118] sm:$0xff] }
0x29b7   :  { %v4796_v47 = vpop.xlane.xlu0 %4795  ;;  %v11219_v53 = vpack.c.bf16 %v9854_v55, %v9852_v51 }
0x29b8   :  { %v4800_v49 = vmul.f32 0.015625, %v4796_v47  ;;  %v4552_v25 = vadd.f32 %v12633_v2, %v4544_v44  ;;  %v9851_v2 = vld [vmem:[%s13831_s3 + $0x100] sm:$0xff] }
0x29b9   :  { %v11221_v41 = vpack.c.bf16 %v9853_v54, %v9851_v2  ;;  %11220 = vmatprep.subr.bf16.mxu1 %v11219_v53 }
0x29ba   :  { %v4802_v21 = vsub.f32 %v12758_v1, %v4800_v49  ;;  %9812 = vmatmul.mubr.msk.f32.gmra.mrb[64].mxu1 %vm63_vm0, %v4552_v25 }
0x29bb   :  { %4923 = vmatprep.mubr.f32.mxu1 %v11612_v20  ;;  %11222 = vmatpush1.bf16.msra.mxu1 %v11221_v41 }
0x29bc   :  { %v4804_v63 = vmul.f32 %v4802_v21, %v4802_v21  ;;  %11224 = vmatprep.subr.bf16.mxu1 %v11223_v58 }
0x29be   :  { %v4806_v50 = vsel %vm63_vm0, %v4804_v63, 0.0 }
0x29bf   :  { %4807 = vadd.xlane.f32.xlu1 %v4806_v50  ;;  %11226 = vmatpush1.bf16.msra.mxu1 %v11225_v29 }
0x29c0   :  { %11228 = vmatprep.subr.bf16.mxu1 %v11227_v4 }
0x29c3   :  { %11230 = vmatpush1.bf16.msra.mxu1 %v11229_v5 }
0x29c4   :  { %11232 = vmatprep.subr.bf16.mxu1 %v11231_v40 }
0x29c7   :  { %11234 = vmatpush1.bf16.msra.mxu1 %v11233_v36 }
0x29c8   :  { %10752 = vmatprep.subr.mxu1 %v11612_v20 }
0x2a4c   :  { %v4808_v46 = vpop.xlane.xlu1 %4807 }
0x2a4d   :  { %v4812_v57 = vmul.f32 0.015625, %v4808_v46 }
0x2a4f   :  { %v4814_v14 = vadd.f32 1e-05, %v4812_v57 }
0x2a51   :  { %11504 = vrsqrt.f32 %v4814_v14  ;;  %v9871_v14 = vld [vmem:[%s13832_s4 + $0x90] sm:$0xff] }
0x2a5b   :  { %v11505_v15 = vpop.eup %11504 }
0x2a5c   :  { %v4818_v17 = vmul.f32 %v11505_v15, %v4802_v21  ;;  %v9872_v15 = vld [vmem:[%s13832_s4 + $0x98] sm:$0xff] }
0x2a5e   :  { %v4826_v22 = vmul.f32 %v9849_v16, %v4818_v17 }
0x2a60   :  { %v4834_v42 = vadd.f32 %v9850_v18, %v4826_v22 }
0x2a62   :  { %9867 = vmatmul.mubr.msk.f32.vlgmr.msra.gmra.mrb[66].mxu1 %vm63_vm0, %v4834_v42 }
0x2a63   :  { %4929 = vmatprep.mubr.f32.mxu1 %v11612_v20 }
0x2a8d   :  { %v4661_v26 = vpop.f32.mrb[64].mxu1 }
0x2a8e   :  { %v4662_v27 = vadd.f32 %v4661_v26, %v12735_v9  ;;  %v4663_v30 = vpop.f32.mrb[65].mxu1  ;;  %v9869_v26 = vld [vmem:[%s13832_s4 + $0x80] sm:$0xff] }
0x2a8f   :  { %v4664_v31 = vadd.f32 %v4663_v30, %v12738_v10 }
0x2a90   :  { %v4668_v23 = vmax.f32 %v4662_v27, 0.0  ;;  %v9870_v27 = vld [vmem:[%s13832_s4 + $0x88] sm:$0xff] }
0x2a91   :  { %v4669_v3 = vmax.f32 %v4664_v31, 0.0 }
0x2a93   :  { %4772 = vmatprep.mubr.f32.mxu0 %v4669_v3  ;;  %v12900_v3 = vpack.c.bf16 %v9870_v27, %v9869_v26 }
0x2a94   :  { %4773 = vmatmul.mubr.f32.gmra.mrb[52].mxu0 %v4668_v23 }
0x2a95   :  { %10759 = vmatprep.mubr.msk.f32.mxu0 %vm11613_vm1, %v11612_v20 }
0x2b35   :  { %v12829_v34 = vpop.f32.mrb[66].mxu1 }
0x2b36   :  { %5108 = vrot.lane.b32.xlu0 %v12829_v34, %s13854_s19  ;;  %v12833_v32 = vpop.f32.mrb[67].mxu1 }
0x2b37   :  { %10758 = vmatpush3.msra.mxu0 %v12833_v32 }
0x2b38   :  { %10767 = vmatprep.subr.mxu0 %v11612_v20 }
0x2b67   :  { %v10279_v9 = vpop.f32.mrb[52].mxu0 }
0x2b68   :  { %v10280_v10 = vpop.f32.mrb[53].mxu0 }
0x2b69   :  { %v10281_v6 = vadd.f32 %v10280_v10, %v10279_v9 }
0x2b6b   :  { %v4779_v35 = vadd.f32 %v10281_v6, %v12745_v62 }
0x2b6d   :  { %v12839_v37 = vadd.f32 %v12754_v52, %v4779_v35 }
0x2b6f   :  { %v4797_v39 = vsel %vm63_vm0, %v12839_v37, 0.0 }
0x2b70   :  { %4798 = vadd.xlane.f32.xlu1 %v4797_v39 }
0x2ba8   :  { %v5109_v2 = vpop.permute.xlu0 %5108 }
0x2bfd   :  { %v4799_v43 = vpop.xlane.xlu1 %4798 }
0x2bfe   :  { %v4801_v45 = vmul.f32 0.015625, %v4799_v43 }
0x2c00   :  { %v4803_v44 = vsub.f32 %v12839_v37, %v4801_v45 }
0x2c02   :  { %v4805_v47 = vmul.f32 %v4803_v44, %v4803_v44 }
0x2c04   :  { %v4809_v49 = vsel %vm63_vm0, %v4805_v47, 0.0 }
0x2c05   :  { %4810 = vadd.xlane.f32.xlu1 %v4809_v49 }
0x2c16   :  { %4946 = vrot.lane.b32.xlu1 %v12829_v34, %s11615_s18 }
0x2c1a   :  { %5110 = vrot.lane.b32.xlu1 %v12829_v34, %s13856_s17 }
0x2c92   :  { %v4811_v62 = vpop.xlane.xlu1 %4810 }
0x2c93   :  { %v4813_v52 = vmul.f32 0.015625, %v4811_v62 }
0x2c95   :  { %v4815_v25 = vadd.f32 1e-05, %v4813_v52 }
0x2c96   :  { %v4947_v21 = vpop.permute.xlu1 %4946 }
0x2c97   :  { %11506 = vrsqrt.f32 %v4815_v25  ;;  %10753 = vmatpush3.xpose.msk.msra.mxu1 %vm217_vm2, %v4947_v21 }
0x2c98   :  { %10762 = vmatprep.subr.mxu1 %v11612_v20 }
0x2c9a   :  { %v5111_v53 = vpop.permute.xlu1 %5110 }
0x2ca1   :  { %v11507_v63 = vpop.eup %11506 }
0x2ca2   :  { %v4819_v50 = vmul.f32 %v11507_v63, %v4803_v44 }
0x2ca4   :  { %v4827_v51 = vmul.f32 %v9849_v16, %v4819_v50  ;;  %v12887_v16 = vpack.c.bf16 %v9872_v15, %v9871_v14  ;;  %v9875_v15 = vld [vmem:[%s13832_s4 + $0xb0] sm:$0xff] }
0x2ca6   :  { %v4835_v55 = vadd.f32 %v9850_v18, %v4827_v51 }
0x2ca8   :  { %9868 = vmatmul.mubr.msk.f32.gmra.mrb[68].mxu1 %vm63_vm0, %v4835_v55 }
0x2ca9   :  { %10754 = vmatprep.mubr.msk.f32.mxu1 %vm11613_vm1, %v11612_v20 }
0x2cac   :  { %10755 = vmatmul.mubr.msk.f32.vlgmr.msra.gmra.mrb[70].mxu1 %vm217_vm2, %v12829_v34 }
0x2cad   :  { %10763 = vmatpush3.xpose.msk.msra.mxu1 %vm217_vm2, %v5111_v53  ;;  %10764 = vmatprep.mubr.msk.f32.mxu1 %vm11613_vm1, %v11612_v20 }
0x2cae   :  { %11235 = vmatprep.subr.bf16.mxu1 %v11619_v24 }
0x2cb0   :  { %10765 = vmatmul.mubr.msk.f32.vlgmr.msra.gmra.mrb[72].mxu1 %vm217_vm2, %v5109_v2 }
0x2cb1   :  { %10776 = vmatprep.mubr.msk.f32.mxu1 %vm11613_vm1, %v11612_v20  ;;  %11237 = vmatpush3.bf16.msra.mxu1 %v12887_v16 }
0x2cb2   :  { %10786 = vmatprep.subr.mxu1 %v11612_v20 }
0x2d7b   :  { %v12863_v54 = vpop.f32.mrb[68].mxu1 }
0x2d7c   :  { %v12865_v41 = vpop.f32.mrb[69].mxu1 }
0x2d7f   :  { %v5018_v56 = vpop.f32.mrb[70].mxu1 }
0x2d80   :  { %v5022_v38 = vmul.f32 0.25, %v5018_v56  ;;  %v10756_v58 = vpop.f32.mrb[71].mxu1 }
0x2d81   :  { %v9873_v58 = vld [vmem:[%s13832_s4 + $0xa0] sm:$0xff] }
0x2d82   :  { %v5023_v59 = vsel %vm11805_vm3, %v5022_v38, -1e+30 }
0x2d83   :  { %v5182_v60 = vpop.f32.mrb[72].mxu1  ;;  %v5024_v29 = vsel %vm294_vm4, %v5023_v59, -inf }
0x2d84   :  { %v5186_v0 = vmul.f32 0.25, %v5182_v60  ;;  %5025 = vmax.xlane.f32.xlu1 %v5024_v29  ;;  %v10766_v61 = vpop.f32.mrb[73].mxu1 }
0x2d86   :  { %v5187_v4 = vsel %vm11805_vm3, %v5186_v0, -1e+30 }
0x2d87   :  { %v5188_v28 = vsel %vm294_vm4, %v5187_v4, -inf }
0x2d88   :  { %5189 = vmax.xlane.f32.xlu0 %v5188_v28 }
0x2d9e   :  { %5424 = vrot.lane.b32.xlu0 %v12829_v34, %s13864_s28 }
0x2e11   :  { %v5026_v19 = vpop.xlane.xlu1 %5025 }
0x2e12   :  { %v5027_v5 = vsub.f32 %v5023_v59, %v5026_v19  ;;  %v9874_v59 = vld [vmem:[%s13832_s4 + $0xa8] sm:$0xff] }
0x2e13   :  { %v12938_v60 = vpack.c.bf16 %v9874_v59, %v9873_v58 }
0x2e14   :  { %v5028_v7 = vmul.f32 1.442695, %v5027_v5 }
0x2e15   :  { %v5190_v8 = vpop.xlane.xlu0 %5189 }
0x2e16   :  { %11508 = vpow2.f32 %v5028_v7  ;;  %v5191_v40 = vsub.f32 %v5187_v4, %v5190_v8 }
0x2e18   :  { %v5192_v11 = vmul.f32 1.442695, %v5191_v40 }
0x2e19   :  { %v5425_v35 = vpop.permute.xlu0 %5424 }
0x2e1a   :  { %11510 = vpow2.f32 %v5192_v11 }
0x2e20   :  { %v11509_v12 = vpop.eup %11508 }
0x2e21   :  { %v5030_v36 = vsel %vm294_vm4, %v11509_v12, 0.0 }
0x2e22   :  { %5031 = vadd.xlane.f32.xlu1 %v5030_v36 }
0x2e24   :  { %v11511_v46 = vpop.eup %11510 }
0x2e25   :  { %v5194_v57 = vsel %vm294_vm4, %v11511_v46, 0.0 }
0x2e26   :  { %5195 = vadd.xlane.f32.xlu1 %v5194_v57 }
0x2e37   :  { %5200 = vrot.lane.b32.xlu1 %v12833_v32, %s13854_s19 }
0x2e3b   :  { %5422 = vrot.lane.b32.xlu1 %v12829_v34, %s13865_s29 }
0x2eaf   :  { %v5032_v17 = vpop.xlane.xlu1 %5031 }
0x2eb0   :  { %11512 = vrcp.f32 %v5032_v17  ;;  %v9876_v17 = vld [vmem:[%s13832_s4 + $0xb8] sm:$0xff] }
0x2eb3   :  { %v5196_v18 = vpop.xlane.xlu1 %5195 }
0x2eb4   :  { %11514 = vrcp.f32 %v5196_v18  ;;  %v12971_v18 = vpack.c.bf16 %v9876_v17, %v9875_v15 }
0x2eb7   :  { %v5201_v30 = vpop.permute.xlu1 %5200 }
0x2eba   :  { %v11513_v22 = vpop.eup %11512 }
0x2ebb   :  { %v5034_v42 = vmul.f32 %v11513_v22, %v11509_v12  ;;  %v5423_v43 = vpop.permute.xlu1 %5422 }
0x2ebd   :  { %10760 = vmatmul.mubr.msk.f32.vlgmr.msra.gmra.mrb[54].mxu0 %vm294_vm4, %v5034_v42 }
0x2ebe   :  { %v11515_v31 = vpop.eup %11514  ;;  %10768 = vmatpush3.msra.mxu0 %v5201_v30  ;;  %10769 = vmatprep.mubr.msk.f32.mxu0 %vm11613_vm1, %v11612_v20 }
0x2ebf   :  { %v5198_v23 = vmul.f32 %v11515_v31, %v11511_v46  ;;  %11238 = vmatprep.subr.bf16.mxu0 %v11619_v24 }
0x2ec1   :  { %10770 = vmatmul.mubr.msk.f32.vlgmr.msra.gmra.mrb[56].mxu0 %vm294_vm4, %v5198_v23 }
0x2ec2   :  { %11240 = vmatpush3.bf16.msra.mxu0 %v12900_v3  ;;  %10783 = vmatprep.mubr.msk.f32.mxu0 %vm11613_vm1, %v11612_v20 }
0x2ec3   :  { %10791 = vmatprep.subr.mxu0 %v11612_v20 }
0x2f90   :  { %v5104_v9 = vpop.f32.mrb[54].mxu0 }
0x2f91   :  { %v10761_v10 = vpop.f32.mrb[55].mxu0  ;;  %10784 = vmatmul.mubr.msk.f32.vlgmr.msra.gmra.mrb[58].mxu0 %vm217_vm2, %v5104_v9 }
0x2f92   :  { %10793 = vmatprep.mubr.msk.f32.mxu0 %vm11613_vm1, %v11612_v20 }
0x2f94   :  { %v5272_v6 = vpop.f32.mrb[56].mxu0 }
0x2f95   :  { %v10771_v39 = vpop.f32.mrb[57].mxu0  ;;  %10777 = vmatmul.mubr.msk.f32.vlgmr.msra.gmra.mrb[74].mxu1 %vm217_vm2, %v5272_v6 }
0x2f96   :  { %10787 = vmatpush3.xpose.msk.msra.mxu1 %vm217_vm2, %v5425_v35  ;;  %10788 = vmatprep.mubr.msk.f32.mxu1 %vm11613_vm1, %v11612_v20 }
0x2f97   :  { %11241 = vmatprep.subr.bf16.mxu1 %v11619_v24 }
0x2f99   :  { %10789 = vmatmul.mubr.msk.f32.vlgmr.msra.gmra.mrb[76].mxu1 %vm217_vm2, %v5423_v43 }
0x2f9a   :  { %10800 = vmatprep.mubr.msk.f32.mxu1 %vm11613_vm1, %v11612_v20  ;;  %11243 = vmatpush3.bf16.msra.mxu1 %v12938_v60 }
0x2f9b   :  { %10808 = vmatprep.subr.mxu1 %v11612_v20 }
0x3064   :  { %v5418_v45 = vpop.f32.mrb[58].mxu0 }
0x3065   :  { %v10785_v44 = vpop.f32.mrb[59].mxu0 }
0x3068   :  { %v5345_v47 = vpop.f32.mrb[74].mxu1 }
0x3069   :  { %v12919_v49 = vadd.f32 %v5418_v45, %v5345_v47  ;;  %v10778_v62 = vpop.f32.mrb[75].mxu1 }
0x306c   :  { %v5496_v52 = vpop.f32.mrb[76].mxu1 }
0x306d   :  { %v5500_v25 = vmul.f32 0.25, %v5496_v52  ;;  %v10790_v21 = vpop.f32.mrb[77].mxu1 }
0x306f   :  { %v5501_v63 = vsel %vm11805_vm3, %v5500_v25, -1e+30 }
0x3070   :  { %v5502_v50 = vsel %vm294_vm4, %v5501_v63, -inf }
0x3071   :  { %5503 = vmax.xlane.f32.xlu1 %v5502_v50 }
0x3082   :  { %5513 = vrot.lane.b32.xlu1 %v12833_v32, %s13865_s29 }
0x3086   :  { %5663 = vrot.lane.b32.xlu1 %v12829_v34, %s13862_s26 }
0x30fe   :  { %v5504_v51 = vpop.xlane.xlu1 %5503 }
0x30ff   :  { %v5505_v55 = vsub.f32 %v5501_v63, %v5504_v51 }
0x3101   :  { %v5506_v53 = vmul.f32 1.442695, %v5505_v55 }
0x3102   :  { %v5514_v2 = vpop.permute.xlu1 %5513 }
0x3103   :  { %11516 = vpow2.f32 %v5506_v53  ;;  %10792 = vmatpush3.msra.mxu0 %v5514_v2 }
0x3104   :  { %10803 = vmatprep.subr.mxu0 %v11612_v20 }
0x310d   :  { %v11517_v56 = vpop.eup %11516 }
0x310e   :  { %v5508_v38 = vsel %vm294_vm4, %v11517_v56, 0.0 }
0x310f   :  { %5509 = vadd.xlane.f32.xlu0 %v5508_v38 }
0x3125   :  { %5665 = vrot.lane.b32.xlu0 %v12829_v34, %s13863_s27  ;;  %v5664_v34 = vpop.permute.xlu1 %5663 }
0x319c   :  { %v5510_v29 = vpop.xlane.xlu0 %5509 }
0x319d   :  { %11518 = vrcp.f32 %v5510_v29 }
0x31a0   :  { %v5666_v4 = vpop.permute.xlu0 %5665 }
0x31a7   :  { %v11519_v0 = vpop.eup %11518 }
0x31a8   :  { %v5512_v61 = vmul.f32 %v11519_v0, %v11517_v56 }
0x31aa   :  { %10794 = vmatmul.mubr.msk.f32.vlgmr.msra.gmra.mrb[60].mxu0 %vm294_vm4, %v5512_v61 }
0x31ab   :  { %10804 = vmatpush3.xpose.msk.msra.mxu0 %vm217_vm2, %v5666_v4  ;;  %10805 = vmatprep.mubr.msk.f32.mxu0 %vm11613_vm1, %v11612_v20 }
0x31ac   :  { %11244 = vmatprep.subr.bf16.mxu0 %v11619_v24 }
0x31ae   :  { %10806 = vmatmul.mubr.msk.f32.vlgmr.msra.gmra.mrb[62].mxu0 %vm217_vm2, %v5664_v34 }
0x31af   :  { %10817 = vmatprep.mubr.msk.f32.mxu0 %vm11613_vm1, %v11612_v20  ;;  %11246 = vmatpush3.bf16.msra.mxu0 %v12971_v18 }
0x31b0   :  { %10825 = vmatprep.subr.mxu0 %v11612_v20 }
0x327d   :  { %v5585_v28 = vpop.f32.mrb[60].mxu0 }
0x327e   :  { %v10795_v19 = vpop.f32.mrb[61].mxu0  ;;  %10801 = vmatmul.mubr.msk.f32.vlgmr.msra.gmra.mrb[78].mxu1 %vm217_vm2, %v5585_v28 }
0x327f   :  { %10810 = vmatprep.mubr.msk.f32.mxu1 %vm11613_vm1, %v11612_v20 }
0x3281   :  { %v5737_v5 = vpop.f32.mrb[62].mxu0 }
0x3282   :  { %v5741_v7 = vmul.f32 0.25, %v5737_v5  ;;  %v10807_v8 = vpop.f32.mrb[63].mxu0 }
0x3284   :  { %v5742_v40 = vsel %vm11805_vm3, %v5741_v7, -1e+30 }
0x3285   :  { %v5743_v11 = vsel %vm294_vm4, %v5742_v40, -inf }
0x3286   :  { %5744 = vmax.xlane.f32.xlu1 %v5743_v11 }
0x3297   :  { %5905 = vrot.lane.b32.xlu1 %v12863_v54, %s11615_s18 }
0x329b   :  { %6069 = vrot.lane.b32.xlu1 %v12863_v54, %s13856_s17 }
0x3313   :  { %v5745_v12 = vpop.xlane.xlu1 %5744 }
0x3314   :  { %v5746_v36 = vsub.f32 %v5742_v40, %v5745_v12 }
0x3316   :  { %v5747_v46 = vmul.f32 1.442695, %v5746_v36 }
0x3317   :  { %v5906_v31 = vpop.permute.xlu1 %5905 }
0x3318   :  { %11520 = vpow2.f32 %v5747_v46 }
0x331b   :  { %v6070_v9 = vpop.permute.xlu1 %6069 }
0x3322   :  { %v11521_v57 = vpop.eup %11520 }
0x3323   :  { %v5749_v14 = vsel %vm294_vm4, %v11521_v57, 0.0 }
0x3324   :  { %5750 = vadd.xlane.f32.xlu0 %v5749_v14 }
0x333a   :  { %5754 = vrot.lane.b32.xlu0 %v12833_v32, %s13862_s26 }
0x333e   :  { %6067 = vrot.lane.b32.xlu0 %v12863_v54, %s13854_s19 }
0x3351   :  { %v5658_v22 = vpop.f32.mrb[78].mxu1 }
0x3352   :  { %v5662_v32 = vadd.f32 %v5658_v22, %v12919_v49  ;;  %v10802_v42 = vpop.f32.mrb[79].mxu1 }
0x33b1   :  { %v5751_v26 = vpop.xlane.xlu0 %5750 }
0x33b2   :  { %11522 = vrcp.f32 %v5751_v26 }
0x33b5   :  { %v5755_v27 = vpop.permute.xlu0 %5754 }
0x33b6   :  { %10809 = vmatpush3.msra.mxu1 %v5755_v27 }
0x33b7   :  { %10820 = vmatprep.subr.mxu1 %v11612_v20 }
0x33b9   :  { %v6068_v10 = vpop.permute.xlu0 %6067 }
0x33bc   :  { %v11523_v30 = vpop.eup %11522 }
0x33bd   :  { %v5753_v23 = vmul.f32 %v11523_v30, %v11521_v57 }
0x33bf   :  { %10811 = vmatmul.mubr.msk.f32.vlgmr.msra.gmra.mrb[80].mxu1 %vm294_vm4, %v5753_v23 }
0x33c0   :  { %10821 = vmatpush3.xpose.msk.msra.mxu1 %vm217_vm2, %v5906_v31  ;;  %10822 = vmatprep.mubr.msk.f32.mxu1 %vm11613_vm1, %v11612_v20 }
0x33c1   :  { %10830 = vmatprep.subr.mxu1 %v11612_v20 }
0x33c3   :  { %10823 = vmatmul.mubr.msk.f32.vlgmr.msra.gmra.mrb[82].mxu1 %vm217_vm2, %v12863_v54 }
0x33c4   :  { %10831 = vmatpush3.xpose.msk.msra.mxu1 %vm217_vm2, %v6070_v9  ;;  %10832 = vmatprep.mubr.msk.f32.mxu1 %vm11613_vm1, %v11612_v20 }
0x33c5   :  { %11247 = vmatprep.subr.bf16.mxu1 %v11619_v24 }
0x33c7   :  { %10833 = vmatmul.mubr.msk.f32.vlgmr.msra.gmra.mrb[84].mxu1 %vm217_vm2, %v6068_v10 }
0x33c8   :  { %11249 = vmatpush3.bf16.msra.mxu1 %v12887_v16  ;;  %10844 = vmatprep.mubr.msk.f32.mxu1 %vm11613_vm1, %v11612_v20 }
0x33c9   :  { %10854 = vmatprep.subr.mxu1 %v11612_v20 }
0x3492   :  { %v5826_v6 = vpop.f32.mrb[80].mxu1 }
0x3493   :  { %v10812_v35 = vpop.f32.mrb[81].mxu1  ;;  %10818 = vmatmul.mubr.msk.f32.vlgmr.msra.gmra.mrb[64].mxu0 %vm217_vm2, %v5826_v6 }
0x3494   :  { %10826 = vmatpush3.msra.mxu0 %v12865_v41  ;;  %10827 = vmatprep.mubr.msk.f32.mxu0 %vm11613_vm1, %v11612_v20 }
0x3495   :  { %10835 = vmatprep.subr.mxu0 %v11612_v20 }
0x3496   :  { %v5977_v39 = vpop.f32.mrb[82].mxu1 }
0x3497   :  { %v5981_v43 = vmul.f32 0.25, %v5977_v39  ;;  %v10824_v45 = vpop.f32.mrb[83].mxu1 }
0x3499   :  { %v5982_v16 = vsel %vm11805_vm3, %v5981_v43, -1e+30 }
0x349a   :  { %v6141_v44 = vpop.f32.mrb[84].mxu1  ;;  %v5983_v47 = vsel %vm294_vm4, %v5982_v16, -inf }
0x349b   :  { %v6145_v49 = vmul.f32 0.25, %v6141_v44  ;;  %5984 = vmax.xlane.f32.xlu1 %v5983_v47  ;;  %v10834_v62 = vpop.f32.mrb[85].mxu1 }
0x349d   :  { %v6146_v52 = vsel %vm11805_vm3, %v6145_v49, -1e+30 }
0x349e   :  { %v6147_v25 = vsel %vm294_vm4, %v6146_v52, -inf }
0x349f   :  { %6148 = vmax.xlane.f32.xlu0 %v6147_v25 }
0x3528   :  { %v5985_v21 = vpop.xlane.xlu1 %5984 }
0x3529   :  { %v5986_v63 = vsub.f32 %v5982_v16, %v5985_v21  ;;  %v13061_v16 = vld [vmem:[%s13833_s5 + $0x2] ss:$0 sm:$0xff] }
0x352b   :  { %v5987_v50 = vmul.f32 1.442695, %v5986_v63 }
0x352c   :  { %v6149_v51 = vpop.xlane.xlu0 %6148 }
0x352d   :  { %11524 = vpow2.f32 %v5987_v50  ;;  %v6150_v55 = vsub.f32 %v6146_v52, %v6149_v51 }
0x352f   :  { %v6151_v53 = vmul.f32 1.442695, %v6150_v55 }
0x3531   :  { %11526 = vpow2.f32 %v6151_v53 }
0x3537   :  { %v11525_v2 = vpop.eup %11524 }
0x3538   :  { %v5989_v56 = vsel %vm294_vm4, %v11525_v2, 0.0 }
0x3539   :  { %5990 = vadd.xlane.f32.xlu0 %v5989_v56 }
0x353b   :  { %v11527_v38 = vpop.eup %11526 }
0x353c   :  { %v6153_v58 = vsel %vm294_vm4, %v11527_v38, 0.0 }
0x353d   :  { %6154 = vadd.xlane.f32.xlu1 %v6153_v58 }
0x354e   :  { %6383 = vrot.lane.b32.xlu1 %v12863_v54, %s13864_s28 }
0x354f   :  { %6159 = vrot.lane.b32.xlu0 %v12865_v41, %s13854_s19 }
0x3552   :  { %6381 = vrot.lane.b32.xlu1 %v12863_v54, %s13865_s29 }
0x3566   :  { %v5899_v59 = vpop.f32.mrb[64].mxu0 }
0x3567   :  { %v13012_v29 = vadd.f32 %v5899_v59, %v5662_v32  ;;  %v10819_v0 = vpop.f32.mrb[65].mxu0 }
0x3569   :  { %v6871_v47 = vadd.f32 %v13061_v16, %v13012_v29 }
0x356b   :  { %v13071_v25 = vadd.f32 %v6871_v47, %v12758_v1 }
0x356d   :  { %v6879_v63 = vsel %vm63_vm0, %v13071_v25, 0.0 }
0x35c6   :  { %v5991_v61 = vpop.xlane.xlu0 %5990 }
0x35c7   :  { %11528 = vrcp.f32 %v5991_v61 }
0x35ca   :  { %v6155_v4 = vpop.xlane.xlu1 %6154  ;;  %v6160_v19 = vpop.permute.xlu0 %6159 }
0x35cb   :  { %11530 = vrcp.f32 %v6155_v4 }
0x35ce   :  { %v6384_v11 = vpop.permute.xlu1 %6383 }
0x35d1   :  { %v11529_v34 = vpop.eup %11528 }
0x35d2   :  { %v5993_v28 = vmul.f32 %v11529_v34, %v11525_v2 }
0x35d4   :  { %10828 = vmatmul.mubr.msk.f32.vlgmr.msra.gmra.mrb[66].mxu0 %vm294_vm4, %v5993_v28  ;;  %v9916_v28 = vld [vmem:[%s13836_s8 + $0x108] sm:$0xff] }
0x35d5   :  { %v11531_v5 = vpop.eup %11530  ;;  %10836 = vmatpush3.msra.mxu0 %v6160_v19  ;;  %10837 = vmatprep.mubr.msk.f32.mxu0 %vm11613_vm1, %v11612_v20  ;;  %v9918_v19 = vld [vmem:[%s13836_s8 + $0x118] sm:$0xff] }
0x35d6   :  { %v6157_v7 = vmul.f32 %v11531_v5, %v11527_v38  ;;  %11250 = vmatprep.subr.bf16.mxu0 %v11619_v24 }
0x35d8   :  { %10838 = vmatmul.mubr.msk.f32.vlgmr.msra.gmra.mrb[68].mxu0 %vm294_vm4, %v6157_v7  ;;  %v11259_v7 = vpack.c.bf16 %v9918_v19, %v9916_v28  ;;  %v9957_v28 = vld [vmem:[%s13838_s10 + $0x2b8] sm:$0xff] }
0x35d9   :  { %11252 = vmatpush3.bf16.msra.mxu0 %v12900_v3  ;;  %10851 = vmatprep.mubr.msk.f32.mxu0 %vm11613_vm1, %v11612_v20  ;;  %v6382_v3 = vpop.permute.xlu1 %6381 }
0x35da   :  { %10859 = vmatprep.subr.mxu0 %v11612_v20 }
0x36a7   :  { %v6063_v8 = vpop.f32.mrb[66].mxu0 }
0x36a8   :  { %v10829_v40 = vpop.f32.mrb[67].mxu0  ;;  %10852 = vmatmul.mubr.msk.f32.vlgmr.msra.gmra.mrb[70].mxu0 %vm217_vm2, %v6063_v8 }
0x36a9   :  { %10861 = vmatprep.mubr.msk.f32.mxu0 %vm11613_vm1, %v11612_v20  ;;  %v9915_v40 = vld [vmem:[%s13836_s8 + $0x100] sm:$0xff] }
0x36ab   :  { %v6231_v12 = vpop.f32.mrb[68].mxu0 }
0x36ac   :  { %v10839_v36 = vpop.f32.mrb[69].mxu0  ;;  %10845 = vmatmul.mubr.msk.f32.vlgmr.msra.gmra.mrb[86].mxu1 %vm217_vm2, %v6231_v12  ;;  %v9920_v12 = vld [vmem:[%s13836_s8 + $0x128] sm:$0xff] }
0x36ad   :  { %10855 = vmatpush3.xpose.msk.msra.mxu1 %vm217_vm2, %v6384_v11  ;;  %10856 = vmatprep.mubr.msk.f32.mxu1 %vm11613_vm1, %v11612_v20  ;;  %v9917_v11 = vld [vmem:[%s13836_s8 + $0x110] sm:$0xff]  ;;  %v9922_v36 = vld [vmem:[%s13836_s8 + $0x138] sm:$0xff] }
0x36ae   :  { %11253 = vmatprep.subr.bf16.mxu1 %v11619_v24 }
0x36b0   :  { %10857 = vmatmul.mubr.msk.f32.vlgmr.msra.gmra.mrb[88].mxu1 %vm217_vm2, %v6382_v3 }
0x36b1   :  { %11255 = vmatpush3.bf16.msra.mxu1 %v12938_v60  ;;  %10868 = vmatprep.mubr.msk.f32.mxu1 %vm11613_vm1, %v11612_v20 }
0x36b2   :  { %10876 = vmatprep.subr.mxu1 %v11612_v20 }
0x377b   :  { %v6377_v46 = vpop.f32.mrb[70].mxu0 }
0x377c   :  { %v10853_v57 = vpop.f32.mrb[71].mxu0 }
0x377f   :  { %v6304_v14 = vpop.f32.mrb[86].mxu1 }
0x3780   :  { %v13036_v15 = vadd.f32 %v6377_v46, %v6304_v14  ;;  %v10846_v17 = vpop.f32.mrb[87].mxu1  ;;  %v11261_v46 = vpack.c.bf16 %v9917_v11, %v9915_v40  ;;  %v11263_v14 = vpack.c.bf16 %v9922_v36, %v9920_v12  ;;  %v9959_v40 = vld [vmem:[%s13838_s10 + $0x2c8] sm:$0xff]  ;;  %v9931_v12 = vld [vmem:[%s13837_s9 + $0x4] sm:$0x3] }
0x3781   :  { %v9921_v17 = vld [vmem:[%s13836_s8 + $0x130] sm:$0xff] }
0x3783   :  { %v6455_v22 = vpop.f32.mrb[88].mxu1 }
0x3784   :  { %v6459_v32 = vmul.f32 0.25, %v6455_v22  ;;  %v10858_v42 = vpop.f32.mrb[89].mxu1  ;;  %v9924_v22 = vld [vmem:[%s13836_s8 + $0x148] sm:$0xff] }
0x3786   :  { %v6460_v26 = vsel %vm11805_vm3, %v6459_v32, -1e+30  ;;  %v9926_v32 = vld [vmem:[%s13836_s8 + $0x158] sm:$0xff] }
0x3787   :  { %v6461_v27 = vsel %vm294_vm4, %v6460_v26, -inf }
0x3788   :  { %6462 = vmax.xlane.f32.xlu0 %v6461_v27  ;;  %v9923_v27 = vld [vmem:[%s13836_s8 + $0x140] sm:$0xff] }
0x379e   :  { %6472 = vrot.lane.b32.xlu0 %v12865_v41, %s13865_s29 }
0x37a2   :  { %6622 = vrot.lane.b32.xlu0 %v12863_v54, %s13862_s26 }
0x3815   :  { %v6463_v60 = vpop.xlane.xlu0 %6462 }
0x3816   :  { %v6464_v30 = vsub.f32 %v6460_v26, %v6463_v60  ;;  %v11267_v26 = vpack.c.bf16 %v9926_v32, %v9924_v22  ;;  %v9925_v60 = vld [vmem:[%s13836_s8 + $0x150] sm:$0xff] }
0x3817   :  { %v9944_v32 = vld [vmem:[%s13838_s10 + $0x250] sm:$0xff] }
0x3818   :  { %v6465_v31 = vmul.f32 1.442695, %v6464_v30 }
0x3819   :  { %v6473_v23 = vpop.permute.xlu0 %6472 }
0x381a   :  { %11532 = vpow2.f32 %v6465_v31  ;;  %10860 = vmatpush3.msra.mxu0 %v6473_v23  ;;  %v9928_v31 = vld [vmem:[%s13836_s8 + $0x168] sm:$0xff]  ;;  %v9930_v23 = vld [vmem:[%s13836_s8 + $0x178] sm:$0xff] }
0x381b   :  { %10871 = vmatprep.subr.mxu0 %v11612_v20 }
0x381d   :  { %v6623_v45 = vpop.permute.xlu0 %6622 }
0x3824   :  { %v11533_v9 = vpop.eup %11532 }
0x3825   :  { %v6467_v10 = vsel %vm294_vm4, %v11533_v9, 0.0 }
0x3826   :  { %6468 = vadd.xlane.f32.xlu1 %v6467_v10 }
0x3837   :  { %6624 = vrot.lane.b32.xlu1 %v12863_v54, %s13863_s27 }
0x38b3   :  { %v6469_v6 = vpop.xlane.xlu1 %6468 }
0x38b4   :  { %11534 = vrcp.f32 %v6469_v6  ;;  %v11271_v6 = vpack.c.bf16 %v9930_v23, %v9928_v31 }
0x38b7   :  { %v6625_v43 = vpop.permute.xlu1 %6624 }
0x38be   :  { %v11535_v35 = vpop.eup %11534 }
0x38bf   :  { %v6471_v39 = vmul.f32 %v11535_v35, %v11533_v9  ;;  %v11269_v9 = vpack.c.bf16 %v9925_v60, %v9923_v27  ;;  %v9927_v35 = vld [vmem:[%s13836_s8 + $0x160] sm:$0xff]  ;;  %v9963_v60 = vld [vmem:[%s13838_s10 + $0x2e8] sm:$0xff] }
0x38c0   :  { %v9962_v27 = vld [vmem:[%s13838_s10 + $0x2e0] sm:$0xff] }
0x38c1   :  { %10862 = vmatmul.mubr.msk.f32.vlgmr.msra.gmra.mrb[72].mxu0 %vm294_vm4, %v6471_v39  ;;  %v9929_v39 = vld [vmem:[%s13836_s8 + $0x170] sm:$0xff] }
0x38c2   :  { %10872 = vmatpush3.xpose.msk.msra.mxu0 %vm217_vm2, %v6625_v43  ;;  %10873 = vmatprep.mubr.msk.f32.mxu0 %vm11613_vm1, %v11612_v20  ;;  %v13137_v43 = vld [vmem:[%s13834_s6 + $0x2] ss:$0 sm:$0xff] }
0x38c3   :  { %11256 = vmatprep.subr.bf16.mxu0 %v11619_v24 }
0x38c5   :  { %10874 = vmatmul.mubr.msk.f32.vlgmr.msra.gmra.mrb[74].mxu0 %vm217_vm2, %v6623_v45  ;;  %v11273_v45 = vpack.c.bf16 %v9929_v39, %v9927_v35  ;;  %v9964_v39 = vld [vmem:[%s13838_s10 + $0x2f0] sm:$0xff] }
0x38c6   :  { %11258 = vmatpush3.bf16.msra.mxu0 %v12971_v18  ;;  %10885 = vmatprep.mubr.msk.f32.mxu0 %vm11613_vm1, %v11612_v20 }
0x3994   :  { %v6544_v54 = vpop.f32.mrb[72].mxu0 }
0x3995   :  { %v10863_v44 = vpop.f32.mrb[73].mxu0  ;;  %10869 = vmatmul.mubr.msk.f32.vlgmr.msra.gmra.mrb[90].mxu1 %vm217_vm2, %v6544_v54 }
0x3996   :  { %10878 = vmatprep.mubr.msk.f32.mxu1 %vm11613_vm1, %v11612_v20  ;;  %v13143_v44 = vld [vmem:[%s13835_s7 + $0x2] ss:$0 sm:$0xff] }
0x3998   :  { %v6696_v49 = vpop.f32.mrb[74].mxu0 }
0x3999   :  { %v6700_v18 = vmul.f32 0.25, %v6696_v49  ;;  %v10875_v62 = vpop.f32.mrb[75].mxu0  ;;  %v9950_v49 = vld [vmem:[%s13838_s10 + $0x280] sm:$0xff] }
0x399b   :  { %v6701_v52 = vsel %vm11805_vm3, %v6700_v18, -1e+30  ;;  %v9951_v18 = vld [vmem:[%s13838_s10 + $0x288] sm:$0xff] }
0x399c   :  { %v6702_v21 = vsel %vm294_vm4, %v6701_v52, -inf  ;;  %v11275_v62 = vpack.c.bf16 %v9951_v18, %v9950_v49  ;;  %v9948_v18 = vld [vmem:[%s13838_s10 + $0x270] sm:$0xff] }
0x399d   :  { %6703 = vmax.xlane.f32.xlu1 %v6702_v21  ;;  %v9935_v21 = vld [vmem:[%s13838_s10 + $0x208] sm:$0xff] }
0x399e   :  { %11276 = vmatprep.subr.bf16.mxu0 %v11275_v62  ;;  %v9949_v62 = vld [vmem:[%s13838_s10 + $0x278] sm:$0xff] }
0x39a1   :  { %6880 = vadd.xlane.f32.xlu1 %v6879_v63  ;;  %v9952_v63 = vld [vmem:[%s13838_s10 + $0x290] sm:$0xff] }
0x3a2a   :  { %v6704_v50 = vpop.xlane.xlu1 %6703 }
0x3a2b   :  { %v6705_v51 = vsub.f32 %v6701_v52, %v6704_v50  ;;  %v9934_v52 = vld [vmem:[%s13838_s10 + $0x200] sm:$0xff]  ;;  %v9953_v50 = vld [vmem:[%s13838_s10 + $0x298] sm:$0xff] }
0x3a2d   :  { %v6706_v55 = vmul.f32 1.442695, %v6705_v51  ;;  %v11277_v51 = vpack.c.bf16 %v9935_v21, %v9934_v52  ;;  %v11305_v52 = vpack.c.bf16 %v9949_v62, %v9948_v18  ;;  %v9986_v18 = vld [vmem:[%s13831_s3 + $0x1f0] sm:$0xff] }
0x3a2e   :  { %v6881_v53 = vpop.xlane.xlu1 %6880 }
0x3a2f   :  { %11536 = vpow2.f32 %v6706_v55  ;;  %v6885_v2 = vmul.f32 0.015625, %v6881_v53  ;;  %v11279_v55 = vpack.c.bf16 %v9953_v50, %v9952_v63  ;;  %v9936_v53 = vld [vmem:[%s13838_s10 + $0x210] sm:$0xff] }
0x3a31   :  { %v6887_v56 = vsub.f32 %v13071_v25, %v6885_v2  ;;  %v9937_v2 = vld [vmem:[%s13838_s10 + $0x218] sm:$0xff] }
0x3a33   :  { %v6889_v38 = vmul.f32 %v6887_v56, %v6887_v56 }
0x3a35   :  { %v6891_v58 = vsel %vm63_vm0, %v6889_v38, 0.0  ;;  %v9954_v38 = vld [vmem:[%s13838_s10 + $0x2a0] sm:$0xff] }
0x3a36   :  { %6892 = vadd.xlane.f32.xlu1 %v6891_v58  ;;  %v9955_v58 = vld [vmem:[%s13838_s10 + $0x2a8] sm:$0xff] }
0x3a39   :  { %v11537_v1 = vpop.eup %11536 }
0x3a3a   :  { %v6708_v59 = vsel %vm294_vm4, %v11537_v1, 0.0 }
0x3a3b   :  { %6709 = vadd.xlane.f32.xlu0 %v6708_v59  ;;  %v11281_v59 = vpack.c.bf16 %v9937_v2, %v9936_v53 }
0x3a51   :  { %6713 = vrot.lane.b32.xlu0 %v12865_v41, %s13862_s26 }
0x3a68   :  { %v6617_v29 = vpop.f32.mrb[90].mxu1 }
0x3a69   :  { %v13082_v0 = vadd.f32 %v6617_v29, %v13036_v15  ;;  %v10870_v61 = vpop.f32.mrb[91].mxu1  ;;  %v9919_v15 = vld [vmem:[%s13836_s8 + $0x120] sm:$0xff]  ;;  %v11283_v29 = vpack.c.bf16 %v9955_v58, %v9954_v38 }
0x3a6a   :  { %v11265_v42 = vpack.c.bf16 %v9921_v17, %v9919_v15  ;;  %v9938_v61 = vld [vmem:[%s13838_s10 + $0x220] sm:$0xff]  ;;  %v13219_v15 = vrot.slane %v9931_v12, %v12171_v13 }
0x3ac3   :  { %v6893_v4 = vpop.xlane.xlu1 %6892 }
0x3ac4   :  { %v6897_v34 = vmul.f32 0.015625, %v6893_v4  ;;  %v9939_v4 = vld [vmem:[%s13838_s10 + $0x228] sm:$0xff] }
0x3ac5   :  { %v11285_v19 = vpack.c.bf16 %v9939_v4, %v9938_v61 }
0x3ac6   :  { %v6899_v8 = vadd.f32 1e-05, %v6897_v34  ;;  %v9956_v34 = vld [vmem:[%s13838_s10 + $0x2b0] sm:$0xff] }
0x3ac8   :  { %v6710_v5 = vpop.xlane.xlu0 %6709 }
0x3ac9   :  { %11538 = vrcp.f32 %v6710_v5  ;;  %v11287_v5 = vpack.c.bf16 %v9957_v28, %v9956_v34 }
0x3aca   :  { %11540 = vrsqrt.f32 %v6899_v8  ;;  %v9941_v8 = vld [vmem:[%s13838_s10 + $0x238] sm:$0xff] }
0x3acc   :  { %v6714_v41 = vpop.permute.xlu0 %6713 }
0x3acd   :  { %10877 = vmatpush3.msra.mxu1 %v6714_v41  ;;  %v9958_v41 = vld [vmem:[%s13838_s10 + $0x2c0] sm:$0xff] }
0x3ace   :  { %11260 = vmatprep.subr.bf16.mxu1 %v11259_v7  ;;  %v9940_v7 = vld [vmem:[%s13838_s10 + $0x230] sm:$0xff]  ;;  %v11291_v36 = vpack.c.bf16 %v9959_v40, %v9958_v41 }
0x3acf   :  { %v11289_v11 = vpack.c.bf16 %v9941_v8, %v9940_v7 }
0x3ad3   :  { %v11539_v3 = vpop.eup %11538 }
0x3ad4   :  { %v6712_v57 = vmul.f32 %v11539_v3, %v11537_v1  ;;  %v11541_v30 = vpop.eup %11540  ;;  %v9942_v3 = vld [vmem:[%s13838_s10 + $0x240] sm:$0xff] }
0x3ad5   :  { %v6903_v10 = vmul.f32 %v11541_v30, %v6887_v56 }
0x3ad6   :  { %10879 = vmatmul.mubr.msk.f32.vlgmr.msra.gmra.mrb[92].mxu1 %vm294_vm4, %v6712_v57  ;;  %v9960_v57 = vld [vmem:[%s13838_s10 + $0x2d0] sm:$0xff] }
0x3ad7   :  { %11262 = vmatpush1.bf16.msra.mxu1 %v11261_v46  ;;  %7021 = vmatprep.mubr.f32.mxu1 %v11612_v20  ;;  %v6911_v54 = vmul.f32 %v13137_v43, %v6903_v10  ;;  %v9943_v46 = vld [vmem:[%s13838_s10 + $0x248] sm:$0xff]  ;;  %v9946_v10 = vld [vmem:[%s13838_s10 + $0x260] sm:$0xff] }
0x3ad8   :  { %11264 = vmatprep.subr.bf16.mxu1 %v11263_v14  ;;  %v9961_v14 = vld [vmem:[%s13838_s10 + $0x2d8] sm:$0xff]  ;;  %v11293_v17 = vpack.c.bf16 %v9943_v46, %v9942_v3 }
0x3ad9   :  { %v6919_v47 = vadd.f32 %v13143_v44, %v6911_v54  ;;  %v11295_v22 = vpack.c.bf16 %v9961_v14, %v9960_v57  ;;  %v9973_v57 = vld [vmem:[%s13831_s3 + $0x188] sm:$0xff]  ;;  %v9975_v14 = vld [vmem:[%s13831_s3 + $0x198] sm:$0xff] }
0x3adb   :  { %11266 = vmatpush1.bf16.msra.mxu1 %v11265_v42  ;;  %v9945_v42 = vld [vmem:[%s13838_s10 + $0x258] sm:$0xff] }
0x3adc   :  { %11268 = vmatprep.subr.bf16.mxu1 %v11267_v26  ;;  %v11297_v23 = vpack.c.bf16 %v9945_v42, %v9944_v32  ;;  %v9977_v32 = vld [vmem:[%s13831_s3 + $0x1a8] sm:$0xff]  ;;  %v9979_v42 = vld [vmem:[%s13831_s3 + $0x1b8] sm:$0xff] }
0x3adf   :  { %11270 = vmatpush1.bf16.msra.mxu1 %v11269_v9  ;;  %v11299_v9 = vpack.c.bf16 %v9963_v60, %v9962_v27  ;;  %v9976_v27 = vld [vmem:[%s13831_s3 + $0x1a0] sm:$0xff]  ;;  %v9978_v60 = vld [vmem:[%s13831_s3 + $0x1b0] sm:$0xff] }
0x3ae0   :  { %11272 = vmatprep.subr.bf16.mxu1 %v11271_v6  ;;  %v9947_v6 = vld [vmem:[%s13838_s10 + $0x268] sm:$0xff] }
0x3ae1   :  { %v11301_v54 = vpack.c.bf16 %v9947_v6, %v9946_v10  ;;  %v9980_v10 = vld [vmem:[%s13831_s3 + $0x1c0] sm:$0xff]  ;;  %v9982_v6 = vld [vmem:[%s13831_s3 + $0x1d0] sm:$0xff] }
0x3ae3   :  { %11274 = vmatpush1.bf16.msra.mxu1 %v11273_v45  ;;  %v9965_v45 = vld [vmem:[%s13838_s10 + $0x2f8] sm:$0xff] }
0x3ae4   :  { %v11303_v49 = vpack.c.bf16 %v9965_v45, %v9964_v39  ;;  %v9985_v39 = vld [vmem:[%s13831_s3 + $0x1e8] sm:$0xff]  ;;  %v9987_v45 = vld [vmem:[%s13831_s3 + $0x1f8] sm:$0xff] }
0x3ae6   :  { %9932 = vmatmul.mubr.msk.f32.vlgmr.msra.gmra.mrb[94].mxu1 %vm63_vm0, %v6919_v47  ;;  %v13247_v47 = vrot.slane %v9931_v12, %v12205_v33 }
0x3ae7   :  { %7027 = vmatprep.mubr.f32.mxu1 %v11612_v20 }
0x3ba9   :  { %v6785_v56 = vpop.f32.mrb[92].mxu1 }
0x3baa   :  { %v10880_v1 = vpop.f32.mrb[93].mxu1  ;;  %10886 = vmatmul.mubr.msk.f32.vlgmr.msra.gmra.mrb[76].mxu0 %vm217_vm2, %v6785_v56 }
0x3bab   :  { %11278 = vmatpush3.bf16.msra.mxu0 %v11277_v51 }
0x3bac   :  { %11280 = vmatprep.subr.bf16.mxu0 %v11279_v55 }
0x3baf   :  { %11282 = vmatpush3.bf16.msra.mxu0 %v11281_v59 }
0x3bb0   :  { %11284 = vmatprep.subr.bf16.mxu0 %v11283_v29 }
0x3bb3   :  { %11286 = vmatpush3.bf16.msra.mxu0 %v11285_v19 }
0x3bb4   :  { %11288 = vmatprep.subr.bf16.mxu0 %v11287_v5 }
0x3bb7   :  { %11290 = vmatpush3.bf16.msra.mxu0 %v11289_v11 }
0x3bb8   :  { %11292 = vmatprep.subr.bf16.mxu0 %v11291_v36 }
0x3bb9   :  { %v7023_v26 = vpop.f32.mrb[94].mxu1 }
0x3bba   :  { %v7025_v30 = vpop.f32.mrb[95].mxu1  ;;  %v7024_v21 = vadd.f32 %v7023_v26, %v13247_v47  ;;  %v11311_v26 = vpack.c.bf16 %v9979_v42, %v9977_v32 }
0x3bbb   :  { %v7026_v31 = vadd.f32 %v7025_v30, %v13219_v15  ;;  %11294 = vmatpush3.bf16.msra.mxu0 %v11293_v17  ;;  %v11307_v17 = vpack.c.bf16 %v9975_v14, %v9973_v57  ;;  %v11313_v30 = vpack.c.bf16 %v9978_v60, %v9976_v27 }
0x3bbc   :  { %11296 = vmatprep.subr.bf16.mxu0 %v11295_v22  ;;  %v7034_v63 = vmax.f32 %v7024_v21, 0.0  ;;  %v9972_v22 = vld [vmem:[%s13831_s3 + $0x180] sm:$0xff] }
0x3bbd   :  { %v7035_v35 = vmax.f32 %v7026_v31, 0.0  ;;  %11308 = vmatprep.subr.bf16.mxu1 %v11307_v17  ;;  %v9981_v31 = vld [vmem:[%s13831_s3 + $0x1c8] sm:$0xff] }
0x3bbf   :  { %11298 = vmatpush3.bf16.msra.mxu0 %v11297_v23  ;;  %7135 = vmatprep.mubr.f32.mxu0 %v7035_v35  ;;  %v9983_v23 = vld [vmem:[%s13831_s3 + $0x1d8] sm:$0xff]  ;;  %v11317_v35 = vpack.c.bf16 %v9982_v6, %v9980_v10 }
0x3bc0   :  { %11300 = vmatprep.subr.bf16.mxu0 %v11299_v9  ;;  %v11315_v9 = vpack.c.bf16 %v9983_v23, %v9981_v31 }
0x3bc3   :  { %11302 = vmatpush3.bf16.msra.mxu0 %v11301_v54  ;;  %v11319_v54 = vpack.c.bf16 %v9987_v45, %v9985_v39 }
0x3bc4   :  { %11304 = vmatprep.subr.bf16.mxu0 %v11303_v49  ;;  %v9984_v49 = vld [vmem:[%s13831_s3 + $0x1e0] sm:$0xff] }
0x3bc5   :  { %v11321_v62 = vpack.c.bf16 %v9986_v18, %v9984_v49 }
0x3bc7   :  { %11306 = vmatpush3.bf16.msra.mxu0 %v11305_v52 }
0x3bc8   :  { %10893 = vmatprep.subr.mxu0 %v11612_v20 }
0x3bca   :  { %7136 = vmatmul.mubr.f32.vlgmr.msra.gmra.mrb[78].mxu0 %v7034_v63 }
0x3c7d   :  { %v6858_v50 = vpop.f32.mrb[76].mxu0 }
0x3c7e   :  { %v6862_v51 = vadd.f32 %v6858_v50, %v13082_v0  ;;  %v10887_v55 = vpop.f32.mrb[77].mxu0 }
0x3c80   :  { %v6872_v53 = vadd.f32 %v13061_v16, %v6862_v51  ;;  %v13269_v16 = vld [vmem:[%s13839_s11 + $0x2] ss:$0 sm:$0xff]  ;;  %v9970_v51 = vld [vmem:[%s13829_s1 + $0x3] ss:$0 sm:$0xff]  ;;  %s13866_s1 = smov 48  }
0x3c82   :  { %v13260_v2 = vadd.f32 %v6872_v53, %v12839_v37  ;;  %v9971_v53 = vld [vmem:[%s13830_s2 + $0x3] ss:$0 sm:$0xff]  ;;  %s13867_s2 = smov 112  }
0x3c84   :  { %v6882_v56 = vsel %vm63_vm0, %v13260_v2, 0.0 }
0x3c85   :  { %6883 = vadd.xlane.f32.xlu1 %v6882_v56 }
0x3c9d   :  { %v10370_v38 = vpop.f32.mrb[78].mxu0 }
0x3c9e   :  { %v10371_v58 = vpop.f32.mrb[79].mxu0 }
0x3c9f   :  { %v10372_v1 = vadd.f32 %v10371_v58, %v10370_v38 }
0x3ca1   :  { %v7146_v61 = vadd.f32 %v10372_v1, %v13071_v25 }
0x3ca3   :  { %v13272_v0 = vadd.f32 %v13269_v16, %v7146_v61 }
0x3ca5   :  { %v7162_v28 = vsel %vm63_vm0, %v13272_v0, 0.0 }
0x3d12   :  { %v6884_v59 = vpop.xlane.xlu1 %6883 }
0x3d13   :  { %v6886_v29 = vmul.f32 0.015625, %v6884_v59 }
0x3d15   :  { %v6888_v4 = vsub.f32 %v13260_v2, %v6886_v29 }
0x3d17   :  { %v6890_v37 = vmul.f32 %v6888_v4, %v6888_v4 }
0x3d19   :  { %v6894_v34 = vsel %vm63_vm0, %v6890_v37, 0.0 }
0x3d1a   :  { %6895 = vadd.xlane.f32.xlu1 %v6894_v34 }
0x3d1e   :  { %7163 = vadd.xlane.f32.xlu1 %v7162_v28 }
0x3da7   :  { %v6896_v19 = vpop.xlane.xlu1 %6895 }
0x3da8   :  { %v6898_v25 = vmul.f32 0.015625, %v6896_v19 }
0x3daa   :  { %v6900_v5 = vadd.f32 1e-05, %v6898_v25 }
0x3dab   :  { %v7164_v7 = vpop.xlane.xlu1 %7163 }
0x3dac   :  { %11542 = vrsqrt.f32 %v6900_v5  ;;  %v7168_v8 = vmul.f32 0.015625, %v7164_v7 }
0x3dae   :  { %v7170_v41 = vsub.f32 %v13272_v0, %v7168_v8 }
0x3db0   :  { %v7172_v40 = vmul.f32 %v7170_v41, %v7170_v41 }
0x3db2   :  { %v7174_v11 = vsel %vm63_vm0, %v7172_v40, 0.0 }
0x3db3   :  { %7175 = vadd.xlane.f32.xlu0 %v7174_v11 }
0x3db6   :  { %v11543_v12 = vpop.eup %11542 }
0x3db7   :  { %v6904_v36 = vmul.f32 %v11543_v12, %v6888_v4 }
0x3db9   :  { %v6912_v3 = vmul.f32 %v13137_v43, %v6904_v36  ;;  %v9974_v43 = vld [vmem:[%s13831_s3 + $0x190] sm:$0xff] }
0x3dbb   :  { %v6920_v46 = vadd.f32 %v13143_v44, %v6912_v3  ;;  %v11309_v44 = vpack.c.bf16 %v9974_v43, %v9972_v22 }
0x3dbd   :  { %9933 = vmatmul.mubr.msk.f32.gmra.mrb[96].mxu1 %vm63_vm0, %v6920_v46 }
0x3dbe   :  { %7291 = vmatprep.mubr.f32.mxu1 %v11612_v20  ;;  %11310 = vmatpush1.bf16.msra.mxu1 %v11309_v44 }
0x3dbf   :  { %11312 = vmatprep.subr.bf16.mxu1 %v11311_v26 }
0x3dc2   :  { %11314 = vmatpush1.bf16.msra.mxu1 %v11313_v30 }
0x3dc3   :  { %11316 = vmatprep.subr.bf16.mxu1 %v11315_v9 }
0x3dc6   :  { %11318 = vmatpush1.bf16.msra.mxu1 %v11317_v35 }
0x3dc7   :  { %11320 = vmatprep.subr.bf16.mxu1 %v11319_v54 }
0x3dca   :  { %11322 = vmatpush1.bf16.msra.mxu1 %v11321_v62 }
0x3dcb   :  { %10888 = vmatprep.subr.mxu1 %v11612_v20 }
0x3e40   :  { %v7176_v52 = vpop.xlane.xlu0 %7175 }
0x3e41   :  { %v7180_v21 = vmul.f32 0.015625, %v7176_v52 }
0x3e43   :  { %v7182_v63 = vadd.f32 1e-05, %v7180_v21 }
0x3e45   :  { %11544 = vrsqrt.f32 %v7182_v63  ;;  %v9992_v63 = vld [vmem:[%s13832_s4 + $0xd0] sm:$0xff] }
0x3e4f   :  { %v11545_v50 = vpop.eup %11544 }
0x3e50   :  { %v7186_v55 = vmul.f32 %v11545_v50, %v7170_v41  ;;  %v9993_v50 = vld [vmem:[%s13832_s4 + $0xd8] sm:$0xff] }
0x3e52   :  { %v7194_v56 = vmul.f32 %v9970_v51, %v7186_v55 }
0x3e54   :  { %v7202_v38 = vadd.f32 %v9971_v53, %v7194_v56 }
0x3e56   :  { %9988 = vmatmul.mubr.msk.f32.vlgmr.msra.gmra.mrb[98].mxu1 %vm63_vm0, %v7202_v38 }
0x3e57   :  { %7297 = vmatprep.mubr.f32.mxu1 %v11612_v20 }
0x3e90   :  { %v7029_v58 = vpop.f32.mrb[96].mxu1 }
0x3e91   :  { %v7030_v1 = vadd.f32 %v7029_v58, %v13247_v47  ;;  %v7031_v59 = vpop.f32.mrb[97].mxu1  ;;  %v9990_v58 = vld [vmem:[%s13832_s4 + $0xc0] sm:$0xff] }
0x3e92   :  { %v7032_v29 = vadd.f32 %v7031_v59, %v13219_v15 }
0x3e93   :  { %v7036_v4 = vmax.f32 %v7030_v1, 0.0  ;;  %v9991_v1 = vld [vmem:[%s13832_s4 + $0xc8] sm:$0xff] }
0x3e94   :  { %v7037_v61 = vmax.f32 %v7032_v29, 0.0 }
0x3e96   :  { %7140 = vmatprep.mubr.f32.mxu0 %v7037_v61  ;;  %v13415_v61 = vpack.c.bf16 %v9991_v1, %v9990_v58 }
0x3e97   :  { %7141 = vmatmul.mubr.f32.gmra.mrb[80].mxu0 %v7036_v4 }
0x3e98   :  { %10895 = vmatprep.mubr.msk.f32.mxu0 %vm11613_vm1, %v11612_v20 }
0x3f29   :  { %v13344_v37 = vpop.f32.mrb[98].mxu1 }
0x3f2a   :  { %v13346_v34 = vpop.f32.mrb[99].mxu1 }
0x3f2b   :  { %10894 = vmatpush3.msra.mxu0 %v13346_v34 }
0x3f2c   :  { %10903 = vmatprep.subr.mxu0 %v11612_v20 }
0x3f6a   :  { %v10373_v28 = vpop.f32.mrb[80].mxu0 }
0x3f6b   :  { %v10374_v47 = vpop.f32.mrb[81].mxu0 }
0x3f6c   :  { %v10375_v19 = vadd.f32 %v10374_v47, %v10373_v28 }
0x3f6e   :  { %v7147_v15 = vadd.f32 %v10375_v19, %v13260_v2 }
0x3f70   :  { %v13352_v25 = vadd.f32 %v13269_v16, %v7147_v15 }
0x3f72   :  { %v7165_v5 = vsel %vm63_vm0, %v13352_v25, 0.0 }
0x3f73   :  { %7166 = vadd.xlane.f32.xlu1 %v7165_v5 }
0x4000   :  { %v7167_v7 = vpop.xlane.xlu1 %7166 }
0x4001   :  { %v7169_v8 = vmul.f32 0.015625, %v7167_v7 }
0x4003   :  { %v7171_v41 = vsub.f32 %v13352_v25, %v7169_v8 }
0x4005   :  { %v7173_v40 = vmul.f32 %v7171_v41, %v7171_v41 }
0x4007   :  { %v7177_v11 = vsel %vm63_vm0, %v7173_v40, 0.0 }
0x4008   :  { %7178 = vadd.xlane.f32.xlu1 %v7177_v11 }
0x4019   :  { %7314 = vrot.lane.b32.xlu1 %v13344_v37, %s11615_s18 }
0x401d   :  { %7478 = vrot.lane.b32.xlu1 %v13344_v37, %s13866_s1 }
0x4021   :  { %7476 = vrot.lane.b32.xlu1 %v13344_v37, %s13867_s2 }
0x4095   :  { %v7179_v2 = vpop.xlane.xlu1 %7178 }
0x4096   :  { %v7181_v16 = vmul.f32 0.015625, %v7179_v2 }
0x4098   :  { %v7183_v12 = vadd.f32 1e-05, %v7181_v16 }
0x4099   :  { %v7315_v36 = vpop.permute.xlu1 %7314 }
0x409a   :  { %11546 = vrsqrt.f32 %v7183_v12  ;;  %10889 = vmatpush3.xpose.msk.msra.mxu1 %vm217_vm2, %v7315_v36 }
0x409b   :  { %10898 = vmatprep.subr.mxu1 %v11612_v20 }
0x409d   :  { %v7479_v17 = vpop.permute.xlu1 %7478 }
0x40a1   :  { %v7477_v22 = vpop.permute.xlu1 %7476 }
0x40a4   :  { %v11547_v3 = vpop.eup %11546 }
0x40a5   :  { %v7187_v46 = vmul.f32 %v11547_v3, %v7171_v41 }
0x40a7   :  { %v7195_v57 = vmul.f32 %v9970_v51, %v7187_v46  ;;  %v13400_v51 = vpack.c.bf16 %v9993_v50, %v9992_v63  ;;  %v9996_v50 = vld [vmem:[%s13832_s4 + $0xf0] sm:$0xff] }
0x40a9   :  { %v7203_v14 = vadd.f32 %v9971_v53, %v7195_v57 }
0x40ab   :  { %9989 = vmatmul.mubr.msk.f32.gmra.mrb[100].mxu1 %vm63_vm0, %v7203_v14 }
0x40ac   :  { %10890 = vmatprep.mubr.msk.f32.mxu1 %vm11613_vm1, %v11612_v20 }
0x40af   :  { %10891 = vmatmul.mubr.msk.f32.vlgmr.msra.gmra.mrb[102].mxu1 %vm217_vm2, %v13344_v37 }
0x40b0   :  { %10899 = vmatpush3.xpose.msk.msra.mxu1 %vm217_vm2, %v7479_v17  ;;  %10900 = vmatprep.mubr.msk.f32.mxu1 %vm11613_vm1, %v11612_v20 }
0x40b1   :  { %11323 = vmatprep.subr.bf16.mxu1 %v11619_v24 }
0x40b3   :  { %10901 = vmatmul.mubr.msk.f32.vlgmr.msra.gmra.mrb[104].mxu1 %vm217_vm2, %v7477_v22 }
0x40b4   :  { %10912 = vmatprep.mubr.msk.f32.mxu1 %vm11613_vm1, %v11612_v20  ;;  %11325 = vmatpush3.bf16.msra.mxu1 %v13400_v51 }
0x40b5   :  { %10922 = vmatprep.subr.mxu1 %v11612_v20 }
0x417e   :  { %v13378_v43 = vpop.f32.mrb[100].mxu1 }
0x417f   :  { %v13380_v44 = vpop.f32.mrb[101].mxu1 }
0x4182   :  { %v7386_v32 = vpop.f32.mrb[102].mxu1 }
0x4183   :  { %v7390_v42 = vmul.f32 0.25, %v7386_v32  ;;  %v10892_v26 = vpop.f32.mrb[103].mxu1 }
0x4184   :  { %v9994_v26 = vld [vmem:[%s13832_s4 + $0xe0] sm:$0xff] }
0x4185   :  { %v7391_v27 = vsel %vm11805_vm3, %v7390_v42, -1e+30 }
0x4186   :  { %v7550_v60 = vpop.f32.mrb[104].mxu1  ;;  %v7392_v30 = vsel %vm294_vm4, %v7391_v27, -inf }
0x4187   :  { %v7554_v31 = vmul.f32 0.25, %v7550_v60  ;;  %7393 = vmax.xlane.f32.xlu0 %v7392_v30  ;;  %v10902_v23 = vpop.f32.mrb[105].mxu1 }
0x4189   :  { %v7555_v9 = vsel %vm11805_vm3, %v7554_v31, -1e+30 }
0x418a   :  { %v7556_v10 = vsel %vm294_vm4, %v7555_v9, -inf }
0x418b   :  { %7557 = vmax.xlane.f32.xlu1 %v7556_v10 }
0x4214   :  { %v7394_v6 = vpop.xlane.xlu0 %7393 }
0x4215   :  { %v7395_v35 = vsub.f32 %v7391_v27, %v7394_v6 }
0x4217   :  { %v7396_v39 = vmul.f32 1.442695, %v7395_v35 }
0x4218   :  { %v7558_v45 = vpop.xlane.xlu1 %7557 }
0x4219   :  { %11548 = vpow2.f32 %v7396_v39  ;;  %v7559_v54 = vsub.f32 %v7555_v9, %v7558_v45 }
0x421b   :  { %v7560_v49 = vmul.f32 1.442695, %v7559_v54 }
0x421d   :  { %11550 = vpow2.f32 %v7560_v49 }
0x4223   :  { %v11549_v18 = vpop.eup %11548 }
0x4224   :  { %v7398_v62 = vsel %vm294_vm4, %v11549_v18, 0.0 }
0x4225   :  { %7399 = vadd.xlane.f32.xlu0 %v7398_v62 }
0x4227   :  { %v11551_v52 = vpop.eup %11550 }
0x4228   :  { %v7562_v21 = vsel %vm294_vm4, %v11551_v52, 0.0 }
0x4229   :  { %7563 = vadd.xlane.f32.xlu0 %v7562_v21 }
0x423f   :  { %7568 = vrot.lane.b32.xlu0 %v13346_v34, %s13867_s2 }
0x4243   :  { %7792 = vrot.lane.b32.xlu0 %v13344_v37, %s13864_s28 }
0x4247   :  { %7790 = vrot.lane.b32.xlu0 %v13344_v37, %s13865_s29 }
0x42b2   :  { %v7400_v55 = vpop.xlane.xlu0 %7399 }
0x42b3   :  { %11552 = vrcp.f32 %v7400_v55  ;;  %v9997_v55 = vld [vmem:[%s13832_s4 + $0xf8] sm:$0xff] }
0x42b6   :  { %v7564_v53 = vpop.xlane.xlu0 %7563 }
0x42b7   :  { %11554 = vrcp.f32 %v7564_v53  ;;  %v13487_v53 = vpack.c.bf16 %v9997_v55, %v9996_v50 }
0x42ba   :  { %v7569_v59 = vpop.permute.xlu0 %7568 }
0x42bd   :  { %v11553_v56 = vpop.eup %11552 }
0x42be   :  { %v7402_v38 = vmul.f32 %v11553_v56, %v11549_v18  ;;  %v7793_v19 = vpop.permute.xlu0 %7792 }
0x42c0   :  { %10896 = vmatmul.mubr.msk.f32.vlgmr.msra.gmra.mrb[82].mxu0 %vm294_vm4, %v7402_v38 }
0x42c1   :  { %v11555_v29 = vpop.eup %11554  ;;  %10904 = vmatpush3.msra.mxu0 %v7569_v59  ;;  %10905 = vmatprep.mubr.msk.f32.mxu0 %vm11613_vm1, %v11612_v20 }
0x42c2   :  { %v7566_v4 = vmul.f32 %v11555_v29, %v11551_v52  ;;  %11326 = vmatprep.subr.bf16.mxu0 %v11619_v24  ;;  %v7791_v7 = vpop.permute.xlu0 %7790 }
0x42c4   :  { %10906 = vmatmul.mubr.msk.f32.vlgmr.msra.gmra.mrb[84].mxu0 %vm294_vm4, %v7566_v4 }
0x42c5   :  { %11328 = vmatpush3.bf16.msra.mxu0 %v13415_v61  ;;  %10919 = vmatprep.mubr.msk.f32.mxu0 %vm11613_vm1, %v11612_v20 }
0x42c6   :  { %10927 = vmatprep.subr.mxu0 %v11612_v20 }
0x4393   :  { %v7472_v28 = vpop.f32.mrb[82].mxu0 }
0x4394   :  { %v10897_v47 = vpop.f32.mrb[83].mxu0  ;;  %10920 = vmatmul.mubr.msk.f32.vlgmr.msra.gmra.mrb[86].mxu0 %vm217_vm2, %v7472_v28 }
0x4395   :  { %10929 = vmatprep.mubr.msk.f32.mxu0 %vm11613_vm1, %v11612_v20 }
0x4397   :  { %v7640_v15 = vpop.f32.mrb[84].mxu0 }
0x4398   :  { %v10907_v5 = vpop.f32.mrb[85].mxu0  ;;  %10913 = vmatmul.mubr.msk.f32.vlgmr.msra.gmra.mrb[106].mxu1 %vm217_vm2, %v7640_v15 }
0x4399   :  { %10923 = vmatpush3.xpose.msk.msra.mxu1 %vm217_vm2, %v7793_v19  ;;  %10924 = vmatprep.mubr.msk.f32.mxu1 %vm11613_vm1, %v11612_v20 }
0x439a   :  { %11329 = vmatprep.subr.bf16.mxu1 %v11619_v24 }
0x439c   :  { %10925 = vmatmul.mubr.msk.f32.vlgmr.msra.gmra.mrb[108].mxu1 %vm217_vm2, %v7791_v7 }
0x439d   :  { %10936 = vmatprep.mubr.msk.f32.mxu1 %vm11613_vm1, %v11612_v20 }
0x4467   :  { %v7786_v8 = vpop.f32.mrb[86].mxu0 }
0x4468   :  { %v10921_v41 = vpop.f32.mrb[87].mxu0 }
0x446b   :  { %v7713_v40 = vpop.f32.mrb[106].mxu1 }
0x446c   :  { %v13434_v11 = vadd.f32 %v7786_v8, %v7713_v40  ;;  %v10914_v2 = vpop.f32.mrb[107].mxu1 }
0x446f   :  { %v7864_v16 = vpop.f32.mrb[108].mxu1 }
0x4470   :  { %v7868_v12 = vmul.f32 0.25, %v7864_v16  ;;  %v10926_v36 = vpop.f32.mrb[109].mxu1 }
0x4472   :  { %v7869_v3 = vsel %vm11805_vm3, %v7868_v12, -1e+30 }
0x4473   :  { %v7870_v46 = vsel %vm294_vm4, %v7869_v3, -inf }
0x4474   :  { %7871 = vmax.xlane.f32.xlu1 %v7870_v46 }
0x4485   :  { %7881 = vrot.lane.b32.xlu1 %v13346_v34, %s13865_s29 }
0x4489   :  { %8033 = vrot.lane.b32.xlu1 %v13344_v37, %s13863_s27 }
0x448d   :  { %8031 = vrot.lane.b32.xlu1 %v13344_v37, %s13862_s26  ;;  %v9995_v37 = vld [vmem:[%s13832_s4 + $0xe8] sm:$0xff] }
0x448e   :  { %v13455_v27 = vpack.c.bf16 %v9995_v37, %v9994_v26 }
0x4490   :  { %11331 = vmatpush3.bf16.msra.mxu1 %v13455_v27 }
0x4491   :  { %10944 = vmatprep.subr.mxu1 %v11612_v20 }
0x4501   :  { %v7872_v57 = vpop.xlane.xlu1 %7871 }
0x4502   :  { %v7873_v14 = vsub.f32 %v7869_v3, %v7872_v57 }
0x4504   :  { %v7874_v17 = vmul.f32 1.442695, %v7873_v14 }
0x4505   :  { %v7882_v22 = vpop.permute.xlu1 %7881 }
0x4506   :  { %11556 = vpow2.f32 %v7874_v17  ;;  %10928 = vmatpush3.msra.mxu0 %v7882_v22 }
0x4507   :  { %10939 = vmatprep.subr.mxu0 %v11612_v20 }
0x4509   :  { %v8034_v31 = vpop.permute.xlu1 %8033 }
0x4510   :  { %v11557_v32 = vpop.eup %11556 }
0x4511   :  { %v7876_v42 = vsel %vm294_vm4, %v11557_v32, 0.0 }
0x4512   :  { %7877 = vadd.xlane.f32.xlu0 %v7876_v42 }
0x4528   :  { %8122 = vrot.lane.b32.xlu0 %v13346_v34, %s13862_s26  ;;  %v8032_v34 = vpop.permute.xlu1 %8031 }
0x459f   :  { %v7878_v60 = vpop.xlane.xlu0 %7877 }
0x45a0   :  { %11558 = vrcp.f32 %v7878_v60 }
0x45a3   :  { %v8123_v10 = vpop.permute.xlu0 %8122 }
0x45aa   :  { %v11559_v30 = vpop.eup %11558 }
0x45ab   :  { %v7880_v23 = vmul.f32 %v11559_v30, %v11557_v32 }
0x45ad   :  { %10930 = vmatmul.mubr.msk.f32.vlgmr.msra.gmra.mrb[88].mxu0 %vm294_vm4, %v7880_v23 }
0x45ae   :  { %10940 = vmatpush3.xpose.msk.msra.mxu0 %vm217_vm2, %v8034_v31  ;;  %10941 = vmatprep.mubr.msk.f32.mxu0 %vm11613_vm1, %v11612_v20 }
0x45af   :  { %11332 = vmatprep.subr.bf16.mxu0 %v11619_v24 }
0x45b1   :  { %10942 = vmatmul.mubr.msk.f32.vlgmr.msra.gmra.mrb[90].mxu0 %vm217_vm2, %v8032_v34 }
0x45b2   :  { %10953 = vmatprep.mubr.msk.f32.mxu0 %vm11613_vm1, %v11612_v20  ;;  %11334 = vmatpush3.bf16.msra.mxu0 %v13487_v53 }
0x45b3   :  { %10961 = vmatprep.subr.mxu0 %v11612_v20 }
0x4680   :  { %v7953_v9 = vpop.f32.mrb[88].mxu0 }
0x4681   :  { %v10931_v6 = vpop.f32.mrb[89].mxu0  ;;  %10937 = vmatmul.mubr.msk.f32.vlgmr.msra.gmra.mrb[110].mxu1 %vm217_vm2, %v7953_v9 }
0x4682   :  { %10945 = vmatpush3.msra.mxu1 %v8123_v10  ;;  %10946 = vmatprep.mubr.msk.f32.mxu1 %vm11613_vm1, %v11612_v20 }
0x4683   :  { %10956 = vmatprep.subr.mxu1 %v11612_v20 }
0x4684   :  { %v8105_v35 = vpop.f32.mrb[90].mxu0 }
0x4685   :  { %v8109_v39 = vmul.f32 0.25, %v8105_v35  ;;  %v10943_v45 = vpop.f32.mrb[91].mxu0 }
0x4687   :  { %v8110_v54 = vsel %vm11805_vm3, %v8109_v39, -1e+30 }
0x4688   :  { %v8111_v49 = vsel %vm294_vm4, %v8110_v54, -inf }
0x4689   :  { %8112 = vmax.xlane.f32.xlu1 %v8111_v49 }
0x469a   :  { %8435 = vrot.lane.b32.xlu1 %v13378_v43, %s13867_s2 }
0x4716   :  { %v8113_v18 = vpop.xlane.xlu1 %8112 }
0x4717   :  { %v8114_v62 = vsub.f32 %v8110_v54, %v8113_v18 }
0x4719   :  { %v8115_v52 = vmul.f32 1.442695, %v8114_v62 }
0x471a   :  { %v8436_v47 = vpop.permute.xlu1 %8435 }
0x471b   :  { %11560 = vpow2.f32 %v8115_v52 }
0x4725   :  { %v11561_v21 = vpop.eup %11560 }
0x4726   :  { %v8117_v63 = vsel %vm294_vm4, %v11561_v21, 0.0 }
0x4727   :  { %8118 = vadd.xlane.f32.xlu0 %v8117_v63 }
0x473d   :  { %8273 = vrot.lane.b32.xlu0 %v13378_v43, %s11615_s18 }
0x4741   :  { %8437 = vrot.lane.b32.xlu0 %v13378_v43, %s13866_s1 }
0x4754   :  { %v8026_v56 = vpop.f32.mrb[110].mxu1 }
0x4755   :  { %v8030_v38 = vadd.f32 %v8026_v56, %v13434_v11  ;;  %v10938_v58 = vpop.f32.mrb[111].mxu1 }
0x47b4   :  { %v8119_v1 = vpop.xlane.xlu0 %8118 }
0x47b5   :  { %11562 = vrcp.f32 %v8119_v1 }
0x47b8   :  { %v8274_v4 = vpop.permute.xlu0 %8273 }
0x47bc   :  { %v8438_v28 = vpop.permute.xlu0 %8437 }
0x47bf   :  { %v11563_v59 = vpop.eup %11562 }
0x47c0   :  { %v8121_v29 = vmul.f32 %v11563_v59, %v11561_v21 }
0x47c2   :  { %10947 = vmatmul.mubr.msk.f32.vlgmr.msra.gmra.mrb[112].mxu1 %vm294_vm4, %v8121_v29 }
0x47c3   :  { %10957 = vmatpush3.xpose.msk.msra.mxu1 %vm217_vm2, %v8274_v4  ;;  %10958 = vmatprep.mubr.msk.f32.mxu1 %vm11613_vm1, %v11612_v20 }
0x47c4   :  { %10966 = vmatprep.subr.mxu1 %v11612_v20 }
0x47c6   :  { %10959 = vmatmul.mubr.msk.f32.vlgmr.msra.gmra.mrb[114].mxu1 %vm217_vm2, %v13378_v43 }
0x47c7   :  { %10967 = vmatpush3.xpose.msk.msra.mxu1 %vm217_vm2, %v8438_v28  ;;  %10968 = vmatprep.mubr.msk.f32.mxu1 %vm11613_vm1, %v11612_v20 }
0x47c8   :  { %11335 = vmatprep.subr.bf16.mxu1 %v11619_v24 }
0x47ca   :  { %10969 = vmatmul.mubr.msk.f32.vlgmr.msra.gmra.mrb[116].mxu1 %vm217_vm2, %v8436_v47 }
0x47cb   :  { %11337 = vmatpush3.bf16.msra.mxu1 %v13400_v51  ;;  %10980 = vmatprep.mubr.msk.f32.mxu1 %vm11613_vm1, %v11612_v20 }
0x47cc   :  { %10990 = vmatprep.subr.mxu1 %v11612_v20 }
0x4895   :  { %v8194_v19 = vpop.f32.mrb[112].mxu1 }
0x4896   :  { %v10948_v15 = vpop.f32.mrb[113].mxu1  ;;  %10954 = vmatmul.mubr.msk.f32.vlgmr.msra.gmra.mrb[92].mxu0 %vm217_vm2, %v8194_v19 }
0x4897   :  { %10962 = vmatpush3.msra.mxu0 %v13380_v44  ;;  %10963 = vmatprep.mubr.msk.f32.mxu0 %vm11613_vm1, %v11612_v20 }
0x4898   :  { %10971 = vmatprep.subr.mxu0 %v11612_v20 }
0x4899   :  { %v8345_v5 = vpop.f32.mrb[114].mxu1 }
0x489a   :  { %v8349_v7 = vmul.f32 0.25, %v8345_v5  ;;  %v10960_v8 = vpop.f32.mrb[115].mxu1 }
0x489c   :  { %v8350_v51 = vsel %vm11805_vm3, %v8349_v7, -1e+30 }
0x489d   :  { %v8509_v41 = vpop.f32.mrb[116].mxu1  ;;  %v8351_v40 = vsel %vm294_vm4, %v8350_v51, -inf }
0x489e   :  { %v8513_v11 = vmul.f32 0.25, %v8509_v41  ;;  %8352 = vmax.xlane.f32.xlu0 %v8351_v40  ;;  %v10970_v2 = vpop.f32.mrb[117].mxu1 }
0x48a0   :  { %v8514_v16 = vsel %vm11805_vm3, %v8513_v11, -1e+30 }
0x48a1   :  { %v8515_v12 = vsel %vm294_vm4, %v8514_v16, -inf }
0x48a2   :  { %8516 = vmax.xlane.f32.xlu1 %v8515_v12 }
0x48b3   :  { %8751 = vrot.lane.b32.xlu1 %v13378_v43, %s13864_s28 }
0x492b   :  { %v8353_v36 = vpop.xlane.xlu0 %8352 }
0x492c   :  { %v8354_v3 = vsub.f32 %v8350_v51, %v8353_v36  ;;  %v10031_v51 = vld [vmem:[%s13833_s5 + $0x3] ss:$0 sm:$0xff] }
0x492e   :  { %v8355_v46 = vmul.f32 1.442695, %v8354_v3 }
0x492f   :  { %v8517_v57 = vpop.xlane.xlu1 %8516 }
0x4930   :  { %11564 = vpow2.f32 %v8355_v46  ;;  %v8518_v14 = vsub.f32 %v8514_v16, %v8517_v57 }
0x4932   :  { %v8519_v17 = vmul.f32 1.442695, %v8518_v14 }
0x4933   :  { %v8752_v49 = vpop.permute.xlu1 %8751 }
0x4934   :  { %11566 = vpow2.f32 %v8519_v17 }
0x493a   :  { %v11565_v22 = vpop.eup %11564 }
0x493b   :  { %v8357_v32 = vsel %vm294_vm4, %v11565_v22, 0.0 }
0x493c   :  { %8358 = vadd.xlane.f32.xlu0 %v8357_v32 }
0x493e   :  { %v11567_v42 = vpop.eup %11566 }
0x493f   :  { %v8521_v26 = vsel %vm294_vm4, %v11567_v42, 0.0 }
0x4940   :  { %8522 = vadd.xlane.f32.xlu0 %v8521_v26 }
0x4956   :  { %8527 = vrot.lane.b32.xlu0 %v13380_v44, %s13867_s2 }
0x495a   :  { %8749 = vrot.lane.b32.xlu0 %v13378_v43, %s13865_s29 }
0x4969   :  { %v8267_v37 = vpop.f32.mrb[92].mxu0 }
0x496a   :  { %v13527_v60 = vadd.f32 %v8267_v37, %v8030_v38  ;;  %v10955_v30 = vpop.f32.mrb[93].mxu0 }
0x49c9   :  { %v8359_v31 = vpop.xlane.xlu0 %8358 }
0x49ca   :  { %11568 = vrcp.f32 %v8359_v31 }
0x49cd   :  { %v8523_v23 = vpop.xlane.xlu0 %8522 }
0x49ce   :  { %11570 = vrcp.f32 %v8523_v23 }
0x49d1   :  { %v8528_v10 = vpop.permute.xlu0 %8527 }
0x49d4   :  { %v11569_v34 = vpop.eup %11568 }
0x49d5   :  { %v8361_v9 = vmul.f32 %v11569_v34, %v11565_v22 }
0x49d7   :  { %10964 = vmatmul.mubr.msk.f32.vlgmr.msra.gmra.mrb[94].mxu0 %vm294_vm4, %v8361_v9 }
0x49d8   :  { %v11571_v6 = vpop.eup %11570  ;;  %10972 = vmatpush3.msra.mxu0 %v8528_v10  ;;  %10973 = vmatprep.mubr.msk.f32.mxu0 %vm11613_vm1, %v11612_v20 }
0x49d9   :  { %v8525_v35 = vmul.f32 %v11571_v6, %v11567_v42  ;;  %11338 = vmatprep.subr.bf16.mxu0 %v11619_v24 }
0x49db   :  { %10974 = vmatmul.mubr.msk.f32.vlgmr.msra.gmra.mrb[96].mxu0 %vm294_vm4, %v8525_v35 }
0x49dc   :  { %11340 = vmatpush3.bf16.msra.mxu0 %v13415_v61  ;;  %10987 = vmatprep.mubr.msk.f32.mxu0 %vm11613_vm1, %v11612_v20  ;;  %v8750_v61 = vpop.permute.xlu0 %8749 }
0x49dd   :  { %10995 = vmatprep.subr.mxu0 %v11612_v20 }
0x4aaa   :  { %v8431_v39 = vpop.f32.mrb[94].mxu0 }
0x4aab   :  { %v10965_v45 = vpop.f32.mrb[95].mxu0  ;;  %10988 = vmatmul.mubr.msk.f32.vlgmr.msra.gmra.mrb[98].mxu0 %vm217_vm2, %v8431_v39 }
0x4aac   :  { %10997 = vmatprep.mubr.msk.f32.mxu0 %vm11613_vm1, %v11612_v20 }
0x4aae   :  { %v8599_v54 = vpop.f32.mrb[96].mxu0 }
0x4aaf   :  { %v10975_v18 = vpop.f32.mrb[97].mxu0  ;;  %10981 = vmatmul.mubr.msk.f32.vlgmr.msra.gmra.mrb[118].mxu1 %vm217_vm2, %v8599_v54 }
0x4ab0   :  { %10991 = vmatpush3.xpose.msk.msra.mxu1 %vm217_vm2, %v8752_v49  ;;  %10992 = vmatprep.mubr.msk.f32.mxu1 %vm11613_vm1, %v11612_v20  ;;  %v10037_v49 = vld [vmem:[%s13836_s8 + $0x188] sm:$0xff]  ;;  %v10039_v18 = vld [vmem:[%s13836_s8 + $0x198] sm:$0xff] }
0x4ab1   :  { %11341 = vmatprep.subr.bf16.mxu1 %v11619_v24 }
0x4ab3   :  { %10993 = vmatmul.mubr.msk.f32.vlgmr.msra.gmra.mrb[120].mxu1 %vm217_vm2, %v8750_v61  ;;  %v11347_v61 = vpack.c.bf16 %v10039_v18, %v10037_v49  ;;  %v10062_v49 = vld [vmem:[%s13838_s10 + $0x338] sm:$0xff]  ;;  %v10079_v18 = vld [vmem:[%s13838_s10 + $0x3c0] sm:$0xff] }
0x4ab4   :  { %11343 = vmatpush3.bf16.msra.mxu1 %v13455_v27  ;;  %11004 = vmatprep.mubr.msk.f32.mxu1 %vm11613_vm1, %v11612_v20 }
0x4ab5   :  { %11012 = vmatprep.subr.mxu1 %v11612_v20 }
0x4b7e   :  { %v8745_v62 = vpop.f32.mrb[98].mxu0 }
0x4b7f   :  { %v10989_v52 = vpop.f32.mrb[99].mxu0 }
0x4b82   :  { %v8672_v21 = vpop.f32.mrb[118].mxu1 }
0x4b83   :  { %v8746_v63 = vadd.f32 %v8745_v62, %v8672_v21  ;;  %v10982_v50 = vpop.f32.mrb[119].mxu1  ;;  %v10038_v62 = vld [vmem:[%s13836_s8 + $0x190] sm:$0xff]  ;;  %v10041_v21 = vld [vmem:[%s13836_s8 + $0x1a8] sm:$0xff] }
0x4b86   :  { %v8823_v55 = vpop.f32.mrb[120].mxu1 }
0x4b87   :  { %v8827_v56 = vmul.f32 0.25, %v8823_v55  ;;  %v10994_v38 = vpop.f32.mrb[121].mxu1  ;;  %v10040_v55 = vld [vmem:[%s13836_s8 + $0x1a0] sm:$0xff] }
0x4b89   :  { %v8828_v58 = vsel %vm11805_vm3, %v8827_v56, -1e+30  ;;  %v10042_v56 = vld [vmem:[%s13836_s8 + $0x1b0] sm:$0xff] }
0x4b8a   :  { %v8829_v1 = vsel %vm294_vm4, %v8828_v58, -inf  ;;  %v11353_v38 = vpack.c.bf16 %v10042_v56, %v10040_v55 }
0x4b8b   :  { %8830 = vmax.xlane.f32.xlu0 %v8829_v1  ;;  %v10047_v1 = vld [vmem:[%s13836_s8 + $0x1d8] sm:$0xff] }
0x4ba1   :  { %8840 = vrot.lane.b32.xlu0 %v13380_v44, %s13865_s29 }
0x4ba5   :  { %8990 = vrot.lane.b32.xlu0 %v13378_v43, %s13862_s26 }
0x4c18   :  { %v8831_v27 = vpop.xlane.xlu0 %8830 }
0x4c19   :  { %v8832_v59 = vsub.f32 %v8828_v58, %v8831_v27  ;;  %v10045_v58 = vld [vmem:[%s13836_s8 + $0x1c8] sm:$0xff] }
0x4c1a   :  { %v11355_v27 = vpack.c.bf16 %v10047_v1, %v10045_v58  ;;  %v10066_v58 = vld [vmem:[%s13838_s10 + $0x358] sm:$0xff]  ;;  %v10083_v1 = vld [vmem:[%s13838_s10 + $0x3e0] sm:$0xff] }
0x4c1b   :  { %v8833_v29 = vmul.f32 1.442695, %v8832_v59  ;;  %v10044_v59 = vld [vmem:[%s13836_s8 + $0x1c0] sm:$0xff] }
0x4c1c   :  { %v8841_v4 = vpop.permute.xlu0 %8840 }
0x4c1d   :  { %11572 = vpow2.f32 %v8833_v29  ;;  %10996 = vmatpush3.msra.mxu0 %v8841_v4  ;;  %v10046_v29 = vld [vmem:[%s13836_s8 + $0x1d0] sm:$0xff] }
0x4c1e   :  { %11007 = vmatprep.subr.mxu0 %v11612_v20  ;;  %v11357_v4 = vpack.c.bf16 %v10046_v29, %v10044_v59 }
0x4c20   :  { %v8991_v8 = vpop.permute.xlu0 %8990 }
0x4c27   :  { %v11573_v28 = vpop.eup %11572 }
0x4c28   :  { %v8835_v47 = vsel %vm294_vm4, %v11573_v28, 0.0 }
0x4c29   :  { %8836 = vadd.xlane.f32.xlu1 %v8835_v47  ;;  %v10051_v47 = vld [vmem:[%s13836_s8 + $0x1f8] sm:$0xff] }
0x4c3a   :  { %8992 = vrot.lane.b32.xlu1 %v13378_v43, %s13863_s27 }
0x4cb6   :  { %v8837_v19 = vpop.xlane.xlu1 %8836 }
0x4cb7   :  { %11574 = vrcp.f32 %v8837_v19  ;;  %v10048_v19 = vld [vmem:[%s13836_s8 + $0x1e0] sm:$0xff] }
0x4cba   :  { %v8993_v7 = vpop.permute.xlu1 %8992 }
0x4cc1   :  { %v11575_v15 = vpop.eup %11574 }
0x4cc2   :  { %v8839_v5 = vmul.f32 %v11575_v15, %v11573_v28  ;;  %v10049_v28 = vld [vmem:[%s13836_s8 + $0x1e8] sm:$0xff] }
0x4cc3   :  { %v11359_v15 = vpack.c.bf16 %v10051_v47, %v10049_v28  ;;  %v10068_v28 = vld [vmem:[%s13838_s10 + $0x368] sm:$0xff] }
0x4cc4   :  { %10998 = vmatmul.mubr.msk.f32.vlgmr.msra.gmra.mrb[100].mxu0 %vm294_vm4, %v8839_v5  ;;  %v10050_v5 = vld [vmem:[%s13836_s8 + $0x1f0] sm:$0xff] }
0x4cc5   :  { %11008 = vmatpush3.xpose.msk.msra.mxu0 %vm217_vm2, %v8993_v7  ;;  %11009 = vmatprep.mubr.msk.f32.mxu0 %vm11613_vm1, %v11612_v20  ;;  %v11361_v7 = vpack.c.bf16 %v10050_v5, %v10048_v19  ;;  %v10085_v19 = vld [vmem:[%s13838_s10 + $0x3f0] sm:$0xff] }
0x4cc6   :  { %11344 = vmatprep.subr.bf16.mxu0 %v11619_v24  ;;  %v9239_v24 = vadd.f32 %v10031_v51, %v13527_v60 }
0x4cc8   :  { %11010 = vmatmul.mubr.msk.f32.vlgmr.msra.gmra.mrb[102].mxu0 %vm217_vm2, %v8991_v8  ;;  %v13581_v16 = vadd.f32 %v9239_v24, %v13272_v0 }
0x4cc9   :  { %11346 = vmatpush3.bf16.msra.mxu0 %v13487_v53  ;;  %11021 = vmatprep.mubr.msk.f32.mxu0 %vm11613_vm1, %v11612_v20 }
0x4cca   :  { %v9247_v36 = vsel %vm63_vm0, %v13581_v16, 0.0 }
0x4d97   :  { %v8912_v43 = vpop.f32.mrb[100].mxu0 }
0x4d98   :  { %v10999_v41 = vpop.f32.mrb[101].mxu0  ;;  %11005 = vmatmul.mubr.msk.f32.vlgmr.msra.gmra.mrb[122].mxu1 %vm217_vm2, %v8912_v43 }
0x4d99   :  { %11014 = vmatprep.mubr.msk.f32.mxu1 %vm11613_vm1, %v11612_v20 }
0x4d9b   :  { %v9064_v40 = vpop.f32.mrb[102].mxu0 }
0x4d9c   :  { %v9068_v11 = vmul.f32 0.25, %v9064_v40  ;;  %v11011_v2 = vpop.f32.mrb[103].mxu0 }
0x4d9e   :  { %v9069_v53 = vsel %vm11805_vm3, %v9068_v11, -1e+30 }
0x4d9f   :  { %v9070_v12 = vsel %vm294_vm4, %v9069_v53, -inf }
0x4da0   :  { %9071 = vmax.xlane.f32.xlu1 %v9070_v12  ;;  %v13656_v12 = vld [vmem:[%s13834_s6 + $0x3] ss:$0 sm:$0xff] }
0x4da4   :  { %9248 = vadd.xlane.f32.xlu1 %v9247_v36 }
0x4e2d   :  { %v9072_v3 = vpop.xlane.xlu1 %9071 }
0x4e2e   :  { %v9073_v46 = vsub.f32 %v9069_v53, %v9072_v3  ;;  %v13661_v3 = vld [vmem:[%s13835_s7 + $0x3] ss:$0 sm:$0xff] }
0x4e30   :  { %v9074_v57 = vmul.f32 1.442695, %v9073_v46 }
0x4e31   :  { %v9249_v31 = vpop.xlane.xlu1 %9248 }
0x4e32   :  { %11576 = vpow2.f32 %v9074_v57  ;;  %v9253_v23 = vmul.f32 0.015625, %v9249_v31  ;;  %v10076_v31 = vld [vmem:[%s13838_s10 + $0x3a8] sm:$0xff] }
0x4e34   :  { %v9255_v10 = vsub.f32 %v13581_v16, %v9253_v23 }
0x4e36   :  { %v9257_v45 = vmul.f32 %v9255_v10, %v9255_v10 }
0x4e38   :  { %v9259_v54 = vsel %vm63_vm0, %v9257_v45, 0.0 }
0x4e3c   :  { %v11577_v14 = vpop.eup %11576 }
0x4e3d   :  { %v9076_v17 = vsel %vm294_vm4, %v11577_v14, 0.0 }
0x4e3e   :  { %9077 = vadd.xlane.f32.xlu0 %v9076_v17  ;;  %v10072_v17 = vld [vmem:[%s13838_s10 + $0x388] sm:$0xff] }
0x4e54   :  { %9081 = vrot.lane.b32.xlu0 %v13380_v44, %s13862_s26 }
0x4e6b   :  { %v8985_v48 = vpop.f32.mrb[122].mxu1 }
0x4e6c   :  { %v8989_v0 = vadd.f32 %v8985_v48, %v8746_v63  ;;  %v11006_v22 = vpop.f32.mrb[123].mxu1  ;;  %v10043_v63 = vld [vmem:[%s13836_s8 + $0x1b8] sm:$0xff]  ;;  %v10055_v48 = vld [vmem:[%s13838_s10 + $0x300] sm:$0xff] }
0x4e6d   :  { %v11351_v50 = vpack.c.bf16 %v10043_v63, %v10041_v21  ;;  %v10056_v22 = vld [vmem:[%s13838_s10 + $0x308] sm:$0xff]  ;;  %v10081_v63 = vld [vmem:[%s13838_s10 + $0x3d0] sm:$0xff] }
0x4e6e   :  { %v10064_v21 = vld [vmem:[%s13838_s10 + $0x348] sm:$0xff] }
0x4ecb   :  { %v9078_v32 = vpop.xlane.xlu0 %9077 }
0x4ecc   :  { %11578 = vrcp.f32 %v9078_v32  ;;  %v10074_v32 = vld [vmem:[%s13838_s10 + $0x398] sm:$0xff] }
0x4ecf   :  { %v9082_v42 = vpop.permute.xlu0 %9081 }
0x4ed0   :  { %11013 = vmatpush3.msra.mxu1 %v9082_v42  ;;  %v11365_v42 = vpack.c.bf16 %v10056_v22, %v10055_v48 }
0x4ed1   :  { %11348 = vmatprep.subr.bf16.mxu1 %v11347_v61  ;;  %v10080_v61 = vld [vmem:[%s13838_s10 + $0x3c8] sm:$0xff] }
0x4ed6   :  { %v11579_v26 = vpop.eup %11578 }
0x4ed7   :  { %v9080_v37 = vmul.f32 %v11579_v26, %v11577_v14  ;;  %v10071_v14 = vld [vmem:[%s13838_s10 + $0x380] sm:$0xff] }
0x4ed9   :  { %11015 = vmatmul.mubr.msk.f32.vlgmr.msra.gmra.mrb[124].mxu1 %vm294_vm4, %v9080_v37  ;;  %v10057_v37 = vld [vmem:[%s13838_s10 + $0x310] sm:$0xff] }
0x4eda   :  { %9389 = vmatprep.mubr.f32.mxu1 %v11612_v20 }
0x4fac   :  { %v9153_v60 = vpop.f32.mrb[124].mxu1 }
0x4fad   :  { %v11016_v30 = vpop.f32.mrb[125].mxu1  ;;  %11022 = vmatmul.mubr.msk.f32.vlgmr.msra.gmra.mrb[104].mxu0 %vm217_vm2, %v9153_v60  ;;  %v10058_v60 = vld [vmem:[%s13838_s10 + $0x318] sm:$0xff] }
0x4fae   :  { %v10075_v30 = vld [vmem:[%s13838_s10 + $0x3a0] sm:$0xff]  ;;  %v11369_v23 = vpack.c.bf16 %v10058_v60, %v10057_v37 }
0x5080   :  { %v9226_v44 = vpop.f32.mrb[104].mxu0 }
0x5081   :  { %v9230_v34 = vadd.f32 %v9226_v44, %v8989_v0  ;;  %v11023_v9 = vpop.f32.mrb[105].mxu0  ;;  %v11363_v0 = vpack.c.bf16 %v10072_v17, %v10071_v14  ;;  %v11371_v44 = vpack.c.bf16 %v10076_v31, %v10075_v30 }
0x5082   :  { %v10060_v9 = vld [vmem:[%s13838_s10 + $0x328] sm:$0xff] }
0x5083   :  { %v9240_v6 = vadd.f32 %v10031_v51, %v9230_v34  ;;  %11364 = vmatprep.subr.bf16.mxu0 %v11363_v0  ;;  %v10059_v34 = vld [vmem:[%s13838_s10 + $0x320] sm:$0xff] }
0x5084   :  { %11366 = vmatpush3.bf16.msra.mxu0 %v11365_v42 }
0x5085   :  { %v13594_v35 = vadd.f32 %v9240_v6, %v13352_v25  ;;  %v10036_v25 = vld [vmem:[%s13836_s8 + $0x180] sm:$0xff]  ;;  %v10078_v6 = vld [vmem:[%s13838_s10 + $0x3b8] sm:$0xff] }
0x5086   :  { %v11349_v52 = vpack.c.bf16 %v10038_v62, %v10036_v25  ;;  %v11379_v62 = vpack.c.bf16 %v10080_v61, %v10079_v18 }
0x5087   :  { %v9250_v39 = vsel %vm63_vm0, %v13594_v35, 0.0 }
0x5088   :  { %9251 = vadd.xlane.f32.xlu1 %v9250_v39  ;;  %11350 = vmatpush1.bf16.msra.mxu1 %v11349_v52  ;;  %v11373_v39 = vpack.c.bf16 %v10060_v9, %v10059_v34  ;;  %v10063_v52 = vld [vmem:[%s13838_s10 + $0x340] sm:$0xff] }
0x5089   :  { %11352 = vmatprep.subr.bf16.mxu1 %v11351_v50  ;;  %v10082_v50 = vld [vmem:[%s13838_s10 + $0x3d8] sm:$0xff]  ;;  %v11381_v55 = vpack.c.bf16 %v10064_v21, %v10063_v52 }
0x508a   :  { %v11383_v56 = vpack.c.bf16 %v10082_v50, %v10081_v63 }
0x508c   :  { %9260 = vadd.xlane.f32.xlu1 %v9259_v54  ;;  %11354 = vmatpush1.bf16.msra.mxu1 %v11353_v38  ;;  %v10061_v54 = vld [vmem:[%s13838_s10 + $0x330] sm:$0xff] }
0x508d   :  { %11356 = vmatprep.subr.bf16.mxu1 %v11355_v27  ;;  %v11377_v25 = vpack.c.bf16 %v10062_v49, %v10061_v54  ;;  %v10065_v38 = vld [vmem:[%s13838_s10 + $0x350] sm:$0xff]  ;;  %v10084_v27 = vld [vmem:[%s13838_s10 + $0x3e8] sm:$0xff] }
0x508e   :  { %v11385_v59 = vpack.c.bf16 %v10066_v58, %v10065_v38  ;;  %v11387_v29 = vpack.c.bf16 %v10084_v27, %v10083_v1  ;;  %v10089_v38 = vld [vmem:[%s13840_s12] ss:$0 sm:$0xff] }
0x508f   :  { %v10090_v1 = vld [vmem:[%s13841_s13] ss:$0 sm:$0xff] }
0x5090   :  { %11358 = vmatpush1.bf16.msra.mxu1 %v11357_v4  ;;  %v10067_v4 = vld [vmem:[%s13838_s10 + $0x360] sm:$0xff] }
0x5091   :  { %11360 = vmatprep.subr.bf16.mxu1 %v11359_v15  ;;  %v11389_v47 = vpack.c.bf16 %v10068_v28, %v10067_v4  ;;  %v10086_v15 = vld [vmem:[%s13838_s10 + $0x3f8] sm:$0xff]  ;;  %v9571_v4 = vld [vmem:[%s13842_s14 + $0x8] sm:$0xff] }
0x5092   :  { %v11391_v5 = vpack.c.bf16 %v10086_v15, %v10085_v19  ;;  %v9573_v19 = vld [vmem:[%s13842_s14 + $0x18] sm:$0xff] }
0x5094   :  { %11362 = vmatpush1.bf16.msra.mxu1 %v11361_v7  ;;  %v10069_v7 = vld [vmem:[%s13838_s10 + $0x370] sm:$0xff] }
0x5115   :  { %v9252_v8 = vpop.xlane.xlu1 %9251 }
0x5116   :  { %v9254_v43 = vmul.f32 0.015625, %v9252_v8  ;;  %v10070_v8 = vld [vmem:[%s13838_s10 + $0x378] sm:$0xff] }
0x5118   :  { %v13648_v51 = vsub.f32 %v13594_v35, %v9254_v43  ;;  %v11393_v43 = vpack.c.bf16 %v10070_v8, %v10069_v7  ;;  %v9575_v7 = vld [vmem:[%s13842_s14 + $0x28] sm:$0xff] }
0x5119   :  { %v9261_v41 = vpop.xlane.xlu1 %9260 }
0x511a   :  { %v9265_v24 = vmul.f32 0.015625, %v9261_v41  ;;  %v9258_v40 = vmul.f32 %v13648_v51, %v13648_v51 }
0x511c   :  { %v9267_v11 = vadd.f32 1e-05, %v9265_v24  ;;  %v9262_v2 = vsel %vm63_vm0, %v9258_v40, 0.0 }
0x511d   :  { %9263 = vadd.xlane.f32.xlu1 %v9262_v2 }
0x511e   :  { %11580 = vrsqrt.f32 %v9267_v11 }
0x5128   :  { %v11581_v53 = vpop.eup %11580 }
0x5129   :  { %v9271_v36 = vmul.f32 %v11581_v53, %v9255_v10  ;;  %v10077_v10 = vld [vmem:[%s13838_s10 + $0x3b0] sm:$0xff] }
0x512a   :  { %v11375_v45 = vpack.c.bf16 %v10078_v6, %v10077_v10 }
0x512b   :  { %v9279_v46 = vmul.f32 %v13656_v12, %v9271_v36 }
0x512d   :  { %v9287_v57 = vadd.f32 %v13661_v3, %v9279_v46  ;;  %v10052_v46 = vld [vmem:[%s13837_s9 + $0x6] sm:$0x3] }
0x512e   :  { %v9316_v14 = vrot.slane %v10052_v46, %v12171_v13  ;;  %v10088_v13 = vld [vmem:[%s13839_s11 + $0x3] ss:$0 sm:$0xff] }
0x512f   :  { %10053 = vmatmul.mubr.msk.f32.vlgmr.msra.gmra.mrb[126].mxu1 %vm63_vm0, %v9287_v57  ;;  %v9312_v57 = vrot.slane %v10052_v46, %v12205_v33 }
0x5130   :  { %9395 = vmatprep.mubr.f32.mxu1 %v11612_v20  ;;  %v10073_v20 = vld [vmem:[%s13838_s10 + $0x390] sm:$0xff] }
0x5131   :  { %v11367_v26 = vpack.c.bf16 %v10074_v32, %v10073_v20 }
0x5133   :  { %11368 = vmatprep.subr.bf16.mxu0 %v11367_v26 }
0x5134   :  { %11370 = vmatpush3.bf16.msra.mxu0 %v11369_v23 }
0x5135   :  { %11372 = vmatprep.subr.bf16.mxu0 %v11371_v44 }
0x5138   :  { %11374 = vmatpush3.bf16.msra.mxu0 %v11373_v39 }
0x5139   :  { %11376 = vmatprep.subr.bf16.mxu0 %v11375_v45 }
0x513c   :  { %11378 = vmatpush3.bf16.msra.mxu0 %v11377_v25 }
0x513d   :  { %11380 = vmatprep.subr.bf16.mxu0 %v11379_v62 }
0x5140   :  { %11382 = vmatpush3.bf16.msra.mxu0 %v11381_v55 }
0x5141   :  { %11384 = vmatprep.subr.bf16.mxu0 %v11383_v56 }
0x5144   :  { %11386 = vmatpush3.bf16.msra.mxu0 %v11385_v59 }
0x5145   :  { %11388 = vmatprep.subr.bf16.mxu0 %v11387_v29  ;;  %v9570_v29 = vld [vmem:[%s13842_s14] sm:$0xff] }
0x5146   :  { %v11395_v28 = vpack.c.bf16 %v9571_v4, %v9570_v29 }
0x5148   :  { %11390 = vmatpush3.bf16.msra.mxu0 %v11389_v47  ;;  %11396 = vmatprep.subr.bf16.mxu1 %v11395_v28  ;;  %v9572_v47 = vld [vmem:[%s13842_s14 + $0x10] sm:$0xff] }
0x5149   :  { %11392 = vmatprep.subr.bf16.mxu0 %v11391_v5  ;;  %11398 = vmatpush3.bf16.msra.mxu1 %v11395_v28  ;;  %v11399_v15 = vpack.c.bf16 %v9573_v19, %v9572_v47  ;;  %v9574_v5 = vld [vmem:[%s13842_s14 + $0x20] sm:$0xff] }
0x514a   :  { %v11403_v8 = vpack.c.bf16 %v9575_v7, %v9574_v5 }
0x514b   :  { %11400 = vmatprep.subr.bf16.mxu1 %v11399_v15 }
0x514c   :  { %11394 = vmatpush3.bf16.msra.mxu0 %v11393_v43  ;;  %v9576_v43 = vld [vmem:[%s13842_s14 + $0x30] sm:$0xff] }
0x514d   :  { %11402 = vmatpush3.bf16.msra.mxu1 %v11399_v15 }
0x514e   :  { %11404 = vmatprep.subr.bf16.mxu1 %v11403_v8 }
0x5151   :  { %11406 = vmatpush3.bf16.msra.mxu1 %v11403_v8 }
0x51aa   :  { %v9264_v41 = vpop.xlane.xlu1 %9263 }
0x51ab   :  { %v9266_v24 = vmul.f32 0.015625, %v9264_v41  ;;  %v9577_v41 = vld [vmem:[%s13842_s14 + $0x38] sm:$0xff]  ;;  %s11588_s14 = scalar_lea.vmem %s9674_s0, 256 }
0x51ac   :  { %p11589_p0 = scmp.ne.s32.totalorder %s9674_s0, %s11588_s14  ;;  %p11594_p2 = scmp.lt.s32.totalorder %s11588_s14, %s11588_s14 }
0x51ad   :  { %v9268_v40 = vadd.f32 1e-05, %v9266_v24  ;;  %v11407_v24 = vpack.c.bf16 %v9577_v41, %v9576_v43 }
0x51ae   :  { %p11595_p3 = por %p11594_p2, %p11593_p1 }
0x51af   :  { %11582 = vrsqrt.f32 %v9268_v40  ;;  %11408 = vmatprep.subr.bf16.mxu1 %v11407_v24 }
0x51b0   :  { %11410 = vmatpush3.bf16.msra.mxu1 %v11407_v24  ;;  %p11596_p4 = pnand %p11595_p3, %p11589_p0 }
0x51b9   :  { %v11583_v11 = vpop.eup %11582 }
0x51ba   :  { %v9272_v2 = vmul.f32 %v11583_v11, %v13648_v51 }
0x51bc   :  { %v9280_v53 = vmul.f32 %v13656_v12, %v9272_v2 }
0x51be   :  { %v9288_v36 = vadd.f32 %v13661_v3, %v9280_v53 }
0x51c0   :  { %10054 = vmatmul.mubr.msk.f32.gmra.mrb[128].mxu1 %vm63_vm0, %v9288_v36 }
0x5202   :  { %v9391_v17 = vpop.f32.mrb[126].mxu1 }
0x5203   :  { %v9392_v48 = vadd.f32 %v9391_v17, %v9312_v57  ;;  %v9393_v0 = vpop.f32.mrb[127].mxu1 }
0x5204   :  { %v9394_v22 = vadd.f32 %v9393_v0, %v9316_v14 }
0x5205   :  { %v9402_v51 = vmax.f32 %v9392_v48, 0.0 }
0x5206   :  { %v9403_v20 = vmax.f32 %v9394_v22, 0.0 }
0x5208   :  { %9503 = vmatprep.mubr.f32.mxu0 %v9403_v20 }
0x5209   :  { %9504 = vmatmul.mubr.f32.vlgmr.msra.gmra.mrb[106].mxu0 %v9402_v51 }
0x5293   :  { %v9397_v12 = vpop.f32.mrb[128].mxu1 }
0x5294   :  { %v9398_v3 = vadd.f32 %v9397_v12, %v9312_v57  ;;  %v9399_v32 = vpop.f32.mrb[129].mxu1 }
0x5295   :  { %v9400_v42 = vadd.f32 %v9399_v32, %v9316_v14  ;;  %v10091_v14 = vld [vmem:[%s13843_s15] ss:$0 sm:$0xff] }
0x5296   :  { %v9404_v37 = vmax.f32 %v9398_v3, 0.0 }
0x5297   :  { %v9405_v26 = vmax.f32 %v9400_v42, 0.0 }
0x5299   :  { %9508 = vmatprep.mubr.f32.mxu0 %v9405_v26 }
0x529a   :  { %9509 = vmatmul.mubr.f32.gmra.mrb[108].mxu0 %v9404_v37 }
0x52dc   :  { %v10464_v60 = vpop.f32.mrb[106].mxu0 }
0x52dd   :  { %v10465_v33 = vpop.f32.mrb[107].mxu0 }
0x52de   :  { %v10466_v30 = vadd.f32 %v10465_v33, %v10464_v60 }
0x52e0   :  { %v9514_v31 = vadd.f32 %v10466_v30, %v13581_v16 }
0x52e2   :  { %v9524_v23 = vadd.f32 %v10088_v13, %v9514_v31 }
0x52e4   :  { %v9528_v44 = vsel %vm63_vm0, %v9524_v23, 0.0 }
0x52e5   :  { %9529 = vadd.xlane.f32.xlu1 %v9528_v44 }
0x536d   :  { %v10467_v34 = vpop.f32.mrb[108].mxu0 }
0x536e   :  { %v10468_v9 = vpop.f32.mrb[109].mxu0 }
0x536f   :  { %v10469_v10 = vadd.f32 %v10468_v9, %v10467_v34 }
0x5371   :  { %v9515_v6 = vadd.f32 %v10469_v10, %v13594_v35 }
0x5372   :  { %v9530_v39 = vpop.xlane.xlu1 %9529 }
0x5373   :  { %v9534_v45 = vmul.f32 0.015625, %v9530_v39  ;;  %v9525_v54 = vadd.f32 %v10088_v13, %v9515_v6 }
0x5375   :  { %v9536_v49 = vsub.f32 %v9524_v23, %v9534_v45  ;;  %v9531_v18 = vsel %vm63_vm0, %v9525_v54, 0.0 }
0x5376   :  { %9532 = vadd.xlane.f32.xlu0 %v9531_v18 }
0x5377   :  { %v9538_v61 = vmul.f32 %v9536_v49, %v9536_v49 }
0x5379   :  { %v9540_v25 = vsel %vm63_vm0, %v9538_v61, 0.0 }
0x537a   :  { %9541 = vadd.xlane.f32.xlu1 %v9540_v25 }
0x5403   :  { %v9533_v16 = vpop.xlane.xlu0 %9532 }
0x5404   :  { %v9535_v62 = vmul.f32 0.015625, %v9533_v16 }
0x5406   :  { %v9537_v52 = vsub.f32 %v9525_v54, %v9535_v62 }
0x5407   :  { %v9542_v21 = vpop.xlane.xlu1 %9541 }
0x5408   :  { %v9546_v63 = vmul.f32 0.015625, %v9542_v21  ;;  %v9539_v50 = vmul.f32 %v9537_v52, %v9537_v52 }
0x540a   :  { %v9548_v55 = vadd.f32 1e-05, %v9546_v63  ;;  %v9543_v35 = vsel %vm63_vm0, %v9539_v50, 0.0 }
0x540b   :  { %9544 = vadd.xlane.f32.xlu1 %v9543_v35 }
0x540c   :  { %11584 = vrsqrt.f32 %v9548_v55 }
0x5416   :  { %v11585_v56 = vpop.eup %11584 }
0x5417   :  { %v9552_v58 = vmul.f32 %v11585_v56, %v9536_v49 }
0x5419   :  { %v9560_v27 = vmul.f32 %v10089_v38, %v9552_v58 }
0x541b   :  { %v9568_v59 = vadd.f32 %v10090_v1, %v9560_v27 }
0x541d   :  { %11040 = vmatprep.mubr.msk.f32.mxu1 %vm63_vm0, %v9568_v59 }
0x5498   :  { %v9545_v40 = vpop.xlane.xlu1 %9544 }
0x5499   :  { %v9547_v11 = vmul.f32 0.015625, %v9545_v40 }
0x549b   :  { %v9549_v2 = vadd.f32 1e-05, %v9547_v11 }
0x549d   :  { %11586 = vrsqrt.f32 %v9549_v2 }
0x54a7   :  { %v11587_v53 = vpop.eup %11586 }
0x54a8   :  { %v9553_v36 = vmul.f32 %v11587_v53, %v9537_v52 }
0x54aa   :  { %v9561_v46 = vmul.f32 %v10089_v38, %v9553_v36 }
0x54ac   :  { %v9569_v57 = vadd.f32 %v10090_v1, %v9561_v46 }
0x54ae   :  { %11041 = vmatmul.mubr.msk.f32.vlgmr.msra.gmra.mrb[130].mxu1 %vm63_vm0, %v9569_v57 }
0x5581   :  { %v11042_v17 = vpop.f32.mrb[130].mxu1 }
0x5582   :  { %v9663_v48 = vadd.f32 %v11042_v17, %v10091_v14  ;;  %v9657_v0 = vpop.f32.mrb[131].mxu1 }
0x5583   :  { %v9658_v22 = vadd.f32 %v10091_v14, %v9657_v0 }
0x5584   :  { %9667 = vst [vmem:[#allocation2 + $0x8] sm:$0xff] %v9663_v48 }
0x5585   :  { %9666 = vst [vmem:[#allocation2] sm:$0xff] %v9658_v22 }
0x5586   :  { %11599 = shalt.err (!%p11596_p4)
}
0x5587   :  { %s11600_s15 = scalar_lea.hbm %s13844_s16, 256 }
0x5588   :  { %p11601_p5 = scmp.ne.s32.totalorder %s13844_s16, %s11600_s15  ;;  %p11604_p6 = scmp.lt.u32.totalorder %s11600_s15, %s13844_s16 }
0x558a   :  { %p11606_p7 = pnand %p11604_p6, %p11601_p5 }
0x558c   :  { %11609 = shalt.err (!%p11606_p7)
}
0x558d   :  { %s11623_s3 = smov 128   ;;  %s11624_s17 = smov 8  }
0x558e   :  { %9679 = dma.vmem_to_hbm [thread:$0]  %s9674_s0, 256, %s13844_s16, [#allocation3], %s11623_s3, %s11623_s3, %s11624_s17  }
0x558f   :  { %11610 = dma.done.wait [#allocation3], 256  }
0x5590   :  { %11611 = vsyncadd [#allocation3], 4294967040 }
0x5591   :  { %9683 = vsyncpa [#allocation3], 1 }

</bundles_post_ra>
